<compile_context>
chip_gen: v7x
topology: tpu7x:2x2x1
jax: 0.10.0
libtpu: 0.0.40
codegen_flags: <defaults>
</compile_context>

<pallas_src>
import functools

import jax
import jax.numpy as jnp
from jax import lax
from jax.experimental import pallas as pl
from jax.experimental.pallas import tpu as pltpu

EPS = 1e-5
NEG_INF = -1e30


# ------------------------------- helpers ----------------------------------- #

def _pick_tile(dim, pref, align):
    """Largest tile <= pref that is a multiple of `align` and divides `dim`;
    falls back to the full dim (always legal for BlockSpec)."""
    if dim <= pref:
        return dim
    t = (pref // align) * align
    while t >= align:
        if dim % t == 0:
            return t
        t -= align
    return dim


def _cparams(dims):
    return pltpu.CompilerParams(
        dimension_semantics=dims,
        vmem_limit_bytes=64 * 1024 * 1024,   # fits v7x (64 MiB) and v5e/v6e
    )


# ----------------------------- Pallas kernels ------------------------------ #

def _norm_matmul_kernel(x_ref, g_ref, w_ref, o_ref):
    # Fused RMSNorm + matmul: o = (rmsnorm(x) * gamma) @ w   (full-K per tile).
    x = x_ref[...].astype(jnp.float32)
    ms = jnp.mean(x * x, axis=-1, keepdims=True)
    h = x * lax.rsqrt(ms + EPS) * g_ref[...].astype(jnp.float32)
    o_ref[...] = jnp.dot(
        h.astype(w_ref.dtype), w_ref[...], preferred_element_type=jnp.float32
    ).astype(o_ref.dtype)


def _matmul_resid_kernel(x_ref, w_ref, r_ref, o_ref, acc_ref):
    # K-tiled matmul with f32 accumulator; residual added at finalize.
    @pl.when(pl.program_id(2) == 0)
    def _():
        acc_ref[...] = jnp.zeros_like(acc_ref)

    acc_ref[...] += jnp.dot(x_ref[...], w_ref[...],
                            preferred_element_type=jnp.float32)

    @pl.when(pl.program_id(2) == pl.num_programs(2) - 1)
    def _():
        o_ref[...] = (acc_ref[...] + r_ref[...].astype(jnp.float32)).astype(o_ref.dtype)


def _ffn_kernel(x_ref, g_ref, w1_ref, w3_ref, w2_ref, o_ref, acc_ref):
    # Fused RMSNorm + SwiGLU FFN + residual, tiled over d_ff (axis 1 of grid).
    j = pl.program_id(1)

    @pl.when(j == 0)
    def _():
        acc_ref[...] = jnp.zeros_like(acc_ref)

    x = x_ref[...].astype(jnp.float32)
    ms = jnp.mean(x * x, axis=-1, keepdims=True)
    h = (x * lax.rsqrt(ms + EPS) * g_ref[...].astype(jnp.float32)).astype(w1_ref.dtype)

    a = jnp.dot(h, w1_ref[...], preferred_element_type=jnp.float32)
    b = jnp.dot(h, w3_ref[...], preferred_element_type=jnp.float32)
    gated = (a * jax.nn.sigmoid(a) * b).astype(w2_ref.dtype)   # silu gate in f32
    acc_ref[...] += jnp.dot(gated, w2_ref[...], preferred_element_type=jnp.float32)

    @pl.when(j == pl.num_programs(1) - 1)
    def _():
        o_ref[...] = (acc_ref[...] + x).astype(o_ref.dtype)    # residual fused


def _flash_attn_kernel(q_ref, k_ref, v_ref, cq_ref, sq_ref, ck_ref, sk_ref,
                       o_ref, m_sc, l_sc, acc_sc, *, scale):
    # Flash attention (online softmax) with fused half-split RoPE and causal
    # KV-block skipping. One (batch*head) per grid axis 0.
    qi = pl.program_id(1)
    ki = pl.program_id(2)
    bq = q_ref.shape[0]
    bkv = k_ref.shape[0]
    half = q_ref.shape[1] // 2

    @pl.when(ki == 0)
    def _():
        m_sc[...] = jnp.full_like(m_sc, NEG_INF)
        l_sc[...] = jnp.zeros_like(l_sc)
        acc_sc[...] = jnp.zeros_like(acc_sc)

    @pl.when(ki * bkv <= qi * bq + (bq - 1))        # skip fully-masked KV blocks
    def _():
        q = q_ref[...].astype(jnp.float32)
        k = k_ref[...].astype(jnp.float32)
        # half-split RoPE (Wq / Wk columns pre-permuted to match interleaved conv.)
        q = q * cq_ref[...] + pltpu.roll(q, half, axis=1) * sq_ref[...]
        k = k * ck_ref[...] + pltpu.roll(k, half, axis=1) * sk_ref[...]

        s = jnp.dot(q.astype(q_ref.dtype), k.astype(k_ref.dtype).T,
                    preferred_element_type=jnp.float32) * scale
        row = qi * bq + lax.broadcasted_iota(jnp.int32, (bq, bkv), 0)
        col = ki * bkv + lax.broadcasted_iota(jnp.int32, (bq, bkv), 1)
        s = jnp.where(col <= row, s, NEG_INF)

        m_prev = m_sc[...]
        m_new = jnp.maximum(m_prev, jnp.max(s, axis=-1, keepdims=True))
        alpha = jnp.exp(m_prev - m_new)
        p = jnp.exp(s - m_new)
        l_sc[...] = alpha * l_sc[...] + jnp.sum(p, axis=-1, keepdims=True)
        acc_sc[...] = alpha * acc_sc[...] + jnp.dot(
            p.astype(v_ref.dtype), v_ref[...], preferred_element_type=jnp.float32)
        m_sc[...] = m_new

    @pl.when(ki == pl.num_programs(2) - 1)
    def _():
        o_ref[...] = (acc_sc[...] *
                      pl.reciprocal(l_sc[...], approx=True)).astype(o_ref.dtype)


# ----------------------------- Pallas wrappers ----------------------------- #

def rmsnorm_matmul(x, gamma, w_t, *, out_dtype, tm_pref=256, tn_pref=512):
    m, d = x.shape
    n = w_t.shape[1]
    tm = _pick_tile(m, tm_pref, 8)
    tn = _pick_tile(n, tn_pref, 128)
    return pl.pallas_call(
        _norm_matmul_kernel,
        out_shape=jax.ShapeDtypeStruct((m, n), out_dtype),
        grid=(m // tm, n // tn),
        in_specs=[pl.BlockSpec((tm, d), lambda i, j: (i, 0)),
                  pl.BlockSpec((1, d), lambda i, j: (0, 0)),
                  pl.BlockSpec((d, tn), lambda i, j: (0, j))],
        out_specs=pl.BlockSpec((tm, tn), lambda i, j: (i, j)),
        compiler_params=_cparams(("parallel", "parallel")),
    )(x, gamma, w_t)


def matmul_residual(x, w_t, residual, *, tm_pref=256, tn_pref=256, tk_pref=512):
    m, kdim = x.shape
    n = w_t.shape[1]
    tm = _pick_tile(m, tm_pref, 8)
    tn = _pick_tile(n, tn_pref, 128)
    tk = _pick_tile(kdim, tk_pref, 128)
    return pl.pallas_call(
        _matmul_resid_kernel,
        out_shape=jax.ShapeDtypeStruct((m, n), residual.dtype),
        grid=(m // tm, n // tn, kdim // tk),
        in_specs=[pl.BlockSpec((tm, tk), lambda i, j, k: (i, k)),
                  pl.BlockSpec((tk, tn), lambda i, j, k: (k, j)),
                  pl.BlockSpec((tm, tn), lambda i, j, k: (i, j))],
        out_specs=pl.BlockSpec((tm, tn), lambda i, j, k: (i, j)),
        scratch_shapes=[pltpu.VMEM((tm, tn), jnp.float32)],
        compiler_params=_cparams(("parallel", "parallel", "arbitrary")),
    )(x, w_t, residual)


def rmsnorm_swiglu_ffn(x, gamma, w1_t, w3_t, w2_t, *, tm_pref=256, tf_pref=512):
    m, d = x.shape
    f = w1_t.shape[1]
    tm = _pick_tile(m, tm_pref, 8)
    tf = _pick_tile(f, tf_pref, 128)
    return pl.pallas_call(
        _ffn_kernel,
        out_shape=jax.ShapeDtypeStruct((m, d), x.dtype),
        grid=(m // tm, f // tf),
        in_specs=[pl.BlockSpec((tm, d), lambda i, j: (i, 0)),
                  pl.BlockSpec((1, d), lambda i, j: (0, 0)),
                  pl.BlockSpec((d, tf), lambda i, j: (0, j)),
                  pl.BlockSpec((d, tf), lambda i, j: (0, j)),
                  pl.BlockSpec((tf, d), lambda i, j: (j, 0))],
        out_specs=pl.BlockSpec((tm, d), lambda i, j: (i, 0)),
        scratch_shapes=[pltpu.VMEM((tm, d), jnp.float32)],
        compiler_params=_cparams(("parallel", "arbitrary")),
    )(x, gamma, w1_t, w3_t, w2_t)


def flash_causal_attention(q, k, v, rope_cos, rope_sin, *, bq_pref=256, bkv_pref=256):
    # q, k, v: (B*H, S, d_head); rope tables: (S, d_head) f32.
    bh, s, dh = q.shape
    bq = _pick_tile(s, bq_pref, 8)
    bkv = _pick_tile(s, bkv_pref, 128)
    scale = 1.0 / (dh ** 0.5)
    kernel = functools.partial(_flash_attn_kernel, scale=scale)
    q_spec = pl.BlockSpec((None, bq, dh), lambda b, qi, ki: (b, qi, 0))
    kv_spec = pl.BlockSpec((None, bkv, dh), lambda b, qi, ki: (b, ki, 0))
    return pl.pallas_call(
        kernel,
        out_shape=jax.ShapeDtypeStruct((bh, s, dh), q.dtype),
        grid=(bh, s // bq, s // bkv),
        in_specs=[q_spec, kv_spec, kv_spec,
                  pl.BlockSpec((bq, dh), lambda b, qi, ki: (qi, 0)),
                  pl.BlockSpec((bq, dh), lambda b, qi, ki: (qi, 0)),
                  pl.BlockSpec((bkv, dh), lambda b, qi, ki: (ki, 0)),
                  pl.BlockSpec((bkv, dh), lambda b, qi, ki: (ki, 0))],
        out_specs=q_spec,
        scratch_shapes=[pltpu.VMEM((bq, 1), jnp.float32),
                        pltpu.VMEM((bq, 1), jnp.float32),
                        pltpu.VMEM((bq, dh), jnp.float32)],
        compiler_params=_cparams(("parallel", "parallel", "arbitrary")),
    )(q, k, v, rope_cos, rope_sin, rope_cos, rope_sin)


# ------------------------------- Model glue -------------------------------- #

def rope_tables(seq_len, dh, theta):
    half = dh // 2
    inv_freq = 1.0 / (theta ** (jnp.arange(half, dtype=jnp.float32) * 2.0 / dh))
    ang = jnp.arange(seq_len, dtype=jnp.float32)[:, None] * inv_freq[None, :]
    cos = jnp.cos(ang)
    sin = jnp.sin(ang)
    # half-split layout: out = x * cos_full + roll(x, dh/2) * sin_signed
    cos_full = jnp.concatenate([cos, cos], axis=-1)
    sin_signed = jnp.concatenate([-sin, sin], axis=-1)
    return cos_full, sin_signed


def init_params(key, vocab_size, d_model, num_layers, num_heads, d_ff):
    dh = d_model // num_heads

    def lin(k, out_dim, in_dim):
        # PyTorch Linear-style weight (out, in), transposed for x @ W^T.
        return (0.02 * jax.random.normal(k, (out_dim, in_dim), dtype=jnp.float32)).T

    # Permute Wq/Wk output columns per head (even dims first, odd second) so the
    # in-kernel half-split RoPE matches the original interleaved convention exactly.
    perm_head = jnp.concatenate([jnp.arange(0, dh, 2), jnp.arange(1, dh, 2)])
    perm = (jnp.arange(num_heads)[:, None] * dh + perm_head[None, :]).reshape(-1)

    keys = jax.random.split(key, 2 + num_layers)
    params = {
        "emb": 0.02 * jax.random.normal(keys[0], (vocab_size, d_model), dtype=jnp.float32),
        "g_final": jnp.ones((1, d_model), jnp.float32),
        "lm_head_T": lin(keys[1], vocab_size, d_model).astype(jnp.bfloat16),
        "layers": [],
    }
    for li in range(num_layers):
        lk = jax.random.split(keys[2 + li], 7)
        wq_t = lin(lk[0], d_model, d_model)[:, perm]
        wk_t = lin(lk[1], d_model, d_model)[:, perm]
        wv_t = lin(lk[2], d_model, d_model)
        params["layers"].append({
            "g1": jnp.ones((1, d_model), jnp.float32),
            "g2": jnp.ones((1, d_model), jnp.float32),
            "wqkv_T": jnp.concatenate([wq_t, wk_t, wv_t], axis=1).astype(jnp.bfloat16),
            "wo_T": lin(lk[3], d_model, d_model).astype(jnp.bfloat16),
            "w1_T": lin(lk[4], d_ff, d_model).astype(jnp.bfloat16),
            "w3_T": lin(lk[5], d_ff, d_model).astype(jnp.bfloat16),
            "w2_T": lin(lk[6], d_model, d_ff).astype(jnp.bfloat16),
        })
    return params


def transformer_lm_forward(token_ids, params, *, num_heads, rope_theta):
    b, s = token_ids.shape
    vocab, d_model = params["emb"].shape
    dh = d_model // num_heads
    m = b * s

    cos_t, sin_t = rope_tables(s, dh, rope_theta)

    # TODO(synk): embedding lookup is a data-dependent row gather; kept in plain JAX.
    x = jnp.take(params["emb"], token_ids, axis=0).astype(jnp.bfloat16)
    x = x.reshape(m, d_model)

    for layer in params["layers"]:
        # fused RMSNorm + QKV projection (one matmul for Q, K and V)
        qkv = rmsnorm_matmul(x, layer["g1"], layer["wqkv_T"], out_dtype=jnp.bfloat16)
        # TODO(synk): head split/merge still uses XLA transposes; could be folded into
        # the attention BlockSpecs when d_head is a multiple of 128.
        qkv = qkv.reshape(b, s, 3, num_heads, dh).transpose(2, 0, 3, 1, 4)
        qkv = qkv.reshape(3, b * num_heads, s, dh)
        attn = flash_causal_attention(qkv[0], qkv[1], qkv[2], cos_t, sin_t)
        attn = attn.reshape(b, num_heads, s, dh).transpose(0, 2, 1, 3).reshape(m, d_model)
        # output projection with fused residual add
        x = matmul_residual(attn, layer["wo_T"], x)
        # fused RMSNorm + SwiGLU FFN + residual
        x = rmsnorm_swiglu_ffn(x, layer["g2"], layer["w1_T"], layer["w3_T"], layer["w2_T"])

    # fused final RMSNorm + LM head (f32 logits)
    logits = rmsnorm_matmul(x, params["g_final"], params["lm_head_T"],
                            out_dtype=jnp.float32)
    return logits.reshape(b, s, vocab)


if __name__ == "__main__":
    # Small config consistent with the module's constructor (d_head = 128 lane-aligned).
    vocab_size = 512
    context_length = 64
    d_model = 256
    num_layers = 2
    num_heads = 2
    d_ff = 512
    rope_theta = 10000.0

    batch, seq = 2, 64

    key = jax.random.PRNGKey(0)
    pkey, tkey = jax.random.split(key)
    params = init_params(pkey, vocab_size, d_model, num_layers, num_heads, d_ff)
    token_ids = jax.random.randint(tkey, (batch, seq), 0, vocab_size, dtype=jnp.int32)

    fwd = jax.jit(functools.partial(
        transformer_lm_forward, num_heads=num_heads, rope_theta=rope_theta))
    logits = fwd(token_ids, params)
    jax.block_until_ready(logits)

    assert logits.shape == (batch, seq, vocab_size)
    assert logits.dtype == jnp.float32
    assert bool(jnp.all(jnp.isfinite(logits)))
    print("KERNEL_OK")
</pallas_src>

<mosaic_0001>
module attributes {stable_mosaic.version = 11 : i64} {
  func.func @_norm_matmul_kernel(%arg0: i32, %arg1: i32, %arg2: memref<128x256xbf16, #tpu.memory_space<vmem>>, %arg3: memref<1x256xf32, #tpu.memory_space<vmem>>, %arg4: memref<256x384xbf16, #tpu.memory_space<vmem>>, %arg5: memref<128x384xbf16, #tpu.memory_space<vmem>>) attributes {dimension_semantics = [#tpu.dimension_semantics<parallel>, #tpu.dimension_semantics<parallel>], iteration_bounds = array<i64: 1, 2>, scalar_prefetch = 0 : i64, scratch_operands = 0 : i64, tpu.core_type = #tpu.core_type<tc>, window_params = [{transform_indices = @transform_0, window_bounds = array<i64: 128, 256>}, {pipeline_mode = #tpu.pipeline_mode<synchronous>, transform_indices = @transform_1, window_bounds = array<i64: 1, 256>}, {transform_indices = @transform_2, window_bounds = array<i64: 256, 384>}, {transform_indices = @transform_3, window_bounds = array<i64: 128, 384>}]} {
    %c0 = arith.constant 0 : index
    %c0_0 = arith.constant 0 : index
    %0 = vector.load %arg2[%c0, %c0_0] : memref<128x256xbf16, #tpu.memory_space<vmem>>, vector<128x256xbf16>
    %1 = arith.extf %0 : vector<128x256xbf16> to vector<128x256xf32>
    %2 = arith.mulf %1, %1 : vector<128x256xf32>
    %cst = arith.constant dense<0.000000e+00> : vector<128xf32>
    %3 = vector.multi_reduction <add>, %2, %cst [1] : vector<128x256xf32> to vector<128xf32>
    %4 = vector.shape_cast %3 : vector<128xf32> to vector<128x1xf32>
    %cst_1 = arith.constant 2.560000e+02 : f32
    %5 = vector.broadcast %cst_1 : f32 to vector<128x1xf32>
    %6 = arith.divf %4, %5 : vector<128x1xf32>
    %cst_2 = arith.constant 9.99999974E-6 : f32
    %7 = vector.broadcast %cst_2 : f32 to vector<128x1xf32>
    %8 = arith.addf %6, %7 : vector<128x1xf32>
    %9 = math.rsqrt %8 : vector<128x1xf32>
    %10 = vector.broadcast %9 : vector<128x1xf32> to vector<128x256xf32>
    %11 = arith.mulf %1, %10 : vector<128x256xf32>
    %c0_3 = arith.constant 0 : index
    %c0_4 = arith.constant 0 : index
    %12 = vector.load %arg3[%c0_3, %c0_4] : memref<1x256xf32, #tpu.memory_space<vmem>>, vector<1x256xf32>
    %13 = vector.broadcast %12 : vector<1x256xf32> to vector<128x256xf32>
    %14 = arith.mulf %11, %13 : vector<128x256xf32>
    %15 = arith.truncf %14 : vector<128x256xf32> to vector<128x256xbf16>
    %c0_5 = arith.constant 0 : index
    %c0_6 = arith.constant 0 : index
    %16 = vector.load %arg4[%c0_5, %c0_6] : memref<256x384xbf16, #tpu.memory_space<vmem>>, vector<256x384xbf16>
    %cst_7 = arith.constant dense<0.000000e+00> : vector<128x384xf32>
    %17 = tpu.matmul %15, %16, %cst_7 {dimension_numbers = #tpu.dot_dimension_numbers<[1], [0], [0], [1], [0, 0, 1, 1], [], []>} : vector<128x256xbf16>, vector<256x384xbf16>, vector<128x384xf32> -> vector<128x384xf32>
    %18 = arith.truncf %17 : vector<128x384xf32> to vector<128x384xbf16>
    %c0_8 = arith.constant 0 : index
    %c0_9 = arith.constant 0 : index
    %19 = vector.load %arg5[%c0_8, %c0_9] : memref<128x384xbf16, #tpu.memory_space<vmem>>, vector<128x384xbf16>
    tpu.vector_store %arg5[%c0_8, %c0_9], %18 {strides = array<i32>} : memref<128x384xbf16, #tpu.memory_space<vmem>>, vector<128x384xbf16>,
    return
  }
  func.func @transform_0(%arg0: i32, %arg1: i32) -> (i32, i32) {
    %c0_i32 = arith.constant 0 : i32
    %c0_i32_0 = arith.constant 0 : i32
    return %arg0, %c0_i32 : i32, i32
  }
  func.func @transform_1(%arg0: i32, %arg1: i32) -> (i32, i32) {
    %c0_i32 = arith.constant 0 : i32
    %c0_i32_0 = arith.constant 0 : i32
    %c0_i32_1 = arith.constant 0 : i32
    return %c0_i32, %c0_i32_0 : i32, i32
  }
  func.func @transform_2(%arg0: i32, %arg1: i32) -> (i32, i32) {
    %c0_i32 = arith.constant 0 : i32
    %c0_i32_0 = arith.constant 0 : i32
    return %c0_i32, %arg1 : i32, i32
  }
  func.func @transform_3(%arg0: i32, %arg1: i32) -> (i32, i32) {
    %c0_i32 = arith.constant 0 : i32
    return %arg0, %arg1 : i32, i32
  }
}

module attributes {stable_mosaic.version = 11 : i64} {
  func.func @_flash_attn_kernel(%arg0: i32, %arg1: i32, %arg2: i32, %arg3: memref<1x64x128xbf16, #tpu.memory_space<vmem>>, %arg4: memref<1x64x128xbf16, #tpu.memory_space<vmem>>, %arg5: memref<1x64x128xbf16, #tpu.memory_space<vmem>>, %arg6: memref<64x128xf32, #tpu.memory_space<vmem>>, %arg7: memref<64x128xf32, #tpu.memory_space<vmem>>, %arg8: memref<64x128xf32, #tpu.memory_space<vmem>>, %arg9: memref<64x128xf32, #tpu.memory_space<vmem>>, %arg10: memref<1x64x128xbf16, #tpu.memory_space<vmem>>, %arg11: memref<64x1xf32, #tpu.memory_space<vmem>>, %arg12: memref<64x1xf32, #tpu.memory_space<vmem>>, %arg13: memref<64x128xf32, #tpu.memory_space<vmem>>) attributes {dimension_semantics = [#tpu.dimension_semantics<parallel>, #tpu.dimension_semantics<parallel>, #tpu.dimension_semantics<arbitrary>], iteration_bounds = array<i64: 4, 1, 1>, scalar_prefetch = 0 : i64, scratch_operands = 3 : i64, tpu.core_type = #tpu.core_type<tc>, window_params = [{transform_indices = @transform_0, window_bounds = array<i64: 1, 64, 128>}, {transform_indices = @transform_1, window_bounds = array<i64: 1, 64, 128>}, {transform_indices = @transform_2, window_bounds = array<i64: 1, 64, 128>}, {transform_indices = @transform_3, window_bounds = array<i64: 64, 128>}, {transform_indices = @transform_4, window_bounds = array<i64: 64, 128>}, {transform_indices = @transform_5, window_bounds = array<i64: 64, 128>}, {transform_indices = @transform_6, window_bounds = array<i64: 64, 128>}, {transform_indices = @transform_7, window_bounds = array<i64: 1, 64, 128>}]} {
    %c0_i32 = arith.constant 0 : i32
    %0 = arith.cmpi eq, %arg2, %c0_i32 : i32
    %1 = arith.extui %0 : i1 to i32
    %c0_i32_0 = arith.constant 0 : i32
    %2 = arith.cmpi ne, %1, %c0_i32_0 : i32
    scf.if %2 {
      %cst = arith.constant -1.000000e+30 : f32
      %12 = vector.broadcast %cst : f32 to vector<64x1xf32>
      %c0 = arith.constant 0 : index
      %c0_5 = arith.constant 0 : index
      %13 = vector.load %arg11[%c0, %c0_5] : memref<64x1xf32, #tpu.memory_space<vmem>>, vector<64x1xf32>
      tpu.vector_store %arg11[%c0, %c0_5], %12 {strides = array<i32>} : memref<64x1xf32, #tpu.memory_space<vmem>>, vector<64x1xf32>,
      %cst_6 = arith.constant 0.000000e+00 : f32
      %14 = vector.broadcast %cst_6 : f32 to vector<64x1xf32>
      %c0_7 = arith.constant 0 : index
      %c0_8 = arith.constant 0 : index
      %15 = vector.load %arg12[%c0_7, %c0_8] : memref<64x1xf32, #tpu.memory_space<vmem>>, vector<64x1xf32>
      tpu.vector_store %arg12[%c0_7, %c0_8], %14 {strides = array<i32>} : memref<64x1xf32, #tpu.memory_space<vmem>>, vector<64x1xf32>,
      %cst_9 = arith.constant 0.000000e+00 : f32
      %16 = vector.broadcast %cst_9 : f32 to vector<64x128xf32>
      %c0_10 = arith.constant 0 : index
      %c0_11 = arith.constant 0 : index
      %17 = vector.load %arg13[%c0_10, %c0_11] : memref<64x128xf32, #tpu.memory_space<vmem>>, vector<64x128xf32>
      tpu.vector_store %arg13[%c0_10, %c0_11], %16 {strides = array<i32>} : memref<64x128xf32, #tpu.memory_space<vmem>>, vector<64x128xf32>,
    } else {
    }
    %c64_i32 = arith.constant 64 : i32
    %3 = arith.muli %arg2, %c64_i32 : i32
    %c64_i32_1 = arith.constant 64 : i32
    %4 = arith.muli %arg1, %c64_i32_1 : i32
    %c63_i32 = arith.constant 63 : i32
    %5 = arith.addi %4, %c63_i32 : i32
    %6 = arith.cmpi sle, %3, %5 : i32
    %7 = arith.extui %6 : i1 to i32
    %c0_i32_2 = arith.constant 0 : i32
    %8 = arith.cmpi ne, %7, %c0_i32_2 : i32
    scf.if %8 {
      %c0 = arith.constant 0 : index
      %c0_5 = arith.constant 0 : index
      %c0_6 = arith.constant 0 : index
      %12 = vector.load %arg3[%c0, %c0_5, %c0_6] : memref<1x64x128xbf16, #tpu.memory_space<vmem>>, vector<1x64x128xbf16>
      %13 = vector.shape_cast %12 : vector<1x64x128xbf16> to vector<64x128xbf16>
      %14 = arith.extf %13 : vector<64x128xbf16> to vector<64x128xf32>
      %c0_7 = arith.constant 0 : index
      %c0_8 = arith.constant 0 : index
      %c0_9 = arith.constant 0 : index
      %15 = vector.load %arg4[%c0_7, %c0_8, %c0_9] : memref<1x64x128xbf16, #tpu.memory_space<vmem>>, vector<1x64x128xbf16>
      %16 = vector.shape_cast %15 : vector<1x64x128xbf16> to vector<64x128xbf16>
      %17 = arith.extf %16 : vector<64x128xbf16> to vector<64x128xf32>
      %c0_10 = arith.constant 0 : index
      %c0_11 = arith.constant 0 : index
      %18 = vector.load %arg6[%c0_10, %c0_11] : memref<64x128xf32, #tpu.memory_space<vmem>>, vector<64x128xf32>
      %19 = arith.mulf %14, %18 : vector<64x128xf32>
      %c64_i32_12 = arith.constant 64 : i32
      %20 = tpu.dynamic_rotate %14 by %c64_i32_12 dim 1 : vector<64x128xf32>, i32 -> vector<64x128xf32>
      %c0_13 = arith.constant 0 : index
      %c0_14 = arith.constant 0 : index
      %21 = vector.load %arg7[%c0_13, %c0_14] : memref<64x128xf32, #tpu.memory_space<vmem>>, vector<64x128xf32>
      %22 = arith.mulf %20, %21 : vector<64x128xf32>
      %23 = arith.addf %19, %22 : vector<64x128xf32>
      %c0_15 = arith.constant 0 : index
      %c0_16 = arith.constant 0 : index
      %24 = vector.load %arg8[%c0_15, %c0_16] : memref<64x128xf32, #tpu.memory_space<vmem>>, vector<64x128xf32>
      %25 = arith.mulf %17, %24 : vector<64x128xf32>
      %c64_i32_17 = arith.constant 64 : i32
      %26 = tpu.dynamic_rotate %17 by %c64_i32_17 dim 1 : vector<64x128xf32>, i32 -> vector<64x128xf32>
      %c0_18 = arith.constant 0 : index
      %c0_19 = arith.constant 0 : index
      %27 = vector.load %arg9[%c0_18, %c0_19] : memref<64x128xf32, #tpu.memory_space<vmem>>, vector<64x128xf32>
      %28 = arith.mulf %26, %27 : vector<64x128xf32>
      %29 = arith.addf %25, %28 : vector<64x128xf32>
      %30 = arith.truncf %23 : vector<64x128xf32> to vector<64x128xbf16>
      %31 = arith.truncf %29 : vector<64x128xf32> to vector<64x128xbf16>
      %32 = tpu.transpose %31, [1, 0] : vector<64x128xbf16> -> vector<128x64xbf16>
      %cst = arith.constant dense<0.000000e+00> : vector<64x64xf32>
      %33 = tpu.matmul %30, %32, %cst {dimension_numbers = #tpu.dot_dimension_numbers<[1], [0], [0], [1], [0, 0, 1, 1], [], []>} : vector<64x128xbf16>, vector<128x64xbf16>, vector<64x64xf32> -> vector<64x64xf32>
      %cst_20 = arith.constant 0.0883883461 : f32
      %34 = vector.broadcast %cst_20 : f32 to vector<64x64xf32>
      %35 = arith.mulf %33, %34 : vector<64x64xf32>
      %c64_i32_21 = arith.constant 64 : i32
      %36 = arith.muli %arg1, %c64_i32_21 : i32
      %37 = tpu.iota {dimensions = array<i32: 0>} : vector<64x64xi32>
      %38 = vector.broadcast %36 : i32 to vector<64x64xi32>
      %39 = arith.addi %38, %37 : vector<64x64xi32>
      %c64_i32_22 = arith.constant 64 : i32
      %40 = arith.muli %arg2, %c64_i32_22 : i32
      %41 = tpu.iota {dimensions = array<i32: 1>} : vector<64x64xi32>
      %42 = vector.broadcast %40 : i32 to vector<64x64xi32>
      %43 = arith.addi %42, %41 : vector<64x64xi32>
      %44 = arith.cmpi sle, %43, %39 : vector<64x64xi32>
      %cst_23 = arith.constant -1.000000e+30 : f32
      %45 = vector.broadcast %cst_23 : f32 to vector<64x64xf32>
      %46 = arith.select %44, %35, %45 : vector<64x64xi1>, vector<64x64xf32>
      %c0_24 = arith.constant 0 : index
      %c0_25 = arith.constant 0 : index
      %47 = vector.load %arg11[%c0_24, %c0_25] : memref<64x1xf32, #tpu.memory_space<vmem>>, vector<64x1xf32>
      %cst_26 = arith.constant dense<0xFF800000> : vector<64xf32>
      %48 = vector.multi_reduction <maximumf>, %46, %cst_26 [1] : vector<64x64xf32> to vector<64xf32>
      %49 = vector.shape_cast %48 : vector<64xf32> to vector<64x1xf32>
      %50 = arith.maximumf %47, %49 : vector<64x1xf32>
      %51 = arith.subf %47, %50 : vector<64x1xf32>
      %52 = math.exp %51 : vector<64x1xf32>
      %53 = vector.broadcast %50 : vector<64x1xf32> to vector<64x64xf32>
      %54 = arith.subf %46, %53 : vector<64x64xf32>
      %55 = math.exp %54 : vector<64x64xf32>
      %c0_27 = arith.constant 0 : index
      %c0_28 = arith.constant 0 : index
      %56 = vector.load %arg12[%c0_27, %c0_28] : memref<64x1xf32, #tpu.memory_space<vmem>>, vector<64x1xf32>
      %57 = arith.mulf %52, %56 : vector<64x1xf32>
      %cst_29 = arith.constant dense<0.000000e+00> : vector<64xf32>
      %58 = vector.multi_reduction <add>, %55, %cst_29 [1] : vector<64x64xf32> to vector<64xf32>
      %59 = vector.shape_cast %58 : vector<64xf32> to vector<64x1xf32>
      %60 = arith.addf %57, %59 : vector<64x1xf32>
      %c0_30 = arith.constant 0 : index
      %c0_31 = arith.constant 0 : index
      %61 = vector.load %arg12[%c0_30, %c0_31] : memref<64x1xf32, #tpu.memory_space<vmem>>, vector<64x1xf32>
      tpu.vector_store %arg12[%c0_30, %c0_31], %60 {strides = array<i32>} : memref<64x1xf32, #tpu.memory_space<vmem>>, vector<64x1xf32>,
      %c0_32 = arith.constant 0 : index
      %c0_33 = arith.constant 0 : index
      %62 = vector.load %arg13[%c0_32, %c0_33] : memref<64x128xf32, #tpu.memory_space<vmem>>, vector<64x128xf32>
      %63 = vector.broadcast %52 : vector<64x1xf32> to vector<64x128xf32>
      %64 = arith.mulf %63, %62 : vector<64x128xf32>
      %65 = arith.truncf %55 : vector<64x64xf32> to vector<64x64xbf16>
      %c0_34 = arith.constant 0 : index
      %c0_35 = arith.constant 0 : index
      %c0_36 = arith.constant 0 : index
      %66 = vector.load %arg5[%c0_34, %c0_35, %c0_36] : memref<1x64x128xbf16, #tpu.memory_space<vmem>>, vector<1x64x128xbf16>
      %67 = vector.shape_cast %66 : vector<1x64x128xbf16> to vector<64x128xbf16>
      %cst_37 = arith.constant dense<0.000000e+00> : vector<64x128xf32>
      %68 = tpu.matmul %65, %67, %cst_37 {dimension_numbers = #tpu.dot_dimension_numbers<[1], [0], [0], [1], [0, 0, 1, 1], [], []>} : vector<64x64xbf16>, vector<64x128xbf16>, vector<64x128xf32> -> vector<64x128xf32>
      %69 = arith.addf %64, %68 : vector<64x128xf32>
      %c0_38 = arith.constant 0 : index
      %c0_39 = arith.constant 0 : index
      %70 = vector.load %arg13[%c0_38, %c0_39] : memref<64x128xf32, #tpu.memory_space<vmem>>, vector<64x128xf32>
      tpu.vector_store %arg13[%c0_38, %c0_39], %69 {strides = array<i32>} : memref<64x128xf32, #tpu.memory_space<vmem>>, vector<64x128xf32>,
      %c0_40 = arith.constant 0 : index
      %c0_41 = arith.constant 0 : index
      %71 = vector.load %arg11[%c0_40, %c0_41] : memref<64x1xf32, #tpu.memory_space<vmem>>, vector<64x1xf32>
      tpu.vector_store %arg11[%c0_40, %c0_41], %50 {strides = array<i32>} : memref<64x1xf32, #tpu.memory_space<vmem>>, vector<64x1xf32>,
    } else {
    }
    %c0_i32_3 = arith.constant 0 : i32
    %9 = arith.cmpi eq, %arg2, %c0_i32_3 : i32
    %10 = arith.extui %9 : i1 to i32
    %c0_i32_4 = arith.constant 0 : i32
    %11 = arith.cmpi ne, %10, %c0_i32_4 : i32
    scf.if %11 {
      %c0 = arith.constant 0 : index
      %c0_5 = arith.constant 0 : index
      %12 = vector.load %arg13[%c0, %c0_5] : memref<64x128xf32, #tpu.memory_space<vmem>>, vector<64x128xf32>
      %c0_6 = arith.constant 0 : index
      %c0_7 = arith.constant 0 : index
      %13 = vector.load %arg12[%c0_6, %c0_7] : memref<64x1xf32, #tpu.memory_space<vmem>>, vector<64x1xf32>
      %14 = tpu.reciprocal %13 {approx = true} : vector<64x1xf32> -> vector<64x1xf32>
      %15 = vector.broadcast %14 : vector<64x1xf32> to vector<64x128xf32>
      %16 = arith.mulf %12, %15 : vector<64x128xf32>
      %17 = arith.truncf %16 : vector<64x128xf32> to vector<64x128xbf16>
      %c0_8 = arith.constant 0 : index
      %c0_9 = arith.constant 0 : index
      %c0_10 = arith.constant 0 : index
      %18 = vector.load %arg10[%c0_8, %c0_9, %c0_10] : memref<1x64x128xbf16, #tpu.memory_space<vmem>>, vector<1x64x128xbf16>
      %19 = vector.shape_cast %18 : vector<1x64x128xbf16> to vector<64x128xbf16>
      %20 = vector.shape_cast %17 : vector<64x128xbf16> to vector<1x64x128xbf16>
      tpu.vector_store %arg10[%c0_8, %c0_9, %c0_10], %20 {strides = array<i32>} : memref<1x64x128xbf16, #tpu.memory_space<vmem>>, vector<1x64x128xbf16>,
    } else {
    }
    return
  }
  func.func @transform_0(%arg0: i32, %arg1: i32, %arg2: i32) -> (i32, i32, i32) {
    %c0_i32 = arith.constant 0 : i32
    %c0_i32_0 = arith.constant 0 : i32
    return %arg0, %arg1, %c0_i32 : i32, i32, i32
  }
  func.func @transform_1(%arg0: i32, %arg1: i32, %arg2: i32) -> (i32, i32, i32) {
    %c0_i32 = arith.constant 0 : i32
    %c0_i32_0 = arith.constant 0 : i32
    return %arg0, %arg2, %c0_i32 : i32, i32, i32
  }
  func.func @transform_2(%arg0: i32, %arg1: i32, %arg2: i32) -> (i32, i32, i32) {
    %c0_i32 = arith.constant 0 : i32
    %c0_i32_0 = arith.constant 0 : i32
    return %arg0, %arg2, %c0_i32 : i32, i32, i32
  }
  func.func @transform_3(%arg0: i32, %arg1: i32, %arg2: i32) -> (i32, i32) {
    %c0_i32 = arith.constant 0 : i32
    %c0_i32_0 = arith.constant 0 : i32
    return %arg1, %c0_i32 : i32, i32
  }
  func.func @transform_4(%arg0: i32, %arg1: i32, %arg2: i32) -> (i32, i32) {
    %c0_i32 = arith.constant 0 : i32
    %c0_i32_0 = arith.constant 0 : i32
    return %arg1, %c0_i32 : i32, i32
  }
  func.func @transform_5(%arg0: i32, %arg1: i32, %arg2: i32) -> (i32, i32) {
    %c0_i32 = arith.constant 0 : i32
    %c0_i32_0 = arith.constant 0 : i32
    return %arg2, %c0_i32 : i32, i32
  }
  func.func @transform_6(%arg0: i32, %arg1: i32, %arg2: i32) -> (i32, i32) {
    %c0_i32 = arith.constant 0 : i32
    %c0_i32_0 = arith.constant 0 : i32
    return %arg2, %c0_i32 : i32, i32
  }
  func.func @transform_7(%arg0: i32, %arg1: i32, %arg2: i32) -> (i32, i32, i32) {
    %c0_i32 = arith.constant 0 : i32
    %c0_i32_0 = arith.constant 0 : i32
    return %arg0, %arg1, %c0_i32 : i32, i32, i32
  }
}

module attributes {stable_mosaic.version = 11 : i64} {
  func.func @_ffn_kernel(%arg0: i32, %arg1: i32, %arg2: memref<128x256xbf16, #tpu.memory_space<vmem>>, %arg3: memref<1x256xf32, #tpu.memory_space<vmem>>, %arg4: memref<256x512xbf16, #tpu.memory_space<vmem>>, %arg5: memref<256x512xbf16, #tpu.memory_space<vmem>>, %arg6: memref<512x256xbf16, #tpu.memory_space<vmem>>, %arg7: memref<128x256xbf16, #tpu.memory_space<vmem>>, %arg8: memref<128x256xf32, #tpu.memory_space<vmem>>) attributes {dimension_semantics = [#tpu.dimension_semantics<parallel>, #tpu.dimension_semantics<arbitrary>], iteration_bounds = array<i64: 1, 1>, scalar_prefetch = 0 : i64, scratch_operands = 1 : i64, tpu.core_type = #tpu.core_type<tc>, window_params = [{transform_indices = @transform_0, window_bounds = array<i64: 128, 256>}, {pipeline_mode = #tpu.pipeline_mode<synchronous>, transform_indices = @transform_1, window_bounds = array<i64: 1, 256>}, {transform_indices = @transform_2, window_bounds = array<i64: 256, 512>}, {transform_indices = @transform_3, window_bounds = array<i64: 256, 512>}, {transform_indices = @transform_4, window_bounds = array<i64: 512, 256>}, {transform_indices = @transform_5, window_bounds = array<i64: 128, 256>}]} {
    %c0_i32 = arith.constant 0 : i32
    %0 = arith.cmpi eq, %arg1, %c0_i32 : i32
    %1 = arith.extui %0 : i1 to i32
    %c0_i32_0 = arith.constant 0 : i32
    %2 = arith.cmpi ne, %1, %c0_i32_0 : i32
    scf.if %2 {
      %cst_22 = arith.constant 0.000000e+00 : f32
      %39 = vector.broadcast %cst_22 : f32 to vector<128x256xf32>
      %c0_23 = arith.constant 0 : index
      %c0_24 = arith.constant 0 : index
      %40 = vector.load %arg8[%c0_23, %c0_24] : memref<128x256xf32, #tpu.memory_space<vmem>>, vector<128x256xf32>
      tpu.vector_store %arg8[%c0_23, %c0_24], %39 {strides = array<i32>} : memref<128x256xf32, #tpu.memory_space<vmem>>, vector<128x256xf32>,
    } else {
    }
    %c0 = arith.constant 0 : index
    %c0_1 = arith.constant 0 : index
    %3 = vector.load %arg2[%c0, %c0_1] : memref<128x256xbf16, #tpu.memory_space<vmem>>, vector<128x256xbf16>
    %4 = arith.extf %3 : vector<128x256xbf16> to vector<128x256xf32>
    %5 = arith.mulf %4, %4 : vector<128x256xf32>
    %cst = arith.constant dense<0.000000e+00> : vector<128xf32>
    %6 = vector.multi_reduction <add>, %5, %cst [1] : vector<128x256xf32> to vector<128xf32>
    %7 = vector.shape_cast %6 : vector<128xf32> to vector<128x1xf32>
    %cst_2 = arith.constant 2.560000e+02 : f32
    %8 = vector.broadcast %cst_2 : f32 to vector<128x1xf32>
    %9 = arith.divf %7, %8 : vector<128x1xf32>
    %cst_3 = arith.constant 9.99999974E-6 : f32
    %10 = vector.broadcast %cst_3 : f32 to vector<128x1xf32>
    %11 = arith.addf %9, %10 : vector<128x1xf32>
    %12 = math.rsqrt %11 : vector<128x1xf32>
    %13 = vector.broadcast %12 : vector<128x1xf32> to vector<128x256xf32>
    %14 = arith.mulf %4, %13 : vector<128x256xf32>
    %c0_4 = arith.constant 0 : index
    %c0_5 = arith.constant 0 : index
    %15 = vector.load %arg3[%c0_4, %c0_5] : memref<1x256xf32, #tpu.memory_space<vmem>>, vector<1x256xf32>
    %16 = vector.broadcast %15 : vector<1x256xf32> to vector<128x256xf32>
    %17 = arith.mulf %14, %16 : vector<128x256xf32>
    %18 = arith.truncf %17 : vector<128x256xf32> to vector<128x256xbf16>
    %c0_6 = arith.constant 0 : index
    %c0_7 = arith.constant 0 : index
    %19 = vector.load %arg4[%c0_6, %c0_7] : memref<256x512xbf16, #tpu.memory_space<vmem>>, vector<256x512xbf16>
    %cst_8 = arith.constant dense<0.000000e+00> : vector<128x512xf32>
    %20 = tpu.matmul %18, %19, %cst_8 {dimension_numbers = #tpu.dot_dimension_numbers<[1], [0], [0], [1], [0, 0, 1, 1], [], []>} : vector<128x256xbf16>, vector<256x512xbf16>, vector<128x512xf32> -> vector<128x512xf32>
    %c0_9 = arith.constant 0 : index
    %c0_10 = arith.constant 0 : index
    %21 = vector.load %arg5[%c0_9, %c0_10] : memref<256x512xbf16, #tpu.memory_space<vmem>>, vector<256x512xbf16>
    %cst_11 = arith.constant dense<0.000000e+00> : vector<128x512xf32>
    %22 = tpu.matmul %18, %21, %cst_11 {dimension_numbers = #tpu.dot_dimension_numbers<[1], [0], [0], [1], [0, 0, 1, 1], [], []>} : vector<128x256xbf16>, vector<256x512xbf16>, vector<128x512xf32> -> vector<128x512xf32>
    %23 = arith.negf %20 : vector<128x512xf32>
    %24 = math.exp %23 : vector<128x512xf32>
    %cst_12 = arith.constant 1.000000e+00 : f32
    %25 = vector.broadcast %cst_12 : f32 to vector<128x512xf32>
    %26 = arith.addf %25, %24 : vector<128x512xf32>
    %27 = arith.divf %25, %26 : vector<128x512xf32>
    %28 = arith.mulf %20, %27 : vector<128x512xf32>
    %29 = arith.mulf %28, %22 : vector<128x512xf32>
    %30 = arith.truncf %29 : vector<128x512xf32> to vector<128x512xbf16>
    %c0_13 = arith.constant 0 : index
    %c0_14 = arith.constant 0 : index
    %31 = vector.load %arg8[%c0_13, %c0_14] : memref<128x256xf32, #tpu.memory_space<vmem>>, vector<128x256xf32>
    %c0_15 = arith.constant 0 : index
    %c0_16 = arith.constant 0 : index
    %32 = vector.load %arg6[%c0_15, %c0_16] : memref<512x256xbf16, #tpu.memory_space<vmem>>, vector<512x256xbf16>
    %cst_17 = arith.constant dense<0.000000e+00> : vector<128x256xf32>
    %33 = tpu.matmul %30, %32, %cst_17 {dimension_numbers = #tpu.dot_dimension_numbers<[1], [0], [0], [1], [0, 0, 1, 1], [], []>} : vector<128x512xbf16>, vector<512x256xbf16>, vector<128x256xf32> -> vector<128x256xf32>
    %34 = arith.addf %31, %33 : vector<128x256xf32>
    %c0_18 = arith.constant 0 : index
    %c0_19 = arith.constant 0 : index
    %35 = vector.load %arg8[%c0_18, %c0_19] : memref<128x256xf32, #tpu.memory_space<vmem>>, vector<128x256xf32>
    tpu.vector_store %arg8[%c0_18, %c0_19], %34 {strides = array<i32>} : memref<128x256xf32, #tpu.memory_space<vmem>>, vector<128x256xf32>,
    %c0_i32_20 = arith.constant 0 : i32
    %36 = arith.cmpi eq, %arg1, %c0_i32_20 : i32
    %37 = arith.extui %36 : i1 to i32
    %c0_i32_21 = arith.constant 0 : i32
    %38 = arith.cmpi ne, %37, %c0_i32_21 : i32
    scf.if %38 {
      %c0_22 = arith.constant 0 : index
      %c0_23 = arith.constant 0 : index
      %39 = vector.load %arg8[%c0_22, %c0_23] : memref<128x256xf32, #tpu.memory_space<vmem>>, vector<128x256xf32>
      %40 = arith.addf %39, %4 : vector<128x256xf32>
      %41 = arith.truncf %40 : vector<128x256xf32> to vector<128x256xbf16>
      %c0_24 = arith.constant 0 : index
      %c0_25 = arith.constant 0 : index
      %42 = vector.load %arg7[%c0_24, %c0_25] : memref<128x256xbf16, #tpu.memory_space<vmem>>, vector<128x256xbf16>
      tpu.vector_store %arg7[%c0_24, %c0_25], %41 {strides = array<i32>} : memref<128x256xbf16, #tpu.memory_space<vmem>>, vector<128x256xbf16>,
    } else {
    }
    return
  }
  func.func @transform_0(%arg0: i32, %arg1: i32) -> (i32, i32) {
    %c0_i32 = arith.constant 0 : i32
    %c0_i32_0 = arith.constant 0 : i32
    return %arg0, %c0_i32 : i32, i32
  }
  func.func @transform_1(%arg0: i32, %arg1: i32) -> (i32, i32) {
    %c0_i32 = arith.constant 0 : i32
    %c0_i32_0 = arith.constant 0 : i32
    %c0_i32_1 = arith.constant 0 : i32
    return %c0_i32, %c0_i32_0 : i32, i32
  }
  func.func @transform_2(%arg0: i32, %arg1: i32) -> (i32, i32) {
    %c0_i32 = arith.constant 0 : i32
    %c0_i32_0 = arith.constant 0 : i32
    return %c0_i32, %arg1 : i32, i32
  }
  func.func @transform_3(%arg0: i32, %arg1: i32) -> (i32, i32) {
    %c0_i32 = arith.constant 0 : i32
    %c0_i32_0 = arith.constant 0 : i32
    return %c0_i32, %arg1 : i32, i32
  }
  func.func @transform_4(%arg0: i32, %arg1: i32) -> (i32, i32) {
    %c0_i32 = arith.constant 0 : i32
    %c0_i32_0 = arith.constant 0 : i32
    return %arg1, %c0_i32 : i32, i32
  }
  func.func @transform_5(%arg0: i32, %arg1: i32) -> (i32, i32) {
    %c0_i32 = arith.constant 0 : i32
    %c0_i32_0 = arith.constant 0 : i32
    return %arg0, %c0_i32 : i32, i32
  }
}

module attributes {stable_mosaic.version = 11 : i64} {
  func.func @_matmul_resid_kernel(%arg0: i32, %arg1: i32, %arg2: i32, %arg3: memref<128x256xbf16, #tpu.memory_space<vmem>>, %arg4: memref<256x256xbf16, #tpu.memory_space<vmem>>, %arg5: memref<128x256xbf16, #tpu.memory_space<vmem>>, %arg6: memref<128x256xbf16, #tpu.memory_space<vmem>>, %arg7: memref<128x256xf32, #tpu.memory_space<vmem>>) attributes {dimension_semantics = [#tpu.dimension_semantics<parallel>, #tpu.dimension_semantics<parallel>, #tpu.dimension_semantics<arbitrary>], iteration_bounds = array<i64: 1, 1, 1>, scalar_prefetch = 0 : i64, scratch_operands = 1 : i64, tpu.core_type = #tpu.core_type<tc>, window_params = [{transform_indices = @transform_0, window_bounds = array<i64: 128, 256>}, {transform_indices = @transform_1, window_bounds = array<i64: 256, 256>}, {transform_indices = @transform_2, window_bounds = array<i64: 128, 256>}, {transform_indices = @transform_3, window_bounds = array<i64: 128, 256>}]} {
    %c0_i32 = arith.constant 0 : i32
    %0 = arith.cmpi eq, %arg2, %c0_i32 : i32
    %1 = arith.extui %0 : i1 to i32
    %c0_i32_0 = arith.constant 0 : i32
    %2 = arith.cmpi ne, %1, %c0_i32_0 : i32
    scf.if %2 {
      %cst_10 = arith.constant 0.000000e+00 : f32
      %12 = vector.broadcast %cst_10 : f32 to vector<128x256xf32>
      %c0_11 = arith.constant 0 : index
      %c0_12 = arith.constant 0 : index
      %13 = vector.load %arg7[%c0_11, %c0_12] : memref<128x256xf32, #tpu.memory_space<vmem>>, vector<128x256xf32>
      tpu.vector_store %arg7[%c0_11, %c0_12], %12 {strides = array<i32>} : memref<128x256xf32, #tpu.memory_space<vmem>>, vector<128x256xf32>,
    } else {
    }
    %c0 = arith.constant 0 : index
    %c0_1 = arith.constant 0 : index
    %3 = vector.load %arg7[%c0, %c0_1] : memref<128x256xf32, #tpu.memory_space<vmem>>, vector<128x256xf32>
    %c0_2 = arith.constant 0 : index
    %c0_3 = arith.constant 0 : index
    %4 = vector.load %arg3[%c0_2, %c0_3] : memref<128x256xbf16, #tpu.memory_space<vmem>>, vector<128x256xbf16>
    %c0_4 = arith.constant 0 : index
    %c0_5 = arith.constant 0 : index
    %5 = vector.load %arg4[%c0_4, %c0_5] : memref<256x256xbf16, #tpu.memory_space<vmem>>, vector<256x256xbf16>
    %cst = arith.constant dense<0.000000e+00> : vector<128x256xf32>
    %6 = tpu.matmul %4, %5, %cst {dimension_numbers = #tpu.dot_dimension_numbers<[1], [0], [0], [1], [0, 0, 1, 1], [], []>} : vector<128x256xbf16>, vector<256x256xbf16>, vector<128x256xf32> -> vector<128x256xf32>
    %7 = arith.addf %3, %6 : vector<128x256xf32>
    %c0_6 = arith.constant 0 : index
    %c0_7 = arith.constant 0 : index
    %8 = vector.load %arg7[%c0_6, %c0_7] : memref<128x256xf32, #tpu.memory_space<vmem>>, vector<128x256xf32>
    tpu.vector_store %arg7[%c0_6, %c0_7], %7 {strides = array<i32>} : memref<128x256xf32, #tpu.memory_space<vmem>>, vector<128x256xf32>,
    %c0_i32_8 = arith.constant 0 : i32
    %9 = arith.cmpi eq, %arg2, %c0_i32_8 : i32
    %10 = arith.extui %9 : i1 to i32
    %c0_i32_9 = arith.constant 0 : i32
    %11 = arith.cmpi ne, %10, %c0_i32_9 : i32
    scf.if %11 {
      %c0_10 = arith.constant 0 : index
      %c0_11 = arith.constant 0 : index
      %12 = vector.load %arg7[%c0_10, %c0_11] : memref<128x256xf32, #tpu.memory_space<vmem>>, vector<128x256xf32>
      %c0_12 = arith.constant 0 : index
      %c0_13 = arith.constant 0 : index
      %13 = vector.load %arg5[%c0_12, %c0_13] : memref<128x256xbf16, #tpu.memory_space<vmem>>, vector<128x256xbf16>
      %14 = arith.extf %13 : vector<128x256xbf16> to vector<128x256xf32>
      %15 = arith.addf %12, %14 : vector<128x256xf32>
      %16 = arith.truncf %15 : vector<128x256xf32> to vector<128x256xbf16>
      %c0_14 = arith.constant 0 : index
      %c0_15 = arith.constant 0 : index
      %17 = vector.load %arg6[%c0_14, %c0_15] : memref<128x256xbf16, #tpu.memory_space<vmem>>, vector<128x256xbf16>
      tpu.vector_store %arg6[%c0_14, %c0_15], %16 {strides = array<i32>} : memref<128x256xbf16, #tpu.memory_space<vmem>>, vector<128x256xbf16>,
    } else {
    }
    return
  }
  func.func @transform_0(%arg0: i32, %arg1: i32, %arg2: i32) -> (i32, i32) {
    %c0_i32 = arith.constant 0 : i32
    return %arg0, %arg2 : i32, i32
  }
  func.func @transform_1(%arg0: i32, %arg1: i32, %arg2: i32) -> (i32, i32) {
    %c0_i32 = arith.constant 0 : i32
    return %arg2, %arg1 : i32, i32
  }
  func.func @transform_2(%arg0: i32, %arg1: i32, %arg2: i32) -> (i32, i32) {
    %c0_i32 = arith.constant 0 : i32
    return %arg0, %arg1 : i32, i32
  }
  func.func @transform_3(%arg0: i32, %arg1: i32, %arg2: i32) -> (i32, i32) {
    %c0_i32 = arith.constant 0 : i32
    return %arg0, %arg1 : i32, i32
  }
}

module attributes {stable_mosaic.version = 11 : i64} {
  func.func @_norm_matmul_kernel(%arg0: i32, %arg1: i32, %arg2: memref<128x256xbf16, #tpu.memory_space<vmem>>, %arg3: memref<1x256xf32, #tpu.memory_space<vmem>>, %arg4: memref<256x512xbf16, #tpu.memory_space<vmem>>, %arg5: memref<128x512xf32, #tpu.memory_space<vmem>>) attributes {dimension_semantics = [#tpu.dimension_semantics<parallel>, #tpu.dimension_semantics<parallel>], iteration_bounds = array<i64: 1, 1>, scalar_prefetch = 0 : i64, scratch_operands = 0 : i64, tpu.core_type = #tpu.core_type<tc>, window_params = [{transform_indices = @transform_0, window_bounds = array<i64: 128, 256>}, {pipeline_mode = #tpu.pipeline_mode<synchronous>, transform_indices = @transform_1, window_bounds = array<i64: 1, 256>}, {transform_indices = @transform_2, window_bounds = array<i64: 256, 512>}, {transform_indices = @transform_3, window_bounds = array<i64: 128, 512>}]} {
    %c0 = arith.constant 0 : index
    %c0_0 = arith.constant 0 : index
    %0 = vector.load %arg2[%c0, %c0_0] : memref<128x256xbf16, #tpu.memory_space<vmem>>, vector<128x256xbf16>
    %1 = arith.extf %0 : vector<128x256xbf16> to vector<128x256xf32>
    %2 = arith.mulf %1, %1 : vector<128x256xf32>
    %cst = arith.constant dense<0.000000e+00> : vector<128xf32>
    %3 = vector.multi_reduction <add>, %2, %cst [1] : vector<128x256xf32> to vector<128xf32>
    %4 = vector.shape_cast %3 : vector<128xf32> to vector<128x1xf32>
    %cst_1 = arith.constant 2.560000e+02 : f32
    %5 = vector.broadcast %cst_1 : f32 to vector<128x1xf32>
    %6 = arith.divf %4, %5 : vector<128x1xf32>
    %cst_2 = arith.constant 9.99999974E-6 : f32
    %7 = vector.broadcast %cst_2 : f32 to vector<128x1xf32>
    %8 = arith.addf %6, %7 : vector<128x1xf32>
    %9 = math.rsqrt %8 : vector<128x1xf32>
    %10 = vector.broadcast %9 : vector<128x1xf32> to vector<128x256xf32>
    %11 = arith.mulf %1, %10 : vector<128x256xf32>
    %c0_3 = arith.constant 0 : index
    %c0_4 = arith.constant 0 : index
    %12 = vector.load %arg3[%c0_3, %c0_4] : memref<1x256xf32, #tpu.memory_space<vmem>>, vector<1x256xf32>
    %13 = vector.broadcast %12 : vector<1x256xf32> to vector<128x256xf32>
    %14 = arith.mulf %11, %13 : vector<128x256xf32>
    %15 = arith.truncf %14 : vector<128x256xf32> to vector<128x256xbf16>
    %c0_5 = arith.constant 0 : index
    %c0_6 = arith.constant 0 : index
    %16 = vector.load %arg4[%c0_5, %c0_6] : memref<256x512xbf16, #tpu.memory_space<vmem>>, vector<256x512xbf16>
    %cst_7 = arith.constant dense<0.000000e+00> : vector<128x512xf32>
    %17 = tpu.matmul %15, %16, %cst_7 {dimension_numbers = #tpu.dot_dimension_numbers<[1], [0], [0], [1], [0, 0, 1, 1], [], []>} : vector<128x256xbf16>, vector<256x512xbf16>, vector<128x512xf32> -> vector<128x512xf32>
    %c0_8 = arith.constant 0 : index
    %c0_9 = arith.constant 0 : index
    %18 = vector.load %arg5[%c0_8, %c0_9] : memref<128x512xf32, #tpu.memory_space<vmem>>, vector<128x512xf32>
    tpu.vector_store %arg5[%c0_8, %c0_9], %17 {strides = array<i32>} : memref<128x512xf32, #tpu.memory_space<vmem>>, vector<128x512xf32>,
    return
  }
  func.func @transform_0(%arg0: i32, %arg1: i32) -> (i32, i32) {
    %c0_i32 = arith.constant 0 : i32
    %c0_i32_0 = arith.constant 0 : i32
    return %arg0, %c0_i32 : i32, i32
  }
  func.func @transform_1(%arg0: i32, %arg1: i32) -> (i32, i32) {
    %c0_i32 = arith.constant 0 : i32
    %c0_i32_0 = arith.constant 0 : i32
    %c0_i32_1 = arith.constant 0 : i32
    return %c0_i32, %c0_i32_0 : i32, i32
  }
  func.func @transform_2(%arg0: i32, %arg1: i32) -> (i32, i32) {
    %c0_i32 = arith.constant 0 : i32
    %c0_i32_0 = arith.constant 0 : i32
    return %c0_i32, %arg1 : i32, i32
  }
  func.func @transform_3(%arg0: i32, %arg1: i32) -> (i32, i32) {
    %c0_i32 = arith.constant 0 : i32
    return %arg0, %arg1 : i32, i32
  }
}

</mosaic_0001>

<bundles_post_ra>
// kernel: transformer_lm_forward.10
= control target key start
LH: loop header
LB: loop body
LE: loop exit
PB: predicated region body
PF: predicated region fallthrough
CT: control target
= control target key end

     0   :  { %s2879_s0 = inlined_call_operand.hbm [shape: bf16[4,64,128], index: 0, kind: input, shape index: {}]   ;;  %s2880_s1 = inlined_call_operand.hbm [shape: bf16[4,64,128], index: 1, kind: input, shape index: {}]   ;;  %s2881_s2 = inlined_call_operand.hbm [shape: bf16[4,64,128], index: 2, kind: input, shape index: {}]   ;;  %s2882_s3 = inlined_call_operand.hbm [shape: f32[64,128], index: 3, kind: input, shape index: {}, may-alias: {3,5}]   ;;  %s2883_s4 = inlined_call_operand.hbm [shape: f32[64,128], index: 4, kind: input, shape index: {}, may-alias: {4,6}]   ;;  %s2884_s5 = inlined_call_operand.hbm [shape: f32[64,128], index: 5, kind: input, shape index: {}, may-alias: {3,5}]   ;;  %s2885_s6 = inlined_call_operand.hbm [shape: f32[64,128], index: 6, kind: input, shape index: {}, may-alias: {4,6}]   ;;  %s2886_s7 = inlined_call_operand.hbm [shape: bf16[4,64,128], index: 7, kind: output, shape index: {}]  }
   0x1   :  { %2913 = sst [smem:[#allocation31_spill]] %s2880_s1 }
   0x2   :  { %2914 = sst [smem:[#allocation32_spill]] %s2882_s3 }
   0x3   :  { %2915 = sst [smem:[#allocation33_spill]] %s2884_s5 }
   0x4   :  { %2916 = sst [smem:[#allocation34_spill]] %s2886_s7 }
   0x5   :  { %12 = vsyncpa [#allocation6], 0 }
   0x6   :  { %14 = vsyncpa [#allocation6 + $0x1], 0 }
   0x7   :  { %15 = vsyncpa [#allocation9], 0 }
   0x8   :  { %17 = vsyncpa [#allocation9 + $0x1], 0 }
   0x9   :  { %18 = vsyncpa [#allocation12], 0 }
   0xa   :  { %19 = vsyncpa [#allocation15], 0 }
   0xb   :  { %20 = vsyncpa [#allocation7], 0 }
   0xc   :  { %22 = vsyncpa [#allocation7 + $0x1], 0  ;;  %s2239_s24 = smov 0   ;;  %s2241_s25 = smov 0  }
   0xd   :  { %s2243_s26 = smov 0   ;;  %s2245_s27 = smov 0  }
   0xe   :  { %s2247_s28 = smov 0   ;;  %s2249_s29 = smov 0  }
   0xf LB: > { %2917 = sst [smem:[#allocation23_spill]] %s2160_s24  ;;  %s2270_s30 = sadd.s32 4294967295, %s2180_s29   ;;  %s2180_s29 = sphi %s2249_s29, %s28_s29   ;;  %s2176_s28 = sphi %s2247_s28, %s2960_s28   ;;  %s2172_s27 = sphi %s2245_s27, %s2959_s27   ;;  %s2168_s26 = sphi %s2243_s26, %s2963_s26   ;;  %s2164_s25 = sphi %s2241_s25, %s2962_s25   ;;  %s2160_s24 = sphi %s2239_s24, %s2961_s24  }
  0x10   : > { %2918 = sst [smem:[#allocation24_spill]] %s2172_s27  ;;  %s1501_s8 = sadd.s32 4294967294, %s2180_s29  }
  0x11   : > { %2919 = sst [smem:[#allocation25_spill]] %s2176_s28  ;;  %p69_p0 = scmp.ne.s32.totalorder %s2164_s25, %s2160_s24 }
  0x12   : > { %2920 = sst [smem:[#allocation26_spill]] %s2180_s29  ;;  %p2887_p1 = scmp.eq.s32.totalorder %s2270_s30, 0 }
  0x13   : > { %p261_p3 = scmp.eq.s32.totalorder %s1501_s8, 3  ;;  %p1502_p5 = scmp.ge.s32.totalorder %s2180_s29, 1 }
  0x14   : > { %p2279_p4 = por %p2887_p1, %p69_p0  ;;  %p268_p7 = scmp.lt.s32.totalorder %s2180_s29, 5 }
  0x15   : > { %p2284_p6 = por %p261_p3, %p69_p0  ;;  %s2182_s12 = smov [#allocation11]  }
  0x16   : > { %s2921_s9 = scalar_select %p2279_p4, 1, 0 }
  0x17   : > { %s2922_s10 = scalar_select %p2284_p6, 1, 0 }
  0x18   : > { %p2289_p8 = pnand %p1502_p5, %p268_p7  ;;  %s283_s13 = sshll.u32 %s2182_s12, 4  ;;  %s284_s13 = int_to_ptr.vmem [resolvable:$true] %s283_s13 }
  0x19   : > { %2923 = sst [smem:[#allocation27_spill]] %s2922_s10  ;;  %s2183_s15 = smov [#allocation14]  }
  0x1a   : > { %s2924_s11 = scalar_select %p2289_p8, 1, 0 }
  0x1b   : > { %p1692_p9 = pneg %p2289_p8  ;;  %s315_s16 = sshll.u32 %s2183_s15, 4  ;;  %s2301_s16 = int_to_ptr.vmem [resolvable:$true] %s315_s16 }
  0x1c   : > { %s2926_s3 = sld [smem:[#allocation32_spill]] }
  0x1d   : > { %p2297_p10 = pnand %p1692_p9, %p2887_p1 }
  0x1f   : > { %s2925_s14 = scalar_select %p2297_p10, 1, 0 }
  0x20   : > { %p2311_p12 = pneg %p2297_p10 }
  0x22   : > { %s1884_s19 = scalar_lea.hbm %s2926_s3, 1024 }
  0x23   : > { %p1885_p11 = scmp.ne.s32.totalorder %s2926_s3, %s1884_s19  ;;  %p1891_p3 = scmp.lt.u32.totalorder %s1884_s19, %s2926_s3 }
  0x24   : > { %s2927_s22 = scalar_select %p2311_p12, 1, 0 }
  0x25   : > { %p1887_p13 = pnand %p2311_p12, %p1885_p11 }
  0x27   : > { %p1888_p0 = pneg %p1887_p13 }
  0x29   : > { %p1893_p5 = pnand %p1891_p3, %p1888_p0 }
  0x2b   : > { %1896 = shalt.err (!%p1893_p5)
}
  0x2c   : > { %s1897_s12 = scalar_lea.vmem %s284_s13, 1024  ;;  %p1905_p2 = scmp.lt.s32.totalorder %s284_s13, %s284_s13 }
  0x2d   : > { %p1898_p7 = scmp.ne.s32.totalorder %s284_s13, %s1897_s12  ;;  %p1906_p6 = scmp.lt.s32.totalorder %s1897_s12, %s1897_s12 }
  0x2f   : > { %p1900_p9 = pnand %p1898_p7, %p2311_p12  ;;  %p1907_p4 = por %p1906_p6, %p1905_p2 }
  0x31   : > { %p1901_p1 = pneg %p1900_p9 }
  0x33   : > { %p1908_p8 = pnand %p1907_p4, %p1901_p1 }
  0x35   : > { %1911 = shalt.err (!%p1908_p8)
}
  0x36   : > { %s2892_s15 = smov 128   ;;  %s2894_s17 = smov 8  }
  0x37   : > { %1695 = dma.hbm_to_vmem [thread:$0]  (!%p2297_p10), %s2926_s3, 1024, %s284_s13, [#allocation12], %s2892_s15, %s2892_s15, %s2894_s17  }
  0x38   : > { %s2928_s5 = sld [smem:[#allocation33_spill]] }
  0x3e   : > { %s1912_s23 = scalar_lea.hbm %s2928_s5, 1024 }
  0x3f   : > { %p1913_p1 = scmp.ne.s32.totalorder %s2928_s5, %s1912_s23  ;;  %p1919_p6 = scmp.lt.u32.totalorder %s1912_s23, %s2928_s5 }
  0x41   : > { %p1915_p2 = pnand %p1913_p1, %p2311_p12 }
  0x43   : > { %p1916_p4 = pneg %p1915_p2 }
  0x45   : > { %p1921_p8 = pnand %p1919_p6, %p1916_p4 }
  0x47   : > { %1924 = shalt.err (!%p1921_p8)
}
  0x48   : > { %s1925_s13 = scalar_lea.vmem %s2301_s16, 1024  ;;  %p1933_p3 = scmp.lt.s32.totalorder %s2301_s16, %s2301_s16 }
  0x49   : > { %p1926_p11 = scmp.ne.s32.totalorder %s2301_s16, %s1925_s13  ;;  %p1934_p5 = scmp.lt.s32.totalorder %s1925_s13, %s1925_s13 }
  0x4b   : > { %p1928_p13 = pnand %p1926_p11, %p2311_p12  ;;  %p1935_p7 = por %p1934_p5, %p1933_p3 }
  0x4d   : > { %p1929_p0 = pneg %p1928_p13 }
  0x4f   : > { %p1936_p9 = pnand %p1935_p7, %p1929_p0 }
  0x51   : > { %1939 = shalt.err (!%p1936_p9)
}
  0x52   : > { %1701 = dma.hbm_to_vmem [thread:$0]  (!%p2297_p10), %s2928_s5, 1024, %s2301_s16, [#allocation15], %s2892_s15, %s2892_s15, %s2894_s17  }
  0x53   : > { %s47_s18 = sadd.s32 1, %s2176_s28  ;;  %s56_s19 = sadd.s32 1, %s2168_s26 }
  0x54   : > { %p49_p1 = scmp.ge.s32.totalorder %s47_s18, 4  ;;  %p63_p2 = scmp.ne.s32.totalorder %s2168_s26, %s2164_s25 }
  0x55   : > { %p64_p4 = scmp.eq.s32.totalorder %s2180_s29, 0  ;;  %p1723_p6 = scmp.lt.s32.totalorder %s2180_s29, 4 }
  0x56   : > { %s2965_s18 = smov (%p49_p1, %s47_s18), 0  ;;  %p2930_p11 = scmp.eq.s32.totalorder %s2270_s30, 3 }
  0x57   : > { %2929 = sst [smem:[#allocation28_spill]] %s2965_s18  ;;  %p65_p8 = por %p64_p4, %p63_p2 }
  0x58   : > { %p2366_p13 = por %p2930_p11, %p63_p2  ;;  %s51_s21 = ssub.s32 %s2176_s28, %s2965_s18 }
  0x59   : > { %s2896_s23 = sand.u32 1, %s2168_s26   ;;  %p54_p0 = scmp.eq.s32.totalorder %s51_s21, 0 }
  0x5a   : > { %s2931_s20 = scalar_select %p2366_p13, 1, 0 }
  0x5b   : > { %s2375_s16 = sshll.u32 %s2896_s23, 5  ;;  %s2378_s8 = sshll.u32 %s2176_s28, 9 }
  0x5c   : > { %2932 = sst [smem:[#allocation29_spill]] %s2931_s20  ;;  %p2380_p3 = pnand %p1723_p6, %p65_p8 }
  0x5d   : > { %s2385_s13 = scalar_select %p54_p0, %s2168_s26, %s56_s19  }
  0x5e   : > { %s2933_s12 = scalar_select %p2380_p3, 1, 0 }
  0x5f   : > { %2934 = sst [smem:[#allocation30_spill]] %s2385_s13  ;;  %s368_s24 = sand.u32 1, %s2180_s29  }
  0x60   : > { %s2935_s1 = sld [smem:[#allocation31_spill]]  ;;  %s372_s21 = scalar_lea.vmem [#allocation8], %s2375_s16 }
  0x61   : > { %s381_s23 = sshll.u32 %s372_s21, 4  ;;  %s2397_s3 = scalar_lea.sflag [#allocation9], %s368_s24  ;;  %s2395_s23 = int_to_ptr.vmem [resolvable:$true] %s381_s23 }
  0x62   : > { %p2403_p7 = pneg %p2380_p3 }
  0x64   : > { %s2936_s19 = scalar_select %p2403_p7, 1, 0 }
  0x66   : > { %s2392_s17 = scalar_lea.hbm %s2935_s1, %s2378_s8  ;;  %s1945_s18 = scalar_lea.hbm %s2935_s1, 2048 }
  0x67   : > { %s1940_s5 = scalar_lea.hbm %s2392_s17, 512  ;;  %p1946_p2 = scmp.lt.u32.totalorder %s2392_s17, %s2935_s1 }
  0x68   : > { %p1941_p5 = scmp.ne.s32.totalorder %s2392_s17, %s1940_s5  ;;  %p1947_p4 = scmp.lt.u32.totalorder %s1945_s18, %s1940_s5 }
  0x69   : > { %p1949_p8 = scmp.lt.u32.totalorder %s1940_s5, %s2392_s17 }
  0x6a   : > { %p1943_p9 = pnand %p2403_p7, %p1941_p5  ;;  %p1948_p6 = por %p1947_p4, %p1946_p2 }
  0x6c   : > { %p1944_p1 = pneg %p1943_p9  ;;  %p1950_p11 = por %p1949_p8, %p1948_p6 }
  0x6e   : > { %p1951_p0 = pnand %p1950_p11, %p1944_p1 }
  0x70   : > { %1954 = shalt.err (!%p1951_p0)
}
  0x71   : > { %s1955_s24 = scalar_lea.vmem %s2395_s23, 512  ;;  %s2186_s15 = smov [#allocation8]  }
  0x72   : > { %p1956_p5 = scmp.ne.s32.totalorder %s2395_s23, %s1955_s24  ;;  %s1960_s10 = sshll.u32 %s2186_s15, 4  ;;  %s1961_s10 = int_to_ptr.vmem [resolvable:$false] %s1960_s10 }
  0x73   : > { %s1962_s28 = scalar_lea.vmem %s1961_s10, 1024  ;;  %p1963_p10 = scmp.lt.s32.totalorder %s2395_s23, %s1961_s10 }
  0x74   : > { %p1958_p9 = pnand %p1956_p5, %p2403_p7  ;;  %p1964_p12 = scmp.lt.s32.totalorder %s1962_s28, %s1955_s24 }
  0x76   : > { %p1959_p13 = pneg %p1958_p9  ;;  %p1965_p2 = por %p1964_p12, %p1963_p10 }
  0x78   : > { %p1966_p4 = pnand %p1965_p2, %p1959_p13 }
  0x7a   : > { %1969 = shalt.err (!%p1966_p4)
}
  0x7b   : > { %s2187_s5 = smov 64   ;;  %s2188_s18 = smov 4  }
  0x7c   : > { %1711 = dma.hbm_to_vmem [thread:$0]  (!%p2380_p3), %s2392_s17, 512, %s2395_s23, %s2397_s3, %s2187_s5, %s2187_s5, %s2188_s18  }
  0x7d   : > { %s2189_s21 = smov [#allocation13]   ;;  %s2190_s10 = smov [#allocation16]  }
  0x7e   : > { %s299_s15 = sshll.u32 %s2189_s21, 4  ;;  %s331_s24 = sshll.u32 %s2190_s10, 4  ;;  %s300_s15 = int_to_ptr.vmem [resolvable:$true] %s299_s15  ;;  %s332_s24 = int_to_ptr.vmem [resolvable:$true] %s331_s24 }
  0x7f   : > { %s1970_s13 = scalar_lea.hbm %s2883_s4, 1024  ;;  %p2937_p12 = scmp.ne.s32.totalorder %s2927_s22, 0 }
  0x80   : > { %p1971_p10 = scmp.ne.s32.totalorder %s2883_s4, %s1970_s13  ;;  %p1977_p6 = scmp.lt.u32.totalorder %s1970_s13, %s2883_s4 }
  0x82   : > { %p1973_p13 = pnand %p1971_p10, %p2937_p12 }
  0x84   : > { %p1974_p1 = pneg %p1973_p13 }
  0x86   : > { %p1979_p8 = pnand %p1977_p6, %p1974_p1 }
  0x88   : > { %1982 = shalt.err (!%p1979_p8)
}
  0x89   : > { %s1983_s17 = scalar_lea.vmem %s300_s15, 1024  ;;  %p1991_p9 = scmp.lt.s32.totalorder %s300_s15, %s300_s15 }
  0x8a   : > { %p1984_p11 = scmp.ne.s32.totalorder %s300_s15, %s1983_s17  ;;  %p1992_p2 = scmp.lt.s32.totalorder %s1983_s17, %s1983_s17 }
  0x8c   : > { %p1986_p0 = pnand %p1984_p11, %p2937_p12  ;;  %p1993_p4 = por %p1992_p2, %p1991_p9 }
  0x8e   : > { %p1987_p5 = pneg %p1986_p0 }
  0x90   : > { %p1994_p3 = pnand %p1993_p4, %p1987_p5 }
  0x92   : > { %1997 = shalt.err (!%p1994_p3)
}
  0x93   : > { %p2938_p10 = scmp.ne.s32.totalorder %s2925_s14, 0  ;;  %s2939_s1 = smov 8  }
  0x94   : > { %s2940_s7 = smov 128   ;;  %s1998_s13 = scalar_lea.hbm %s2885_s6, 1024 }
  0x95   : > { %1698 = dma.hbm_to_vmem [thread:$0]  (!%p2938_p10), %s2883_s4, 1024, %s300_s15, [#allocation12], %s2940_s7, %s2940_s7, %s2939_s1  }
  0x96   : > { %p1999_p13 = scmp.ne.s32.totalorder %s2885_s6, %s1998_s13  ;;  %p2005_p6 = scmp.lt.u32.totalorder %s1998_s13, %s2885_s6 }
  0x98   : > { %p2001_p3 = pnand %p1999_p13, %p2937_p12 }
  0x9a   : > { %p2002_p1 = pneg %p2001_p3 }
  0x9c   : > { %p2007_p8 = pnand %p2005_p6, %p2002_p1 }
  0x9e   : > { %2010 = shalt.err (!%p2007_p8)
}
  0x9f   : > { %s2011_s27 = scalar_lea.vmem %s332_s24, 1024  ;;  %p2019_p9 = scmp.lt.s32.totalorder %s332_s24, %s332_s24 }
  0xa0   : > { %p2012_p11 = scmp.ne.s32.totalorder %s332_s24, %s2011_s27  ;;  %p2020_p2 = scmp.lt.s32.totalorder %s2011_s27, %s2011_s27 }
  0xa2   : > { %p2014_p0 = pnand %p2012_p11, %p2937_p12  ;;  %p2021_p4 = por %p2020_p2, %p2019_p9 }
  0xa4   : > { %p2015_p5 = pneg %p2014_p0 }
  0xa6   : > { %p2022_p7 = pnand %p2021_p4, %p2015_p5 }
  0xa8   : > { %2025 = shalt.err (!%p2022_p7)
}
  0xa9   : > { %1704 = dma.hbm_to_vmem [thread:$0]  (!%p2938_p10), %s2885_s6, 1024, %s332_s24, [#allocation15], %s2940_s7, %s2940_s7, %s2939_s1  }
  0xaa   : > { %s2476_s23 = scalar_lea.hbm %s2879_s0, %s2378_s8  ;;  %s349_s14 = scalar_lea.vmem [#allocation5], %s2375_s16 }
  0xab   : > { %s358_s13 = sshll.u32 %s349_s14, 4  ;;  %s2485_s28 = scalar_lea.hbm %s2881_s2, %s2378_s8  ;;  %s2479_s13 = int_to_ptr.vmem [resolvable:$true] %s358_s13 }
  0xac   : > { %s2941_s17 = sand.u32 1, %s2168_s26   ;;  %s2026_s1 = scalar_lea.hbm %s2476_s23, 512 }
  0xad   : > { %s2489_s24 = scalar_lea.sflag [#allocation6], %s2941_s17  ;;  %p2027_p7 = scmp.ne.s32.totalorder %s2476_s23, %s2026_s1 }
  0xae   : > { %p2942_p12 = scmp.ne.s32.totalorder %s2936_s19, 0  ;;  %s2031_s15 = scalar_lea.hbm %s2879_s0, 2048 }
  0xaf   : > { %p2032_p3 = scmp.lt.u32.totalorder %s2476_s23, %s2879_s0  ;;  %p2033_p1 = scmp.lt.u32.totalorder %s2031_s15, %s2026_s1 }
  0xb0   : > { %p2029_p10 = pnand %p2027_p7, %p2942_p12  ;;  %p2035_p8 = scmp.lt.u32.totalorder %s2026_s1, %s2476_s23 }
  0xb1   : > { %p2034_p6 = por %p2033_p1, %p2032_p3 }
  0xb2   : > { %p2030_p13 = pneg %p2029_p10 }
  0xb3   : > { %p2036_p11 = por %p2035_p8, %p2034_p6 }
  0xb5   : > { %p2037_p0 = pnand %p2036_p11, %p2030_p13 }
  0xb7   : > { %2040 = shalt.err (!%p2037_p0)
}
  0xb8   : > { %s2041_s8 = scalar_lea.vmem %s2479_s13, 512  ;;  %s2191_s20 = smov [#allocation5]  }
  0xb9   : > { %p2042_p5 = scmp.ne.s32.totalorder %s2479_s13, %s2041_s8  ;;  %s2046_s14 = sshll.u32 %s2191_s20, 4  ;;  %s2047_s14 = int_to_ptr.vmem [resolvable:$false] %s2046_s14 }
  0xba   : > { %s2048_s21 = scalar_lea.vmem %s2047_s14, 1024  ;;  %p2049_p4 = scmp.lt.s32.totalorder %s2479_s13, %s2047_s14 }
  0xbb   : > { %p2044_p9 = pnand %p2042_p5, %p2942_p12  ;;  %p2050_p7 = scmp.lt.s32.totalorder %s2048_s21, %s2041_s8 }
  0xbd   : > { %p2045_p2 = pneg %p2044_p9  ;;  %p2051_p10 = por %p2050_p7, %p2049_p4 }
  0xbf   : > { %p2052_p3 = pnand %p2051_p10, %p2045_p2 }
  0xc1   : > { %2055 = shalt.err (!%p2052_p3)
}
  0xc2   : > { %p2943_p13 = scmp.ne.s32.totalorder %s2933_s12, 0  ;;  %s395_s10 = scalar_lea.vmem [#allocation10], %s2375_s16 }
  0xc3   : > { %s404_s17 = sshll.u32 %s395_s10, 4  ;;  %s2056_s1 = scalar_lea.hbm %s2485_s28, 512  ;;  %s2517_s17 = int_to_ptr.vmem [resolvable:$true] %s404_s17 }
  0xc4   : > { %1708 = dma.hbm_to_vmem [thread:$0]  (!%p2943_p13), %s2476_s23, 512, %s2479_s13, %s2489_s24, %s2187_s5, %s2187_s5, %s2188_s18  }
  0xc5   : > { %p2057_p1 = scmp.ne.s32.totalorder %s2485_s28, %s2056_s1  ;;  %s2061_s15 = scalar_lea.hbm %s2881_s2, 2048 }
  0xc6   : > { %p2062_p11 = scmp.lt.u32.totalorder %s2485_s28, %s2881_s2  ;;  %p2063_p0 = scmp.lt.u32.totalorder %s2061_s15, %s2056_s1 }
  0xc7   : > { %p2059_p6 = pnand %p2057_p1, %p2942_p12  ;;  %p2065_p9 = scmp.lt.u32.totalorder %s2056_s1, %s2485_s28 }
  0xc8   : > { %p2064_p5 = por %p2063_p0, %p2062_p11 }
  0xc9   : > { %p2060_p8 = pneg %p2059_p6 }
  0xca   : > { %p2066_p2 = por %p2065_p9, %p2064_p5 }
  0xcc   : > { %p2067_p4 = pnand %p2066_p2, %p2060_p8 }
  0xce   : > { %2070 = shalt.err (!%p2067_p4)
}
  0xcf   : > { %s2071_s16 = scalar_lea.vmem %s2517_s17, 512  ;;  %s2192_s23 = smov [#allocation10]  }
  0xd0   : > { %p2072_p7 = scmp.ne.s32.totalorder %s2517_s17, %s2071_s16  ;;  %s2076_s13 = sshll.u32 %s2192_s23, 4  ;;  %s2077_s13 = int_to_ptr.vmem [resolvable:$false] %s2076_s13 }
  0xd1   : > { %s2078_s24 = scalar_lea.vmem %s2077_s13, 1024  ;;  %p2079_p1 = scmp.lt.s32.totalorder %s2517_s17, %s2077_s13 }
  0xd2   : > { %p2074_p10 = pnand %p2072_p7, %p2942_p12  ;;  %p2080_p6 = scmp.lt.s32.totalorder %s2078_s24, %s2071_s16 }
  0xd4   : > { %p2075_p3 = pneg %p2074_p10  ;;  %p2081_p11 = por %p2080_p6, %p2079_p1 }
  0xd6   : > { %p2082_p0 = pnand %p2081_p11, %p2075_p3 }
  0xd8   : > { %2085 = shalt.err (!%p2082_p0)
}
  0xd9   : > { %1714 = dma.hbm_to_vmem [thread:$0]  (!%p2943_p13), %s2485_s28, 512, %s2517_s17, %s2397_s3, %s2187_s5, %s2187_s5, %s2188_s18  }
  0xda   : > { %p2944_p12 = scmp.ne.s32.totalorder %s2924_s11, 0 }
  0xdb   : > { %s2547_s19 = sand.u32 (!%p2944_p12), 1, %s2164_s25   ;;  %p2945_p8 = scmp.ne.s32.totalorder (!%p2944_p12), %s2921_s9, 0 }
  0xdc   : > { %416 = sbr.rel (%p2944_p12) target bundleno = 1237 (0x4d5), region = 48  ;;  %s2550_s8 = sshll.u32 (!%p2944_p12), %s2547_s19, 5 }
  0xdd   : > { %s419_s12 = scalar_lea.sflag (!%p2944_p12), [#allocation6], %s2547_s19  ;;  %s2554_s20 = scalar_lea.vmem (!%p2944_p12), [#allocation5], %s2550_s8 }
  0xe3   : > { %2139 = dma.done.wait (%p2945_p8), %s419_s12, 512  }
  0xe4   : > { %2141 = vsyncadd (%p2945_p8), %s419_s12, 4294966784  ;;  %s427_s3 = sand.u32 1, %s2270_s30   ;;  %s431_s5 = scalar_lea.vmem [#allocation8], %s2550_s8 }
  0xe5   : > { %s428_s11 = scalar_lea.sflag [#allocation9], %s427_s3 }
  0xe6   : > { %2143 = dma.done.wait (%p2945_p8), %s428_s11, 1024  }
  0xe7   : > { %2145 = vsyncadd (%p2945_p8), %s428_s11, 4294966272  ;;  %s2567_s18 = scalar_lea.vmem [#allocation10], %s2550_s8  ;;  %p2946_p13 = scmp.eq.s32.totalorder %s2270_s30, 0 }
  0xe9   : > { %2147 = dma.done.wait (%p2946_p13), [#allocation12], 2048   ;;  %p2947_p5 = pmov %p2946_p13 }
  0xeb   : > { %2149 = vsyncadd (%p2947_p5), [#allocation12], 4294965248  ;;  %p2948_p9 = pmov %p2947_p5 }
  0xec   : > { %p2949_p2 = pmov %p2947_p5 }
  0xed   : > { %2151 = dma.done.wait (%p2948_p9), [#allocation15], 2048  }
  0xee   : > { %2153 = vsyncadd (%p2949_p2), [#allocation15], 4294965248  ;;  %v2577_v0 = vld [vmem:[%s431_s5] sm:$0xff]   ;;  %v1614_v1 = vld [vmem:[%s431_s5 + $0x8] sm:$0xff]   ;;  %s2193_s30 = smov 64   ;;  %vm510_vm0 = vcmask 7168  }
  0xef   : > { %v1615_v2 = vld [vmem:[%s431_s5 + $0x10] sm:$0xff]   ;;  %v1577_v3 = vunpack.c.l.bf16 %v2577_v0  ;;  %v1578_v4 = vunpack.c.h.bf16 %v2577_v0  ;;  %v1581_v5 = vunpack.c.l.bf16 %v1614_v1  ;;  %v1582_v6 = vunpack.c.h.bf16 %v1614_v1  ;;  %v2581_v7 = vld [vmem:[%s431_s5 + $0x18] sm:$0xff]   ;;  %v2586_v12 = vld [vmem:[%s2554_s20] sm:$0xff]   ;;  %s2816_s9 = scalar_lea.vmem [#allocation17], %s2550_s8  ;;  %s2950_s28 = sld [smem:[#allocation24_spill]] }
  0xf0   : > { %v1585_v8 = vunpack.c.l.bf16 %v1615_v2  ;;  %v1586_v9 = vunpack.c.h.bf16 %v1615_v2  ;;  %v1589_v10 = vunpack.c.l.bf16 %v2581_v7  ;;  %v1590_v11 = vunpack.c.h.bf16 %v2581_v7  ;;  %v1611_v14 = vld [vmem:[%s2554_s20 + $0x8] sm:$0xff]   ;;  %v2594_v22 = vld [vmem:[%s2554_s20 + $0x10] sm:$0xff]   ;;  %v2597_v23 = vld [vmem:[%s2554_s20 + $0x18] sm:$0xff]   ;;  %s2951_s14 = sld [smem:[#allocation29_spill]]  ;;  %s1315_s21 = sshll.u32 %s2816_s9, 4  ;;  %s2823_s21 = int_to_ptr.vmem [resolvable:$true] %s1315_s21 }
  0xf1   : > { %v1790_v13 = vpack.i.bf16 %v1578_v4, %v1577_v3  ;;  %v1795_v16 = vpack.i.bf16 %v1582_v6, %v1581_v5  ;;  %v1561_v17 = vunpack.c.l.bf16 %v2586_v12  ;;  %v1562_v18 = vunpack.c.h.bf16 %v2586_v12  ;;  %v634_v32 = vld [vmem:[#allocation14 + $0x20] sm:$0xff]  ;;  %v635_v33 = vld [vmem:[#allocation14 + $0x28] sm:$0xff]  ;;  %v632_v34 = vld [vmem:[#allocation14 + $0x10] sm:$0xff]  ;;  %s2952_s7 = sld [smem:[#allocation34_spill]]  ;;  %s1300_s15 = scalar_lea.sflag [#allocation7], %s2547_s19 }
  0xf2   : > { %v1800_v15 = vpack.i.bf16 %v1586_v9, %v1585_v8  ;;  %v1805_v19 = vpack.i.bf16 %v1590_v11, %v1589_v10  ;;  %v1565_v20 = vunpack.c.l.bf16 %v1611_v14  ;;  %v1566_v21 = vunpack.c.h.bf16 %v1611_v14  ;;  %v633_v35 = vld [vmem:[#allocation14 + $0x18] sm:$0xff]  ;;  %v662_v36 = vld [vmem:[#allocation16] sm:$0xff]  ;;  %v631_v38 = vld [vmem:[#allocation14 + $0x8] sm:$0xff]  ;;  %s2086_s29 = scalar_lea.vmem %s2823_s21, 512  ;;  %s2197_s22 = smov [#allocation17]  }
  0xf3   : > { %1791 = vrot.lane.b32.xlu0 %v1790_v13, %s2193_s30  ;;  %v1810_v24 = vpack.i.bf16 %v1562_v18, %v1561_v17  ;;  %v1569_v25 = vunpack.c.l.bf16 %v2594_v22  ;;  %v1570_v26 = vunpack.c.h.bf16 %v2594_v22  ;;  %v1573_v28 = vunpack.c.l.bf16 %v2597_v23  ;;  %v630_v37 = vld [vmem:[#allocation14] sm:$0xff]  ;;  %v663_v39 = vld [vmem:[#allocation16 + $0x8] sm:$0xff]  ;;  %v636_v40 = vld [vmem:[#allocation14 + $0x30] sm:$0xff]  ;;  %p2087_p4 = scmp.ne.s32.totalorder %s2823_s21, %s2086_s29  ;;  %s2090_s16 = sshll.u32 %s2197_s22, 4  ;;  %s2091_s16 = int_to_ptr.vmem [resolvable:$false] %s2090_s16 }
  0xf4   : > { %1801 = vrot.lane.b32.xlu1 %v1800_v15, %s2193_s30  ;;  %v1815_v27 = vpack.i.bf16 %v1566_v21, %v1565_v20  ;;  %v1574_v29 = vunpack.c.h.bf16 %v2597_v23  ;;  %v637_v41 = vld [vmem:[#allocation14 + $0x38] sm:$0xff]  ;;  %v643_v42 = vmul.f32 %v1586_v9, %v635_v33  ;;  %v642_v43 = vmul.f32 %v1585_v8, %v634_v32  ;;  %v666_v47 = vld [vmem:[#allocation16 + $0x20] sm:$0xff]  ;;  %v576_v48 = vld [vmem:[#allocation11 + $0x10] sm:$0xff]  ;;  %s2092_s23 = scalar_lea.vmem %s2091_s16, 1024  ;;  %p2093_p1 = scmp.lt.s32.totalorder %s2823_s21, %s2091_s16 }
  0xf5   : > { %v1820_v30 = vpack.i.bf16 %v1570_v26, %v1569_v25  ;;  %v640_v45 = vmul.f32 %v1581_v5, %v632_v34  ;;  %v641_v46 = vmul.f32 %v1582_v6, %v633_v35  ;;  %v577_v49 = vld [vmem:[#allocation11 + $0x18] sm:$0xff]  ;;  %v638_v52 = vmul.f32 %v1577_v3, %v630_v37  ;;  %v667_v54 = vld [vmem:[#allocation16 + $0x28] sm:$0xff]  ;;  %v574_v56 = vld [vmem:[#allocation11] sm:$0xff]  ;;  %s1558_s10 = sshll.u32 %s2950_s28, 9  ;;  %p2094_p6 = scmp.lt.s32.totalorder %s2092_s23, %s2086_s29 }
  0xf6   : > { %v1825_v31 = vpack.i.bf16 %v1574_v29, %v1573_v28  ;;  %v639_v53 = vmul.f32 %v1578_v4, %v631_v38  ;;  %v575_v57 = vld [vmem:[#allocation11 + $0x8] sm:$0xff]  ;;  %v644_v60 = vmul.f32 %v1589_v10, %v636_v40  ;;  %v645_v61 = vmul.f32 %v1590_v11, %v637_v41  ;;  %v664_v2 = vld [vmem:[#allocation16 + $0x10] sm:$0xff]  ;;  %v665_v5 = vld [vmem:[#allocation16 + $0x18] sm:$0xff]  ;;  %p2953_p7 = scmp.ne.s32.totalorder %s2951_s14, 0 }
  0xf7   : > { %1796 = vrot.lane.b32.xlu0 %v1795_v16, %s2193_s30  ;;  %v2617_v0 = vmul.f32 %v1566_v21, %v577_v49  ;;  %v2619_v1 = vmul.f32 %v1565_v20, %v576_v48  ;;  %v578_v4 = vld [vmem:[#allocation11 + $0x20] sm:$0xff]  ;;  %v582_v8 = vmul.f32 %v1561_v17, %v574_v56  ;;  %v583_v9 = vmul.f32 %v1562_v18, %v575_v57  ;;  %v668_v10 = vld [vmem:[#allocation16 + $0x30] sm:$0xff]  ;;  %v669_v11 = vld [vmem:[#allocation16 + $0x38] sm:$0xff]  ;;  %s2828_s27 = scalar_lea.hbm %s2952_s7, %s1558_s10  ;;  %p2095_p11 = por %p2094_p6, %p2093_p1 }
  0xf8   : > { %1806 = vrot.lane.b32.xlu1 %v1805_v19, %s2193_s30  ;;  %v579_v19 = vld [vmem:[#allocation11 + $0x28] sm:$0xff]  ;;  %v586_v33 = vmul.f32 %v1569_v25, %v578_v4  ;;  %v606_v35 = vld [vmem:[#allocation13] sm:$0xff]  ;;  %v581_v49 = vld [vmem:[#allocation11 + $0x38] sm:$0xff]  ;;  %vm813_vm2 = vcmask 523264   ;;  %p2088_p10 = pnand %p2087_p4, %p2953_p7 }
  0xf9   : > { %v587_v38 = vmul.f32 %v1570_v26, %v579_v19  ;;  %v610_v56 = vld [vmem:[#allocation13 + $0x20] sm:$0xff]  ;;  %v611_v57 = vld [vmem:[#allocation13 + $0x28] sm:$0xff] }
  0xfa   : > { %p2089_p3 = pneg %p2088_p10 }
  0xfb   : > { %1811 = vrot.lane.b32.xlu0 %v1810_v24, %s2193_s30 }
  0xfc   : > { %1816 = vrot.lane.b32.xlu1 %v1815_v27, %s2193_s30  ;;  %p2096_p0 = pnand %p2095_p11, %p2089_p3 }
  0xff   : > { %1821 = vrot.lane.b32.xlu0 %v1820_v30, %s2193_s30 }
 0x100   : > { %1826 = vrot.lane.b32.xlu1 %v1825_v31, %s2193_s30 }
 0x165   : > { %v1792_v44 = vpop.permute.xlu0 %1791 }
 0x166   : > { %v1794_v50 = vunpack.i.h.bf16 %v1792_v44  ;;  %v1793_v51 = vunpack.i.l.bf16 %v1792_v44  ;;  %v1802_v55 = vpop.permute.xlu1 %1801  ;;  %v608_v44 = vld [vmem:[#allocation13 + $0x10] sm:$0xff] }
 0x167   : > { %v1804_v58 = vunpack.i.h.bf16 %v1802_v55  ;;  %v1803_v59 = vunpack.i.l.bf16 %v1802_v55 }
 0x168   : > { %v671_v62 = vmul.f32 %v1794_v50, %v663_v39  ;;  %v670_v63 = vmul.f32 %v1793_v51, %v662_v36  ;;  %v607_v36 = vld [vmem:[#allocation13 + $0x8] sm:$0xff]  ;;  %v580_v39 = vld [vmem:[#allocation11 + $0x30] sm:$0xff] }
 0x169   : > { %v1797_v6 = vpop.permute.xlu0 %1796  ;;  %v675_v7 = vmul.f32 %v1804_v58, %v667_v54  ;;  %v674_v3 = vmul.f32 %v1803_v59, %v666_v47  ;;  %v609_v47 = vld [vmem:[#allocation13 + $0x18] sm:$0xff]  ;;  %v588_v22 = vmul.f32 %v1573_v28, %v580_v39  ;;  %v589_v59 = vmul.f32 %v1574_v29, %v581_v49 }
 0x16a   : > { %v1799_v12 = vunpack.i.h.bf16 %v1797_v6  ;;  %v1798_v13 = vunpack.i.l.bf16 %v1797_v6  ;;  %v678_v14 = vadd.f32 %v670_v63, %v638_v52  ;;  %v679_v15 = vadd.f32 %v671_v62, %v639_v53  ;;  %v1807_v16 = vpop.permute.xlu1 %1806  ;;  %v612_v62 = vld [vmem:[#allocation13 + $0x30] sm:$0xff]  ;;  %v613_v63 = vld [vmem:[#allocation13 + $0x38] sm:$0xff] }
 0x16b   : > { %v683_v21 = vadd.f32 %v675_v7, %v643_v42  ;;  %v682_v24 = vadd.f32 %v674_v3, %v642_v43  ;;  %v1809_v20 = vunpack.i.h.bf16 %v1807_v16  ;;  %v1808_v27 = vunpack.i.l.bf16 %v1807_v16 }
 0x16c   : > { %v673_v30 = vmul.f32 %v1799_v12, %v665_v5  ;;  %v672_v31 = vmul.f32 %v1798_v13, %v664_v2  ;;  %v690_v32 = vpack.c.bf16 %v679_v15, %v678_v14 }
 0x16d   : > { %v677_v17 = vmul.f32 %v1809_v20, %v669_v11  ;;  %v676_v18 = vmul.f32 %v1808_v27, %v668_v10  ;;  %v692_v34 = vpack.c.bf16 %v683_v21, %v682_v24  ;;  %v1812_v37 = vpop.permute.xlu0 %1811 }
 0x16e   : > { %v681_v40 = vadd.f32 %v673_v30, %v641_v46  ;;  %v680_v41 = vadd.f32 %v672_v31, %v640_v45  ;;  %1636 = vmatprep.subr.bf16.mxu0 %v690_v32  ;;  %v1814_v42 = vunpack.i.h.bf16 %v1812_v37  ;;  %v1813_v43 = vunpack.i.l.bf16 %v1812_v37  ;;  %v1817_v48 = vpop.permute.xlu1 %1816 }
 0x16f   : > { %1637 = vmatpush3.bf16.xpose.msra.mxu0 %v690_v32  ;;  %v685_v25 = vadd.f32 %v677_v17, %v645_v61  ;;  %v684_v50 = vadd.f32 %v676_v18, %v644_v60  ;;  %v1819_v51 = vunpack.i.h.bf16 %v1817_v48  ;;  %v1818_v52 = vunpack.i.l.bf16 %v1817_v48 }
 0x170   : > { %v691_v53 = vpack.c.bf16 %v681_v40, %v680_v41  ;;  %v615_v54 = vmul.f32 %v1814_v42, %v607_v36  ;;  %v614_v55 = vmul.f32 %v1813_v43, %v606_v35 }
 0x171   : > { %v617_v26 = vmul.f32 %v1819_v51, %v609_v47  ;;  %v616_v45 = vmul.f32 %v1818_v52, %v608_v44  ;;  %v693_v46 = vpack.c.bf16 %v685_v25, %v684_v50  ;;  %v1822_v58 = vpop.permute.xlu0 %1821 }
 0x172   : > { %1638 = vmatprep.subr.bf16.mxu0 %v691_v53  ;;  %v1824_v61 = vunpack.i.h.bf16 %v1822_v58  ;;  %v1823_v60 = vunpack.i.l.bf16 %v1822_v58  ;;  %v1827_v2 = vpop.permute.xlu1 %1826  ;;  %v622_v5 = vadd.f32 %v614_v55, %v582_v8  ;;  %v623_v6 = vadd.f32 %v615_v54, %v583_v9 }
 0x173   : > { %v625_v7 = vadd.f32 %v617_v26, %v2617_v0  ;;  %v624_v28 = vadd.f32 %v616_v45, %v2619_v1  ;;  %v1829_v3 = vunpack.i.h.bf16 %v1827_v2  ;;  %v1828_v4 = vunpack.i.l.bf16 %v1827_v2 }
 0x174   : > { %v619_v12 = vmul.f32 %v1824_v61, %v611_v57  ;;  %v618_v13 = vmul.f32 %v1823_v60, %v610_v56  ;;  %v686_v14 = vpack.c.bf16 %v623_v6, %v622_v5  ;;  %v2194_v0 = vmov -1e+30  }
 0x175   : > { %v621_v15 = vmul.f32 %v1829_v3, %v613_v63  ;;  %v620_v23 = vmul.f32 %v1828_v4, %v612_v62  ;;  %v687_v29 = vpack.c.bf16 %v625_v7, %v624_v28  ;;  %511 = vst.msk [vmem:[#allocation2] sm:$0xff] %vm510_vm0, %v2194_v0  ;;  %512 = vst.msk [vmem:[#allocation2 + $0x8] sm:$0xff] %vm510_vm0, %v2194_v0  ;;  %v767_v1 = vlaneseq }
 0x176   : > { %v627_v10 = vadd.f32 %v619_v12, %v587_v38  ;;  %v626_v11 = vadd.f32 %v618_v13, %v586_v33  ;;  %1644 = vmatprep.mubr.bf16.mxu0 %v686_v14  ;;  %513 = vst.msk [vmem:[#allocation2 + $0x10] sm:$0xff] %vm510_vm0, %v2194_v0  ;;  %514 = vst.msk [vmem:[#allocation2 + $0x18] sm:$0xff] %vm510_vm0, %v2194_v0  ;;  %v2195_v62 = vmov 0   ;;  %v2196_v63 = vmov 0.0  }
 0x177   : > { %1639 = vmatpush3.bf16.xpose.msra.mxu0 %v691_v53  ;;  %v629_v16 = vadd.f32 %v621_v15, %v589_v59  ;;  %v628_v19 = vadd.f32 %v620_v23, %v588_v22  ;;  %515 = vst.msk [vmem:[#allocation2 + $0x20] sm:$0xff] %vm510_vm0, %v2194_v0  ;;  %516 = vst.msk [vmem:[#allocation2 + $0x28] sm:$0xff] %vm510_vm0, %v2194_v0  ;;  %v768_v21 = vshrl.u32 %v767_v1, 7  ;;  %v786_v24 = vand.u32 127, %v767_v1 }
 0x178   : > { %1640 = vmatprep.subr.bf16.mxu0 %v692_v34  ;;  %v688_v8 = vpack.c.bf16 %v627_v10, %v626_v11  ;;  %517 = vst.msk [vmem:[#allocation2 + $0x30] sm:$0xff] %vm510_vm0, %v2194_v0  ;;  %518 = vst.msk [vmem:[#allocation2 + $0x38] sm:$0xff] %vm510_vm0, %v2194_v0  ;;  %1830 = vset.pattern.permute.xlu1 %v2195_v62 }
 0x179   : > { %v689_v9 = vpack.c.bf16 %v629_v16, %v628_v19  ;;  %v769_v20 = vadd.s32 8, %v768_v21  ;;  %v770_v27 = vadd.s32 16, %v768_v21  ;;  %vm789_vm1 = vcmp.le.s32.totalorder %v786_v24, %v768_v21  ;;  %1831 = vset.pattern.permute.xlu0 %v2195_v62  ;;  %521 = vst.msk [vmem:[#allocation3 + $0x10] sm:$0xff] %vm510_vm0, %v2196_v63  ;;  %519 = vst.msk [vmem:[#allocation3] sm:$0xff] %vm510_vm0, %v2196_v63 }
 0x17a   : > { %v771_v32 = vadd.s32 24, %v768_v21  ;;  %v772_v39 = vadd.s32 32, %v768_v21  ;;  %v774_v43 = vadd.s32 48, %v768_v21  ;;  %v773_v44 = vadd.s32 40, %v768_v21  ;;  %520 = vst.msk [vmem:[#allocation3 + $0x8] sm:$0xff] %vm510_vm0, %v2196_v63  ;;  %522 = vst.msk [vmem:[#allocation3 + $0x18] sm:$0xff] %vm510_vm0, %v2196_v63 }
 0x17b   : > { %vm790_vm3 = vcmp.le.s32.totalorder %v786_v24, %v769_v20  ;;  %vm791_vm4 = vcmp.le.s32.totalorder %v786_v24, %v770_v27  ;;  %v775_v54 = vadd.s32 56, %v768_v21  ;;  %523 = vst.msk [vmem:[#allocation3 + $0x20] sm:$0xff] %vm510_vm0, %v2196_v63  ;;  %524 = vst.msk [vmem:[#allocation3 + $0x28] sm:$0xff] %vm510_vm0, %v2196_v63 }
 0x17c   : > { %vm792_vm5 = vcmp.le.s32.totalorder %v786_v24, %v771_v32  ;;  %vm793_vm6 = vcmp.le.s32.totalorder %v786_v24, %v772_v39  ;;  %vm795_vm7 = vcmp.le.s32.totalorder %v786_v24, %v774_v43  ;;  %vm794_vm8 = vcmp.le.s32.totalorder %v786_v24, %v773_v44  ;;  %525 = vst.msk [vmem:[#allocation3 + $0x30] sm:$0xff] %vm510_vm0, %v2196_v63  ;;  %v2679_v2 = vld [vmem:[#allocation2] sm:$0xff]  ;;  %v2681_v6 = vld [vmem:[#allocation2 + $0x8] sm:$0xff]  ;;  %v1835_v39 = vld [vmem:[%s2567_s18 + $0x18] sm:$0xff]  }
 0x17d   : > { %vm796_vm9 = vcmp.le.s32.totalorder %v786_v24, %v775_v54  ;;  %526 = vst.msk [vmem:[#allocation3 + $0x38] sm:$0xff] %vm510_vm0, %v2196_v63  ;;  %v2686_v3 = vld [vmem:[#allocation2 + $0x10] sm:$0xff]  ;;  %v2704_v23 = vld [vmem:[#allocation2 + $0x18] sm:$0xff]  ;;  %v1832_v24 = vld [vmem:[%s2567_s18] sm:$0xff]  }
 0x17e   : > { %v2721_v0 = vld [vmem:[#allocation2 + $0x28] sm:$0xff]  ;;  %1652 = vmatprep.subr.bf16.mxu1 %v1832_v24 }
 0x17f   : > { %1641 = vmatpush3.bf16.xpose.msra.mxu0 %v692_v34  ;;  %v2739_v32 = vld [vmem:[#allocation2 + $0x38] sm:$0xff]  ;;  %1653 = vmatpush3.bf16.msra.mxu1 %v1832_v24 }
 0x180   : > { %1642 = vmatprep.subr.bf16.mxu0 %v693_v46 }
 0x187   : > { %1643 = vmatpush3.bf16.xpose.msra.mxu0 %v693_v46 }
 0x18e   : > { %1645 = vmatmul.mubr.bf16.vlgmr.msra.gmra.mrb[0].mxu0 %v687_v29  ;;  %v2706_v29 = vld [vmem:[#allocation2 + $0x20] sm:$0xff] }
 0x18f   : > { %1648 = vmatprep.mubr.bf16.mxu0 %v688_v8 }
 0x196   : > { %1649 = vmatmul.mubr.bf16.gmra.mrb[4].mxu0 %v689_v9  ;;  %v2719_v9 = vld [vmem:[#allocation2 + $0x30] sm:$0xff] }
 0x261   : > { %v1646_v30 = vpop.f32.mrb[0].mxu0 }
 0x262   : > { %v728_v31 = vpop.f32.mrb[1].mxu0  ;;  %v761_v33 = vmul.f32 0.088388346, %v1646_v30 }
 0x263   : > { %v759_v17 = vmul.f32 0.088388346, %v728_v31  ;;  %v1647_v18 = vpop.f32.mrb[2].mxu0 }
 0x264   : > { %v731_v34 = vpop.f32.mrb[3].mxu0  ;;  %v762_v37 = vmul.f32 0.088388346, %v1647_v18  ;;  %v2645_v41 = vsel %vm791_vm4, %v761_v33, -1e+30  ;;  %v1833_v18 = vld [vmem:[%s2567_s18 + $0x8] sm:$0xff]  }
 0x265   : > { %v760_v35 = vmul.f32 0.088388346, %v731_v34  ;;  %v2639_v36 = vsel %vm789_vm1, %v759_v17, -1e+30  ;;  %v820_v49 = vsel %vm813_vm2, %v2645_v41, -inf  ;;  %1654 = vmatprep.subr.bf16.mxu1 %v1833_v18 }
 0x266   : > { %v814_v38 = vsel %vm813_vm2, %v2639_v36, -inf  ;;  %v2651_v25 = vsel %vm792_vm5, %v762_v37, -1e+30  ;;  %1655 = vmatpush3.bf16.msra.mxu1 %v1833_v18 }
 0x267   : > { %815 = vmax.xlane.f32.xlu0 %v814_v38  ;;  %v2643_v40 = vsel %vm790_vm3, %v760_v35, -1e+30  ;;  %v823_v26 = vsel %vm813_vm2, %v2651_v25, -inf  ;;  %v1834_v38 = vld [vmem:[%s2567_s18 + $0x10] sm:$0xff]  }
 0x268   : > { %v817_v42 = vsel %vm813_vm2, %v2643_v40, -inf  ;;  %1656 = vmatprep.subr.bf16.mxu1 %v1834_v38 }
 0x269   : > { %818 = vmax.xlane.f32.xlu1 %v817_v42  ;;  %v1650_v47 = vpop.f32.mrb[4].mxu0 }
 0x26a   : > { %v744_v48 = vpop.f32.mrb[5].mxu0  ;;  %v765_v50 = vmul.f32 0.088388346, %v1650_v47  ;;  %1657 = vmatpush3.bf16.msra.mxu1 %v1834_v38 }
 0x26b   : > { %v763_v51 = vmul.f32 0.088388346, %v744_v48  ;;  %821 = vmax.xlane.f32.xlu0 %v820_v49  ;;  %v1651_v52 = vpop.f32.mrb[6].mxu0  ;;  %1658 = vmatprep.subr.bf16.mxu1 %v1835_v39 }
 0x26c   : > { %v747_v53 = vpop.f32.mrb[7].mxu0  ;;  %v766_v46 = vmul.f32 0.088388346, %v1651_v52  ;;  %v2659_v56 = vsel %vm795_vm7, %v765_v50, -1e+30 }
 0x26d   : > { %v764_v55 = vmul.f32 0.088388346, %v747_v53  ;;  %v2653_v22 = vsel %vm793_vm6, %v763_v51, -1e+30  ;;  %v832_v58 = vsel %vm813_vm2, %v2659_v56, -inf }
 0x26e   : > { %v826_v45 = vsel %vm813_vm2, %v2653_v22, -inf  ;;  %v2667_v61 = vsel %vm796_vm9, %v766_v46, -1e+30  ;;  %1659 = vmatpush3.bf16.msra.mxu1 %v1835_v39 }
 0x26f   : > { %824 = vmax.xlane.f32.xlu0 %v823_v26  ;;  %827 = vmax.xlane.f32.xlu1 %v826_v45  ;;  %v2661_v57 = vsel %vm794_vm8, %v764_v55, -1e+30  ;;  %v835_v60 = vsel %vm813_vm2, %v2667_v61, -inf }
 0x270   : > { %v829_v59 = vsel %vm813_vm2, %v2661_v57, -inf }
 0x273   : > { %833 = vmax.xlane.f32.xlu1 %v832_v58  ;;  %830 = vmax.xlane.f32.xlu0 %v829_v59 }
 0x277   : > { %836 = vmax.xlane.f32.xlu0 %v835_v60 }
 0x2f4   : > { %v816_v5 = vpop.xlane.xlu0 %815 }
 0x2f5   : > { %v2684_v7 = vmax.f32 %v2679_v2, %v816_v5 }
 0x2f6   : > { %v819_v28 = vpop.xlane.xlu1 %818 }
 0x2f7   : > { %v846_v4 = vsub.f32 %v2679_v2, %v2684_v7  ;;  %1176 = vst.msk [vmem:[#allocation2] sm:$0xff] %vm510_vm0, %v2684_v7  ;;  %v2693_v12 = vmax.f32 %v2681_v6, %v819_v28  ;;  %872 = vperm.xlu1 %1830, %v2684_v7  }
 0x2f8   : > { %v822_v13 = vpop.xlane.xlu0 %821 }
 0x2f9   : > { %v847_v14 = vsub.f32 %v2681_v6, %v2693_v12  ;;  %1177 = vst.msk [vmem:[#allocation2 + $0x8] sm:$0xff] %vm510_vm0, %v2693_v12  ;;  %v2701_v15 = vmax.f32 %v2686_v3, %v822_v13  ;;  %877 = vperm.xlu0 %1831, %v2693_v12  }
 0x2fb   : > { %v848_v10 = vsub.f32 %v2686_v3, %v2701_v15  ;;  %1178 = vst.msk [vmem:[#allocation2 + $0x10] sm:$0xff] %vm510_vm0, %v2701_v15  ;;  %882 = vperm.xlu1 %1830, %v2701_v15   ;;  %v856_v2 = vmul.f32 1.442695, %v847_v14 }
 0x2fc   : > { %v825_v11 = vpop.xlane.xlu0 %824  ;;  %v828_v16 = vpop.xlane.xlu1 %827 }
 0x2fd   : > { %v2714_v19 = vmax.f32 %v2704_v23, %v825_v11  ;;  %v2717_v8 = vmax.f32 %v2706_v29, %v828_v16 }
 0x2ff   : > { %v849_v1 = vsub.f32 %v2704_v23, %v2714_v19  ;;  %1179 = vst.msk [vmem:[#allocation2 + $0x18] sm:$0xff] %vm510_vm0, %v2714_v19  ;;  %v850_v21 = vsub.f32 %v2706_v29, %v2717_v8  ;;  %1180 = vst.msk [vmem:[#allocation2 + $0x20] sm:$0xff] %vm510_vm0, %v2717_v8  ;;  %887 = vperm.xlu1 %1830, %v2714_v19  }
 0x300   : > { %v834_v20 = vpop.xlane.xlu1 %833  ;;  %v831_v27 = vpop.xlane.xlu0 %830 }
 0x301   : > { %v2734_v30 = vmax.f32 %v2719_v9, %v834_v20  ;;  %v2737_v31 = vmax.f32 %v2721_v0, %v831_v27  ;;  %v862_v3 = vmul.f32 1.442695, %v850_v21  ;;  %v937_v21 = vld [vmem:[#allocation3 + $0x18] sm:$0xff] }
 0x303   : > { %v852_v33 = vsub.f32 %v2719_v9, %v2734_v30  ;;  %1182 = vst.msk [vmem:[#allocation2 + $0x30] sm:$0xff] %vm510_vm0, %v2734_v30  ;;  %v851_v17 = vsub.f32 %v2721_v0, %v2737_v31  ;;  %1181 = vst.msk [vmem:[#allocation2 + $0x28] sm:$0xff] %vm510_vm0, %v2737_v31  ;;  %902 = vperm.xlu1 %1830, %v2734_v30   ;;  %v936_v0 = vld [vmem:[#allocation3 + $0x10] sm:$0xff]  ;;  %v934_v30 = vld [vmem:[#allocation3] sm:$0xff] }
 0x304   : > { %v837_v34 = vpop.xlane.xlu0 %836 }
 0x305   : > { %v2752_v35 = vmax.f32 %v2739_v32, %v837_v34  ;;  %v864_v7 = vmul.f32 1.442695, %v851_v17  ;;  %v866_v6 = vmul.f32 1.442695, %v852_v33 }
 0x307   : > { %v853_v37 = vsub.f32 %v2739_v32, %v2752_v35  ;;  %1183 = vst.msk [vmem:[#allocation2 + $0x38] sm:$0xff] %vm510_vm0, %v2752_v35  ;;  %892 = vperm.xlu1 %1830, %v2717_v8  }
 0x309   : > { %v868_v15 = vmul.f32 1.442695, %v853_v37  ;;  %v935_v37 = vld [vmem:[#allocation3 + $0x8] sm:$0xff] }
 0x30b   : > { %897 = vperm.xlu1 %1830, %v2737_v31  }
 0x30f   : > { %907 = vperm.xlu1 %1830, %v2752_v35  }
 0x376   : > { %v873_v42 = vpop.permute.xlu1 %872 }
 0x377   : > { %v910_v43 = vsub.f32 %v2639_v36, %v873_v42 }
 0x378   : > { %v878_v44 = vpop.permute.xlu0 %877 }
 0x379   : > { %v918_v47 = vmul.f32 1.442695, %v910_v43  ;;  %v911_v48 = vsub.f32 %v2643_v40, %v878_v44  ;;  %v854_v44 = vmul.f32 1.442695, %v846_v4 }
 0x37a   : > { %v883_v49 = vpop.permute.xlu1 %882 }
 0x37b   : > { %v920_v50 = vmul.f32 1.442695, %v911_v48  ;;  %v912_v51 = vsub.f32 %v2645_v41, %v883_v49  ;;  %1836 = vpow2.f32 %v918_v47  ;;  %v858_v49 = vmul.f32 1.442695, %v848_v10 }
 0x37d   : > { %1838 = vpow2.f32 %v920_v50  ;;  %v922_v52 = vmul.f32 1.442695, %v912_v51  ;;  %v860_v50 = vmul.f32 1.442695, %v849_v1 }
 0x37e   : > { %v888_v53 = vpop.permute.xlu1 %887 }
 0x37f   : > { %1840 = vpow2.f32 %v922_v52  ;;  %v913_v54 = vsub.f32 %v2651_v25, %v888_v53 }
 0x381   : > { %v924_v55 = vmul.f32 1.442695, %v913_v54 }
 0x382   : > { %v903_v26 = vpop.permute.xlu1 %902 }
 0x383   : > { %1842 = vpow2.f32 %v924_v55  ;;  %v916_v36 = vsub.f32 %v2659_v56, %v903_v26  ;;  %v938_v55 = vld [vmem:[#allocation3 + $0x20] sm:$0xff] }
 0x385   : > { %v1837_v45 = vpop.eup %1836  ;;  %v930_v41 = vmul.f32 1.442695, %v916_v36 }
 0x386   : > { %v893_v46 = vpop.permute.xlu1 %892  ;;  %v950_v11 = vsel %vm813_vm2, %v1837_v45, 0.0 }
 0x387   : > { %v1839_v58 = vpop.eup %1838  ;;  %v914_v40 = vsub.f32 %v2653_v22, %v893_v46 }
 0x388   : > { %v1047_v59 = vpack.c.bf16 %v1839_v58, %v1837_v45 }
 0x389   : > { %v1841_v60 = vpop.eup %1840  ;;  %v926_v62 = vmul.f32 1.442695, %v914_v40  ;;  %v940_v40 = vld [vmem:[#allocation3 + $0x30] sm:$0xff] }
 0x38a   : > { %1660 = vmatprep.mubr.msk.bf16.mxu1 %vm813_vm2, %v1047_v59  ;;  %v898_v63 = vpop.permute.xlu1 %897  ;;  %v956_v5 = vsel %vm813_vm2, %v1841_v60, 0.0 }
 0x38b   : > { %1844 = vpow2.f32 %v926_v62  ;;  %v915_v25 = vsub.f32 %v2661_v57, %v898_v63  ;;  %957 = vadd.xlane.f32.xlu1 %v956_v5  ;;  %v953_v57 = vsel %vm813_vm2, %v1839_v58, 0.0  ;;  %v939_v58 = vld [vmem:[#allocation3 + $0x28] sm:$0xff] }
 0x38c   : > { %1846 = vpow2.f32 %v930_v41 }
 0x38d   : > { %v1843_v28 = vpop.eup %1842  ;;  %v928_v56 = vmul.f32 1.442695, %v915_v25 }
 0x38e   : > { %v908_v13 = vpop.permute.xlu1 %907  ;;  %v959_v22 = vsel %vm813_vm2, %v1843_v28, 0.0  ;;  %v1048_v16 = vpack.c.bf16 %v1843_v28, %v1841_v60  ;;  %v941_v28 = vld [vmem:[#allocation3 + $0x38] sm:$0xff] }
 0x38f   : > { %1848 = vpow2.f32 %v928_v56  ;;  %v917_v24 = vsub.f32 %v2667_v61, %v908_v13  ;;  %951 = vadd.xlane.f32.xlu1 %v950_v11  ;;  %960 = vadd.xlane.f32.xlu0 %v959_v22 }
 0x390   : > { %1661 = vmatmul.mubr.msk.bf16.vlgmr.msra.gmra.mrb[0].mxu1 %vm813_vm2, %v1048_v16 }
 0x391   : > { %v932_v20 = vmul.f32 1.442695, %v917_v24 }
 0x393   : > { %1850 = vpow2.f32 %v932_v20  ;;  %954 = vadd.xlane.f32.xlu0 %v953_v57 }
 0x394   : > { %1852 = vpow2.f32 %v854_v44 }
 0x395   : > { %v1845_v27 = vpop.eup %1844  ;;  %1854 = vpow2.f32 %v858_v49 }
 0x396   : > { %v962_v18 = vsel %vm813_vm2, %v1845_v27, 0.0  ;;  %v1847_v34 = vpop.eup %1846  ;;  %1856 = vpow2.f32 %v860_v50 }
 0x397   : > { %963 = vadd.xlane.f32.xlu1 %v962_v18  ;;  %v968_v39 = vsel %vm813_vm2, %v1847_v34, 0.0  ;;  %1858 = vpow2.f32 %v856_v2 }
 0x398   : > { %1860 = vpow2.f32 %v864_v7 }
 0x399   : > { %v1849_v38 = vpop.eup %1848  ;;  %1862 = vpow2.f32 %v862_v3 }
 0x39a   : > { %v965_v42 = vsel %vm813_vm2, %v1849_v38, 0.0  ;;  %v1049_v61 = vpack.c.bf16 %v1849_v38, %v1845_v27  ;;  %1864 = vpow2.f32 %v868_v15 }
 0x39b   : > { %969 = vadd.xlane.f32.xlu1 %v968_v39  ;;  %966 = vadd.xlane.f32.xlu0 %v965_v42  ;;  %1866 = vpow2.f32 %v866_v6 }
 0x39c   : > { %1664 = vmatprep.mubr.msk.bf16.mxu1 %vm813_vm2, %v1049_v61 }
 0x39d   : > { %v1851_v43 = vpop.eup %1850 }
 0x39e   : > { %v971_v47 = vsel %vm813_vm2, %v1851_v43, 0.0  ;;  %v1050_v48 = vpack.c.bf16 %v1851_v43, %v1847_v34  ;;  %v1853_v4 = vpop.eup %1852 }
 0x39f   : > { %972 = vadd.xlane.f32.xlu0 %v971_v47  ;;  %v1855_v12 = vpop.eup %1854  ;;  %v942_v33 = vmul.f32 %v1853_v4, %v934_v30 }
 0x3a0   : > { %1665 = vmatmul.mubr.msk.bf16.gmra.mrb[4].mxu1 %vm813_vm2, %v1050_v48  ;;  %v1857_v14 = vpop.eup %1856  ;;  %v944_v1 = vmul.f32 %v1855_v12, %v936_v0 }
 0x3a1   : > { %v1859_v23 = vpop.eup %1858  ;;  %v945_v32 = vmul.f32 %v1857_v14, %v937_v21 }
 0x3a2   : > { %v1861_v29 = vpop.eup %1860  ;;  %v943_v53 = vmul.f32 %v1859_v23, %v935_v37 }
 0x3a3   : > { %v1863_v10 = vpop.eup %1862  ;;  %v947_v62 = vmul.f32 %v1861_v29, %v939_v58 }
 0x3a4   : > { %v1865_v19 = vpop.eup %1864  ;;  %v946_v45 = vmul.f32 %v1863_v10, %v938_v55 }
 0x3a5   : > { %v1867_v8 = vpop.eup %1866  ;;  %v949_v22 = vmul.f32 %v1865_v19, %v941_v28 }
 0x3a6   : > { %v948_v63 = vmul.f32 %v1867_v8, %v940_v40 }
 0x3ac   : > { %1001 = vperm.xlu1 %1830, %v1853_v4  }
 0x3b0   : > { %1011 = vperm.xlu1 %1830, %v1855_v12  }
 0x3b4   : > { %1016 = vperm.xlu1 %1830, %v1857_v14  }
 0x3b5   : > { %1006 = vperm.xlu0 %1831, %v1859_v23  }
 0x3b8   : > { %1026 = vperm.xlu1 %1830, %v1861_v29  }
 0x3b9   : > { %1021 = vperm.xlu0 %1831, %v1863_v10  }
 0x3bc   : > { %1036 = vperm.xlu1 %1830, %v1865_v19  }
 0x3bd   : > { %1031 = vperm.xlu0 %1831, %v1867_v8  }
 0x418   : > { %v958_v9 = vpop.xlane.xlu1 %957 }
 0x419   : > { %v976_v31 = vadd.f32 %v958_v9, %v944_v1 }
 0x41b   : > { %985 = vst.msk [vmem:[#allocation3 + $0x10] sm:$0xff] %vm510_vm0, %v976_v31 }
 0x41c   : > { %v961_v17 = vpop.xlane.xlu0 %960  ;;  %v952_v35 = vpop.xlane.xlu1 %951 }
 0x41d   : > { %v977_v51 = vadd.f32 %v961_v17, %v945_v32  ;;  %v974_v52 = vadd.f32 %v952_v35, %v942_v33 }
 0x41f   : > { %986 = vst.msk [vmem:[#allocation3 + $0x18] sm:$0xff] %vm510_vm0, %v977_v51  ;;  %983 = vst.msk [vmem:[#allocation3] sm:$0xff] %vm510_vm0, %v974_v52 }
 0x420   : > { %v955_v54 = vpop.xlane.xlu0 %954 }
 0x421   : > { %v975_v26 = vadd.f32 %v955_v54, %v943_v53 }
 0x422   : > { %v1197_v36 = vld [vmem:[#allocation3 + $0x10] sm:$0xff] }
 0x423   : > { %984 = vst.msk [vmem:[#allocation3 + $0x8] sm:$0xff] %vm510_vm0, %v975_v26  ;;  %1868 = vrcp.f32 %v1197_v36 }
 0x424   : > { %v964_v46 = vpop.xlane.xlu1 %963 }
 0x425   : > { %v978_v59 = vadd.f32 %v964_v46, %v946_v45 }
 0x426   : > { %v1198_v60 = vld [vmem:[#allocation3 + $0x18] sm:$0xff]  ;;  %v1195_v41 = vld [vmem:[#allocation3] sm:$0xff] }
 0x427   : > { %987 = vst.msk [vmem:[#allocation3 + $0x20] sm:$0xff] %vm510_vm0, %v978_v59  ;;  %1870 = vrcp.f32 %v1198_v60 }
 0x428   : > { %v967_v5 = vpop.xlane.xlu0 %966  ;;  %v970_v25 = vpop.xlane.xlu1 %969  ;;  %1872 = vrcp.f32 %v1195_v41 }
 0x429   : > { %v979_v56 = vadd.f32 %v967_v5, %v947_v62  ;;  %v980_v13 = vadd.f32 %v970_v25, %v948_v63 }
 0x42a   : > { %v1196_v11 = vld [vmem:[#allocation3 + $0x8] sm:$0xff] }
 0x42b   : > { %988 = vst.msk [vmem:[#allocation3 + $0x28] sm:$0xff] %vm510_vm0, %v979_v56  ;;  %989 = vst.msk [vmem:[#allocation3 + $0x30] sm:$0xff] %vm510_vm0, %v980_v13  ;;  %1874 = vrcp.f32 %v1196_v11 }
 0x42c   : > { %v973_v16 = vpop.xlane.xlu0 %972  ;;  %v1002_v6 = vpop.permute.xlu1 %1001 }
 0x42d   : > { %v1869_v24 = vpop.eup %1868  ;;  %v981_v20 = vadd.f32 %v973_v16, %v949_v22  ;;  %v1039_v32 = vmul.f32 0.0, %v1002_v6 }
 0x42e   : > { %1223 = vperm.xlu0 %1831, %v1869_v24   ;;  %v1199_v57 = vld [vmem:[#allocation3 + $0x20] sm:$0xff] }
 0x42f   : > { %990 = vst.msk [vmem:[#allocation3 + $0x38] sm:$0xff] %vm510_vm0, %v981_v20  ;;  %1876 = vrcp.f32 %v1199_v57 }
 0x430   : > { %v1012_v12 = vpop.permute.xlu1 %1011 }
 0x431   : > { %v1871_v27 = vpop.eup %1870  ;;  %v1041_v1 = vmul.f32 0.0, %v1012_v12 }
 0x432   : > { %v1873_v18 = vpop.eup %1872  ;;  %1228 = vperm.xlu1 %1830, %v1871_v27   ;;  %v1200_v34 = vld [vmem:[#allocation3 + $0x28] sm:$0xff]  ;;  %v1201_v38 = vld [vmem:[#allocation3 + $0x30] sm:$0xff] }
 0x433   : > { %1213 = vperm.xlu0 %1831, %v1873_v18   ;;  %1878 = vrcp.f32 %v1200_v34 }
 0x434   : > { %1880 = vrcp.f32 %v1201_v38  ;;  %v1007_v14 = vpop.permute.xlu0 %1006  ;;  %v1017_v23 = vpop.permute.xlu1 %1016 }
 0x435   : > { %v1875_v39 = vpop.eup %1874  ;;  %v1042_v9 = vmul.f32 0.0, %v1017_v23  ;;  %v1040_v33 = vmul.f32 0.0, %v1007_v14 }
 0x436   : > { %1218 = vperm.xlu1 %1830, %v1875_v39   ;;  %v1202_v42 = vld [vmem:[#allocation3 + $0x38] sm:$0xff] }
 0x437   : > { %1882 = vrcp.f32 %v1202_v42 }
 0x438   : > { %v1022_v29 = vpop.permute.xlu0 %1021  ;;  %v1027_v10 = vpop.permute.xlu1 %1026 }
 0x439   : > { %v1877_v61 = vpop.eup %1876  ;;  %v1043_v46 = vmul.f32 0.0, %v1022_v29  ;;  %v1044_v58 = vmul.f32 0.0, %v1027_v10 }
 0x43a   : > { %1233 = vperm.xlu0 %1831, %v1877_v61  }
 0x43c   : > { %v1032_v19 = vpop.permute.xlu0 %1031  ;;  %v1037_v8 = vpop.permute.xlu1 %1036 }
 0x43d   : > { %v1879_v43 = vpop.eup %1878  ;;  %v1045_v41 = vmul.f32 0.0, %v1032_v19  ;;  %v1046_v62 = vmul.f32 0.0, %v1037_v8 }
 0x43e   : > { %v1881_v44 = vpop.eup %1880  ;;  %1238 = vperm.xlu1 %1830, %v1879_v43  }
 0x43f   : > { %1243 = vperm.xlu0 %1831, %v1881_v44  }
 0x441   : > { %v1883_v47 = vpop.eup %1882 }
 0x442   : > { %1248 = vperm.xlu1 %1830, %v1883_v47  }
 0x463   : > { %v1662_v48 = vpop.f32.mrb[0].mxu1 }
 0x464   : > { %v1129_v49 = vpop.f32.mrb[1].mxu1  ;;  %v1162_v21 = vadd.f32 %v1662_v48, %v1041_v1 }
 0x465   : > { %v1663_v50 = vpop.f32.mrb[2].mxu1  ;;  %v1160_v51 = vadd.f32 %v1129_v49, %v1039_v32 }
 0x466   : > { %v1132_v2 = vpop.f32.mrb[3].mxu1  ;;  %v1163_v30 = vadd.f32 %v1663_v50, %v1042_v9 }
 0x467   : > { %v1161_v52 = vadd.f32 %v1132_v2, %v1040_v33 }
 0x473   : > { %v1666_v7 = vpop.f32.mrb[4].mxu1 }
 0x474   : > { %v1145_v3 = vpop.f32.mrb[5].mxu1  ;;  %v1166_v28 = vadd.f32 %v1666_v7, %v1045_v41 }
 0x475   : > { %v1667_v4 = vpop.f32.mrb[6].mxu1  ;;  %v1164_v40 = vadd.f32 %v1145_v3, %v1043_v46 }
 0x476   : > { %v1148_v15 = vpop.f32.mrb[7].mxu1  ;;  %v1167_v56 = vadd.f32 %v1667_v4, %v1046_v62 }
 0x477   : > { %v1165_v59 = vadd.f32 %v1148_v15, %v1044_v58 }
 0x4ad   : > { %v1224_v0 = vpop.permute.xlu0 %1223 }
 0x4ae   : > { %v1253_v17 = vmul.f32 %v1224_v0, %v1162_v21 }
 0x4b1   : > { %v1229_v31 = vpop.permute.xlu1 %1228 }
 0x4b2   : > { %v1254_v35 = vmul.f32 %v1229_v31, %v1163_v30  ;;  %v1214_v37 = vpop.permute.xlu0 %1213 }
 0x4b3   : > { %v1251_v55 = vmul.f32 %v1214_v37, %v1160_v51 }
 0x4b4   : > { %v1599_v53 = vpack.c.bf16 %v1254_v35, %v1253_v17 }
 0x4b5   : > { %v1219_v54 = vpop.permute.xlu1 %1218 }
 0x4b6   : > { %1617 = vst [vmem:[%s2816_s9 + $0x8] sm:$0xff] %v1599_v53   ;;  %v1252_v26 = vmul.f32 %v1219_v54, %v1161_v52 }
 0x4b8   : > { %v1594_v36 = vpack.c.bf16 %v1252_v26, %v1251_v55 }
 0x4b9   : > { %v1234_v45 = vpop.permute.xlu0 %1233 }
 0x4ba   : > { %1595 = vst [vmem:[%s2816_s9] sm:$0xff] %v1594_v36   ;;  %v1255_v63 = vmul.f32 %v1234_v45, %v1164_v40 }
 0x4bd   : > { %v1239_v60 = vpop.permute.xlu1 %1238 }
 0x4be   : > { %v1256_v5 = vmul.f32 %v1239_v60, %v1165_v59  ;;  %v1244_v25 = vpop.permute.xlu0 %1243 }
 0x4bf   : > { %v1257_v22 = vmul.f32 %v1244_v25, %v1166_v28 }
 0x4c0   : > { %v1604_v13 = vpack.c.bf16 %v1256_v5, %v1255_v63 }
 0x4c1   : > { %v1249_v11 = vpop.permute.xlu1 %1248 }
 0x4c2   : > { %1618 = vst [vmem:[%s2816_s9 + $0x10] sm:$0xff] %v1604_v13   ;;  %v1258_v16 = vmul.f32 %v1249_v11, %v1167_v56 }
 0x4c4   : > { %v1609_v24 = vpack.c.bf16 %v1258_v16, %v1257_v22 }
 0x4c6   : > { %1619 = vst [vmem:[%s2816_s9 + $0x18] sm:$0xff] %v1609_v24  }
 0x4c7   : > { %2099 = shalt.err (!%p2096_p0)
}
 0x4c8   : > { %s2100_s13 = scalar_lea.hbm %s2828_s27, 512  ;;  %s2104_s12 = scalar_lea.hbm %s2952_s7, 2048 }
 0x4c9   : > { %p2101_p12 = scmp.ne.s32.totalorder %s2828_s27, %s2100_s13  ;;  %p2105_p5 = scmp.lt.u32.totalorder %s2828_s27, %s2952_s7 }
 0x4ca   : > { %p2106_p9 = scmp.lt.u32.totalorder %s2104_s12, %s2100_s13  ;;  %p2108_p4 = scmp.lt.u32.totalorder %s2100_s13, %s2828_s27 }
 0x4cb   : > { %p2102_p8 = pnand %p2101_p12, %p2953_p7 }
 0x4cc   : > { %p2107_p2 = por %p2106_p9, %p2105_p5 }
 0x4cd   : > { %p2103_p13 = pneg %p2102_p8 }
 0x4ce   : > { %p2109_p10 = por %p2108_p4, %p2107_p2 }
 0x4d0   : > { %p2110_p3 = pnand %p2109_p10, %p2103_p13 }
 0x4d2   : > { %2113 = shalt.err (!%p2110_p3)
}
 0x4d3   : > { %s2198_s11 = smov 4  }
 0x4d4   : > { %1690 = dma.vmem_to_hbm [thread:$0]  (%p2953_p7), %s2823_s21, 512, %s2828_s27, %s1300_s15, %s2193_s30, %s2193_s30, %s2198_s11  }
 0x4d5 PF: > { %s2954_s5 = sld [smem:[#allocation26_spill]]  ;;  %s2955_s18 = sld [smem:[#allocation23_spill]] }
 0x4d6   : > { %s2956_s9 = sld [smem:[#allocation27_spill]] }
 0x4db   : > { %p1728_p1 = scmp.ge.s32.totalorder %s2954_s5, 2  ;;  %s1330_s28 = sand.u32 1, %s2955_s18  }
 0x4dc   : > { %p2957_p6 = scmp.ne.s32.totalorder %s2956_s9, 0  ;;  %s1331_s10 = scalar_lea.sflag [#allocation7], %s1330_s28 }
 0x4de   : > { %p1716_p11 = pnand %p1728_p1, %p2957_p6 }
 0x4e0   : > { %2155 = dma.done.wait (!%p1716_p11), %s1331_s10, 512  }
 0x4e1   : > { %2157 = vsyncadd (!%p1716_p11), %s1331_s10, 4294966784  ;;  %s28_s29 = sadd.s32 1, %s2954_s5   ;;  %s2958_s19 = sld [smem:[#allocation30_spill]] }
 0x4e2   : > { %p25_p0 = scmp.ge.s32.totalorder %s28_s29, 6   ;;  %s2959_s27 = sld [smem:[#allocation25_spill]] }
 0x4e3   : > { %s2960_s28 = sld [smem:[#allocation28_spill]]  ;;  %s2961_s24 = smov %s2164_s25 }
 0x4e4   : > { %s2962_s25 = smov %s2168_s26  ;;  %27 = sbr.rel (!%p25_p0) target bundleno = 15 (0xf), region = 149 }
 0x4e7   : > { %s2963_s26 = smov %s2958_s19 }
 0x4eb   :  { %1336 = vsyncpa [#allocation6], 1 }
 0x4ec   :  { %1338 = vsyncpa [#allocation6 + $0x1], 1 }
 0x4ed   :  { %1339 = vsyncpa [#allocation9], 1 }
 0x4ee   :  { %1341 = vsyncpa [#allocation9 + $0x1], 1 }
 0x4ef   :  { %1342 = vsyncpa [#allocation12], 1 }
 0x4f0   :  { %1343 = vsyncpa [#allocation15], 1 }
 0x4f1   :  { %1344 = vsyncpa [#allocation7], 1 }
 0x4f2   :  { %1346 = vsyncpa [#allocation7 + $0x1], 1 }

// kernel: transformer_lm_forward.9
= control target key start
LH: loop header
LB: loop body
LE: loop exit
PB: predicated region body
PF: predicated region fallthrough
CT: control target
= control target key end

     0   :  { %8 = vsyncpa [#allocation3], 0  ;;  %s2488_s0 = inlined_call_operand.hbm [shape: bf16[128,256], index: 0, kind: input, shape index: {}]   ;;  %s2489_s1 = inlined_call_operand.hbm [shape: f32[1,256], index: 1, kind: input, shape index: {}]   ;;  %s2490_s2 = inlined_call_operand.hbm [shape: bf16[256,768], index: 2, kind: input, shape index: {}]   ;;  %s2491_s3 = inlined_call_operand.hbm [shape: bf16[128,768], index: 3, kind: output, shape index: {}]  }
   0x1   :  { %9 = vsyncpa [#allocation6], 0 }
   0x2   :  { %10 = vsyncpa [#allocation4], 0 }
   0x3   :  { %12 = vsyncpa [#allocation4 + $0x1], 0  ;;  %s1946_s12 = smov 0   ;;  %s1948_s13 = smov 0  }
   0x4   :  { %s1950_s14 = smov 0   ;;  %s1952_s15 = smov 0  }
   0x5   :  { %s1954_s16 = smov 0   ;;  %s1956_s17 = smov 0  }
   0x6 LB: > { %s1977_s18 = sadd.s32 4294967295, %s1912_s17   ;;  %s1356_s19 = sadd.s32 4294967294, %s1912_s17   ;;  %s1912_s17 = sphi %s1956_s17, %s18_s17   ;;  %s1908_s16 = sphi %s1954_s16, %s2514_s16   ;;  %s1904_s15 = sphi %s1952_s15, %s2513_s15   ;;  %s1900_s14 = sphi %s1950_s14, %s2512_s14   ;;  %s1896_s13 = sphi %s1948_s13, %s2511_s13   ;;  %s1892_s12 = sphi %s1946_s12, %s2510_s12  }
   0x7   : > { %s84_s20 = sadd.s32 1, %s1900_s14  ;;  %p91_p0 = scmp.ne.s32.totalorder %s1900_s14, %s1896_s13 }
   0x8   : > { %p92_p1 = scmp.eq.s32.totalorder %s1912_s17, 0  ;;  %p97_p2 = scmp.ne.s32.totalorder %s1896_s13, %s1892_s12 }
   0x9   : > { %p2492_p3 = scmp.eq.s32.totalorder %s1977_s18, 0  ;;  %p123_p4 = scmp.eq.s32.totalorder %s1977_s18, 1 }
   0xa   : > { %p1988_p5 = por %p92_p1, %p91_p0  ;;  %p129_p6 = scmp.eq.s32.totalorder %s1356_s19, 1 }
   0xb   : > { %p1994_p7 = por %p2492_p3, %p97_p2  ;;  %p1998_p8 = por %p123_p4, %p91_p0 }
   0xc   : > { %p2002_p9 = por %p129_p6, %p97_p2  ;;  %p1357_p10 = scmp.ge.s32.totalorder %s1912_s17, 1 }
   0xd   : > { %s2496_s22 = scalar_select %p1994_p7, 1, 0 }
   0xe   : > { %s2497_s23 = scalar_select %p1998_p8, 1, 0 }
   0xf   : > { %s2498_s24 = scalar_select %p2002_p9, 1, 0 }
  0x10   : > { %p136_p11 = scmp.lt.s32.totalorder %s1912_s17, 3  ;;  %s1914_s26 = smov [#allocation2]  }
  0x11   : > { %s152_s27 = sshll.u32 %s1914_s26, 4  ;;  %p1578_p1 = scmp.lt.s32.totalorder %s1912_s17, 2  ;;  %s2012_s27 = int_to_ptr.vmem [resolvable:$true] %s152_s27 }
  0x12   : > { %p2008_p12 = pnand %p1357_p10, %p136_p11  ;;  %s1915_s29 = smov [#allocation5]  }
  0x13   : > { %s166_s30 = sshll.u32 %s1915_s29, 4  ;;  %p2026_p4 = pnand %p1578_p1, %p1988_p5  ;;  %s2030_s30 = int_to_ptr.vmem [resolvable:$true] %s166_s30 }
  0x14   : > { %p1561_p13 = pneg %p2008_p12  ;;  %s1736_s7 = scalar_lea.hbm %s2488_s0, 2048 }
  0x15   : > { %p1737_p6 = scmp.ne.s32.totalorder %s2488_s0, %s1736_s7  ;;  %p1743_p5 = scmp.lt.u32.totalorder %s1736_s7, %s2488_s0 }
  0x16   : > { %p2020_p2 = pnand %p1561_p13, %p2492_p3 }
  0x18   : > { %p1738_p10 = pneg %p2020_p2 }
  0x1a   : > { %p1739_p11 = pnand %p1738_p10, %p1737_p6 }
  0x1c   : > { %p1740_p13 = pneg %p1739_p11 }
  0x1e   : > { %p1745_p1 = pnand %p1743_p5, %p1740_p13 }
  0x20   : > { %1748 = shalt.err (!%p1745_p1)
}
  0x21   : > { %s1749_s19 = scalar_lea.vmem %s2012_s27, 2048  ;;  %p1757_p8 = scmp.lt.s32.totalorder %s2012_s27, %s2012_s27 }
  0x22   : > { %p1750_p0 = scmp.ne.s32.totalorder %s2012_s27, %s1749_s19  ;;  %p1758_p6 = scmp.lt.s32.totalorder %s1749_s19, %s1749_s19 }
  0x24   : > { %p1752_p3 = pnand %p1750_p0, %p1738_p10  ;;  %p1759_p11 = por %p1758_p6, %p1757_p8 }
  0x26   : > { %p1753_p9 = pneg %p1752_p3 }
  0x28   : > { %p1760_p7 = pnand %p1759_p11, %p1753_p9 }
  0x2a   : > { %1763 = shalt.err (!%p1760_p7)
}
  0x2b   : > { %s1916_s21 = smov 128   ;;  %s1917_s26 = smov 8  }
  0x2c   : > { %1564 = dma.hbm_to_vmem [thread:$0]  (!%p2020_p2), %s2488_s0, 2048, %s2012_s27, [#allocation3], %s1916_s21, %s1916_s21, %s1917_s26  }
  0x2d   : > { %s1764_s8 = scalar_lea.hbm %s2489_s1, 32 }
  0x2e   : > { %p1765_p3 = scmp.ne.s32.totalorder %s2489_s1, %s1764_s8  ;;  %p1771_p9 = scmp.lt.u32.totalorder %s1764_s8, %s2489_s1 }
  0x30   : > { %p1767_p7 = pnand %p1765_p3, %p1738_p10 }
  0x32   : > { %p1768_p8 = pneg %p1767_p7 }
  0x34   : > { %p1773_p0 = pnand %p1771_p9, %p1768_p8 }
  0x36   : > { %1776 = shalt.err (!%p1773_p0)
}
  0x37   : > { %s1777_s27 = scalar_lea.vmem %s2030_s30, 32  ;;  %p1785_p6 = scmp.lt.s32.totalorder %s2030_s30, %s2030_s30 }
  0x38   : > { %p1778_p13 = scmp.ne.s32.totalorder %s2030_s30, %s1777_s27  ;;  %p1786_p11 = scmp.lt.s32.totalorder %s1777_s27, %s1777_s27 }
  0x3a   : > { %p1780_p5 = pnand %p1778_p13, %p1738_p10  ;;  %p1787_p3 = por %p1786_p11, %p1785_p6 }
  0x3c   : > { %p1781_p1 = pneg %p1780_p5 }
  0x3e   : > { %p1788_p7 = pnand %p1787_p3, %p1781_p1 }
  0x40   : > { %1791 = shalt.err (!%p1788_p7)
}
  0x41   : > { %1567 = dma.hbm_to_vmem [thread:$0]  (!%p2020_p2), %s2489_s1, 32, %s2030_s30, [#allocation6]  }
  0x42   : > { %s27_s29 = sadd.s32 1, %s1908_s16  ;;  %s177_s5 = sand.u32 1, %s1912_s17  }
  0x43   : > { %p28_p10 = scmp.ge.s32.totalorder %s27_s29, 2  ;;  %s179_s6 = sand.u32 1, %s1900_s14  }
  0x44   : > { %s1448_s7 = smul.u32 192, %s1908_s16  ;;  %s2104_s21 = scalar_lea.sflag [#allocation3], %s177_s5 }
  0x45   : > { %s2516_s29 = smov (%p28_p10, %s27_s29), 0  ;;  %s1546_s28 = smul.u32 384, %s179_s6 }
  0x46   : > { %s2093_s10 = scalar_lea.hbm %s2490_s2, %s1448_s7  ;;  %s81_s30 = ssub.s32 %s1908_s16, %s2516_s29 }
  0x47   : > { %p82_p2 = scmp.eq.s32.totalorder %s81_s30, 0  ;;  %s181_s11 = scalar_lea.vmem [#allocation7], %s1546_s28 }
  0x48   : > { %s188_s19 = sshll.u32 %s181_s11, 4  ;;  %s1792_s26 = scalar_lea.hbm %s2093_s10, 6144  ;;  %s2102_s19 = int_to_ptr.vmem [resolvable:$true] %s188_s19 }
  0x49   : > { %s2100_s27 = scalar_select %p82_p2, %s1900_s14, %s84_s20  }
  0x4a   : > { %p1793_p8 = scmp.ne.s32.totalorder %s2093_s10, %s1792_s26  ;;  %p1794_p9 = pneg %p2026_p4 }
  0x4b   : > { %s1797_s28 = scalar_lea.hbm %s2490_s2, 12288  ;;  %p1798_p5 = scmp.lt.u32.totalorder %s2093_s10, %s2490_s2 }
  0x4c   : > { %p1795_p0 = pnand %p1794_p9, %p1793_p8  ;;  %p1799_p1 = scmp.lt.u32.totalorder %s1797_s28, %s1792_s26 }
  0x4d   : > { %p1801_p11 = scmp.lt.u32.totalorder %s1792_s26, %s2093_s10 }
  0x4e   : > { %p1796_p13 = pneg %p1795_p0  ;;  %p1800_p6 = por %p1799_p1, %p1798_p5 }
  0x50   : > { %p1802_p3 = por %p1801_p11, %p1800_p6 }
  0x52   : > { %p1803_p7 = pnand %p1802_p3, %p1796_p13 }
  0x54   : > { %1806 = shalt.err (!%p1803_p7)
}
  0x55   : > { %s1807_s20 = scalar_lea.vmem %s2102_s19, 6144  ;;  %s1918_s5 = smov [#allocation7]  }
  0x56   : > { %p1808_p10 = scmp.ne.s32.totalorder %s2102_s19, %s1807_s20  ;;  %s1812_s30 = sshll.u32 %s1918_s5, 4  ;;  %s1813_s30 = int_to_ptr.vmem [resolvable:$false] %s1812_s30 }
  0x57   : > { %s1814_s11 = scalar_lea.vmem %s1813_s30, 12288  ;;  %p1815_p0 = scmp.lt.s32.totalorder %s2102_s19, %s1813_s30 }
  0x58   : > { %p1810_p2 = pnand %p1808_p10, %p1794_p9  ;;  %p1816_p5 = scmp.lt.s32.totalorder %s1814_s11, %s1807_s20 }
  0x5a   : > { %p1811_p8 = pneg %p1810_p2  ;;  %p1817_p1 = por %p1816_p5, %p1815_p0 }
  0x5c   : > { %p1818_p6 = pnand %p1817_p1, %p1811_p8 }
  0x5e   : > { %1821 = shalt.err (!%p1818_p6)
}
  0x5f   : > { %s1919_s26 = smov 384   ;;  %s1920_s6 = smov 192  }
  0x60   : > { %s1921_s7 = smov 12   ;;  %200 = sbr.rel (%p2008_p12) target bundleno = 578 (0x242), region = 32 }
  0x61   : > { %1571 = dma.hbm_to_vmem [thread:$0]  (!%p2026_p4), %s2093_s10, 6144, %s2102_s19, %s2104_s21, %s1919_s26, %s1920_s6, %s1921_s7  }
  0x62   : > { %p2502_p9 = scmp.eq.s32.totalorder (!%p2008_p12), %s1977_s18, 0 }
  0x67   : > { %1875 = dma.done.wait (%p2502_p9), [#allocation3], 2048   ;;  %p2503_p13 = pmov %p2502_p9 }
  0x68   : > { %p2504_p11 = pmov %p2502_p9 }
  0x69   : > { %1877 = vsyncadd (%p2503_p13), [#allocation3], 4294965248 }
  0x6a   : > { %1879 = dma.done.wait (%p2504_p11), [#allocation6], 32   ;;  %p2505_p3 = pmov %p2502_p9 }
  0x6b   : > { %s210_s4 = sand.u32 1, %s1977_s18   ;;  %s2144_s10 = sand.u32 1, %s1896_s13  }
  0x6c   : > { %1881 = vsyncadd (%p2505_p3), [#allocation6], 4294967264  ;;  %s1547_s25 = smul.u32 384, %s2144_s10  ;;  %s211_s19 = scalar_lea.sflag [#allocation3], %s210_s4 }
  0x6d   : > { %p2506_p12 = scmp.ne.s32.totalorder %s2496_s22, 0 }
  0x6e   : > { %s2147_s21 = scalar_lea.vmem [#allocation7], %s1547_s25 }
  0x6f   : > { %1883 = dma.done.wait (%p2506_p12), %s211_s19, 6144  }
  0x70   : > { %1885 = vsyncadd (%p2506_p12), %s211_s19, 4294961152  ;;  %v242_v0 = vld [vmem:[#allocation2] sm:$0xff]  ;;  %v244_v1 = vld [vmem:[#allocation2 + $0x10] sm:$0xff]  ;;  %s1548_s18 = smul.u32 192, %s2144_s10  ;;  %s1234_s5 = scalar_lea.sflag [#allocation4], %s2144_s10 }
  0x71   : > { %v243_v2 = vld [vmem:[#allocation2 + $0x8] sm:$0xff]  ;;  %v2153_v3 = vunpack.c.l.bf16 %v242_v0  ;;  %v2155_v4 = vunpack.c.h.bf16 %v242_v0  ;;  %v2157_v5 = vunpack.c.l.bf16 %v244_v1  ;;  %v2159_v6 = vunpack.c.h.bf16 %v244_v1  ;;  %v245_v7 = vld [vmem:[#allocation2 + $0x18] sm:$0xff]  ;;  %v246_v17 = vld [vmem:[#allocation2 + $0x20] sm:$0xff]  ;;  %s1481_s28 = smul.u32 192, %s1904_s15  ;;  %p2507_p7 = scmp.ne.s32.totalorder %s2497_s23, 0 }
  0x72   : > { %v2161_v8 = vunpack.c.l.bf16 %v243_v2  ;;  %v2163_v9 = vunpack.c.h.bf16 %v243_v2  ;;  %v2165_v10 = vunpack.c.l.bf16 %v245_v7  ;;  %v2167_v11 = vunpack.c.h.bf16 %v245_v7  ;;  %v247_v12 = vld [vmem:[#allocation2 + $0x28] sm:$0xff]  ;;  %v249_v22 = vld [vmem:[#allocation2 + $0x38] sm:$0xff]  ;;  %v248_v27 = vld [vmem:[#allocation2 + $0x30] sm:$0xff]  ;;  %s2398_s22 = scalar_lea.vmem [#allocation8], %s1548_s18  ;;  %s1922_s11 = smov [#allocation8]  }
  0x73   : > { %v290_v13 = vmul.f32 %v2153_v3, %v2153_v3  ;;  %v291_v14 = vmul.f32 %v2155_v4, %v2155_v4  ;;  %v294_v15 = vmul.f32 %v2157_v5, %v2157_v5  ;;  %v295_v16 = vmul.f32 %v2159_v6, %v2159_v6  ;;  %v1640_v32 = vld [vmem:[%s2147_s21 + $0x4] ss:$12 sps:$4 sm:$0xff]   ;;  %v1642_v33 = vld [vmem:[%s2147_s21] ss:$12 sps:$4 sm:$0xff]   ;;  %v1643_v39 = vld [vmem:[%s2147_s21 + $0x1c] ss:$12 sps:$4 sm:$0xff]   ;;  %s2434_s20 = scalar_lea.hbm %s2491_s3, %s1481_s28 }
  0x74   : > { %v292_v18 = vmul.f32 %v2161_v8, %v2161_v8  ;;  %v293_v19 = vmul.f32 %v2163_v9, %v2163_v9  ;;  %v296_v20 = vmul.f32 %v2165_v10, %v2165_v10  ;;  %v297_v21 = vmul.f32 %v2167_v11, %v2167_v11  ;;  %v251_v38 = vld [vmem:[#allocation2 + $0x48] sm:$0xff]  ;;  %v250_v44 = vld [vmem:[#allocation2 + $0x40] sm:$0xff]  ;;  %831 = vmatprep.subr.bf16.mxu0 %v1640_v32  ;;  %v253_v52 = vld [vmem:[#allocation2 + $0x58] sm:$0xff]  ;;  %s1250_s8 = sshll.u32 %s2398_s22, 4  ;;  %s1826_s26 = sshll.u32 %s1922_s11, 4  ;;  %s2436_s8 = int_to_ptr.vmem [resolvable:$true] %s1250_s8  ;;  %s1827_s26 = int_to_ptr.vmem [resolvable:$false] %s1826_s26 }
  0x75   : > { %v322_v23 = vadd.f32 %v291_v14, %v290_v13  ;;  %v328_v24 = vadd.f32 %v295_v16, %v294_v15  ;;  %v2185_v25 = vunpack.c.l.bf16 %v247_v12  ;;  %v2187_v26 = vunpack.c.h.bf16 %v247_v12  ;;  %832 = vmatpush1.bf16.msra.mxu0 %v1642_v33  ;;  %v1645_v47 = vld [vmem:[%s2147_s21 + $0x18] ss:$12 sps:$4 sm:$0xff]   ;;  %v1646_v53 = vld [vmem:[%s2147_s21 + $0x34] ss:$12 sps:$4 sm:$0xff]   ;;  %v1648_v62 = vld [vmem:[%s2147_s21 + $0x30] ss:$12 sps:$4 sm:$0xff]   ;;  %p1829_p8 = scmp.lt.s32.totalorder %s2436_s8, %s1827_s26 }
  0x76   : > { %v325_v28 = vadd.f32 %v293_v19, %v292_v18  ;;  %v331_v29 = vadd.f32 %v297_v21, %v296_v20  ;;  %v2189_v30 = vunpack.c.l.bf16 %v246_v17  ;;  %v2191_v31 = vunpack.c.h.bf16 %v246_v17  ;;  %833 = vmatprep.subr.bf16.mxu0 %v1643_v39  ;;  %v252_v58 = vld [vmem:[#allocation2 + $0x50] sm:$0xff]  ;;  %v255_v7 = vld [vmem:[#allocation2 + $0x68] sm:$0xff]  ;;  %v254_v16 = vld [vmem:[#allocation2 + $0x60] sm:$0xff]  ;;  %s1822_s30 = scalar_lea.vmem %s2436_s8, 3072  ;;  %s1828_s6 = scalar_lea.vmem %s1827_s26, 6144 }
  0x77   : > { %323 = vadd.xlane.f32.xlu0 %v322_v23  ;;  %329 = vadd.xlane.f32.xlu1 %v328_v24  ;;  %v300_v34 = vmul.f32 %v2185_v25, %v2185_v25  ;;  %v301_v35 = vmul.f32 %v2187_v26, %v2187_v26  ;;  %v2199_v36 = vunpack.c.l.bf16 %v249_v22  ;;  %v2201_v37 = vunpack.c.h.bf16 %v249_v22  ;;  %v1649_v12 = vld [vmem:[%s2147_s21 + $0x4c] ss:$12 sps:$4 sm:$0xff]   ;;  %v1651_v17 = vld [vmem:[%s2147_s21 + $0x48] ss:$12 sps:$4 sm:$0xff]   ;;  %p1823_p4 = scmp.ne.s32.totalorder %s2436_s8, %s1822_s30  ;;  %p1830_p0 = scmp.lt.s32.totalorder %s1828_s6, %s1822_s30 }
  0x78   : > { %v298_v40 = vmul.f32 %v2189_v30, %v2189_v30  ;;  %v299_v41 = vmul.f32 %v2191_v31, %v2191_v31  ;;  %v2208_v42 = vunpack.c.l.bf16 %v248_v27  ;;  %v2210_v43 = vunpack.c.h.bf16 %v248_v27  ;;  %v257_v21 = vld [vmem:[#allocation2 + $0x78] sm:$0xff]  ;;  %v1654_v39 = vld [vmem:[%s2147_s21 + $0x60] ss:$12 sps:$4 sm:$0xff]  }
  0x79   : > { %v304_v45 = vmul.f32 %v2199_v36, %v2199_v36  ;;  %v305_v46 = vmul.f32 %v2201_v37, %v2201_v37  ;;  %v337_v48 = vadd.f32 %v301_v35, %v300_v34  ;;  %v2221_v51 = vunpack.c.l.bf16 %v251_v38  ;;  %834 = vmatpush1.bf16.msra.mxu0 %v1645_v47  ;;  %v1666_v22 = vld [vmem:[%s2147_s21 + $0xc8] ss:$12 sps:$4 sm:$0xff]   ;;  %p1824_p10 = pnand %p1823_p4, %p2507_p7  ;;  %p1831_p5 = por %p1830_p0, %p1829_p8 }
  0x7a   : > { %v302_v49 = vmul.f32 %v2208_v42, %v2208_v42  ;;  %v303_v50 = vmul.f32 %v2210_v43, %v2210_v43  ;;  %v334_v54 = vadd.f32 %v299_v41, %v298_v40  ;;  %v2224_v55 = vunpack.c.h.bf16 %v251_v38  ;;  %835 = vmatprep.subr.bf16.mxu0 %v1646_v53  ;;  %v1668_v38 = vld [vmem:[%s2147_s21 + $0x8] ss:$12 sps:$4 sm:$0xff]   ;;  %1482 = vmatprep.subr.bf16.mxu1 %v1666_v22 }
  0x7b   : > { %326 = vadd.xlane.f32.xlu0 %v325_v28  ;;  %332 = vadd.xlane.f32.xlu1 %v331_v29  ;;  %v2226_v56 = vunpack.c.l.bf16 %v250_v44  ;;  %v2228_v57 = vunpack.c.h.bf16 %v250_v44  ;;  %v343_v59 = vadd.f32 %v305_v46, %v304_v45  ;;  %v2230_v60 = vunpack.c.l.bf16 %v253_v52  ;;  %v256_v28 = vld [vmem:[#allocation2 + $0x70] sm:$0xff]  ;;  %v1655_v44 = vld [vmem:[%s2147_s21 + $0x7c] ss:$12 sps:$4 sm:$0xff]   ;;  %p1825_p2 = pneg %p1824_p10 }
  0x7c   : > { %v2232_v61 = vunpack.c.h.bf16 %v253_v52  ;;  %v340_v63 = vadd.f32 %v303_v50, %v302_v49  ;;  %v308_v0 = vmul.f32 %v2221_v51, %v2221_v51  ;;  %v2237_v1 = vunpack.c.l.bf16 %v252_v58  ;;  %v1652_v29 = vld [vmem:[%s2147_s21 + $0x64] ss:$12 sps:$4 sm:$0xff]   ;;  %1483 = vmatpush3.bf16.msra.mxu1 %v1668_v38  ;;  %v1671_v45 = vld [vmem:[%s2147_s21 + $0xe0] ss:$12 sps:$4 sm:$0xff]  }
  0x7d   : > { %v2239_v2 = vunpack.c.h.bf16 %v252_v58  ;;  %v309_v13 = vmul.f32 %v2224_v55, %v2224_v55  ;;  %v306_v14 = vmul.f32 %v2226_v56, %v2226_v56  ;;  %v307_v15 = vmul.f32 %v2228_v57, %v2228_v57  ;;  %836 = vmatpush1.bf16.msra.mxu0 %v1648_v62  ;;  %v1673_v50 = vld [vmem:[%s2147_s21 + $0x20] ss:$12 sps:$4 sm:$0xff]   ;;  %1484 = vmatprep.subr.bf16.mxu1 %v1671_v45  ;;  %v1676_v62 = vld [vmem:[%s2147_s21 + $0xf8] ss:$12 sps:$4 sm:$0xff]   ;;  %p1832_p1 = pnand %p1831_p5, %p1825_p2 }
  0x7e   : > { %v312_v18 = vmul.f32 %v2230_v60, %v2230_v60  ;;  %v313_v19 = vmul.f32 %v2232_v61, %v2232_v61  ;;  %v2253_v20 = vunpack.c.l.bf16 %v255_v7  ;;  %v310_v23 = vmul.f32 %v2237_v1, %v2237_v1  ;;  %837 = vmatprep.subr.bf16.mxu0 %v1649_v12  ;;  %v1667_v38 = vld [vmem:[%s2147_s21 + $0xc0] ss:$12 sps:$4 sm:$0xff]   ;;  %v1698_v45 = vld [vmem:[%s2147_s21 + $0x98] ss:$12 sps:$4 sm:$0xff]  }
  0x7f   : > { %338 = vadd.xlane.f32.xlu1 %v337_v48  ;;  %335 = vadd.xlane.f32.xlu0 %v334_v54  ;;  %v311_v24 = vmul.f32 %v2239_v2, %v2239_v2  ;;  %v2260_v27 = vunpack.c.h.bf16 %v255_v7  ;;  %v349_v32 = vadd.f32 %v309_v13, %v308_v0  ;;  %v346_v33 = vadd.f32 %v307_v15, %v306_v14  ;;  %v1658_v13 = vld [vmem:[%s2147_s21 + $0x94] ss:$12 sps:$4 sm:$0xff]  }
  0x80   : > { %v2263_v34 = vunpack.c.l.bf16 %v254_v16  ;;  %v2265_v35 = vunpack.c.h.bf16 %v254_v16  ;;  %v355_v40 = vadd.f32 %v313_v19, %v312_v18  ;;  %v316_v41 = vmul.f32 %v2253_v20, %v2253_v20  ;;  %1485 = vmatpush3.bf16.msra.mxu1 %v1673_v50  ;;  %v1660_v18 = vld [vmem:[%s2147_s21 + $0x90] ss:$12 sps:$4 sm:$0xff]  }
  0x81   : > { %838 = vmatpush1.bf16.msra.mxu0 %v1651_v17  ;;  %v352_v46 = vadd.f32 %v311_v24, %v310_v23  ;;  %v317_v47 = vmul.f32 %v2260_v27, %v2260_v27  ;;  %v2275_v48 = vunpack.c.l.bf16 %v257_v21  ;;  %v2277_v49 = vunpack.c.h.bf16 %v257_v21  ;;  %1486 = vmatprep.subr.bf16.mxu1 %v1676_v62  ;;  %v1681_v17 = vld [vmem:[%s2147_s21 + $0x110] ss:$12 sps:$4 sm:$0xff]   ;;  %v1661_v21 = vld [vmem:[%s2147_s21 + $0xac] ss:$12 sps:$4 sm:$0xff]   ;;  %v1686_v24 = vld [vmem:[%s2147_s21 + $0x128] ss:$12 sps:$4 sm:$0xff]  }
  0x82   : > { %839 = vmatprep.subr.bf16.mxu0 %v1652_v29  ;;  %v314_v52 = vmul.f32 %v2263_v34, %v2263_v34  ;;  %v315_v53 = vmul.f32 %v2265_v35, %v2265_v35  ;;  %v2284_v54 = vunpack.c.l.bf16 %v256_v28  ;;  %v2286_v58 = vunpack.c.h.bf16 %v256_v28  ;;  %v1683_v19 = vld [vmem:[%s2147_s21 + $0x50] ss:$12 sps:$4 sm:$0xff]   ;;  %v1663_v28 = vld [vmem:[%s2147_s21 + $0xa8] ss:$12 sps:$4 sm:$0xff]  }
  0x83   : > { %344 = vadd.xlane.f32.xlu1 %v343_v59  ;;  %341 = vadd.xlane.f32.xlu0 %v340_v63  ;;  %v1657_v59 = vld [vmem:[%s2147_s21 + $0x78] ss:$12 sps:$4 sm:$0xff]   ;;  %v361_v0 = vadd.f32 %v317_v47, %v316_v41  ;;  %v320_v7 = vmul.f32 %v2275_v48, %v2275_v48  ;;  %v321_v12 = vmul.f32 %v2277_v49, %v2277_v49  ;;  %v1688_v29 = vld [vmem:[%s2147_s21 + $0x68] ss:$12 sps:$4 sm:$0xff]   ;;  %v1701_v47 = vld [vmem:[%s2147_s21 + $0x170] ss:$12 sps:$4 sm:$0xff]  }
  0x84   : > { %v1678_v63 = vld [vmem:[%s2147_s21 + $0x38] ss:$12 sps:$4 sm:$0xff]   ;;  %v358_v14 = vadd.f32 %v315_v53, %v314_v52  ;;  %v318_v15 = vmul.f32 %v2284_v54, %v2284_v54  ;;  %v319_v16 = vmul.f32 %v2286_v58, %v2286_v58  ;;  %v1677_v50 = vld [vmem:[%s2147_s21 + $0xf0] ss:$12 sps:$4 sm:$0xff]  }
  0x85   : > { %840 = vmatpush1.bf16.msra.mxu0 %v1654_v39  ;;  %1487 = vmatpush3.bf16.msra.mxu1 %v1678_v63  ;;  %v367_v22 = vadd.f32 %v321_v12, %v320_v7  ;;  %v1669_v39 = vld [vmem:[%s2147_s21 + $0xdc] ss:$12 sps:$4 sm:$0xff]   ;;  %v1696_v41 = vld [vmem:[%s2147_s21 + $0x158] ss:$12 sps:$4 sm:$0xff]   ;;  %v1687_v63 = vld [vmem:[%s2147_s21 + $0x120] ss:$12 sps:$4 sm:$0xff]  }
  0x86   : > { %841 = vmatprep.subr.bf16.mxu0 %v1655_v44  ;;  %1488 = vmatprep.subr.bf16.mxu1 %v1681_v17  ;;  %v364_v23 = vadd.f32 %v319_v16, %v318_v15  ;;  %v1672_v44 = vld [vmem:[%s2147_s21 + $0xd8] ss:$12 sps:$4 sm:$0xff]   ;;  %v1703_v52 = vld [vmem:[%s2147_s21 + $0xb0] ss:$12 sps:$4 sm:$0xff]   ;;  %v1694_v12 = vld [vmem:[%s2147_s21 + $0x154] ss:$12 sps:$4 sm:$0xff]  }
  0x87   : > { %350 = vadd.xlane.f32.xlu1 %v349_v32  ;;  %347 = vadd.xlane.f32.xlu0 %v346_v33  ;;  %v1664_v32 = vld [vmem:[%s2147_s21 + $0xc4] ss:$12 sps:$4 sm:$0xff]   ;;  %v1691_v33 = vld [vmem:[%s2147_s21 + $0x140] ss:$12 sps:$4 sm:$0xff]   ;;  %v1702_v15 = vld [vmem:[%s2147_s21 + $0x168] ss:$12 sps:$4 sm:$0xff]  }
  0x88   : > { %v1679_v53 = vld [vmem:[%s2147_s21 + $0x10c] ss:$12 sps:$4 sm:$0xff]   ;;  %v1684_v62 = vld [vmem:[%s2147_s21 + $0x124] ss:$12 sps:$4 sm:$0xff]  }
  0x89   : > { %842 = vmatpush1.bf16.msra.mxu0 %v1657_v59  ;;  %1489 = vmatpush3.bf16.msra.mxu1 %v1683_v19  ;;  %v1682_v59 = vld [vmem:[%s2147_s21 + $0x108] ss:$12 sps:$4 sm:$0xff]   ;;  %v1692_v7 = vld [vmem:[%s2147_s21 + $0x138] ss:$12 sps:$4 sm:$0xff]  }
  0x8a   : > { %843 = vmatprep.subr.bf16.mxu0 %v1658_v13  ;;  %1490 = vmatprep.subr.bf16.mxu1 %v1686_v24  ;;  %v1697_v13 = vld [vmem:[%s2147_s21 + $0x150] ss:$12 sps:$4 sm:$0xff]  }
  0x8b   : > { %356 = vadd.xlane.f32.xlu1 %v355_v40  ;;  %353 = vadd.xlane.f32.xlu0 %v352_v46  ;;  %v1693_v40 = vld [vmem:[%s2147_s21 + $0x80] ss:$12 sps:$4 sm:$0xff]  }
  0x8c   : > { %v1674_v46 = vld [vmem:[%s2147_s21 + $0xf4] ss:$12 sps:$4 sm:$0xff]  }
  0x8d   : > { %844 = vmatpush1.bf16.msra.mxu0 %v1660_v18  ;;  %1491 = vmatpush3.bf16.msra.mxu1 %v1688_v29 }
  0x8e   : > { %845 = vmatprep.subr.bf16.mxu0 %v1661_v21  ;;  %1492 = vmatprep.subr.bf16.mxu1 %v1691_v33 }
  0x8f   : > { %362 = vadd.xlane.f32.xlu1 %v361_v0  ;;  %359 = vadd.xlane.f32.xlu0 %v358_v14  ;;  %v1689_v0 = vld [vmem:[%s2147_s21 + $0x13c] ss:$12 sps:$4 sm:$0xff]   ;;  %v1699_v14 = vld [vmem:[%s2147_s21 + $0x16c] ss:$12 sps:$4 sm:$0xff]  }
  0x91   : > { %846 = vmatpush1.bf16.msra.mxu0 %v1663_v28  ;;  %1493 = vmatpush3.bf16.msra.mxu1 %v1693_v40 }
  0x92   : > { %847 = vmatprep.subr.bf16.mxu0 %v1664_v32  ;;  %1494 = vmatprep.subr.bf16.mxu1 %v1696_v41  ;;  %v453_v32 = vlaneseq }
  0x93   : > { %368 = vadd.xlane.f32.xlu1 %v367_v22  ;;  %365 = vadd.xlane.f32.xlu0 %v364_v23 }
  0x95   : > { %848 = vmatpush1.bf16.msra.mxu0 %v1667_v38  ;;  %1495 = vmatpush3.bf16.msra.mxu1 %v1698_v45  ;;  %v454_v45 = vshrl.u32 %v453_v32, 7 }
  0x96   : > { %849 = vmatprep.subr.bf16.mxu0 %v1669_v39  ;;  %1496 = vmatprep.subr.bf16.mxu1 %v1701_v47 }
  0x99   : > { %850 = vmatpush1.bf16.msra.mxu0 %v1672_v44  ;;  %1497 = vmatpush3.bf16.msra.mxu1 %v1703_v52 }
  0x9a   : > { %851 = vmatprep.subr.bf16.mxu0 %v1674_v46 }
  0x9d   : > { %852 = vmatpush1.bf16.msra.mxu0 %v1677_v50 }
  0x9e   : > { %853 = vmatprep.subr.bf16.mxu0 %v1679_v53  ;;  %v459_v53 = vsub.s32 1, %v454_v45 }
  0xa1   : > { %854 = vmatpush1.bf16.msra.mxu0 %v1682_v59 }
  0xa2   : > { %855 = vmatprep.subr.bf16.mxu0 %v1684_v62 }
  0xa5   : > { %856 = vmatpush1.bf16.msra.mxu0 %v1687_v63  ;;  %v451_v63 = vld [vmem:[#allocation5] sm:$0x3] }
  0xa6   : > { %857 = vmatprep.subr.bf16.mxu0 %v1689_v0  ;;  %v455_v0 = vsub.s32 0, %v454_v45 }
  0xa9   : > { %858 = vmatpush1.bf16.msra.mxu0 %v1692_v7 }
  0xaa   : > { %859 = vmatprep.subr.bf16.mxu0 %v1694_v12 }
  0xad   : > { %860 = vmatpush1.bf16.msra.mxu0 %v1697_v13 }
  0xae   : > { %861 = vmatprep.subr.bf16.mxu0 %v1699_v14 }
  0xb1   : > { %862 = vmatpush1.bf16.msra.mxu0 %v1702_v15 }
 0x104   : > { %v324_v16 = vpop.xlane.xlu0 %323  ;;  %v330_v17 = vpop.xlane.xlu1 %329 }
 0x105   : > { %v371_v18 = vmul.f32 0.00390625, %v324_v16  ;;  %v373_v19 = vmul.f32 0.00390625, %v330_v17 }
 0x107   : > { %v387_v21 = vadd.f32 1e-05, %v371_v18  ;;  %v389_v22 = vadd.f32 1e-05, %v373_v19  ;;  %v2330_v18 = vrot.slane %v451_v63, %v459_v53 }
 0x108   : > { %v327_v23 = vpop.xlane.xlu0 %326  ;;  %v333_v24 = vpop.xlane.xlu1 %332 }
 0x109   : > { %1704 = vrsqrt.f32 %v387_v21  ;;  %v372_v28 = vmul.f32 0.00390625, %v327_v23  ;;  %v374_v29 = vmul.f32 0.00390625, %v333_v24  ;;  %v2333_v21 = vrot.slane %v451_v63, %v455_v0 }
 0x10a   : > { %1706 = vrsqrt.f32 %v389_v22 }
 0x10b   : > { %v388_v33 = vadd.f32 1e-05, %v372_v28  ;;  %v390_v38 = vadd.f32 1e-05, %v374_v29 }
 0x10c   : > { %v339_v39 = vpop.xlane.xlu1 %338  ;;  %v336_v40 = vpop.xlane.xlu0 %335 }
 0x10d   : > { %1708 = vrsqrt.f32 %v388_v33  ;;  %v376_v41 = vmul.f32 0.00390625, %v339_v39  ;;  %v375_v44 = vmul.f32 0.00390625, %v336_v40 }
 0x10e   : > { %1710 = vrsqrt.f32 %v390_v38 }
 0x10f   : > { %v392_v46 = vadd.f32 1e-05, %v376_v41  ;;  %v391_v47 = vadd.f32 1e-05, %v375_v44 }
 0x110   : > { %v345_v50 = vpop.xlane.xlu1 %344  ;;  %v342_v52 = vpop.xlane.xlu0 %341 }
 0x111   : > { %1712 = vrsqrt.f32 %v392_v46  ;;  %v378_v59 = vmul.f32 0.00390625, %v345_v50  ;;  %v377_v62 = vmul.f32 0.00390625, %v342_v52 }
 0x112   : > { %1714 = vrsqrt.f32 %v391_v47 }
 0x113   : > { %v1705_v7 = vpop.eup %1704  ;;  %v394_v12 = vadd.f32 1e-05, %v378_v59  ;;  %v393_v13 = vadd.f32 1e-05, %v377_v62 }
 0x114   : > { %v1707_v14 = vpop.eup %1706  ;;  %v351_v15 = vpop.xlane.xlu1 %350  ;;  %v420_v17 = vmul.f32 %v1705_v7, %v2155_v4  ;;  %v419_v22 = vmul.f32 %v1705_v7, %v2153_v3 }
 0x115   : > { %v348_v16 = vpop.xlane.xlu0 %347  ;;  %v424_v19 = vmul.f32 %v1707_v14, %v2159_v6  ;;  %1716 = vrsqrt.f32 %v394_v12  ;;  %v380_v23 = vmul.f32 0.00390625, %v351_v15  ;;  %v423_v59 = vmul.f32 %v1707_v14, %v2157_v5 }
 0x116   : > { %1718 = vrsqrt.f32 %v393_v13  ;;  %v379_v28 = vmul.f32 0.00390625, %v348_v16  ;;  %v464_v4 = vmul.f32 %v2330_v18, %v420_v17  ;;  %v463_v3 = vmul.f32 %v2333_v21, %v419_v22 }
 0x117   : > { %v1709_v24 = vpop.eup %1708  ;;  %v468_v6 = vmul.f32 %v2330_v18, %v424_v19  ;;  %v396_v41 = vadd.f32 1e-05, %v380_v23 }
 0x118   : > { %v1711_v29 = vpop.eup %1710  ;;  %v422_v32 = vmul.f32 %v1709_v24, %v2163_v9  ;;  %v421_v33 = vmul.f32 %v1709_v24, %v2161_v8  ;;  %v395_v46 = vadd.f32 1e-05, %v379_v28  ;;  %v357_v9 = vpop.xlane.xlu1 %356 }
 0x119   : > { %v426_v38 = vmul.f32 %v1711_v29, %v2167_v11  ;;  %v354_v11 = vpop.xlane.xlu0 %353  ;;  %v425_v62 = vmul.f32 %v1711_v29, %v2165_v10  ;;  %1720 = vrsqrt.f32 %v396_v41  ;;  %v382_v0 = vmul.f32 0.00390625, %v357_v9 }
 0x11a   : > { %v466_v39 = vmul.f32 %v2330_v18, %v422_v32  ;;  %v465_v40 = vmul.f32 %v2333_v21, %v421_v33  ;;  %1722 = vrsqrt.f32 %v395_v46  ;;  %v381_v7 = vmul.f32 0.00390625, %v354_v11 }
 0x11b   : > { %v1713_v44 = vpop.eup %1712  ;;  %v470_v45 = vmul.f32 %v2330_v18, %v426_v38  ;;  %v467_v10 = vmul.f32 %v2333_v21, %v423_v59  ;;  %v398_v14 = vadd.f32 1e-05, %v382_v0 }
 0x11c   : > { %v1715_v47 = vpop.eup %1714  ;;  %v496_v8 = vpack.c.bf16 %v466_v39, %v464_v4  ;;  %v495_v50 = vpack.c.bf16 %v465_v40, %v463_v3  ;;  %v430_v52 = vmul.f32 %v1713_v44, %v2187_v26  ;;  %v429_v16 = vmul.f32 %v1713_v44, %v2185_v25  ;;  %v363_v19 = vpop.xlane.xlu1 %362 }
 0x11d   : > { %v498_v53 = vpack.c.bf16 %v470_v45, %v468_v6  ;;  %v428_v63 = vmul.f32 %v1715_v47, %v2191_v31  ;;  %v469_v31 = vmul.f32 %v2333_v21, %v425_v62  ;;  %v427_v15 = vmul.f32 %v1715_v47, %v2189_v30  ;;  %v360_v28 = vpop.xlane.xlu0 %359 }
 0x11e   : > { %863 = vmatprep.mubr.bf16.mxu0 %v496_v8  ;;  %976 = vmatprep.mubr.bf16.mxu1 %v496_v8  ;;  %v474_v13 = vmul.f32 %v2330_v18, %v430_v52  ;;  %v397_v17 = vadd.f32 1e-05, %v381_v7  ;;  %1724 = vrsqrt.f32 %v398_v14  ;;  %v384_v32 = vmul.f32 0.00390625, %v363_v19 }
 0x11f   : > { %864 = vmatmul.mubr.bf16.vlgmr.msra.gmra.mrb[0].mxu0 %v495_v50  ;;  %977 = vmatmul.mubr.bf16.vlgmr.msra.gmra.mrb[0].mxu1 %v495_v50  ;;  %v1717_v12 = vpop.eup %1716  ;;  %v472_v26 = vmul.f32 %v2330_v18, %v428_v63  ;;  %v497_v29 = vpack.c.bf16 %v469_v31, %v467_v10  ;;  %v471_v33 = vmul.f32 %v2333_v21, %v427_v15  ;;  %v383_v30 = vmul.f32 0.00390625, %v360_v28 }
 0x120   : > { %873 = vmatprep.mubr.bf16.mxu0 %v498_v53  ;;  %984 = vmatprep.mubr.bf16.mxu1 %v498_v53  ;;  %v1719_v5 = vpop.eup %1718  ;;  %v434_v24 = vmul.f32 %v1717_v12, %v2201_v37  ;;  %v473_v4 = vmul.f32 %v2333_v21, %v429_v16  ;;  %1726 = vrsqrt.f32 %v397_v17  ;;  %v400_v6 = vadd.f32 1e-05, %v384_v32  ;;  %v369_v44 = vpop.xlane.xlu1 %368 }
 0x121   : > { %v500_v22 = vpack.c.bf16 %v474_v13, %v472_v26  ;;  %v432_v23 = vmul.f32 %v1719_v5, %v2210_v43  ;;  %v431_v3 = vmul.f32 %v1719_v5, %v2208_v42  ;;  %v433_v40 = vmul.f32 %v1717_v12, %v2199_v36  ;;  %v366_v47 = vpop.xlane.xlu0 %365 }
 0x122   : > { %v478_v43 = vmul.f32 %v2330_v18, %v434_v24  ;;  %v499_v39 = vpack.c.bf16 %v473_v4, %v471_v33  ;;  %v399_v41 = vadd.f32 1e-05, %v383_v30  ;;  %1728 = vrsqrt.f32 %v400_v6 }
 0x123   : > { %v1721_v25 = vpop.eup %1720  ;;  %v476_v38 = vmul.f32 %v2330_v18, %v432_v23  ;;  %v386_v8 = vmul.f32 0.00390625, %v369_v44  ;;  %v475_v50 = vmul.f32 %v2333_v21, %v431_v3  ;;  %v477_v52 = vmul.f32 %v2333_v21, %v433_v40 }
 0x124   : > { %v1723_v37 = vpop.eup %1722  ;;  %v438_v9 = vmul.f32 %v1721_v25, %v2224_v55  ;;  %1730 = vrsqrt.f32 %v399_v41  ;;  %v385_v42 = vmul.f32 0.00390625, %v366_v47  ;;  %v437_v63 = vmul.f32 %v1721_v25, %v2221_v51 }
 0x125   : > { %v502_v45 = vpack.c.bf16 %v478_v43, %v476_v38  ;;  %v436_v46 = vmul.f32 %v1723_v37, %v2228_v57  ;;  %v402_v55 = vadd.f32 1e-05, %v386_v8  ;;  %v501_v59 = vpack.c.bf16 %v477_v52, %v475_v50 }
 0x126   : > { %v482_v57 = vmul.f32 %v2330_v18, %v438_v9  ;;  %v435_v62 = vmul.f32 %v1723_v37, %v2226_v56  ;;  %v401_v0 = vadd.f32 1e-05, %v385_v42  ;;  %v481_v5 = vmul.f32 %v2333_v21, %v437_v63 }
 0x127   : > { %874 = vmatmul.mubr.bf16.gmra.mrb[4].mxu0 %v497_v29  ;;  %985 = vmatmul.mubr.bf16.gmra.mrb[4].mxu1 %v497_v29  ;;  %v480_v36 = vmul.f32 %v2330_v18, %v436_v46  ;;  %1732 = vrsqrt.f32 %v402_v55 }
 0x128   : > { %883 = vmatprep.mubr.bf16.mxu0 %v500_v22  ;;  %992 = vmatprep.mubr.bf16.mxu1 %v500_v22  ;;  %v1725_v11 = vpop.eup %1724  ;;  %v479_v13 = vmul.f32 %v2333_v21, %v435_v62  ;;  %1734 = vrsqrt.f32 %v401_v0 }
 0x129   : > { %v504_v7 = vpack.c.bf16 %v482_v57, %v480_v36  ;;  %v442_v26 = vmul.f32 %v1725_v11, %v2232_v61  ;;  %v441_v61 = vmul.f32 %v1725_v11, %v2230_v60 }
 0x12a   : > { %v1727_v53 = vpop.eup %1726  ;;  %v503_v14 = vpack.c.bf16 %v481_v5, %v479_v13 }
 0x12b   : > { %v440_v12 = vmul.f32 %v1727_v53, %v2239_v2  ;;  %v486_v51 = vmul.f32 %v2330_v18, %v442_v26  ;;  %v439_v2 = vmul.f32 %v1727_v53, %v2237_v1  ;;  %v485_v22 = vmul.f32 %v2333_v21, %v441_v61 }
 0x12c   : > { %v1729_v10 = vpop.eup %1728 }
 0x12d   : > { %v484_v56 = vmul.f32 %v2330_v18, %v440_v12  ;;  %v446_v17 = vmul.f32 %v1729_v10, %v2260_v27  ;;  %v483_v19 = vmul.f32 %v2333_v21, %v439_v2 }
 0x12e   : > { %v1731_v31 = vpop.eup %1730 }
 0x12f   : > { %884 = vmatmul.mubr.bf16.gmra.mrb[8].mxu0 %v499_v39  ;;  %993 = vmatmul.mubr.bf16.gmra.mrb[8].mxu1 %v499_v39  ;;  %v506_v15 = vpack.c.bf16 %v486_v51, %v484_v56  ;;  %v444_v16 = vmul.f32 %v1731_v31, %v2265_v35  ;;  %v490_v1 = vmul.f32 %v2330_v18, %v446_v17 }
 0x130   : > { %893 = vmatprep.mubr.bf16.mxu0 %v502_v45  ;;  %1000 = vmatprep.mubr.bf16.mxu1 %v502_v45  ;;  %v505_v60 = vpack.c.bf16 %v485_v22, %v483_v19  ;;  %v443_v29 = vmul.f32 %v1731_v31, %v2263_v34  ;;  %v445_v35 = vmul.f32 %v1729_v10, %v2253_v20 }
 0x131   : > { %v1733_v23 = vpop.eup %1732  ;;  %v488_v24 = vmul.f32 %v2330_v18, %v444_v16 }
 0x132   : > { %v1735_v28 = vpop.eup %1734  ;;  %v450_v33 = vmul.f32 %v1733_v23, %v2277_v49  ;;  %v487_v4 = vmul.f32 %v2333_v21, %v443_v29  ;;  %v489_v30 = vmul.f32 %v2333_v21, %v445_v35 }
 0x133   : > { %v508_v27 = vpack.c.bf16 %v490_v1, %v488_v24  ;;  %v448_v32 = vmul.f32 %v1735_v28, %v2286_v58  ;;  %v447_v20 = vmul.f32 %v1735_v28, %v2284_v54  ;;  %v449_v58 = vmul.f32 %v1733_v23, %v2275_v48 }
 0x134   : > { %v494_v34 = vmul.f32 %v2330_v18, %v450_v33  ;;  %v507_v38 = vpack.c.bf16 %v489_v30, %v487_v4 }
 0x135   : > { %v492_v25 = vmul.f32 %v2330_v18, %v448_v32  ;;  %v491_v49 = vmul.f32 %v2333_v21, %v447_v20  ;;  %v493_v37 = vmul.f32 %v2333_v21, %v449_v58 }
 0x137   : > { %894 = vmatmul.mubr.bf16.gmra.mrb[12].mxu0 %v501_v59  ;;  %1001 = vmatmul.mubr.bf16.gmra.mrb[12].mxu1 %v501_v59  ;;  %v510_v43 = vpack.c.bf16 %v494_v34, %v492_v25  ;;  %v509_v6 = vpack.c.bf16 %v493_v37, %v491_v49 }
 0x138   : > { %903 = vmatprep.mubr.bf16.mxu0 %v504_v7  ;;  %1008 = vmatprep.mubr.bf16.mxu1 %v504_v7 }
 0x13f   : > { %904 = vmatmul.mubr.bf16.gmra.mrb[16].mxu0 %v503_v14  ;;  %1009 = vmatmul.mubr.bf16.gmra.mrb[16].mxu1 %v503_v14 }
 0x140   : > { %913 = vmatprep.mubr.bf16.mxu0 %v506_v15  ;;  %1016 = vmatprep.mubr.bf16.mxu1 %v506_v15 }
 0x147   : > { %914 = vmatmul.mubr.bf16.gmra.mrb[20].mxu0 %v505_v60  ;;  %1017 = vmatmul.mubr.bf16.gmra.mrb[20].mxu1 %v505_v60 }
 0x148   : > { %923 = vmatprep.mubr.bf16.mxu0 %v508_v27  ;;  %1024 = vmatprep.mubr.bf16.mxu1 %v508_v27 }
 0x14f   : > { %924 = vmatmul.mubr.bf16.gmra.mrb[24].mxu0 %v507_v38  ;;  %1025 = vmatmul.mubr.bf16.gmra.mrb[24].mxu1 %v507_v38 }
 0x150   : > { %933 = vmatprep.mubr.bf16.mxu0 %v510_v43  ;;  %1032 = vmatprep.mubr.bf16.mxu1 %v510_v43 }
 0x157   : > { %934 = vmatmul.mubr.bf16.gmra.mrb[28].mxu0 %v509_v6  ;;  %1033 = vmatmul.mubr.bf16.gmra.mrb[28].mxu1 %v509_v6 }
 0x1f2   : > { %v865_v39 = vpop.f32.mrb[0].mxu0  ;;  %v1498_v18 = vpop.f32.mrb[0].mxu1 }
 0x1f3   : > { %v867_v3 = vpop.f32.mrb[1].mxu0  ;;  %v1499_v40 = vpop.f32.mrb[1].mxu1 }
 0x1f4   : > { %v1449_v54 = vpack.c.bf16 %v867_v3, %v865_v39  ;;  %v1500_v41 = vadd.f32 %v1499_v40, %v1498_v18  ;;  %v869_v48 = vpop.f32.mrb[2].mxu0  ;;  %v1501_v44 = vpop.f32.mrb[2].mxu1 }
 0x1f5   : > { %v871_v45 = vpop.f32.mrb[3].mxu0  ;;  %v1502_v46 = vpop.f32.mrb[3].mxu1 }
 0x1f6   : > { %1201 = vst [vmem:[%s2398_s22] sm:$0xff] %v1449_v54  ;;  %v1450_v21 = vpack.c.bf16 %v1500_v41, %v1500_v41  ;;  %v1451_v9 = vpack.c.bf16 %v871_v45, %v869_v48  ;;  %v1503_v47 = vadd.f32 %v1502_v46, %v1501_v44 }
 0x1f8   : > { %1202 = vst [vmem:[%s2398_s22 + $0x8] sm:$0xf] %v1450_v21  ;;  %1203 = vst [vmem:[%s2398_s22 + $0xc] sm:$0xff] %v1451_v9  ;;  %v1452_v8 = vpack.c.bf16 %v1503_v47, %v1503_v47 }
 0x1fa   : > { %1204 = vst [vmem:[%s2398_s22 + $0x14] sm:$0xf] %v1452_v8  ;;  %v875_v50 = vpop.f32.mrb[4].mxu0  ;;  %v1504_v52 = vpop.f32.mrb[4].mxu1 }
 0x1fb   : > { %v877_v42 = vpop.f32.mrb[5].mxu0  ;;  %v1505_v11 = vpop.f32.mrb[5].mxu1 }
 0x1fc   : > { %v1453_v36 = vpack.c.bf16 %v877_v42, %v875_v50  ;;  %v1506_v57 = vadd.f32 %v1505_v11, %v1504_v52  ;;  %v879_v53 = vpop.f32.mrb[6].mxu0  ;;  %v1507_v55 = vpop.f32.mrb[6].mxu1 }
 0x1fd   : > { %v881_v59 = vpop.f32.mrb[7].mxu0  ;;  %v1508_v62 = vpop.f32.mrb[7].mxu1 }
 0x1fe   : > { %1205 = vst [vmem:[%s2398_s22 + $0x18] sm:$0xff] %v1453_v36  ;;  %v1454_v63 = vpack.c.bf16 %v1506_v57, %v1506_v57  ;;  %v1455_v0 = vpack.c.bf16 %v881_v59, %v879_v53  ;;  %v1509_v7 = vadd.f32 %v1508_v62, %v1507_v55 }
 0x200   : > { %1206 = vst [vmem:[%s2398_s22 + $0x20] sm:$0xf] %v1454_v63  ;;  %1207 = vst [vmem:[%s2398_s22 + $0x24] sm:$0xff] %v1455_v0  ;;  %v1456_v12 = vpack.c.bf16 %v1509_v7, %v1509_v7 }
 0x202   : > { %1208 = vst [vmem:[%s2398_s22 + $0x2c] sm:$0xf] %v1456_v12  ;;  %v885_v26 = vpop.f32.mrb[8].mxu0  ;;  %v1510_v13 = vpop.f32.mrb[8].mxu1 }
 0x203   : > { %v887_v5 = vpop.f32.mrb[9].mxu0  ;;  %v1511_v10 = vpop.f32.mrb[9].mxu1 }
 0x204   : > { %v1457_v56 = vpack.c.bf16 %v887_v5, %v885_v26  ;;  %v1512_v51 = vadd.f32 %v1511_v10, %v1510_v13  ;;  %v889_v31 = vpop.f32.mrb[10].mxu0  ;;  %v1513_v14 = vpop.f32.mrb[10].mxu1 }
 0x205   : > { %v891_v2 = vpop.f32.mrb[11].mxu0  ;;  %v1514_v61 = vpop.f32.mrb[11].mxu1 }
 0x206   : > { %1209 = vst [vmem:[%s2398_s22 + $0x30] sm:$0xff] %v1457_v56  ;;  %v1458_v15 = vpack.c.bf16 %v1512_v51, %v1512_v51  ;;  %v1459_v16 = vpack.c.bf16 %v891_v2, %v889_v31  ;;  %v1515_v17 = vadd.f32 %v1514_v61, %v1513_v14 }
 0x208   : > { %1210 = vst [vmem:[%s2398_s22 + $0x38] sm:$0xf] %v1458_v15  ;;  %1211 = vst [vmem:[%s2398_s22 + $0x3c] sm:$0xff] %v1459_v16  ;;  %v1460_v19 = vpack.c.bf16 %v1515_v17, %v1515_v17 }
 0x20a   : > { %1212 = vst [vmem:[%s2398_s22 + $0x44] sm:$0xf] %v1460_v19  ;;  %v895_v22 = vpop.f32.mrb[12].mxu0  ;;  %v1516_v23 = vpop.f32.mrb[12].mxu1 }
 0x20b   : > { %v897_v24 = vpop.f32.mrb[13].mxu0  ;;  %v1517_v1 = vpop.f32.mrb[13].mxu1 }
 0x20c   : > { %v1461_v28 = vpack.c.bf16 %v897_v24, %v895_v22  ;;  %v1518_v60 = vadd.f32 %v1517_v1, %v1516_v23  ;;  %v899_v29 = vpop.f32.mrb[14].mxu0  ;;  %v1519_v35 = vpop.f32.mrb[14].mxu1 }
 0x20d   : > { %v901_v27 = vpop.f32.mrb[15].mxu0  ;;  %v1520_v32 = vpop.f32.mrb[15].mxu1 }
 0x20e   : > { %1213 = vst [vmem:[%s2398_s22 + $0x48] sm:$0xff] %v1461_v28  ;;  %v1462_v33 = vpack.c.bf16 %v1518_v60, %v1518_v60  ;;  %v1463_v4 = vpack.c.bf16 %v901_v27, %v899_v29  ;;  %v1521_v30 = vadd.f32 %v1520_v32, %v1519_v35 }
 0x210   : > { %1214 = vst [vmem:[%s2398_s22 + $0x50] sm:$0xf] %v1462_v33  ;;  %1215 = vst [vmem:[%s2398_s22 + $0x54] sm:$0xff] %v1463_v4  ;;  %v1464_v25 = vpack.c.bf16 %v1521_v30, %v1521_v30 }
 0x212   : > { %1216 = vst [vmem:[%s2398_s22 + $0x5c] sm:$0xf] %v1464_v25  ;;  %v905_v34 = vpop.f32.mrb[16].mxu0  ;;  %v1522_v38 = vpop.f32.mrb[16].mxu1 }
 0x213   : > { %v907_v20 = vpop.f32.mrb[17].mxu0  ;;  %v1523_v58 = vpop.f32.mrb[17].mxu1 }
 0x214   : > { %v1465_v43 = vpack.c.bf16 %v907_v20, %v905_v34  ;;  %v1524_v49 = vadd.f32 %v1523_v58, %v1522_v38  ;;  %v909_v37 = vpop.f32.mrb[18].mxu0  ;;  %v1525_v6 = vpop.f32.mrb[18].mxu1 }
 0x215   : > { %v911_v39 = vpop.f32.mrb[19].mxu0  ;;  %v1526_v18 = vpop.f32.mrb[19].mxu1 }
 0x216   : > { %1217 = vst [vmem:[%s2398_s22 + $0x60] sm:$0xff] %v1465_v43  ;;  %v1466_v3 = vpack.c.bf16 %v1524_v49, %v1524_v49  ;;  %v1467_v40 = vpack.c.bf16 %v911_v39, %v909_v37  ;;  %v1527_v54 = vadd.f32 %v1526_v18, %v1525_v6 }
 0x218   : > { %1218 = vst [vmem:[%s2398_s22 + $0x68] sm:$0xf] %v1466_v3  ;;  %1219 = vst [vmem:[%s2398_s22 + $0x6c] sm:$0xff] %v1467_v40  ;;  %v1468_v41 = vpack.c.bf16 %v1527_v54, %v1527_v54 }
 0x21a   : > { %1220 = vst [vmem:[%s2398_s22 + $0x74] sm:$0xf] %v1468_v41  ;;  %v915_v48 = vpop.f32.mrb[20].mxu0  ;;  %v1528_v44 = vpop.f32.mrb[20].mxu1 }
 0x21b   : > { %v917_v45 = vpop.f32.mrb[21].mxu0  ;;  %v1529_v46 = vpop.f32.mrb[21].mxu1 }
 0x21c   : > { %v1469_v21 = vpack.c.bf16 %v917_v45, %v915_v48  ;;  %v1530_v9 = vadd.f32 %v1529_v46, %v1528_v44  ;;  %v919_v47 = vpop.f32.mrb[22].mxu0  ;;  %v1531_v8 = vpop.f32.mrb[22].mxu1 }
 0x21d   : > { %v921_v50 = vpop.f32.mrb[23].mxu0  ;;  %v1532_v52 = vpop.f32.mrb[23].mxu1 }
 0x21e   : > { %1221 = vst [vmem:[%s2398_s22 + $0x78] sm:$0xff] %v1469_v21  ;;  %v1470_v42 = vpack.c.bf16 %v1530_v9, %v1530_v9  ;;  %v1471_v11 = vpack.c.bf16 %v921_v50, %v919_v47  ;;  %v1533_v36 = vadd.f32 %v1532_v52, %v1531_v8 }
 0x220   : > { %1222 = vst [vmem:[%s2398_s22 + $0x80] sm:$0xf] %v1470_v42  ;;  %1223 = vst [vmem:[%s2398_s22 + $0x84] sm:$0xff] %v1471_v11  ;;  %v1472_v57 = vpack.c.bf16 %v1533_v36, %v1533_v36 }
 0x222   : > { %1224 = vst [vmem:[%s2398_s22 + $0x8c] sm:$0xf] %v1472_v57  ;;  %v925_v53 = vpop.f32.mrb[24].mxu0  ;;  %v1534_v55 = vpop.f32.mrb[24].mxu1 }
 0x223   : > { %v927_v59 = vpop.f32.mrb[25].mxu0  ;;  %v1535_v62 = vpop.f32.mrb[25].mxu1 }
 0x224   : > { %v1473_v63 = vpack.c.bf16 %v927_v59, %v925_v53  ;;  %v1536_v0 = vadd.f32 %v1535_v62, %v1534_v55  ;;  %v929_v7 = vpop.f32.mrb[26].mxu0  ;;  %v1537_v12 = vpop.f32.mrb[26].mxu1 }
 0x225   : > { %v931_v26 = vpop.f32.mrb[27].mxu0  ;;  %v1538_v13 = vpop.f32.mrb[27].mxu1 }
 0x226   : > { %1225 = vst [vmem:[%s2398_s22 + $0x90] sm:$0xff] %v1473_v63  ;;  %v1474_v5 = vpack.c.bf16 %v1536_v0, %v1536_v0  ;;  %v1475_v10 = vpack.c.bf16 %v931_v26, %v929_v7  ;;  %v1539_v56 = vadd.f32 %v1538_v13, %v1537_v12 }
 0x228   : > { %1226 = vst [vmem:[%s2398_s22 + $0x98] sm:$0xf] %v1474_v5  ;;  %1227 = vst [vmem:[%s2398_s22 + $0x9c] sm:$0xff] %v1475_v10  ;;  %v1476_v51 = vpack.c.bf16 %v1539_v56, %v1539_v56 }
 0x22a   : > { %1228 = vst [vmem:[%s2398_s22 + $0xa4] sm:$0xf] %v1476_v51  ;;  %v935_v31 = vpop.f32.mrb[28].mxu0  ;;  %v1540_v14 = vpop.f32.mrb[28].mxu1 }
 0x22b   : > { %v937_v2 = vpop.f32.mrb[29].mxu0  ;;  %v1541_v61 = vpop.f32.mrb[29].mxu1 }
 0x22c   : > { %v1477_v15 = vpack.c.bf16 %v937_v2, %v935_v31  ;;  %v1542_v16 = vadd.f32 %v1541_v61, %v1540_v14  ;;  %v939_v17 = vpop.f32.mrb[30].mxu0  ;;  %v1543_v19 = vpop.f32.mrb[30].mxu1 }
 0x22d   : > { %v941_v22 = vpop.f32.mrb[31].mxu0  ;;  %v1544_v23 = vpop.f32.mrb[31].mxu1 }
 0x22e   : > { %1229 = vst [vmem:[%s2398_s22 + $0xa8] sm:$0xff] %v1477_v15  ;;  %v1478_v24 = vpack.c.bf16 %v1542_v16, %v1542_v16  ;;  %v1479_v1 = vpack.c.bf16 %v941_v22, %v939_v17  ;;  %v1545_v28 = vadd.f32 %v1544_v23, %v1543_v19 }
 0x230   : > { %1230 = vst [vmem:[%s2398_s22 + $0xb0] sm:$0xf] %v1478_v24  ;;  %1231 = vst [vmem:[%s2398_s22 + $0xb4] sm:$0xff] %v1479_v1  ;;  %v1480_v60 = vpack.c.bf16 %v1545_v28, %v1545_v28 }
 0x232   : > { %1232 = vst [vmem:[%s2398_s22 + $0xbc] sm:$0xf] %v1480_v60 }
 0x233   : > { %1835 = shalt.err (!%p1832_p1)
}
 0x234   : > { %s1836_s7 = scalar_lea.hbm %s2434_s20, 3072  ;;  %s1840_s19 = scalar_lea.hbm %s2491_s3, 6144 }
 0x235   : > { %p1837_p6 = scmp.ne.s32.totalorder %s2434_s20, %s1836_s7  ;;  %p1841_p11 = scmp.lt.u32.totalorder %s2434_s20, %s2491_s3 }
 0x236   : > { %p1842_p3 = scmp.lt.u32.totalorder %s1840_s19, %s1836_s7  ;;  %p1844_p4 = scmp.lt.u32.totalorder %s1836_s7, %s2434_s20 }
 0x237   : > { %p1838_p9 = pnand %p1837_p6, %p2507_p7 }
 0x238   : > { %p1843_p12 = por %p1842_p3, %p1841_p11 }
 0x239   : > { %p1839_p13 = pneg %p1838_p9 }
 0x23a   : > { %p1845_p10 = por %p1844_p4, %p1843_p12 }
 0x23c   : > { %p1846_p2 = pnand %p1845_p10, %p1839_p13 }
 0x23e   : > { %1849 = shalt.err (!%p1846_p2)
}
 0x23f   : > { %s1923_s22 = smov 192   ;;  %s1924_s28 = smov 384  }
 0x240   : > { %s1925_s9 = smov 12  }
 0x241   : > { %1559 = dma.vmem_to_hbm [thread:$0]  (%p2507_p7), %s2436_s8, 3072, %s2434_s20, %s1234_s5, %s1923_s22, %s1924_s28, %s1925_s9  }
 0x242 PF: > { %s1265_s15 = sand.u32 1, %s1892_s12   ;;  %p2508_p8 = scmp.ne.s32.totalorder %s2498_s24, 0 }
 0x243   : > { %p2509_p0 = scmp.ge.s32.totalorder %s1912_s17, 2  ;;  %s1266_s30 = scalar_lea.sflag [#allocation4], %s1265_s15 }
 0x245   : > { %p1573_p5 = pnand %p2509_p0, %p2508_p8 }
 0x247   : > { %1887 = dma.done.wait (!%p1573_p5), %s1266_s30, 3072  }
 0x248   : > { %1889 = vsyncadd (!%p1573_p5), %s1266_s30, 4294964224  ;;  %s18_s17 = sadd.s32 1, %s1912_s17   ;;  %s2510_s12 = smov %s1896_s13 }
 0x249   : > { %p15_p1 = scmp.ge.s32.totalorder %s18_s17, 4   ;;  %s2511_s13 = smov %s1900_s14 }
 0x24a   : > { %s2512_s14 = smov %s2100_s27  ;;  %s2513_s15 = smov %s1908_s16 }
 0x24b   : > { %s2514_s16 = smov %s2516_s29  ;;  %17 = sbr.rel (!%p15_p1) target bundleno = 6 (0x6), region = 85 }
 0x252   :  { %1271 = vsyncpa [#allocation3], 1 }
 0x253   :  { %1273 = vsyncpa [#allocation3 + $0x1], 1 }
 0x254   :  { %1274 = vsyncpa [#allocation6], 1 }
 0x255   :  { %1275 = vsyncpa [#allocation4], 1 }
 0x256   :  { %1277 = vsyncpa [#allocation4 + $0x1], 1 }

// kernel: transformer_lm_forward.11
= control target key start
LH: loop header
LB: loop body
LE: loop exit
PB: predicated region body
PF: predicated region fallthrough
CT: control target
= control target key end

     0   :  { %8 = vsyncpa [#allocation4], 0  ;;  %s1211_s0 = inlined_call_operand.hbm [shape: bf16[128,256], index: 0, kind: input, shape index: {}]   ;;  %s1212_s1 = inlined_call_operand.hbm [shape: bf16[256,256], index: 1, kind: input, shape index: {}]   ;;  %s1213_s2 = inlined_call_operand.hbm [shape: bf16[128,256], index: 2, kind: input, shape index: {}]   ;;  %s1214_s3 = inlined_call_operand.hbm [shape: bf16[128,256], index: 3, kind: output, shape index: {}]  }
   0x1   :  { %9 = vsyncpa [#allocation7], 0 }
   0x2   :  { %10 = vsyncpa [#allocation5], 0  ;;  %s1118_s12 = smov [#allocation6]   ;;  %s1119_s14 = smov [#allocation3]  }
   0x3   :  { %s28_s13 = sshll.u32 %s1118_s12, 4  ;;  %s16_s15 = sshll.u32 %s1119_s14, 4  ;;  %s29_s13 = int_to_ptr.vmem [resolvable:$true] %s28_s13  ;;  %s1144_s15 = int_to_ptr.vmem [resolvable:$true] %s16_s15 }
   0x4   :  { %s1024_s18 = scalar_lea.hbm %s1212_s1, 4096 }
   0x5   :  { %p1025_p0 = scmp.ne.s32.totalorder %s1212_s1, %s1024_s18  ;;  %p1028_p1 = scmp.lt.u32.totalorder %s1024_s18, %s1212_s1 }
   0x7   :  { %p1030_p2 = pnand %p1028_p1, %p1025_p0 }
   0x9   :  { %1033 = shalt.err (!%p1030_p2)
}
   0xa   :  { %s1034_s23 = scalar_lea.vmem %s29_s13, 4096  ;;  %p1039_p4 = scmp.lt.s32.totalorder %s29_s13, %s29_s13 }
   0xb   :  { %p1035_p3 = scmp.ne.s32.totalorder %s29_s13, %s1034_s23  ;;  %p1040_p5 = scmp.lt.s32.totalorder %s1034_s23, %s1034_s23 }
   0xd   :  { %p1041_p6 = por %p1040_p5, %p1039_p4 }
   0xf   :  { %p1042_p7 = pnand %p1041_p6, %p1035_p3 }
  0x11   :  { %1045 = shalt.err (!%p1042_p7)
}
  0x12   :  { %s1120_s24 = smov 128   ;;  %s1121_s25 = smov 8  }
  0x13   :  { %34 = dma.hbm_to_vmem [thread:$0]  %s1212_s1, 4096, %s29_s13, [#allocation7], %s1120_s24, %s1120_s24, %s1121_s25  }
  0x14   :  { %s1046_s30 = scalar_lea.hbm %s1211_s0, 2048 }
  0x15   :  { %p1047_p8 = scmp.ne.s32.totalorder %s1211_s0, %s1046_s30  ;;  %p1050_p9 = scmp.lt.u32.totalorder %s1046_s30, %s1211_s0 }
  0x17   :  { %p1052_p10 = pnand %p1050_p9, %p1047_p8 }
  0x19   :  { %1055 = shalt.err (!%p1052_p10)
}
  0x1a   :  { %s1056_s8 = scalar_lea.vmem %s1144_s15, 2048  ;;  %p1061_p12 = scmp.lt.s32.totalorder %s1144_s15, %s1144_s15 }
  0x1b   :  { %p1057_p11 = scmp.ne.s32.totalorder %s1144_s15, %s1056_s8  ;;  %p1062_p13 = scmp.lt.s32.totalorder %s1056_s8, %s1056_s8 }
  0x1d   :  { %p1063_p0 = por %p1062_p13, %p1061_p12 }
  0x1f   :  { %p1064_p1 = pnand %p1063_p0, %p1057_p11 }
  0x21   :  { %1067 = shalt.err (!%p1064_p1)
}
  0x22   :  { %22 = dma.hbm_to_vmem [thread:$0]  %s1211_s0, 2048, %s1144_s15, [#allocation4], %s1120_s24, %s1120_s24, %s1121_s25  }
  0x23   :  { %s1122_s10 = smov [#allocation8]   ;;  %s1068_s14 = scalar_lea.hbm %s1213_s2, 2048 }
  0x24   :  { %s40_s11 = sshll.u32 %s1122_s10, 4  ;;  %p1069_p2 = scmp.ne.s32.totalorder %s1213_s2, %s1068_s14  ;;  %s41_s11 = int_to_ptr.vmem [resolvable:$true] %s40_s11 }
  0x25   :  { %p1072_p3 = scmp.lt.u32.totalorder %s1068_s14, %s1213_s2 }
  0x27   :  { %p1074_p4 = pnand %p1072_p3, %p1069_p2 }
  0x29   :  { %1077 = shalt.err (!%p1074_p4)
}
  0x2a   :  { %s1078_s20 = scalar_lea.vmem %s41_s11, 2048  ;;  %p1083_p6 = scmp.lt.s32.totalorder %s41_s11, %s41_s11 }
  0x2b   :  { %p1079_p5 = scmp.ne.s32.totalorder %s41_s11, %s1078_s20  ;;  %p1084_p7 = scmp.lt.s32.totalorder %s1078_s20, %s1078_s20 }
  0x2d   :  { %p1085_p8 = por %p1084_p7, %p1083_p6 }
  0x2f   :  { %p1086_p9 = pnand %p1085_p8, %p1079_p5 }
  0x31   :  { %1089 = shalt.err (!%p1086_p9)
}
  0x32   :  { %46 = dma.hbm_to_vmem [thread:$0]  %s1213_s2, 2048, %s41_s11, [#allocation7], %s1120_s24, %s1120_s24, %s1121_s25  }
  0x33   :  { %1112 = dma.done.wait [#allocation4], 2048  }
  0x34   :  { %1113 = vsyncadd [#allocation4], 4294965248 }
  0x35   :  { %1114 = dma.done.wait [#allocation7], 6144  }
  0x36   :  { %1115 = vsyncadd [#allocation7], 4294961152  ;;  %v952_v0 = vld [vmem:[#allocation6 + $0x4] ss:$8 sps:$4 sm:$0xff]   ;;  %v954_v1 = vld [vmem:[#allocation6] ss:$8 sps:$4 sm:$0xff]  }
  0x37   :  { %412 = vmatprep.subr.bf16.mxu0 %v952_v0  ;;  %914 = vmatprep.subr.bf16.mxu1 %v952_v0  ;;  %v955_v2 = vld [vmem:[#allocation6 + $0x14] ss:$8 sps:$4 sm:$0xff]   ;;  %v957_v3 = vld [vmem:[#allocation6 + $0x10] ss:$8 sps:$4 sm:$0xff]   ;;  %v958_v4 = vld [vmem:[#allocation6 + $0x24] ss:$8 sps:$4 sm:$0xff]  }
  0x38   :  { %413 = vmatpush1.bf16.msra.mxu0 %v954_v1  ;;  %930 = vmatpush1.bf16.msra.mxu1 %v954_v1  ;;  %v960_v5 = vld [vmem:[#allocation6 + $0x20] ss:$8 sps:$4 sm:$0xff]   ;;  %v961_v6 = vld [vmem:[#allocation6 + $0x34] ss:$8 sps:$4 sm:$0xff]   ;;  %v963_v7 = vld [vmem:[#allocation6 + $0x30] ss:$8 sps:$4 sm:$0xff]  }
  0x39   :  { %414 = vmatprep.subr.bf16.mxu0 %v955_v2  ;;  %915 = vmatprep.subr.bf16.mxu1 %v955_v2  ;;  %v964_v8 = vld [vmem:[#allocation6 + $0x44] ss:$8 sps:$4 sm:$0xff]   ;;  %v966_v9 = vld [vmem:[#allocation6 + $0x40] ss:$8 sps:$4 sm:$0xff]   ;;  %v967_v10 = vld [vmem:[#allocation6 + $0x54] ss:$8 sps:$4 sm:$0xff]  }
  0x3a   :  { %v969_v11 = vld [vmem:[#allocation6 + $0x50] ss:$8 sps:$4 sm:$0xff]   ;;  %v970_v12 = vld [vmem:[#allocation6 + $0x64] ss:$8 sps:$4 sm:$0xff]   ;;  %v972_v14 = vld [vmem:[#allocation6 + $0x60] ss:$8 sps:$4 sm:$0xff]  }
  0x3b   :  { %v1002_v13 = vld [vmem:[#allocation3 + $0x4] ss:$8 sps:$4 sm:$0xff]   ;;  %v973_v16 = vld [vmem:[#allocation6 + $0x74] ss:$8 sps:$4 sm:$0xff]   ;;  %v975_v17 = vld [vmem:[#allocation6 + $0x70] ss:$8 sps:$4 sm:$0xff]  }
  0x3c   :  { %415 = vmatpush1.bf16.msra.mxu0 %v957_v3  ;;  %931 = vmatpush1.bf16.msra.mxu1 %v957_v3  ;;  %v1005_v15 = vld [vmem:[#allocation3 + $0x44] ss:$8 sps:$4 sm:$0xff]   ;;  %v978_v19 = vld [vmem:[#allocation6 + $0x80] ss:$8 sps:$4 sm:$0xff]   ;;  %v979_v20 = vld [vmem:[#allocation6 + $0x94] ss:$8 sps:$4 sm:$0xff]  }
  0x3d   :  { %416 = vmatprep.subr.bf16.mxu0 %v958_v4  ;;  %916 = vmatprep.subr.bf16.mxu1 %v958_v4  ;;  %v976_v18 = vld [vmem:[#allocation6 + $0x84] ss:$8 sps:$4 sm:$0xff]   ;;  %v981_v21 = vld [vmem:[#allocation6 + $0x90] ss:$8 sps:$4 sm:$0xff]   ;;  %v984_v23 = vld [vmem:[#allocation6 + $0xa0] ss:$8 sps:$4 sm:$0xff]  }
  0x3e   :  { %444 = vmatprep.mubr.bf16.mxu0 %v1002_v13  ;;  %484 = vmatprep.mubr.bf16.mxu1 %v1005_v15  ;;  %v982_v22 = vld [vmem:[#allocation6 + $0xa4] ss:$8 sps:$4 sm:$0xff]   ;;  %v985_v24 = vld [vmem:[#allocation6 + $0xb4] ss:$8 sps:$4 sm:$0xff]   ;;  %v987_v25 = vld [vmem:[#allocation6 + $0xb0] ss:$8 sps:$4 sm:$0xff]  }
  0x3f   :  { %v988_v26 = vld [vmem:[#allocation6 + $0xc4] ss:$8 sps:$4 sm:$0xff]   ;;  %v990_v27 = vld [vmem:[#allocation6 + $0xc0] ss:$8 sps:$4 sm:$0xff]   ;;  %v991_v28 = vld [vmem:[#allocation6 + $0xd4] ss:$8 sps:$4 sm:$0xff]  }
  0x40   :  { %417 = vmatpush1.bf16.msra.mxu0 %v960_v5  ;;  %932 = vmatpush1.bf16.msra.mxu1 %v960_v5  ;;  %v993_v29 = vld [vmem:[#allocation6 + $0xd0] ss:$8 sps:$4 sm:$0xff]   ;;  %v994_v30 = vld [vmem:[#allocation6 + $0xe4] ss:$8 sps:$4 sm:$0xff]   ;;  %v996_v31 = vld [vmem:[#allocation6 + $0xe0] ss:$8 sps:$4 sm:$0xff]  }
  0x41   :  { %418 = vmatprep.subr.bf16.mxu0 %v961_v6  ;;  %917 = vmatprep.subr.bf16.mxu1 %v961_v6  ;;  %v997_v32 = vld [vmem:[#allocation6 + $0xf4] ss:$8 sps:$4 sm:$0xff]   ;;  %v999_v33 = vld [vmem:[#allocation6 + $0xf0] ss:$8 sps:$4 sm:$0xff]   ;;  %v1000_v34 = vld [vmem:[#allocation3] ss:$8 sps:$4 sm:$0xff]  }
  0x42   :  { %v1003_v35 = vld [vmem:[#allocation3 + $0x40] ss:$8 sps:$4 sm:$0xff]   ;;  %v1006_v36 = vld [vmem:[#allocation3 + $0x14] ss:$8 sps:$4 sm:$0xff]   ;;  %v1010_v38 = vld [vmem:[#allocation3 + $0x10] ss:$8 sps:$4 sm:$0xff]  }
  0x43   :  { %v1008_v37 = vld [vmem:[#allocation3 + $0x54] ss:$8 sps:$4 sm:$0xff]   ;;  %v1011_v39 = vld [vmem:[#allocation3 + $0x50] ss:$8 sps:$4 sm:$0xff]   ;;  %v1012_v40 = vld [vmem:[#allocation3 + $0x24] ss:$8 sps:$4 sm:$0xff]  }
  0x44   :  { %419 = vmatpush1.bf16.msra.mxu0 %v963_v7  ;;  %933 = vmatpush1.bf16.msra.mxu1 %v963_v7  ;;  %v1014_v41 = vld [vmem:[#allocation3 + $0x64] ss:$8 sps:$4 sm:$0xff]   ;;  %v1016_v42 = vld [vmem:[#allocation3 + $0x20] ss:$8 sps:$4 sm:$0xff]   ;;  %v1018_v44 = vld [vmem:[#allocation3 + $0x34] ss:$8 sps:$4 sm:$0xff]  }
  0x45   :  { %420 = vmatprep.subr.bf16.mxu0 %v964_v8  ;;  %918 = vmatprep.subr.bf16.mxu1 %v964_v8  ;;  %v1017_v43 = vld [vmem:[#allocation3 + $0x60] ss:$8 sps:$4 sm:$0xff]   ;;  %v1020_v45 = vld [vmem:[#allocation3 + $0x74] ss:$8 sps:$4 sm:$0xff]   ;;  %v1022_v46 = vld [vmem:[#allocation3 + $0x30] ss:$8 sps:$4 sm:$0xff]  }
  0x46   :  { %v1023_v47 = vld [vmem:[#allocation3 + $0x70] ss:$8 sps:$4 sm:$0xff]   ;;  %v624_v48 = vld [vmem:[#allocation8] sm:$0xff]  ;;  %v625_v50 = vld [vmem:[#allocation8 + $0x8] sm:$0xff]  ;;  %s1123_s2 = smov [#allocation9]  }
  0x47   :  { %v632_v49 = vld [vmem:[#allocation8 + $0x40] sm:$0xff]  ;;  %v633_v51 = vld [vmem:[#allocation8 + $0x48] sm:$0xff]  ;;  %v640_v52 = vunpack.c.l.bf16 %v624_v48  ;;  %v641_v54 = vunpack.c.h.bf16 %v624_v48  ;;  %v642_v56 = vunpack.c.l.bf16 %v625_v50  ;;  %v643_v60 = vunpack.c.h.bf16 %v625_v50  ;;  %v626_v6 = vld [vmem:[#allocation8 + $0x10] sm:$0xff]  ;;  %s821_s21 = sshll.u32 %s1123_s2, 4  ;;  %s822_s21 = int_to_ptr.vmem [resolvable:$true] %s821_s21 }
  0x48   :  { %421 = vmatpush1.bf16.msra.mxu0 %v966_v9  ;;  %934 = vmatpush1.bf16.msra.mxu1 %v966_v9  ;;  %v656_v53 = vunpack.c.l.bf16 %v632_v49  ;;  %v657_v55 = vunpack.c.h.bf16 %v632_v49  ;;  %v658_v57 = vunpack.c.l.bf16 %v633_v51  ;;  %v659_v61 = vunpack.c.h.bf16 %v633_v51  ;;  %v634_v7 = vld [vmem:[#allocation8 + $0x50] sm:$0xff]  ;;  %v629_v48 = vld [vmem:[#allocation8 + $0x28] sm:$0xff]  ;;  %s1090_s22 = scalar_lea.vmem %s822_s21, 2048  ;;  %p1095_p11 = scmp.lt.s32.totalorder %s822_s21, %s822_s21 }
  0x49   :  { %422 = vmatprep.subr.bf16.mxu0 %v967_v10  ;;  %919 = vmatprep.subr.bf16.mxu1 %v967_v10  ;;  %v637_v49 = vld [vmem:[#allocation8 + $0x68] sm:$0xff]  ;;  %p1091_p10 = scmp.ne.s32.totalorder %s822_s21, %s1090_s22  ;;  %p1096_p12 = scmp.lt.s32.totalorder %s1090_s22, %s1090_s22 }
  0x4b   :  { %p1097_p13 = por %p1096_p12, %p1095_p11 }
  0x4c   :  { %423 = vmatpush1.bf16.msra.mxu0 %v969_v11  ;;  %935 = vmatpush1.bf16.msra.mxu1 %v969_v11 }
  0x4d   :  { %424 = vmatprep.subr.bf16.mxu0 %v970_v12  ;;  %920 = vmatprep.subr.bf16.mxu1 %v970_v12  ;;  %p1098_p0 = pnand %p1097_p13, %p1091_p10 }
  0x50   :  { %425 = vmatpush1.bf16.msra.mxu0 %v972_v14  ;;  %936 = vmatpush1.bf16.msra.mxu1 %v972_v14 }
  0x51   :  { %426 = vmatprep.subr.bf16.mxu0 %v973_v16  ;;  %921 = vmatprep.subr.bf16.mxu1 %v973_v16  ;;  %v627_v16 = vld [vmem:[#allocation8 + $0x18] sm:$0xff] }
  0x54   :  { %427 = vmatpush1.bf16.msra.mxu0 %v975_v17  ;;  %937 = vmatpush1.bf16.msra.mxu1 %v975_v17  ;;  %v635_v17 = vld [vmem:[#allocation8 + $0x58] sm:$0xff] }
  0x55   :  { %428 = vmatprep.subr.bf16.mxu0 %v976_v18  ;;  %922 = vmatprep.subr.bf16.mxu1 %v976_v18  ;;  %v644_v18 = vunpack.c.l.bf16 %v626_v6 }
  0x58   :  { %429 = vmatpush1.bf16.msra.mxu0 %v978_v19  ;;  %938 = vmatpush1.bf16.msra.mxu1 %v978_v19  ;;  %v660_v19 = vunpack.c.l.bf16 %v634_v7 }
  0x59   :  { %430 = vmatprep.subr.bf16.mxu0 %v979_v20  ;;  %923 = vmatprep.subr.bf16.mxu1 %v979_v20 }
  0x5c   :  { %431 = vmatpush1.bf16.msra.mxu0 %v981_v21  ;;  %939 = vmatpush1.bf16.msra.mxu1 %v981_v21 }
  0x5d   :  { %432 = vmatprep.subr.bf16.mxu0 %v982_v22  ;;  %924 = vmatprep.subr.bf16.mxu1 %v982_v22  ;;  %v645_v22 = vunpack.c.h.bf16 %v626_v6  ;;  %v630_v6 = vld [vmem:[#allocation8 + $0x30] sm:$0xff] }
  0x60   :  { %433 = vmatpush1.bf16.msra.mxu0 %v984_v23  ;;  %940 = vmatpush1.bf16.msra.mxu1 %v984_v23  ;;  %v661_v23 = vunpack.c.h.bf16 %v634_v7  ;;  %v638_v7 = vld [vmem:[#allocation8 + $0x70] sm:$0xff] }
  0x61   :  { %434 = vmatprep.subr.bf16.mxu0 %v985_v24  ;;  %925 = vmatprep.subr.bf16.mxu1 %v985_v24  ;;  %v646_v24 = vunpack.c.l.bf16 %v627_v16 }
  0x64   :  { %435 = vmatpush1.bf16.msra.mxu0 %v987_v25  ;;  %941 = vmatpush1.bf16.msra.mxu1 %v987_v25  ;;  %v662_v25 = vunpack.c.l.bf16 %v635_v17 }
  0x65   :  { %436 = vmatprep.subr.bf16.mxu0 %v988_v26  ;;  %926 = vmatprep.subr.bf16.mxu1 %v988_v26 }
  0x68   :  { %437 = vmatpush1.bf16.msra.mxu0 %v990_v27  ;;  %942 = vmatpush1.bf16.msra.mxu1 %v990_v27 }
  0x69   :  { %438 = vmatprep.subr.bf16.mxu0 %v991_v28  ;;  %927 = vmatprep.subr.bf16.mxu1 %v991_v28  ;;  %v647_v28 = vunpack.c.h.bf16 %v627_v16  ;;  %v631_v16 = vld [vmem:[#allocation8 + $0x38] sm:$0xff] }
  0x6c   :  { %439 = vmatpush1.bf16.msra.mxu0 %v993_v29  ;;  %943 = vmatpush1.bf16.msra.mxu1 %v993_v29  ;;  %v663_v29 = vunpack.c.h.bf16 %v635_v17  ;;  %v639_v17 = vld [vmem:[#allocation8 + $0x78] sm:$0xff] }
  0x6d   :  { %440 = vmatprep.subr.bf16.mxu0 %v994_v30  ;;  %928 = vmatprep.subr.bf16.mxu1 %v994_v30 }
  0x70   :  { %441 = vmatpush1.bf16.msra.mxu0 %v996_v31  ;;  %944 = vmatpush1.bf16.msra.mxu1 %v996_v31 }
  0x71   :  { %442 = vmatprep.subr.bf16.mxu0 %v997_v32  ;;  %929 = vmatprep.subr.bf16.mxu1 %v997_v32 }
  0x74   :  { %443 = vmatpush1.bf16.msra.mxu0 %v999_v33  ;;  %945 = vmatpush1.bf16.msra.mxu1 %v999_v33 }
  0x77   :  { %445 = vmatmul.mubr.bf16.vlgmr.msra.gmra.mrb[0].mxu0 %v1000_v34  ;;  %485 = vmatmul.mubr.bf16.vlgmr.msra.gmra.mrb[0].mxu1 %v1003_v35 }
  0x78   :  { %454 = vmatprep.mubr.bf16.mxu0 %v1006_v36  ;;  %494 = vmatprep.mubr.bf16.mxu1 %v1008_v37 }
  0x7f   :  { %455 = vmatmul.mubr.bf16.gmra.mrb[4].mxu0 %v1010_v38  ;;  %495 = vmatmul.mubr.bf16.gmra.mrb[4].mxu1 %v1011_v39  ;;  %v628_v38 = vld [vmem:[#allocation8 + $0x20] sm:$0xff] }
  0x80   :  { %464 = vmatprep.mubr.bf16.mxu0 %v1012_v40  ;;  %504 = vmatprep.mubr.bf16.mxu1 %v1014_v41  ;;  %v636_v39 = vld [vmem:[#allocation8 + $0x60] sm:$0xff]  ;;  %v648_v50 = vunpack.c.l.bf16 %v628_v38 }
  0x81   :  { %v664_v51 = vunpack.c.l.bf16 %v636_v39 }
  0x87   :  { %465 = vmatmul.mubr.bf16.gmra.mrb[8].mxu0 %v1016_v42  ;;  %505 = vmatmul.mubr.bf16.gmra.mrb[8].mxu1 %v1017_v43 }
  0x88   :  { %474 = vmatprep.mubr.bf16.mxu0 %v1018_v44  ;;  %514 = vmatprep.mubr.bf16.mxu1 %v1020_v45 }
  0x8f   :  { %475 = vmatmul.mubr.bf16.gmra.mrb[12].mxu0 %v1022_v46  ;;  %515 = vmatmul.mubr.bf16.gmra.mrb[12].mxu1 %v1023_v47 }
 0x14a   :  { %v446_v58 = vpop.f32.mrb[0].mxu0  ;;  %v486_v59 = vpop.f32.mrb[0].mxu1 }
 0x14b   :  { %v672_v62 = vadd.f32 %v640_v52, %v446_v58  ;;  %v688_v63 = vadd.f32 %v656_v53, %v486_v59  ;;  %v448_v0 = vpop.f32.mrb[1].mxu0  ;;  %v488_v1 = vpop.f32.mrb[1].mxu1 }
 0x14c   :  { %v673_v2 = vadd.f32 %v641_v54, %v448_v0  ;;  %v689_v3 = vadd.f32 %v657_v55, %v488_v1  ;;  %v450_v4 = vpop.f32.mrb[2].mxu0  ;;  %v490_v5 = vpop.f32.mrb[2].mxu1  ;;  %v649_v54 = vunpack.c.h.bf16 %v628_v38  ;;  %v665_v55 = vunpack.c.h.bf16 %v636_v39 }
 0x14d   :  { %v674_v8 = vadd.f32 %v642_v56, %v450_v4  ;;  %v690_v9 = vadd.f32 %v658_v57, %v490_v5  ;;  %v452_v10 = vpop.f32.mrb[3].mxu0  ;;  %v492_v11 = vpop.f32.mrb[3].mxu1  ;;  %v650_v56 = vunpack.c.l.bf16 %v629_v48  ;;  %v666_v57 = vunpack.c.l.bf16 %v637_v49 }
 0x14e   :  { %v898_v12 = vpack.c.bf16 %v673_v2, %v672_v62  ;;  %v906_v13 = vpack.c.bf16 %v689_v3, %v688_v63  ;;  %v675_v14 = vadd.f32 %v643_v60, %v452_v10  ;;  %v691_v15 = vadd.f32 %v659_v61, %v492_v11 }
 0x14f   :  { %v651_v60 = vunpack.c.h.bf16 %v629_v48  ;;  %v667_v61 = vunpack.c.h.bf16 %v637_v49 }
 0x150   :  { %800 = vst [vmem:[#allocation9] sm:$0xff] %v898_v12  ;;  %808 = vst [vmem:[#allocation9 + $0x40] sm:$0xff] %v906_v13  ;;  %v899_v20 = vpack.c.bf16 %v675_v14, %v674_v8  ;;  %v907_v21 = vpack.c.bf16 %v691_v15, %v690_v9 }
 0x152   :  { %801 = vst [vmem:[#allocation9 + $0x8] sm:$0xff] %v899_v20  ;;  %809 = vst [vmem:[#allocation9 + $0x48] sm:$0xff] %v907_v21  ;;  %v456_v26 = vpop.f32.mrb[4].mxu0  ;;  %v496_v27 = vpop.f32.mrb[4].mxu1 }
 0x153   :  { %v676_v30 = vadd.f32 %v644_v18, %v456_v26  ;;  %v692_v31 = vadd.f32 %v660_v19, %v496_v27  ;;  %v458_v32 = vpop.f32.mrb[5].mxu0  ;;  %v498_v33 = vpop.f32.mrb[5].mxu1  ;;  %v652_v18 = vunpack.c.l.bf16 %v630_v6  ;;  %v668_v19 = vunpack.c.l.bf16 %v638_v7 }
 0x154   :  { %v677_v34 = vadd.f32 %v645_v22, %v458_v32  ;;  %v693_v35 = vadd.f32 %v661_v23, %v498_v33  ;;  %v460_v36 = vpop.f32.mrb[6].mxu0  ;;  %v500_v37 = vpop.f32.mrb[6].mxu1  ;;  %v653_v22 = vunpack.c.h.bf16 %v630_v6  ;;  %v669_v23 = vunpack.c.h.bf16 %v638_v7 }
 0x155   :  { %v678_v40 = vadd.f32 %v646_v24, %v460_v36  ;;  %v694_v41 = vadd.f32 %v662_v25, %v500_v37  ;;  %v462_v42 = vpop.f32.mrb[7].mxu0  ;;  %v502_v43 = vpop.f32.mrb[7].mxu1  ;;  %v654_v24 = vunpack.c.l.bf16 %v631_v16  ;;  %v670_v25 = vunpack.c.l.bf16 %v639_v17 }
 0x156   :  { %v900_v44 = vpack.c.bf16 %v677_v34, %v676_v30  ;;  %v908_v45 = vpack.c.bf16 %v693_v35, %v692_v31  ;;  %v679_v46 = vadd.f32 %v647_v28, %v462_v42  ;;  %v695_v47 = vadd.f32 %v663_v29, %v502_v43 }
 0x157   :  { %v655_v28 = vunpack.c.h.bf16 %v631_v16  ;;  %v671_v29 = vunpack.c.h.bf16 %v639_v17 }
 0x158   :  { %802 = vst [vmem:[#allocation9 + $0x10] sm:$0xff] %v900_v44  ;;  %810 = vst [vmem:[#allocation9 + $0x50] sm:$0xff] %v908_v45  ;;  %v901_v52 = vpack.c.bf16 %v679_v46, %v678_v40  ;;  %v909_v53 = vpack.c.bf16 %v695_v47, %v694_v41 }
 0x15a   :  { %803 = vst [vmem:[#allocation9 + $0x18] sm:$0xff] %v901_v52  ;;  %811 = vst [vmem:[#allocation9 + $0x58] sm:$0xff] %v909_v53  ;;  %v466_v58 = vpop.f32.mrb[8].mxu0  ;;  %v506_v59 = vpop.f32.mrb[8].mxu1 }
 0x15b   :  { %v680_v62 = vadd.f32 %v648_v50, %v466_v58  ;;  %v696_v63 = vadd.f32 %v664_v51, %v506_v59  ;;  %v468_v0 = vpop.f32.mrb[9].mxu0  ;;  %v508_v1 = vpop.f32.mrb[9].mxu1 }
 0x15c   :  { %v681_v2 = vadd.f32 %v649_v54, %v468_v0  ;;  %v697_v3 = vadd.f32 %v665_v55, %v508_v1  ;;  %v470_v4 = vpop.f32.mrb[10].mxu0  ;;  %v510_v5 = vpop.f32.mrb[10].mxu1 }
 0x15d   :  { %v682_v8 = vadd.f32 %v650_v56, %v470_v4  ;;  %v698_v9 = vadd.f32 %v666_v57, %v510_v5  ;;  %v472_v10 = vpop.f32.mrb[11].mxu0  ;;  %v512_v11 = vpop.f32.mrb[11].mxu1 }
 0x15e   :  { %v902_v12 = vpack.c.bf16 %v681_v2, %v680_v62  ;;  %v910_v13 = vpack.c.bf16 %v697_v3, %v696_v63  ;;  %v683_v14 = vadd.f32 %v651_v60, %v472_v10  ;;  %v699_v15 = vadd.f32 %v667_v61, %v512_v11 }
 0x160   :  { %804 = vst [vmem:[#allocation9 + $0x20] sm:$0xff] %v902_v12  ;;  %812 = vst [vmem:[#allocation9 + $0x60] sm:$0xff] %v910_v13  ;;  %v903_v20 = vpack.c.bf16 %v683_v14, %v682_v8  ;;  %v911_v21 = vpack.c.bf16 %v699_v15, %v698_v9 }
 0x162   :  { %805 = vst [vmem:[#allocation9 + $0x28] sm:$0xff] %v903_v20  ;;  %813 = vst [vmem:[#allocation9 + $0x68] sm:$0xff] %v911_v21  ;;  %v476_v26 = vpop.f32.mrb[12].mxu0  ;;  %v516_v27 = vpop.f32.mrb[12].mxu1 }
 0x163   :  { %v684_v30 = vadd.f32 %v652_v18, %v476_v26  ;;  %v700_v31 = vadd.f32 %v668_v19, %v516_v27  ;;  %v478_v32 = vpop.f32.mrb[13].mxu0  ;;  %v518_v33 = vpop.f32.mrb[13].mxu1 }
 0x164   :  { %v685_v34 = vadd.f32 %v653_v22, %v478_v32  ;;  %v701_v35 = vadd.f32 %v669_v23, %v518_v33  ;;  %v480_v36 = vpop.f32.mrb[14].mxu0  ;;  %v520_v37 = vpop.f32.mrb[14].mxu1 }
 0x165   :  { %v686_v38 = vadd.f32 %v654_v24, %v480_v36  ;;  %v702_v39 = vadd.f32 %v670_v25, %v520_v37  ;;  %v482_v40 = vpop.f32.mrb[15].mxu0  ;;  %v522_v41 = vpop.f32.mrb[15].mxu1 }
 0x166   :  { %v904_v42 = vpack.c.bf16 %v685_v34, %v684_v30  ;;  %v912_v43 = vpack.c.bf16 %v701_v35, %v700_v31  ;;  %v687_v44 = vadd.f32 %v655_v28, %v482_v40  ;;  %v703_v45 = vadd.f32 %v671_v29, %v522_v41 }
 0x168   :  { %806 = vst [vmem:[#allocation9 + $0x30] sm:$0xff] %v904_v42  ;;  %814 = vst [vmem:[#allocation9 + $0x70] sm:$0xff] %v912_v43  ;;  %v905_v46 = vpack.c.bf16 %v687_v44, %v686_v38  ;;  %v913_v47 = vpack.c.bf16 %v703_v45, %v702_v39 }
 0x16a   :  { %807 = vst [vmem:[#allocation9 + $0x38] sm:$0xff] %v905_v46  ;;  %815 = vst [vmem:[#allocation9 + $0x78] sm:$0xff] %v913_v47 }
 0x16b   :  { %1101 = shalt.err (!%p1098_p0)
}
 0x16c   :  { %s1102_s27 = scalar_lea.hbm %s1214_s3, 2048 }
 0x16d   :  { %p1103_p1 = scmp.ne.s32.totalorder %s1214_s3, %s1102_s27  ;;  %p1106_p2 = scmp.lt.u32.totalorder %s1102_s27, %s1214_s3 }
 0x16f   :  { %p1108_p3 = pnand %p1106_p2, %p1103_p1 }
 0x171   :  { %1111 = shalt.err (!%p1108_p3)
}
 0x172   :  { %827 = dma.vmem_to_hbm [thread:$0]  %s822_s21, 2048, %s1214_s3, [#allocation5], %s1120_s24, %s1120_s24, %s1121_s25  }
 0x173   :  { %1116 = dma.done.wait [#allocation5], 2048  }
 0x174   :  { %1117 = vsyncadd [#allocation5], 4294965248 }
 0x175   :  { %831 = vsyncpa [#allocation4], 1 }
 0x176   :  { %832 = vsyncpa [#allocation7], 1 }
 0x177   :  { %833 = vsyncpa [#allocation5], 1 }

// kernel: transformer_lm_forward.17
= control target key start
LH: loop header
LB: loop body
LE: loop exit
PB: predicated region body
PF: predicated region fallthrough
CT: control target
= control target key end

     0   :  { %8 = vsyncpa [#allocation3], 0  ;;  %s1592_s0 = inlined_call_operand.hbm [shape: bf16[128,256], index: 0, kind: input, shape index: {}]   ;;  %s1593_s1 = inlined_call_operand.hbm [shape: f32[1,256], index: 1, kind: input, shape index: {}]   ;;  %s1594_s2 = inlined_call_operand.hbm [shape: bf16[256,512], index: 2, kind: input, shape index: {}]   ;;  %s1595_s3 = inlined_call_operand.hbm [shape: f32[128,512], index: 3, kind: output, shape index: {}]  }
   0x1   :  { %9 = vsyncpa [#allocation6], 0 }
   0x2   :  { %10 = vsyncpa [#allocation4], 0  ;;  %s1311_s12 = smov [#allocation5]   ;;  %s1312_s14 = smov [#allocation2]  }
   0x3   :  { %s29_s13 = sshll.u32 %s1311_s12, 4  ;;  %s16_s15 = sshll.u32 %s1312_s14, 4  ;;  %s30_s13 = int_to_ptr.vmem [resolvable:$true] %s29_s13  ;;  %s1341_s15 = int_to_ptr.vmem [resolvable:$true] %s16_s15 }
   0x4   :  { %s1217_s18 = scalar_lea.hbm %s1593_s1, 32 }
   0x5   :  { %p1218_p0 = scmp.ne.s32.totalorder %s1593_s1, %s1217_s18  ;;  %p1221_p1 = scmp.lt.u32.totalorder %s1217_s18, %s1593_s1 }
   0x7   :  { %p1223_p2 = pnand %p1221_p1, %p1218_p0 }
   0x9   :  { %1226 = shalt.err (!%p1223_p2)
}
   0xa   :  { %s1227_s23 = scalar_lea.vmem %s30_s13, 32  ;;  %p1232_p4 = scmp.lt.s32.totalorder %s30_s13, %s30_s13 }
   0xb   :  { %p1228_p3 = scmp.ne.s32.totalorder %s30_s13, %s1227_s23  ;;  %p1233_p5 = scmp.lt.s32.totalorder %s1227_s23, %s1227_s23 }
   0xd   :  { %p1234_p6 = por %p1233_p5, %p1232_p4 }
   0xf   :  { %p1235_p7 = pnand %p1234_p6, %p1228_p3 }
  0x11   :  { %1238 = shalt.err (!%p1235_p7)
}
  0x12   :  { %32 = dma.hbm_to_vmem [thread:$0]  %s1593_s1, 32, %s30_s13, [#allocation6]  }
  0x13   :  { %s1239_s28 = scalar_lea.hbm %s1592_s0, 2048 }
  0x14   :  { %p1240_p8 = scmp.ne.s32.totalorder %s1592_s0, %s1239_s28  ;;  %p1243_p9 = scmp.lt.u32.totalorder %s1239_s28, %s1592_s0 }
  0x16   :  { %p1245_p10 = pnand %p1243_p9, %p1240_p8 }
  0x18   :  { %1248 = shalt.err (!%p1245_p10)
}
  0x19   :  { %s1249_s6 = scalar_lea.vmem %s1341_s15, 2048  ;;  %p1254_p12 = scmp.lt.s32.totalorder %s1341_s15, %s1341_s15 }
  0x1a   :  { %p1250_p11 = scmp.ne.s32.totalorder %s1341_s15, %s1249_s6  ;;  %p1255_p13 = scmp.lt.s32.totalorder %s1249_s6, %s1249_s6 }
  0x1c   :  { %p1256_p0 = por %p1255_p13, %p1254_p12 }
  0x1e   :  { %p1257_p1 = pnand %p1256_p0, %p1250_p11 }
  0x20   :  { %1260 = shalt.err (!%p1257_p1)
}
  0x21   :  { %s1313_s1 = smov 128   ;;  %s1314_s7 = smov 8  }
  0x22   :  { %22 = dma.hbm_to_vmem [thread:$0]  %s1592_s0, 2048, %s1341_s15, [#allocation3], %s1313_s1, %s1313_s1, %s1314_s7  }
  0x23   :  { %s1315_s10 = smov [#allocation7]   ;;  %s1261_s14 = scalar_lea.hbm %s1594_s2, 8192 }
  0x24   :  { %s38_s11 = sshll.u32 %s1315_s10, 4  ;;  %p1262_p2 = scmp.ne.s32.totalorder %s1594_s2, %s1261_s14  ;;  %s39_s11 = int_to_ptr.vmem [resolvable:$true] %s38_s11 }
  0x25   :  { %p1265_p3 = scmp.lt.u32.totalorder %s1261_s14, %s1594_s2 }
  0x27   :  { %p1267_p4 = pnand %p1265_p3, %p1262_p2 }
  0x29   :  { %1270 = shalt.err (!%p1267_p4)
}
  0x2a   :  { %s1271_s20 = scalar_lea.vmem %s39_s11, 8192  ;;  %p1276_p6 = scmp.lt.s32.totalorder %s39_s11, %s39_s11 }
  0x2b   :  { %p1272_p5 = scmp.ne.s32.totalorder %s39_s11, %s1271_s20  ;;  %p1277_p7 = scmp.lt.s32.totalorder %s1271_s20, %s1271_s20 }
  0x2d   :  { %p1278_p8 = por %p1277_p7, %p1276_p6 }
  0x2f   :  { %p1279_p9 = pnand %p1278_p8, %p1272_p5 }
  0x31   :  { %1282 = shalt.err (!%p1279_p9)
}
  0x32   :  { %s1316_s0 = smov 256   ;;  %s1317_s15 = smov 16  }
  0x33   :  { %44 = dma.hbm_to_vmem [thread:$0]  %s1594_s2, 8192, %s39_s11, [#allocation6], %s1316_s0, %s1316_s0, %s1317_s15  }
  0x34   :  { %1305 = dma.done.wait [#allocation3], 2048  }
  0x35   :  { %1306 = vsyncadd [#allocation3], 4294965248 }
  0x36   :  { %1307 = dma.done.wait [#allocation6], 8224  }
  0x37   :  { %1308 = vsyncadd [#allocation6], 4294959072  ;;  %v54_v0 = vld [vmem:[#allocation2] sm:$0xff]  ;;  %v56_v1 = vld [vmem:[#allocation2 + $0x10] sm:$0xff]  ;;  %s1318_s2 = smov [#allocation8]  }
  0x38   :  { %v55_v2 = vld [vmem:[#allocation2 + $0x8] sm:$0xff]  ;;  %v1384_v3 = vunpack.c.l.bf16 %v54_v0  ;;  %v1386_v4 = vunpack.c.h.bf16 %v54_v0  ;;  %v1388_v5 = vunpack.c.l.bf16 %v56_v1  ;;  %v1390_v6 = vunpack.c.h.bf16 %v56_v1  ;;  %v57_v7 = vld [vmem:[#allocation2 + $0x18] sm:$0xff]  ;;  %v58_v17 = vld [vmem:[#allocation2 + $0x20] sm:$0xff]  ;;  %s1002_s23 = sshll.u32 %s1318_s2, 4  ;;  %s1003_s23 = int_to_ptr.vmem [resolvable:$true] %s1002_s23 }
  0x39   :  { %v1392_v8 = vunpack.c.l.bf16 %v55_v2  ;;  %v1394_v9 = vunpack.c.h.bf16 %v55_v2  ;;  %v1396_v10 = vunpack.c.l.bf16 %v57_v7  ;;  %v1398_v11 = vunpack.c.h.bf16 %v57_v7  ;;  %v59_v12 = vld [vmem:[#allocation2 + $0x28] sm:$0xff]  ;;  %v61_v22 = vld [vmem:[#allocation2 + $0x38] sm:$0xff]  ;;  %v60_v23 = vld [vmem:[#allocation2 + $0x30] sm:$0xff]  ;;  %s1283_s24 = scalar_lea.vmem %s1003_s23, 8192  ;;  %p1288_p11 = scmp.lt.s32.totalorder %s1003_s23, %s1003_s23 }
  0x3a   :  { %v102_v13 = vmul.f32 %v1384_v3, %v1384_v3  ;;  %v103_v14 = vmul.f32 %v1386_v4, %v1386_v4  ;;  %v106_v15 = vmul.f32 %v1388_v5, %v1388_v5  ;;  %v107_v16 = vmul.f32 %v1390_v6, %v1390_v6  ;;  %v63_v28 = vld [vmem:[#allocation2 + $0x48] sm:$0xff]  ;;  %v62_v33 = vld [vmem:[#allocation2 + $0x40] sm:$0xff]  ;;  %v65_v46 = vld [vmem:[#allocation2 + $0x58] sm:$0xff]  ;;  %p1284_p10 = scmp.ne.s32.totalorder %s1003_s23, %s1283_s24  ;;  %p1289_p12 = scmp.lt.s32.totalorder %s1283_s24, %s1283_s24 }
  0x3b   :  { %v104_v18 = vmul.f32 %v1392_v8, %v1392_v8  ;;  %v105_v19 = vmul.f32 %v1394_v9, %v1394_v9  ;;  %v108_v20 = vmul.f32 %v1396_v10, %v1396_v10  ;;  %v109_v21 = vmul.f32 %v1398_v11, %v1398_v11  ;;  %v1089_v34 = vld [vmem:[#allocation7 + $0x4] ss:$16 sps:$4 sm:$0xff]   ;;  %v1091_v39 = vld [vmem:[#allocation7 + $0xc] ss:$16 sps:$4 sm:$0xff]   ;;  %v1093_v40 = vld [vmem:[#allocation7] ss:$16 sps:$4 sm:$0xff]  }
  0x3c   :  { %v134_v24 = vadd.f32 %v103_v14, %v102_v13  ;;  %v140_v25 = vadd.f32 %v107_v16, %v106_v15  ;;  %v1416_v26 = vunpack.c.l.bf16 %v59_v12  ;;  %v1418_v27 = vunpack.c.h.bf16 %v59_v12  ;;  %v1094_v41 = vld [vmem:[#allocation7 + $0x8] ss:$16 sps:$4 sm:$0xff]   ;;  %707 = vmatprep.subr.bf16.mxu0 %v1089_v34  ;;  %v1095_v47 = vld [vmem:[#allocation7 + $0x24] ss:$16 sps:$4 sm:$0xff]   ;;  %820 = vmatprep.subr.bf16.mxu1 %v1091_v39  ;;  %v1097_v51 = vld [vmem:[#allocation7 + $0x2c] ss:$16 sps:$4 sm:$0xff]   ;;  %p1290_p13 = por %p1289_p12, %p1288_p11 }
  0x3d   :  { %v137_v29 = vadd.f32 %v105_v19, %v104_v18  ;;  %v143_v30 = vadd.f32 %v109_v21, %v108_v20  ;;  %v1420_v31 = vunpack.c.l.bf16 %v58_v17  ;;  %v1422_v32 = vunpack.c.h.bf16 %v58_v17  ;;  %v64_v50 = vld [vmem:[#allocation2 + $0x50] sm:$0xff]  ;;  %708 = vmatpush1.bf16.msra.mxu0 %v1093_v40  ;;  %821 = vmatpush1.bf16.msra.mxu1 %v1094_v41  ;;  %v1100_v57 = vld [vmem:[#allocation7 + $0x28] ss:$16 sps:$4 sm:$0xff]  }
  0x3e   :  { %135 = vadd.xlane.f32.xlu0 %v134_v24  ;;  %141 = vadd.xlane.f32.xlu1 %v140_v25  ;;  %v112_v35 = vmul.f32 %v1416_v26, %v1416_v26  ;;  %v113_v36 = vmul.f32 %v1418_v27, %v1418_v27  ;;  %v1428_v37 = vunpack.c.l.bf16 %v61_v22  ;;  %v1430_v38 = vunpack.c.h.bf16 %v61_v22  ;;  %v1099_v56 = vld [vmem:[#allocation7 + $0x20] ss:$16 sps:$4 sm:$0xff]   ;;  %v1101_v62 = vld [vmem:[#allocation7 + $0x44] ss:$16 sps:$4 sm:$0xff]   ;;  %v1103_v0 = vld [vmem:[#allocation7 + $0x4c] ss:$16 sps:$4 sm:$0xff]   ;;  %p1291_p0 = pnand %p1290_p13, %p1284_p10 }
  0x3f   :  { %v110_v42 = vmul.f32 %v1420_v31, %v1420_v31  ;;  %v111_v43 = vmul.f32 %v1422_v32, %v1422_v32  ;;  %v1436_v44 = vunpack.c.l.bf16 %v60_v23  ;;  %v1438_v45 = vunpack.c.h.bf16 %v60_v23  ;;  %709 = vmatprep.subr.bf16.mxu0 %v1095_v47  ;;  %v67_v63 = vld [vmem:[#allocation2 + $0x68] sm:$0xff]  ;;  %822 = vmatprep.subr.bf16.mxu1 %v1097_v51  ;;  %v1105_v1 = vld [vmem:[#allocation7 + $0x40] ss:$16 sps:$4 sm:$0xff]  }
  0x40   :  { %v116_v48 = vmul.f32 %v1428_v37, %v1428_v37  ;;  %v117_v49 = vmul.f32 %v1430_v38, %v1430_v38  ;;  %v149_v52 = vadd.f32 %v113_v36, %v112_v35  ;;  %v1448_v55 = vunpack.c.l.bf16 %v63_v28  ;;  %v1106_v13 = vld [vmem:[#allocation7 + $0x48] ss:$16 sps:$4 sm:$0xff]   ;;  %v1107_v18 = vld [vmem:[#allocation7 + $0x64] ss:$16 sps:$4 sm:$0xff]   ;;  %v1109_v23 = vld [vmem:[#allocation7 + $0x6c] ss:$16 sps:$4 sm:$0xff]  }
  0x41   :  { %v114_v53 = vmul.f32 %v1436_v44, %v1436_v44  ;;  %v115_v54 = vmul.f32 %v1438_v45, %v1438_v45  ;;  %v146_v58 = vadd.f32 %v111_v43, %v110_v42  ;;  %v1450_v59 = vunpack.c.h.bf16 %v63_v28  ;;  %710 = vmatpush1.bf16.msra.mxu0 %v1099_v56  ;;  %823 = vmatpush1.bf16.msra.mxu1 %v1100_v57  ;;  %v66_v22 = vld [vmem:[#allocation2 + $0x60] sm:$0xff]  ;;  %v1112_v36 = vld [vmem:[#allocation7 + $0x68] ss:$16 sps:$4 sm:$0xff]  }
  0x42   :  { %138 = vadd.xlane.f32.xlu0 %v137_v29  ;;  %144 = vadd.xlane.f32.xlu1 %v143_v30  ;;  %v1452_v60 = vunpack.c.l.bf16 %v62_v33  ;;  %v1454_v61 = vunpack.c.h.bf16 %v62_v33  ;;  %v155_v2 = vadd.f32 %v117_v49, %v116_v48  ;;  %v1456_v7 = vunpack.c.l.bf16 %v65_v46  ;;  %v69_v29 = vld [vmem:[#allocation2 + $0x78] sm:$0xff]  ;;  %v1111_v30 = vld [vmem:[#allocation7 + $0x60] ss:$16 sps:$4 sm:$0xff]  }
  0x43   :  { %v1458_v12 = vunpack.c.h.bf16 %v65_v46  ;;  %v152_v14 = vadd.f32 %v115_v54, %v114_v53  ;;  %v120_v15 = vmul.f32 %v1448_v55, %v1448_v55  ;;  %v1462_v16 = vunpack.c.l.bf16 %v64_v50  ;;  %711 = vmatprep.subr.bf16.mxu0 %v1101_v62  ;;  %824 = vmatprep.subr.bf16.mxu1 %v1103_v0  ;;  %v1113_v39 = vld [vmem:[#allocation7 + $0x84] ss:$16 sps:$4 sm:$0xff]   ;;  %v1115_v47 = vld [vmem:[#allocation7 + $0x8c] ss:$16 sps:$4 sm:$0xff]   ;;  %v1117_v48 = vld [vmem:[#allocation7 + $0x80] ss:$16 sps:$4 sm:$0xff]  }
  0x44   :  { %v1464_v17 = vunpack.c.h.bf16 %v64_v50  ;;  %v121_v19 = vmul.f32 %v1450_v59, %v1450_v59  ;;  %v118_v20 = vmul.f32 %v1452_v60, %v1452_v60  ;;  %v119_v21 = vmul.f32 %v1454_v61, %v1454_v61  ;;  %v68_v46 = vld [vmem:[#allocation2 + $0x70] sm:$0xff]  ;;  %v1118_v51 = vld [vmem:[#allocation7 + $0x88] ss:$16 sps:$4 sm:$0xff]  }
  0x45   :  { %v124_v24 = vmul.f32 %v1456_v7, %v1456_v7  ;;  %v125_v25 = vmul.f32 %v1458_v12, %v1458_v12  ;;  %v1476_v28 = vunpack.c.l.bf16 %v67_v63  ;;  %712 = vmatpush1.bf16.msra.mxu0 %v1105_v1  ;;  %v122_v33 = vmul.f32 %v1462_v16, %v1462_v16  ;;  %825 = vmatpush1.bf16.msra.mxu1 %v1106_v13  ;;  %v1119_v57 = vld [vmem:[#allocation7 + $0xa4] ss:$16 sps:$4 sm:$0xff]   ;;  %v1121_v1 = vld [vmem:[#allocation7 + $0xac] ss:$16 sps:$4 sm:$0xff]  }
  0x46   :  { %150 = vadd.xlane.f32.xlu1 %v149_v52  ;;  %147 = vadd.xlane.f32.xlu0 %v146_v58  ;;  %v123_v34 = vmul.f32 %v1464_v17, %v1464_v17  ;;  %v1482_v35 = vunpack.c.h.bf16 %v67_v63  ;;  %v161_v40 = vadd.f32 %v121_v19, %v120_v15  ;;  %v158_v41 = vadd.f32 %v119_v21, %v118_v20  ;;  %v1125_v19 = vld [vmem:[#allocation7 + $0xc4] ss:$16 sps:$4 sm:$0xff]  }
  0x47   :  { %713 = vmatprep.subr.bf16.mxu0 %v1107_v18  ;;  %v1484_v42 = vunpack.c.l.bf16 %v66_v22  ;;  %v1486_v43 = vunpack.c.h.bf16 %v66_v22  ;;  %826 = vmatprep.subr.bf16.mxu1 %v1109_v23  ;;  %v167_v49 = vadd.f32 %v125_v25, %v124_v24  ;;  %v128_v50 = vmul.f32 %v1476_v28, %v1476_v28  ;;  %v1124_v18 = vld [vmem:[#allocation7 + $0xa8] ss:$16 sps:$4 sm:$0xff]   ;;  %v1127_v23 = vld [vmem:[#allocation7 + $0xcc] ss:$16 sps:$4 sm:$0xff]   ;;  %v1129_v24 = vld [vmem:[#allocation7 + $0xc0] ss:$16 sps:$4 sm:$0xff]  }
  0x48   :  { %v164_v52 = vadd.f32 %v123_v34, %v122_v33  ;;  %v129_v53 = vmul.f32 %v1482_v35, %v1482_v35  ;;  %v1492_v54 = vunpack.c.l.bf16 %v69_v29  ;;  %v1494_v56 = vunpack.c.h.bf16 %v69_v29  ;;  %v1130_v25 = vld [vmem:[#allocation7 + $0xc8] ss:$16 sps:$4 sm:$0xff]   ;;  %v1131_v29 = vld [vmem:[#allocation7 + $0xe4] ss:$16 sps:$4 sm:$0xff]   ;;  %v1133_v34 = vld [vmem:[#allocation7 + $0xec] ss:$16 sps:$4 sm:$0xff]  }
  0x49   :  { %714 = vmatpush1.bf16.msra.mxu0 %v1111_v30  ;;  %827 = vmatpush1.bf16.msra.mxu1 %v1112_v36  ;;  %v126_v58 = vmul.f32 %v1484_v42, %v1484_v42  ;;  %v127_v62 = vmul.f32 %v1486_v43, %v1486_v43  ;;  %v1500_v63 = vunpack.c.l.bf16 %v68_v46  ;;  %v1502_v0 = vunpack.c.h.bf16 %v68_v46  ;;  %v1135_v36 = vld [vmem:[#allocation7 + $0xe0] ss:$16 sps:$4 sm:$0xff]  }
  0x4a   :  { %156 = vadd.xlane.f32.xlu1 %v155_v2  ;;  %153 = vadd.xlane.f32.xlu0 %v152_v14  ;;  %v1123_v2 = vld [vmem:[#allocation7 + $0xa0] ss:$16 sps:$4 sm:$0xff]   ;;  %v173_v13 = vadd.f32 %v129_v53, %v128_v50  ;;  %v132_v14 = vmul.f32 %v1492_v54, %v1492_v54  ;;  %v133_v15 = vmul.f32 %v1494_v56, %v1494_v56  ;;  %v1151_v53 = vld [vmem:[#allocation7 + $0x14c] ss:$16 sps:$4 sm:$0xff]  }
  0x4b   :  { %715 = vmatprep.subr.bf16.mxu0 %v1113_v39  ;;  %828 = vmatprep.subr.bf16.mxu1 %v1115_v47  ;;  %v170_v20 = vadd.f32 %v127_v62, %v126_v58  ;;  %v130_v21 = vmul.f32 %v1500_v63, %v1500_v63  ;;  %v131_v22 = vmul.f32 %v1502_v0, %v1502_v0  ;;  %v1136_v39 = vld [vmem:[#allocation7 + $0xe8] ss:$16 sps:$4 sm:$0xff]   ;;  %v1141_v46 = vld [vmem:[#allocation7 + $0x100] ss:$16 sps:$4 sm:$0xff]   ;;  %v1155_v62 = vld [vmem:[#allocation7 + $0x164] ss:$16 sps:$4 sm:$0xff]  }
  0x4c   :  { %v179_v30 = vadd.f32 %v133_v15, %v132_v14  ;;  %v1142_v47 = vld [vmem:[#allocation7 + $0x108] ss:$16 sps:$4 sm:$0xff]   ;;  %v1147_v50 = vld [vmem:[#allocation7 + $0x120] ss:$16 sps:$4 sm:$0xff]   ;;  %v1161_v14 = vld [vmem:[#allocation7 + $0x184] ss:$16 sps:$4 sm:$0xff]  }
  0x4d   :  { %716 = vmatpush1.bf16.msra.mxu0 %v1117_v48  ;;  %829 = vmatpush1.bf16.msra.mxu1 %v1118_v51  ;;  %v176_v33 = vadd.f32 %v131_v22, %v130_v21  ;;  %v1143_v48 = vld [vmem:[#allocation7 + $0x124] ss:$16 sps:$4 sm:$0xff]   ;;  %v1148_v51 = vld [vmem:[#allocation7 + $0x128] ss:$16 sps:$4 sm:$0xff]   ;;  %v1163_v15 = vld [vmem:[#allocation7 + $0x18c] ss:$16 sps:$4 sm:$0xff]  }
  0x4e   :  { %162 = vadd.xlane.f32.xlu1 %v161_v40  ;;  %159 = vadd.xlane.f32.xlu0 %v158_v41  ;;  %v1137_v40 = vld [vmem:[#allocation7 + $0x104] ss:$16 sps:$4 sm:$0xff]   ;;  %v1139_v41 = vld [vmem:[#allocation7 + $0x10c] ss:$16 sps:$4 sm:$0xff]   ;;  %v1154_v58 = vld [vmem:[#allocation7 + $0x148] ss:$16 sps:$4 sm:$0xff]  }
  0x4f   :  { %717 = vmatprep.subr.bf16.mxu0 %v1119_v57  ;;  %830 = vmatprep.subr.bf16.mxu1 %v1121_v1  ;;  %v1153_v57 = vld [vmem:[#allocation7 + $0x140] ss:$16 sps:$4 sm:$0xff]   ;;  %v1157_v1 = vld [vmem:[#allocation7 + $0x16c] ss:$16 sps:$4 sm:$0xff]  }
  0x50   :  { %v1169_v21 = vld [vmem:[#allocation7 + $0x1ac] ss:$16 sps:$4 sm:$0xff]   ;;  %v1171_v22 = vld [vmem:[#allocation7 + $0x1a0] ss:$16 sps:$4 sm:$0xff]  }
  0x51   :  { %718 = vmatpush1.bf16.msra.mxu0 %v1123_v2  ;;  %831 = vmatpush1.bf16.msra.mxu1 %v1124_v18  ;;  %v1159_v2 = vld [vmem:[#allocation7 + $0x160] ss:$16 sps:$4 sm:$0xff]  }
  0x52   :  { %168 = vadd.xlane.f32.xlu1 %v167_v49  ;;  %165 = vadd.xlane.f32.xlu0 %v164_v52  ;;  %v1145_v49 = vld [vmem:[#allocation7 + $0x12c] ss:$16 sps:$4 sm:$0xff]   ;;  %v1149_v52 = vld [vmem:[#allocation7 + $0x144] ss:$16 sps:$4 sm:$0xff]   ;;  %v1165_v18 = vld [vmem:[#allocation7 + $0x180] ss:$16 sps:$4 sm:$0xff]  }
  0x53   :  { %719 = vmatprep.subr.bf16.mxu0 %v1125_v19  ;;  %832 = vmatprep.subr.bf16.mxu1 %v1127_v23  ;;  %v1166_v19 = vld [vmem:[#allocation7 + $0x188] ss:$16 sps:$4 sm:$0xff]  }
  0x54   :  { %v1172_v23 = vld [vmem:[#allocation7 + $0x1a8] ss:$16 sps:$4 sm:$0xff]  }
  0x55   :  { %720 = vmatpush1.bf16.msra.mxu0 %v1129_v24  ;;  %833 = vmatpush1.bf16.msra.mxu1 %v1130_v25  ;;  %v1173_v24 = vld [vmem:[#allocation7 + $0x1c4] ss:$16 sps:$4 sm:$0xff]   ;;  %v1175_v25 = vld [vmem:[#allocation7 + $0x1cc] ss:$16 sps:$4 sm:$0xff]  }
  0x56   :  { %174 = vadd.xlane.f32.xlu1 %v173_v13  ;;  %171 = vadd.xlane.f32.xlu0 %v170_v20  ;;  %v1160_v13 = vld [vmem:[#allocation7 + $0x168] ss:$16 sps:$4 sm:$0xff]   ;;  %v1167_v20 = vld [vmem:[#allocation7 + $0x1a4] ss:$16 sps:$4 sm:$0xff]  }
  0x57   :  { %721 = vmatprep.subr.bf16.mxu0 %v1131_v29  ;;  %834 = vmatprep.subr.bf16.mxu1 %v1133_v34  ;;  %v1177_v29 = vld [vmem:[#allocation7 + $0x1c0] ss:$16 sps:$4 sm:$0xff]   ;;  %v1181_v34 = vld [vmem:[#allocation7 + $0x1ec] ss:$16 sps:$4 sm:$0xff]  }
  0x59   :  { %722 = vmatpush1.bf16.msra.mxu0 %v1135_v36  ;;  %835 = vmatpush1.bf16.msra.mxu1 %v1136_v39  ;;  %v1183_v36 = vld [vmem:[#allocation7 + $0x1e0] ss:$16 sps:$4 sm:$0xff]   ;;  %v1184_v39 = vld [vmem:[#allocation7 + $0x1e8] ss:$16 sps:$4 sm:$0xff]  }
  0x5a   :  { %180 = vadd.xlane.f32.xlu1 %v179_v30  ;;  %177 = vadd.xlane.f32.xlu0 %v176_v33  ;;  %v1178_v30 = vld [vmem:[#allocation7 + $0x1c8] ss:$16 sps:$4 sm:$0xff]   ;;  %v1179_v33 = vld [vmem:[#allocation7 + $0x1e4] ss:$16 sps:$4 sm:$0xff]  }
  0x5b   :  { %723 = vmatprep.subr.bf16.mxu0 %v1137_v40  ;;  %836 = vmatprep.subr.bf16.mxu1 %v1139_v41 }
  0x5d   :  { %724 = vmatpush1.bf16.msra.mxu0 %v1141_v46  ;;  %837 = vmatpush1.bf16.msra.mxu1 %v1142_v47 }
  0x5e   :  { %725 = vmatprep.subr.bf16.mxu0 %v1143_v48  ;;  %838 = vmatprep.subr.bf16.mxu1 %v1145_v49 }
  0x61   :  { %726 = vmatpush1.bf16.msra.mxu0 %v1147_v50  ;;  %839 = vmatpush1.bf16.msra.mxu1 %v1148_v51 }
  0x62   :  { %727 = vmatprep.subr.bf16.mxu0 %v1149_v52  ;;  %840 = vmatprep.subr.bf16.mxu1 %v1151_v53 }
  0x65   :  { %728 = vmatpush1.bf16.msra.mxu0 %v1153_v57  ;;  %841 = vmatpush1.bf16.msra.mxu1 %v1154_v58  ;;  %v265_v57 = vlaneseq }
  0x66   :  { %729 = vmatprep.subr.bf16.mxu0 %v1155_v62  ;;  %842 = vmatprep.subr.bf16.mxu1 %v1157_v1 }
  0x69   :  { %730 = vmatpush1.bf16.msra.mxu0 %v1159_v2  ;;  %843 = vmatpush1.bf16.msra.mxu1 %v1160_v13 }
  0x6a   :  { %731 = vmatprep.subr.bf16.mxu0 %v1161_v14  ;;  %844 = vmatprep.subr.bf16.mxu1 %v1163_v15  ;;  %v266_v15 = vshrl.u32 %v265_v57, 7 }
  0x6d   :  { %732 = vmatpush1.bf16.msra.mxu0 %v1165_v18  ;;  %845 = vmatpush1.bf16.msra.mxu1 %v1166_v19 }
  0x6e   :  { %733 = vmatprep.subr.bf16.mxu0 %v1167_v20  ;;  %846 = vmatprep.subr.bf16.mxu1 %v1169_v21 }
  0x71   :  { %734 = vmatpush1.bf16.msra.mxu0 %v1171_v22  ;;  %847 = vmatpush1.bf16.msra.mxu1 %v1172_v23  ;;  %v271_v22 = vsub.s32 1, %v266_v15 }
  0x72   :  { %735 = vmatprep.subr.bf16.mxu0 %v1173_v24  ;;  %848 = vmatprep.subr.bf16.mxu1 %v1175_v25  ;;  %v263_v25 = vld [vmem:[#allocation5] sm:$0x3] }
  0x75   :  { %736 = vmatpush1.bf16.msra.mxu0 %v1177_v29  ;;  %849 = vmatpush1.bf16.msra.mxu1 %v1178_v30  ;;  %v267_v29 = vsub.s32 0, %v266_v15 }
  0x76   :  { %737 = vmatprep.subr.bf16.mxu0 %v1179_v33  ;;  %850 = vmatprep.subr.bf16.mxu1 %v1181_v34 }
  0x79   :  { %738 = vmatpush1.bf16.msra.mxu0 %v1183_v36  ;;  %851 = vmatpush1.bf16.msra.mxu1 %v1184_v39 }
  0xcb   :  { %v136_v40 = vpop.xlane.xlu0 %135  ;;  %v142_v41 = vpop.xlane.xlu1 %141 }
  0xcc   :  { %v183_v46 = vmul.f32 0.00390625, %v136_v40  ;;  %v185_v47 = vmul.f32 0.00390625, %v142_v41 }
  0xce   :  { %v199_v48 = vadd.f32 1e-05, %v183_v46  ;;  %v201_v49 = vadd.f32 1e-05, %v185_v47  ;;  %v1513_v46 = vrot.slane %v263_v25, %v271_v22 }
  0xcf   :  { %v139_v50 = vpop.xlane.xlu0 %138  ;;  %v145_v51 = vpop.xlane.xlu1 %144 }
  0xd0   :  { %1185 = vrsqrt.f32 %v199_v48  ;;  %v184_v52 = vmul.f32 0.00390625, %v139_v50  ;;  %v186_v53 = vmul.f32 0.00390625, %v145_v51  ;;  %v1516_v48 = vrot.slane %v263_v25, %v267_v29 }
  0xd1   :  { %1187 = vrsqrt.f32 %v201_v49 }
  0xd2   :  { %v200_v58 = vadd.f32 1e-05, %v184_v52  ;;  %v202_v62 = vadd.f32 1e-05, %v186_v53 }
  0xd3   :  { %v151_v1 = vpop.xlane.xlu1 %150  ;;  %v148_v2 = vpop.xlane.xlu0 %147 }
  0xd4   :  { %1189 = vrsqrt.f32 %v200_v58  ;;  %v188_v13 = vmul.f32 0.00390625, %v151_v1  ;;  %v187_v14 = vmul.f32 0.00390625, %v148_v2 }
  0xd5   :  { %1191 = vrsqrt.f32 %v202_v62 }
  0xd6   :  { %v204_v18 = vadd.f32 1e-05, %v188_v13  ;;  %v203_v19 = vadd.f32 1e-05, %v187_v14 }
  0xd7   :  { %v157_v20 = vpop.xlane.xlu1 %156  ;;  %v154_v21 = vpop.xlane.xlu0 %153 }
  0xd8   :  { %1193 = vrsqrt.f32 %v204_v18  ;;  %v190_v23 = vmul.f32 0.00390625, %v157_v20  ;;  %v189_v24 = vmul.f32 0.00390625, %v154_v21 }
  0xd9   :  { %1195 = vrsqrt.f32 %v203_v19 }
  0xda   :  { %v1186_v30 = vpop.eup %1185  ;;  %v206_v33 = vadd.f32 1e-05, %v190_v23  ;;  %v205_v34 = vadd.f32 1e-05, %v189_v24 }
  0xdb   :  { %v1188_v36 = vpop.eup %1187  ;;  %v163_v39 = vpop.xlane.xlu1 %162  ;;  %v232_v41 = vmul.f32 %v1186_v30, %v1386_v4  ;;  %v231_v49 = vmul.f32 %v1186_v30, %v1384_v3 }
  0xdc   :  { %v160_v40 = vpop.xlane.xlu0 %159  ;;  %v236_v47 = vmul.f32 %v1188_v36, %v1390_v6  ;;  %1197 = vrsqrt.f32 %v206_v33  ;;  %v192_v50 = vmul.f32 0.00390625, %v163_v39  ;;  %v235_v23 = vmul.f32 %v1188_v36, %v1388_v5 }
  0xdd   :  { %1199 = vrsqrt.f32 %v205_v34  ;;  %v191_v52 = vmul.f32 0.00390625, %v160_v40  ;;  %v276_v4 = vmul.f32 %v1513_v46, %v232_v41  ;;  %v275_v3 = vmul.f32 %v1516_v48, %v231_v49 }
  0xde   :  { %v1190_v51 = vpop.eup %1189  ;;  %v280_v6 = vmul.f32 %v1513_v46, %v236_v47  ;;  %v208_v13 = vadd.f32 1e-05, %v192_v50 }
  0xdf   :  { %v1192_v53 = vpop.eup %1191  ;;  %v234_v57 = vmul.f32 %v1190_v51, %v1394_v9  ;;  %v233_v58 = vmul.f32 %v1190_v51, %v1392_v8  ;;  %v207_v18 = vadd.f32 1e-05, %v191_v52  ;;  %v169_v9 = vpop.xlane.xlu1 %168 }
  0xe0   :  { %v238_v62 = vmul.f32 %v1192_v53, %v1398_v11  ;;  %v166_v11 = vpop.xlane.xlu0 %165  ;;  %v237_v24 = vmul.f32 %v1192_v53, %v1396_v10  ;;  %1201 = vrsqrt.f32 %v208_v13  ;;  %v194_v29 = vmul.f32 0.00390625, %v169_v9 }
  0xe1   :  { %v278_v1 = vmul.f32 %v1513_v46, %v234_v57  ;;  %v277_v2 = vmul.f32 %v1516_v48, %v233_v58  ;;  %1203 = vrsqrt.f32 %v207_v18  ;;  %v193_v30 = vmul.f32 0.00390625, %v166_v11 }
  0xe2   :  { %v1194_v14 = vpop.eup %1193  ;;  %v282_v15 = vmul.f32 %v1513_v46, %v238_v62  ;;  %v279_v10 = vmul.f32 %v1516_v48, %v235_v23  ;;  %v210_v36 = vadd.f32 1e-05, %v194_v29 }
  0xe3   :  { %v1196_v19 = vpop.eup %1195  ;;  %v308_v8 = vpack.c.bf16 %v278_v1, %v276_v4  ;;  %v307_v20 = vpack.c.bf16 %v277_v2, %v275_v3  ;;  %v242_v21 = vmul.f32 %v1194_v14, %v1418_v27  ;;  %v241_v40 = vmul.f32 %v1194_v14, %v1416_v26  ;;  %v175_v47 = vpop.xlane.xlu1 %174 }
  0xe4   :  { %v310_v22 = vpack.c.bf16 %v282_v15, %v280_v6  ;;  %v240_v25 = vmul.f32 %v1196_v19, %v1422_v32  ;;  %v281_v32 = vmul.f32 %v1516_v48, %v237_v24  ;;  %v239_v39 = vmul.f32 %v1196_v19, %v1420_v31  ;;  %v172_v52 = vpop.xlane.xlu0 %171 }
  0xe5   :  { %739 = vmatprep.mubr.bf16.mxu0 %v308_v8  ;;  %852 = vmatprep.mubr.bf16.mxu1 %v308_v8  ;;  %v286_v34 = vmul.f32 %v1513_v46, %v242_v21  ;;  %v209_v41 = vadd.f32 1e-05, %v193_v30  ;;  %1205 = vrsqrt.f32 %v210_v36  ;;  %v196_v57 = vmul.f32 0.00390625, %v175_v47 }
  0xe6   :  { %740 = vmatmul.mubr.bf16.vlgmr.msra.gmra.mrb[0].mxu0 %v307_v20  ;;  %853 = vmatmul.mubr.bf16.vlgmr.msra.gmra.mrb[0].mxu1 %v307_v20  ;;  %v1198_v33 = vpop.eup %1197  ;;  %v284_v27 = vmul.f32 %v1513_v46, %v240_v25  ;;  %v309_v53 = vpack.c.bf16 %v281_v32, %v279_v10  ;;  %v283_v58 = vmul.f32 %v1516_v48, %v239_v39  ;;  %v195_v31 = vmul.f32 0.00390625, %v172_v52 }
  0xe7   :  { %749 = vmatprep.mubr.bf16.mxu0 %v310_v22  ;;  %862 = vmatprep.mubr.bf16.mxu1 %v310_v22  ;;  %v1200_v5 = vpop.eup %1199  ;;  %v246_v51 = vmul.f32 %v1198_v33, %v1430_v38  ;;  %v285_v4 = vmul.f32 %v1516_v48, %v241_v40  ;;  %1207 = vrsqrt.f32 %v209_v41  ;;  %v212_v6 = vadd.f32 1e-05, %v196_v57  ;;  %v181_v14 = vpop.xlane.xlu1 %180 }
  0xe8   :  { %v312_v49 = vpack.c.bf16 %v286_v34, %v284_v27  ;;  %v244_v50 = vmul.f32 %v1200_v5, %v1438_v45  ;;  %v243_v3 = vmul.f32 %v1200_v5, %v1436_v44  ;;  %v245_v2 = vmul.f32 %v1198_v33, %v1428_v37  ;;  %v178_v19 = vpop.xlane.xlu0 %177 }
  0xe9   :  { %v290_v45 = vmul.f32 %v1513_v46, %v246_v51  ;;  %v311_v1 = vpack.c.bf16 %v285_v4, %v283_v58  ;;  %v211_v13 = vadd.f32 1e-05, %v195_v31  ;;  %1209 = vrsqrt.f32 %v212_v6 }
  0xea   :  { %v1202_v26 = vpop.eup %1201  ;;  %v288_v62 = vmul.f32 %v1513_v46, %v244_v50  ;;  %v198_v8 = vmul.f32 0.00390625, %v181_v14  ;;  %v287_v20 = vmul.f32 %v1516_v48, %v243_v3  ;;  %v289_v21 = vmul.f32 %v1516_v48, %v245_v2 }
  0xeb   :  { %v1204_v38 = vpop.eup %1203  ;;  %v250_v9 = vmul.f32 %v1202_v26, %v1450_v59  ;;  %1211 = vrsqrt.f32 %v211_v13  ;;  %v197_v44 = vmul.f32 0.00390625, %v178_v19  ;;  %v249_v25 = vmul.f32 %v1202_v26, %v1448_v55 }
  0xec   :  { %v314_v15 = vpack.c.bf16 %v290_v45, %v288_v62  ;;  %v248_v18 = vmul.f32 %v1204_v38, %v1454_v61  ;;  %v214_v59 = vadd.f32 1e-05, %v198_v8  ;;  %v313_v23 = vpack.c.bf16 %v289_v21, %v287_v20 }
  0xed   :  { %v294_v61 = vmul.f32 %v1513_v46, %v250_v9  ;;  %v247_v24 = vmul.f32 %v1204_v38, %v1452_v60  ;;  %v213_v29 = vadd.f32 1e-05, %v197_v44  ;;  %v293_v5 = vmul.f32 %v1516_v48, %v249_v25 }
  0xee   :  { %750 = vmatmul.mubr.bf16.gmra.mrb[4].mxu0 %v309_v53  ;;  %863 = vmatmul.mubr.bf16.gmra.mrb[4].mxu1 %v309_v53  ;;  %v292_v37 = vmul.f32 %v1513_v46, %v248_v18  ;;  %1213 = vrsqrt.f32 %v214_v59 }
  0xef   :  { %759 = vmatprep.mubr.bf16.mxu0 %v312_v49  ;;  %872 = vmatprep.mubr.bf16.mxu1 %v312_v49  ;;  %v1206_v11 = vpop.eup %1205  ;;  %v291_v34 = vmul.f32 %v1516_v48, %v247_v24  ;;  %1215 = vrsqrt.f32 %v213_v29 }
  0xf0   :  { %v316_v30 = vpack.c.bf16 %v294_v61, %v292_v37  ;;  %v254_v27 = vmul.f32 %v1206_v11, %v1458_v12  ;;  %v253_v12 = vmul.f32 %v1206_v11, %v1456_v7 }
  0xf1   :  { %v1208_v22 = vpop.eup %1207  ;;  %v315_v36 = vpack.c.bf16 %v293_v5, %v291_v34 }
  0xf2   :  { %v252_v33 = vmul.f32 %v1208_v22, %v1464_v17  ;;  %v298_v55 = vmul.f32 %v1513_v46, %v254_v27  ;;  %v251_v17 = vmul.f32 %v1208_v22, %v1462_v16  ;;  %v297_v49 = vmul.f32 %v1516_v48, %v253_v12 }
  0xf3   :  { %v1210_v10 = vpop.eup %1209 }
  0xf4   :  { %v296_v60 = vmul.f32 %v1513_v46, %v252_v33  ;;  %v258_v41 = vmul.f32 %v1210_v10, %v1482_v35  ;;  %v295_v47 = vmul.f32 %v1516_v48, %v251_v17 }
  0xf5   :  { %v1212_v32 = vpop.eup %1211 }
  0xf6   :  { %760 = vmatmul.mubr.bf16.gmra.mrb[8].mxu0 %v311_v1  ;;  %873 = vmatmul.mubr.bf16.gmra.mrb[8].mxu1 %v311_v1  ;;  %v318_v39 = vpack.c.bf16 %v298_v55, %v296_v60  ;;  %v256_v40 = vmul.f32 %v1212_v32, %v1486_v43  ;;  %v302_v16 = vmul.f32 %v1513_v46, %v258_v41 }
  0xf7   :  { %769 = vmatprep.mubr.bf16.mxu0 %v314_v15  ;;  %882 = vmatprep.mubr.bf16.mxu1 %v314_v15  ;;  %v317_v7 = vpack.c.bf16 %v297_v49, %v295_v47  ;;  %v255_v53 = vmul.f32 %v1212_v32, %v1484_v42  ;;  %v257_v43 = vmul.f32 %v1210_v10, %v1476_v28 }
  0xf8   :  { %v1214_v50 = vpop.eup %1213  ;;  %v300_v51 = vmul.f32 %v1513_v46, %v256_v40 }
  0xf9   :  { %v1216_v52 = vpop.eup %1215  ;;  %v262_v58 = vmul.f32 %v1214_v50, %v1494_v56  ;;  %v299_v4 = vmul.f32 %v1516_v48, %v255_v53  ;;  %v301_v31 = vmul.f32 %v1516_v48, %v257_v43  ;;  %v261_v45 = vmul.f32 %v1214_v50, %v1492_v54 }
  0xfa   :  { %v320_v35 = vpack.c.bf16 %v302_v16, %v300_v51  ;;  %v260_v57 = vmul.f32 %v1216_v52, %v1502_v0  ;;  %v259_v28 = vmul.f32 %v1216_v52, %v1500_v63 }
  0xfb   :  { %v306_v62 = vmul.f32 %v1513_v46, %v262_v58  ;;  %v319_v42 = vpack.c.bf16 %v301_v31, %v299_v4  ;;  %v305_v38 = vmul.f32 %v1516_v48, %v261_v45 }
  0xfc   :  { %v304_v26 = vmul.f32 %v1513_v46, %v260_v57  ;;  %v303_v56 = vmul.f32 %v1516_v48, %v259_v28 }
  0xfe   :  { %770 = vmatmul.mubr.bf16.gmra.mrb[12].mxu0 %v313_v23  ;;  %883 = vmatmul.mubr.bf16.gmra.mrb[12].mxu1 %v313_v23  ;;  %v322_v0 = vpack.c.bf16 %v306_v62, %v304_v26  ;;  %v321_v6 = vpack.c.bf16 %v305_v38, %v303_v56 }
  0xff   :  { %779 = vmatprep.mubr.bf16.mxu0 %v316_v30  ;;  %892 = vmatprep.mubr.bf16.mxu1 %v316_v30 }
 0x106   :  { %780 = vmatmul.mubr.bf16.gmra.mrb[16].mxu0 %v315_v36  ;;  %893 = vmatmul.mubr.bf16.gmra.mrb[16].mxu1 %v315_v36 }
 0x107   :  { %789 = vmatprep.mubr.bf16.mxu0 %v318_v39  ;;  %902 = vmatprep.mubr.bf16.mxu1 %v318_v39 }
 0x10e   :  { %790 = vmatmul.mubr.bf16.gmra.mrb[20].mxu0 %v317_v7  ;;  %903 = vmatmul.mubr.bf16.gmra.mrb[20].mxu1 %v317_v7 }
 0x10f   :  { %799 = vmatprep.mubr.bf16.mxu0 %v320_v35  ;;  %912 = vmatprep.mubr.bf16.mxu1 %v320_v35 }
 0x116   :  { %800 = vmatmul.mubr.bf16.gmra.mrb[24].mxu0 %v319_v42  ;;  %913 = vmatmul.mubr.bf16.gmra.mrb[24].mxu1 %v319_v42 }
 0x117   :  { %809 = vmatprep.mubr.bf16.mxu0 %v322_v0  ;;  %922 = vmatprep.mubr.bf16.mxu1 %v322_v0 }
 0x11e   :  { %810 = vmatmul.mubr.bf16.gmra.mrb[28].mxu0 %v321_v6  ;;  %923 = vmatmul.mubr.bf16.gmra.mrb[28].mxu1 %v321_v6 }
 0x1b9   :  { %v741_v1 = vpop.f32.mrb[0].mxu0  ;;  %v854_v3 = vpop.f32.mrb[0].mxu1 }
 0x1ba   :  { %933 = vst [vmem:[#allocation8] sm:$0xff] %v741_v1  ;;  %935 = vst [vmem:[#allocation8 + $0x10] sm:$0xff] %v854_v3  ;;  %v743_v46 = vpop.f32.mrb[1].mxu0  ;;  %v856_v63 = vpop.f32.mrb[1].mxu1 }
 0x1bb   :  { %934 = vst [vmem:[#allocation8 + $0x8] sm:$0xff] %v743_v46  ;;  %936 = vst [vmem:[#allocation8 + $0x18] sm:$0xff] %v856_v63  ;;  %v745_v54 = vpop.f32.mrb[2].mxu0  ;;  %v858_v2 = vpop.f32.mrb[2].mxu1 }
 0x1bc   :  { %937 = vst [vmem:[#allocation8 + $0x20] sm:$0xff] %v745_v54  ;;  %939 = vst [vmem:[#allocation8 + $0x30] sm:$0xff] %v858_v2  ;;  %v747_v13 = vpop.f32.mrb[3].mxu0  ;;  %v860_v14 = vpop.f32.mrb[3].mxu1 }
 0x1bd   :  { %938 = vst [vmem:[#allocation8 + $0x28] sm:$0xff] %v747_v13  ;;  %940 = vst [vmem:[#allocation8 + $0x38] sm:$0xff] %v860_v14 }
 0x1c1   :  { %v751_v48 = vpop.f32.mrb[4].mxu0  ;;  %v864_v15 = vpop.f32.mrb[4].mxu1 }
 0x1c2   :  { %941 = vst [vmem:[#allocation8 + $0x40] sm:$0xff] %v751_v48  ;;  %943 = vst [vmem:[#allocation8 + $0x50] sm:$0xff] %v864_v15  ;;  %v753_v18 = vpop.f32.mrb[5].mxu0  ;;  %v866_v9 = vpop.f32.mrb[5].mxu1 }
 0x1c3   :  { %942 = vst [vmem:[#allocation8 + $0x48] sm:$0xff] %v753_v18  ;;  %944 = vst [vmem:[#allocation8 + $0x58] sm:$0xff] %v866_v9  ;;  %v755_v19 = vpop.f32.mrb[6].mxu0  ;;  %v868_v8 = vpop.f32.mrb[6].mxu1 }
 0x1c4   :  { %945 = vst [vmem:[#allocation8 + $0x60] sm:$0xff] %v755_v19  ;;  %947 = vst [vmem:[#allocation8 + $0x70] sm:$0xff] %v868_v8  ;;  %v757_v20 = vpop.f32.mrb[7].mxu0  ;;  %v870_v21 = vpop.f32.mrb[7].mxu1 }
 0x1c5   :  { %946 = vst [vmem:[#allocation8 + $0x68] sm:$0xff] %v757_v20  ;;  %948 = vst [vmem:[#allocation8 + $0x78] sm:$0xff] %v870_v21 }
 0x1c9   :  { %v761_v44 = vpop.f32.mrb[8].mxu0  ;;  %v874_v11 = vpop.f32.mrb[8].mxu1 }
 0x1ca   :  { %949 = vst [vmem:[#allocation8 + $0x80] sm:$0xff] %v761_v44  ;;  %951 = vst [vmem:[#allocation8 + $0x90] sm:$0xff] %v874_v11  ;;  %v763_v37 = vpop.f32.mrb[9].mxu0  ;;  %v876_v61 = vpop.f32.mrb[9].mxu1 }
 0x1cb   :  { %950 = vst [vmem:[#allocation8 + $0x88] sm:$0xff] %v763_v37  ;;  %952 = vst [vmem:[#allocation8 + $0x98] sm:$0xff] %v876_v61  ;;  %v765_v22 = vpop.f32.mrb[10].mxu0  ;;  %v878_v59 = vpop.f32.mrb[10].mxu1 }
 0x1cc   :  { %953 = vst [vmem:[#allocation8 + $0xa0] sm:$0xff] %v765_v22  ;;  %955 = vst [vmem:[#allocation8 + $0xb0] sm:$0xff] %v878_v59  ;;  %v767_v23 = vpop.f32.mrb[11].mxu0  ;;  %v880_v24 = vpop.f32.mrb[11].mxu1 }
 0x1cd   :  { %954 = vst [vmem:[#allocation8 + $0xa8] sm:$0xff] %v767_v23  ;;  %956 = vst [vmem:[#allocation8 + $0xb8] sm:$0xff] %v880_v24 }
 0x1d1   :  { %v771_v25 = vpop.f32.mrb[12].mxu0  ;;  %v884_v29 = vpop.f32.mrb[12].mxu1 }
 0x1d2   :  { %957 = vst [vmem:[#allocation8 + $0xc0] sm:$0xff] %v771_v25  ;;  %959 = vst [vmem:[#allocation8 + $0xd0] sm:$0xff] %v884_v29  ;;  %v773_v30 = vpop.f32.mrb[13].mxu0  ;;  %v886_v33 = vpop.f32.mrb[13].mxu1 }
 0x1d3   :  { %958 = vst [vmem:[#allocation8 + $0xc8] sm:$0xff] %v773_v30  ;;  %960 = vst [vmem:[#allocation8 + $0xd8] sm:$0xff] %v886_v33  ;;  %v775_v27 = vpop.f32.mrb[14].mxu0  ;;  %v888_v34 = vpop.f32.mrb[14].mxu1 }
 0x1d4   :  { %961 = vst [vmem:[#allocation8 + $0xe0] sm:$0xff] %v775_v27  ;;  %963 = vst [vmem:[#allocation8 + $0xf0] sm:$0xff] %v888_v34  ;;  %v777_v5 = vpop.f32.mrb[15].mxu0  ;;  %v890_v10 = vpop.f32.mrb[15].mxu1 }
 0x1d5   :  { %962 = vst [vmem:[#allocation8 + $0xe8] sm:$0xff] %v777_v5  ;;  %964 = vst [vmem:[#allocation8 + $0xf8] sm:$0xff] %v890_v10 }
 0x1d9   :  { %v781_v60 = vpop.f32.mrb[16].mxu0  ;;  %v894_v55 = vpop.f32.mrb[16].mxu1 }
 0x1da   :  { %965 = vst [vmem:[#allocation8 + $0x100] sm:$0xff] %v781_v60  ;;  %967 = vst [vmem:[#allocation8 + $0x110] sm:$0xff] %v894_v55  ;;  %v783_v32 = vpop.f32.mrb[17].mxu0  ;;  %v896_v36 = vpop.f32.mrb[17].mxu1 }
 0x1db   :  { %966 = vst [vmem:[#allocation8 + $0x108] sm:$0xff] %v783_v32  ;;  %968 = vst [vmem:[#allocation8 + $0x118] sm:$0xff] %v896_v36  ;;  %v785_v17 = vpop.f32.mrb[18].mxu0  ;;  %v898_v12 = vpop.f32.mrb[18].mxu1 }
 0x1dc   :  { %969 = vst [vmem:[#allocation8 + $0x120] sm:$0xff] %v785_v17  ;;  %971 = vst [vmem:[#allocation8 + $0x130] sm:$0xff] %v898_v12  ;;  %v787_v39 = vpop.f32.mrb[19].mxu0  ;;  %v900_v40 = vpop.f32.mrb[19].mxu1 }
 0x1dd   :  { %970 = vst [vmem:[#allocation8 + $0x128] sm:$0xff] %v787_v39  ;;  %972 = vst [vmem:[#allocation8 + $0x138] sm:$0xff] %v900_v40 }
 0x1e1   :  { %v791_v41 = vpop.f32.mrb[20].mxu0  ;;  %v904_v47 = vpop.f32.mrb[20].mxu1 }
 0x1e2   :  { %973 = vst [vmem:[#allocation8 + $0x140] sm:$0xff] %v791_v41  ;;  %975 = vst [vmem:[#allocation8 + $0x150] sm:$0xff] %v904_v47  ;;  %v793_v49 = vpop.f32.mrb[21].mxu0  ;;  %v906_v50 = vpop.f32.mrb[21].mxu1 }
 0x1e3   :  { %974 = vst [vmem:[#allocation8 + $0x148] sm:$0xff] %v793_v49  ;;  %976 = vst [vmem:[#allocation8 + $0x158] sm:$0xff] %v906_v50  ;;  %v795_v51 = vpop.f32.mrb[22].mxu0  ;;  %v908_v16 = vpop.f32.mrb[22].mxu1 }
 0x1e4   :  { %977 = vst [vmem:[#allocation8 + $0x160] sm:$0xff] %v795_v51  ;;  %979 = vst [vmem:[#allocation8 + $0x170] sm:$0xff] %v908_v16  ;;  %v797_v52 = vpop.f32.mrb[23].mxu0  ;;  %v910_v7 = vpop.f32.mrb[23].mxu1 }
 0x1e5   :  { %978 = vst [vmem:[#allocation8 + $0x168] sm:$0xff] %v797_v52  ;;  %980 = vst [vmem:[#allocation8 + $0x178] sm:$0xff] %v910_v7 }
 0x1e9   :  { %v801_v53 = vpop.f32.mrb[24].mxu0  ;;  %v914_v43 = vpop.f32.mrb[24].mxu1 }
 0x1ea   :  { %981 = vst [vmem:[#allocation8 + $0x180] sm:$0xff] %v801_v53  ;;  %983 = vst [vmem:[#allocation8 + $0x190] sm:$0xff] %v914_v43  ;;  %v803_v35 = vpop.f32.mrb[25].mxu0  ;;  %v916_v57 = vpop.f32.mrb[25].mxu1 }
 0x1eb   :  { %982 = vst [vmem:[#allocation8 + $0x188] sm:$0xff] %v803_v35  ;;  %984 = vst [vmem:[#allocation8 + $0x198] sm:$0xff] %v916_v57  ;;  %v805_v58 = vpop.f32.mrb[26].mxu0  ;;  %v918_v4 = vpop.f32.mrb[26].mxu1 }
 0x1ec   :  { %985 = vst [vmem:[#allocation8 + $0x1a0] sm:$0xff] %v805_v58  ;;  %987 = vst [vmem:[#allocation8 + $0x1b0] sm:$0xff] %v918_v4  ;;  %v807_v31 = vpop.f32.mrb[27].mxu0  ;;  %v920_v26 = vpop.f32.mrb[27].mxu1 }
 0x1ed   :  { %986 = vst [vmem:[#allocation8 + $0x1a8] sm:$0xff] %v807_v31  ;;  %988 = vst [vmem:[#allocation8 + $0x1b8] sm:$0xff] %v920_v26 }
 0x1f1   :  { %v811_v62 = vpop.f32.mrb[28].mxu0  ;;  %v924_v42 = vpop.f32.mrb[28].mxu1 }
 0x1f2   :  { %989 = vst [vmem:[#allocation8 + $0x1c0] sm:$0xff] %v811_v62  ;;  %991 = vst [vmem:[#allocation8 + $0x1d0] sm:$0xff] %v924_v42  ;;  %v813_v28 = vpop.f32.mrb[29].mxu0  ;;  %v926_v45 = vpop.f32.mrb[29].mxu1 }
 0x1f3   :  { %990 = vst [vmem:[#allocation8 + $0x1c8] sm:$0xff] %v813_v28  ;;  %992 = vst [vmem:[#allocation8 + $0x1d8] sm:$0xff] %v926_v45  ;;  %v815_v0 = vpop.f32.mrb[30].mxu0  ;;  %v928_v56 = vpop.f32.mrb[30].mxu1 }
 0x1f4   :  { %993 = vst [vmem:[#allocation8 + $0x1e0] sm:$0xff] %v815_v0  ;;  %995 = vst [vmem:[#allocation8 + $0x1f0] sm:$0xff] %v928_v56  ;;  %v817_v38 = vpop.f32.mrb[31].mxu0  ;;  %v930_v6 = vpop.f32.mrb[31].mxu1 }
 0x1f5   :  { %994 = vst [vmem:[#allocation8 + $0x1e8] sm:$0xff] %v817_v38  ;;  %996 = vst [vmem:[#allocation8 + $0x1f8] sm:$0xff] %v930_v6 }
 0x1f6   :  { %1294 = shalt.err (!%p1291_p0)
}
 0x1f7   :  { %s1295_s27 = scalar_lea.hbm %s1595_s3, 8192 }
 0x1f8   :  { %p1296_p1 = scmp.ne.s32.totalorder %s1595_s3, %s1295_s27  ;;  %p1299_p2 = scmp.lt.u32.totalorder %s1295_s27, %s1595_s3 }
 0x1fa   :  { %p1301_p3 = pnand %p1299_p2, %p1296_p1 }
 0x1fc   :  { %1304 = shalt.err (!%p1301_p3)
}
 0x1fd   :  { %s1319_s5 = smov 512   ;;  %s1320_s6 = smov 32  }
 0x1fe   :  { %1008 = dma.vmem_to_hbm [thread:$0]  %s1003_s23, 8192, %s1595_s3, [#allocation4], %s1319_s5, %s1319_s5, %s1320_s6  }
 0x1ff   :  { %1309 = dma.done.wait [#allocation4], 8192  }
 0x200   :  { %1310 = vsyncadd [#allocation4], 4294959104 }
 0x201   :  { %1012 = vsyncpa [#allocation3], 1 }
 0x202   :  { %1013 = vsyncpa [#allocation6], 1 }
 0x203   :  { %1014 = vsyncpa [#allocation4], 1 }

// kernel: transformer_lm_forward.12
= control target key start
LH: loop header
LB: loop body
LE: loop exit
PB: predicated region body
PF: predicated region fallthrough
CT: control target
= control target key end

     0   :  { %10 = vsyncpa [#allocation4], 0  ;;  %s4909_s0 = inlined_call_operand.hbm [shape: bf16[128,256], index: 0, kind: input, shape index: {}]   ;;  %s4910_s1 = inlined_call_operand.hbm [shape: f32[1,256], index: 1, kind: input, shape index: {}]   ;;  %s4911_s2 = inlined_call_operand.hbm [shape: bf16[256,512], index: 2, kind: input, shape index: {}]   ;;  %s4912_s3 = inlined_call_operand.hbm [shape: bf16[256,512], index: 3, kind: input, shape index: {}]   ;;  %s4913_s4 = inlined_call_operand.hbm [shape: bf16[512,256], index: 4, kind: input, shape index: {}]   ;;  %s4914_s5 = inlined_call_operand.hbm [shape: bf16[128,256], index: 5, kind: output, shape index: {}]  }
   0x1   :  { %11 = vsyncpa [#allocation7], 0 }
   0x2   :  { %12 = vsyncpa [#allocation10], 0 }
   0x3   :  { %13 = vsyncpa [#allocation5], 0  ;;  %s4106_s18 = smov [#allocation6]   ;;  %s3966_s22 = scalar_lea.hbm %s4910_s1, 32 }
   0x4   :  { %s32_s19 = sshll.u32 %s4106_s18, 4  ;;  %p3967_p0 = scmp.ne.s32.totalorder %s4910_s1, %s3966_s22  ;;  %s33_s19 = int_to_ptr.vmem [resolvable:$true] %s32_s19 }
   0x5   :  { %p3970_p1 = scmp.lt.u32.totalorder %s3966_s22, %s4910_s1 }
   0x7   :  { %p3972_p2 = pnand %p3970_p1, %p3967_p0 }
   0x9   :  { %3975 = shalt.err (!%p3972_p2)
}
   0xa   :  { %s3976_s27 = scalar_lea.vmem %s33_s19, 32  ;;  %p3981_p4 = scmp.lt.s32.totalorder %s33_s19, %s33_s19 }
   0xb   :  { %p3977_p3 = scmp.ne.s32.totalorder %s33_s19, %s3976_s27  ;;  %p3982_p5 = scmp.lt.s32.totalorder %s3976_s27, %s3976_s27 }
   0xd   :  { %p3983_p6 = por %p3982_p5, %p3981_p4 }
   0xf   :  { %p3984_p7 = pnand %p3983_p6, %p3977_p3 }
  0x11   :  { %3987 = shalt.err (!%p3984_p7)
}
  0x12   :  { %35 = dma.hbm_to_vmem [thread:$0]  %s4910_s1, 32, %s33_s19, [#allocation7]  }
  0x13   :  { %s4107_s30 = smov [#allocation9]   ;;  %s4108_s7 = smov [#allocation3]  }
  0x14   :  { %s53_s6 = sshll.u32 %s4107_s30, 4  ;;  %s19_s8 = sshll.u32 %s4108_s7, 4  ;;  %s54_s6 = int_to_ptr.vmem [resolvable:$true] %s53_s6  ;;  %s20_s8 = int_to_ptr.vmem [resolvable:$true] %s19_s8 }
  0x15   :  { %s3988_s11 = scalar_lea.hbm %s4912_s3, 8192 }
  0x16   :  { %p3989_p8 = scmp.ne.s32.totalorder %s4912_s3, %s3988_s11  ;;  %p3992_p9 = scmp.lt.u32.totalorder %s3988_s11, %s4912_s3 }
  0x18   :  { %p3994_p10 = pnand %p3992_p9, %p3989_p8 }
  0x1a   :  { %3997 = shalt.err (!%p3994_p10)
}
  0x1b   :  { %s3998_s1 = scalar_lea.vmem %s54_s6, 8192  ;;  %p4003_p12 = scmp.lt.s32.totalorder %s54_s6, %s54_s6 }
  0x1c   :  { %p3999_p11 = scmp.ne.s32.totalorder %s54_s6, %s3998_s1  ;;  %p4004_p13 = scmp.lt.s32.totalorder %s3998_s1, %s3998_s1 }
  0x1e   :  { %p4005_p0 = por %p4004_p13, %p4003_p12 }
  0x20   :  { %p4006_p1 = pnand %p4005_p0, %p3999_p11 }
  0x22   :  { %4009 = shalt.err (!%p4006_p1)
}
  0x23   :  { %s4109_s16 = smov 256   ;;  %s4110_s17 = smov 16  }
  0x24   :  { %59 = dma.hbm_to_vmem [thread:$0]  %s4912_s3, 8192, %s54_s6, [#allocation10], %s4109_s16, %s4109_s16, %s4110_s17  }
  0x25   :  { %s4010_s22 = scalar_lea.hbm %s4909_s0, 2048 }
  0x26   :  { %p4011_p2 = scmp.ne.s32.totalorder %s4909_s0, %s4010_s22  ;;  %p4014_p3 = scmp.lt.u32.totalorder %s4010_s22, %s4909_s0 }
  0x28   :  { %p4016_p4 = pnand %p4014_p3, %p4011_p2 }
  0x2a   :  { %4019 = shalt.err (!%p4016_p4)
}
  0x2b   :  { %s4020_s27 = scalar_lea.vmem %s20_s8, 2048  ;;  %p4025_p6 = scmp.lt.s32.totalorder %s20_s8, %s20_s8 }
  0x2c   :  { %p4021_p5 = scmp.ne.s32.totalorder %s20_s8, %s4020_s27  ;;  %p4026_p7 = scmp.lt.s32.totalorder %s4020_s27, %s4020_s27 }
  0x2e   :  { %p4027_p8 = por %p4026_p7, %p4025_p6 }
  0x30   :  { %p4028_p9 = pnand %p4027_p8, %p4021_p5 }
  0x32   :  { %4031 = shalt.err (!%p4028_p9)
}
  0x33   :  { %s4111_s3 = smov 128   ;;  %s4112_s28 = smov 8  }
  0x34   :  { %25 = dma.hbm_to_vmem [thread:$0]  %s4909_s0, 2048, %s20_s8, [#allocation4], %s4111_s3, %s4111_s3, %s4112_s28  }
  0x35   :  { %s4113_s6 = smov [#allocation8]   ;;  %s4114_s9 = smov [#allocation11]  }
  0x36   :  { %s41_s7 = sshll.u32 %s4113_s6, 4  ;;  %s65_s10 = sshll.u32 %s4114_s9, 4  ;;  %s42_s7 = int_to_ptr.vmem [resolvable:$true] %s41_s7  ;;  %s66_s10 = int_to_ptr.vmem [resolvable:$true] %s65_s10 }
  0x37   :  { %s4032_s13 = scalar_lea.hbm %s4911_s2, 8192 }
  0x38   :  { %p4033_p10 = scmp.ne.s32.totalorder %s4911_s2, %s4032_s13  ;;  %p4036_p11 = scmp.lt.u32.totalorder %s4032_s13, %s4911_s2 }
  0x3a   :  { %p4038_p12 = pnand %p4036_p11, %p4033_p10 }
  0x3c   :  { %4041 = shalt.err (!%p4038_p12)
}
  0x3d   :  { %s4042_s0 = scalar_lea.vmem %s42_s7, 8192  ;;  %p4047_p0 = scmp.lt.s32.totalorder %s42_s7, %s42_s7 }
  0x3e   :  { %p4043_p13 = scmp.ne.s32.totalorder %s42_s7, %s4042_s0  ;;  %p4048_p1 = scmp.lt.s32.totalorder %s4042_s0, %s4042_s0 }
  0x40   :  { %p4049_p2 = por %p4048_p1, %p4047_p0 }
  0x42   :  { %p4050_p3 = pnand %p4049_p2, %p4043_p13 }
  0x44   :  { %4053 = shalt.err (!%p4050_p3)
}
  0x45   :  { %47 = dma.hbm_to_vmem [thread:$0]  %s4911_s2, 8192, %s42_s7, [#allocation7], %s4109_s16, %s4109_s16, %s4110_s17  }
  0x46   :  { %s4054_s22 = scalar_lea.hbm %s4913_s4, 8192 }
  0x47   :  { %p4055_p4 = scmp.ne.s32.totalorder %s4913_s4, %s4054_s22  ;;  %p4058_p5 = scmp.lt.u32.totalorder %s4054_s22, %s4913_s4 }
  0x49   :  { %p4060_p6 = pnand %p4058_p5, %p4055_p4 }
  0x4b   :  { %4063 = shalt.err (!%p4060_p6)
}
  0x4c   :  { %s4064_s27 = scalar_lea.vmem %s66_s10, 8192  ;;  %p4069_p8 = scmp.lt.s32.totalorder %s66_s10, %s66_s10 }
  0x4d   :  { %p4065_p7 = scmp.ne.s32.totalorder %s66_s10, %s4064_s27  ;;  %p4070_p9 = scmp.lt.s32.totalorder %s4064_s27, %s4064_s27 }
  0x4f   :  { %p4071_p10 = por %p4070_p9, %p4069_p8 }
  0x51   :  { %p4072_p11 = pnand %p4071_p10, %p4065_p7 }
  0x53   :  { %4075 = shalt.err (!%p4072_p11)
}
  0x54   :  { %71 = dma.hbm_to_vmem [thread:$0]  %s4913_s4, 8192, %s66_s10, [#allocation10], %s4111_s3, %s4111_s3, %s4112_s28  }
  0x55   :  { %4098 = dma.done.wait [#allocation4], 2048  }
  0x56   :  { %4099 = vsyncadd [#allocation4], 4294965248 }
  0x57   :  { %4100 = dma.done.wait [#allocation7], 8224  }
  0x58   :  { %4101 = vsyncadd [#allocation7], 4294959072 }
  0x59   :  { %4102 = dma.done.wait [#allocation10], 16384  }
  0x5a   :  { %4103 = vsyncadd [#allocation10], 4294950912  ;;  %v123_v0 = vld [vmem:[#allocation3] sm:$0xff]  ;;  %v125_v1 = vld [vmem:[#allocation3 + $0x10] sm:$0xff]  ;;  %s4115_s4 = smov [#allocation12]  }
  0x5b   :  { %v124_v2 = vld [vmem:[#allocation3 + $0x8] sm:$0xff]  ;;  %v4218_v3 = vunpack.c.l.bf16 %v123_v0  ;;  %v4220_v4 = vunpack.c.h.bf16 %v123_v0  ;;  %v4222_v5 = vunpack.c.l.bf16 %v125_v1  ;;  %v4224_v6 = vunpack.c.h.bf16 %v125_v1  ;;  %v126_v7 = vld [vmem:[#allocation3 + $0x18] sm:$0xff]  ;;  %v127_v17 = vld [vmem:[#allocation3 + $0x20] sm:$0xff]  ;;  %s3046_s17 = sshll.u32 %s4115_s4, 4  ;;  %s3047_s17 = int_to_ptr.vmem [resolvable:$true] %s3046_s17 }
  0x5c   :  { %v4226_v8 = vunpack.c.l.bf16 %v124_v2  ;;  %v4228_v9 = vunpack.c.h.bf16 %v124_v2  ;;  %v4230_v10 = vunpack.c.l.bf16 %v126_v7  ;;  %v4232_v11 = vunpack.c.h.bf16 %v126_v7  ;;  %v128_v12 = vld [vmem:[#allocation3 + $0x28] sm:$0xff]  ;;  %v130_v22 = vld [vmem:[#allocation3 + $0x38] sm:$0xff]  ;;  %v129_v23 = vld [vmem:[#allocation3 + $0x30] sm:$0xff]  ;;  %s4076_s29 = scalar_lea.vmem %s3047_s17, 2048  ;;  %p4081_p13 = scmp.lt.s32.totalorder %s3047_s17, %s3047_s17 }
  0x5d   :  { %v171_v13 = vmul.f32 %v4218_v3, %v4218_v3  ;;  %v172_v14 = vmul.f32 %v4220_v4, %v4220_v4  ;;  %v175_v15 = vmul.f32 %v4222_v5, %v4222_v5  ;;  %v176_v16 = vmul.f32 %v4224_v6, %v4224_v6  ;;  %v132_v28 = vld [vmem:[#allocation3 + $0x48] sm:$0xff]  ;;  %v131_v33 = vld [vmem:[#allocation3 + $0x40] sm:$0xff]  ;;  %v134_v46 = vld [vmem:[#allocation3 + $0x58] sm:$0xff]  ;;  %p4077_p12 = scmp.ne.s32.totalorder %s3047_s17, %s4076_s29  ;;  %p4082_p0 = scmp.lt.s32.totalorder %s4076_s29, %s4076_s29 }
  0x5e   :  { %v173_v18 = vmul.f32 %v4226_v8, %v4226_v8  ;;  %v174_v19 = vmul.f32 %v4228_v9, %v4228_v9  ;;  %v177_v20 = vmul.f32 %v4230_v10, %v4230_v10  ;;  %v178_v21 = vmul.f32 %v4232_v11, %v4232_v11  ;;  %v3390_v34 = vld [vmem:[#allocation8 + $0x4] ss:$16 sps:$4 sm:$0xff]   ;;  %v3392_v35 = vld [vmem:[#allocation8] ss:$16 sps:$4 sm:$0xff]  }
  0x5f   :  { %v203_v24 = vadd.f32 %v172_v14, %v171_v13  ;;  %v209_v25 = vadd.f32 %v176_v16, %v175_v15  ;;  %v4250_v26 = vunpack.c.l.bf16 %v128_v12  ;;  %v4252_v27 = vunpack.c.h.bf16 %v128_v12  ;;  %v3393_v40 = vld [vmem:[#allocation9 + $0x4] ss:$16 sps:$4 sm:$0xff]   ;;  %v3395_v41 = vld [vmem:[#allocation9] ss:$16 sps:$4 sm:$0xff]   ;;  %776 = vmatprep.subr.bf16.mxu1 %v3390_v34  ;;  %p4083_p1 = por %p4082_p0, %p4081_p13 }
  0x60   :  { %v206_v29 = vadd.f32 %v174_v19, %v173_v18  ;;  %v212_v30 = vadd.f32 %v178_v21, %v177_v20  ;;  %v4254_v31 = vunpack.c.l.bf16 %v127_v17  ;;  %v4256_v32 = vunpack.c.h.bf16 %v127_v17  ;;  %v3396_v47 = vld [vmem:[#allocation8 + $0x24] ss:$16 sps:$4 sm:$0xff]   ;;  %777 = vmatpush1.bf16.msra.mxu1 %v3392_v35  ;;  %1386 = vmatprep.subr.bf16.mxu0 %v3393_v40  ;;  %v3398_v50 = vld [vmem:[#allocation8 + $0x20] ss:$16 sps:$4 sm:$0xff]  }
  0x61   :  { %4939 = vst [vmem:[#allocation17_spill] sm:$0xff] %v4250_v26  ;;  %4940 = vst [vmem:[#allocation18_spill] sm:$0xff] %v4252_v27  ;;  %204 = vadd.xlane.f32.xlu0 %v203_v24  ;;  %210 = vadd.xlane.f32.xlu1 %v209_v25  ;;  %v181_v36 = vmul.f32 %v4250_v26, %v4250_v26  ;;  %v182_v37 = vmul.f32 %v4252_v27, %v4252_v27  ;;  %v4262_v38 = vunpack.c.l.bf16 %v130_v22  ;;  %v3399_v55 = vld [vmem:[#allocation9 + $0x24] ss:$16 sps:$4 sm:$0xff]   ;;  %v3401_v56 = vld [vmem:[#allocation9 + $0x20] ss:$16 sps:$4 sm:$0xff]   ;;  %p4084_p2 = pnand %p4083_p1, %p4077_p12 }
  0x62   :  { %4941 = vst [vmem:[#allocation19_spill] sm:$0xff] %v4254_v31  ;;  %4942 = vst [vmem:[#allocation20_spill] sm:$0xff] %v4256_v32  ;;  %v4264_v39 = vunpack.c.h.bf16 %v130_v22  ;;  %v179_v42 = vmul.f32 %v4254_v31, %v4254_v31  ;;  %v180_v43 = vmul.f32 %v4256_v32, %v4256_v32  ;;  %v4270_v44 = vunpack.c.l.bf16 %v129_v23  ;;  %1387 = vmatpush1.bf16.msra.mxu0 %v3395_v41  ;;  %v133_v61 = vld [vmem:[#allocation3 + $0x50] sm:$0xff]  ;;  %v136_v63 = vld [vmem:[#allocation3 + $0x68] sm:$0xff] }
  0x63   :  { %4943 = vst [vmem:[#allocation21_spill] sm:$0xff] %v4262_v38  ;;  %v4272_v45 = vunpack.c.h.bf16 %v129_v23  ;;  %v185_v48 = vmul.f32 %v4262_v38, %v4262_v38  ;;  %v218_v51 = vadd.f32 %v182_v37, %v181_v36  ;;  %v4282_v54 = vunpack.c.l.bf16 %v132_v28  ;;  %778 = vmatprep.subr.bf16.mxu1 %v3396_v47  ;;  %v3402_v62 = vld [vmem:[#allocation8 + $0x44] ss:$16 sps:$4 sm:$0xff]   ;;  %1388 = vmatprep.subr.bf16.mxu0 %v3399_v55  ;;  %v3404_v12 = vld [vmem:[#allocation8 + $0x40] ss:$16 sps:$4 sm:$0xff]  }
  0x64   :  { %4944 = vst [vmem:[#allocation22_spill] sm:$0xff] %v4264_v39  ;;  %4945 = vst [vmem:[#allocation23_spill] sm:$0xff] %v4270_v44  ;;  %v186_v49 = vmul.f32 %v4264_v39, %v4264_v39  ;;  %v183_v52 = vmul.f32 %v4270_v44, %v4270_v44  ;;  %v215_v57 = vadd.f32 %v180_v43, %v179_v42  ;;  %v4284_v58 = vunpack.c.h.bf16 %v132_v28  ;;  %v3405_v0 = vld [vmem:[#allocation9 + $0x44] ss:$16 sps:$4 sm:$0xff]   ;;  %v3407_v17 = vld [vmem:[#allocation9 + $0x40] ss:$16 sps:$4 sm:$0xff]  }
  0x65   :  { %4946 = vst [vmem:[#allocation24_spill] sm:$0xff] %v4272_v45  ;;  %v184_v53 = vmul.f32 %v4272_v45, %v4272_v45  ;;  %4947 = vst [vmem:[#allocation25_spill] sm:$0xff] %v4282_v54  ;;  %207 = vadd.xlane.f32.xlu0 %v206_v29  ;;  %213 = vadd.xlane.f32.xlu1 %v212_v30  ;;  %v4286_v59 = vunpack.c.l.bf16 %v131_v33  ;;  %v4288_v60 = vunpack.c.h.bf16 %v131_v33  ;;  %v4290_v2 = vunpack.c.l.bf16 %v134_v46  ;;  %v3408_v18 = vld [vmem:[#allocation8 + $0x64] ss:$16 sps:$4 sm:$0xff]   ;;  %v3410_v29 = vld [vmem:[#allocation8 + $0x60] ss:$16 sps:$4 sm:$0xff]  }
  0x66   :  { %4948 = vst [vmem:[#allocation26_spill] sm:$0xff] %v4284_v58  ;;  %v224_v1 = vadd.f32 %v186_v49, %v185_v48  ;;  %v4292_v7 = vunpack.c.h.bf16 %v134_v46  ;;  %779 = vmatpush1.bf16.msra.mxu1 %v3398_v50  ;;  %v189_v14 = vmul.f32 %v4282_v54, %v4282_v54  ;;  %v4296_v15 = vunpack.c.l.bf16 %v133_v61  ;;  %1389 = vmatpush1.bf16.msra.mxu0 %v3401_v56  ;;  %v135_v22 = vld [vmem:[#allocation3 + $0x60] sm:$0xff]  ;;  %v138_v43 = vld [vmem:[#allocation3 + $0x78] sm:$0xff]  ;;  %v137_v46 = vld [vmem:[#allocation3 + $0x70] sm:$0xff] }
  0x67   :  { %4949 = vst [vmem:[#allocation27_spill] sm:$0xff] %v4286_v59  ;;  %4950 = vst [vmem:[#allocation28_spill] sm:$0xff] %v4288_v60  ;;  %v221_v13 = vadd.f32 %v184_v53, %v183_v52  ;;  %v4298_v16 = vunpack.c.h.bf16 %v133_v61  ;;  %780 = vmatprep.subr.bf16.mxu1 %v3402_v62  ;;  %v190_v19 = vmul.f32 %v4284_v58, %v4284_v58  ;;  %1390 = vmatprep.subr.bf16.mxu0 %v3405_v0  ;;  %v3411_v23 = vld [vmem:[#allocation9 + $0x64] ss:$16 sps:$4 sm:$0xff]   ;;  %v3413_v35 = vld [vmem:[#allocation9 + $0x60] ss:$16 sps:$4 sm:$0xff]  }
  0x68   :  { %4951 = vst [vmem:[#allocation29_spill] sm:$0xff] %v4290_v2  ;;  %4952 = vst [vmem:[#allocation30_spill] sm:$0xff] %v4292_v7  ;;  %v187_v20 = vmul.f32 %v4286_v59, %v4286_v59  ;;  %v188_v21 = vmul.f32 %v4288_v60, %v4288_v60  ;;  %v193_v24 = vmul.f32 %v4290_v2, %v4290_v2  ;;  %v4310_v28 = vunpack.c.l.bf16 %v136_v63  ;;  %v3414_v36 = vld [vmem:[#allocation8 + $0x84] ss:$16 sps:$4 sm:$0xff]   ;;  %v3416_v50 = vld [vmem:[#allocation8 + $0x80] ss:$16 sps:$4 sm:$0xff]  }
  0x69   :  { %4953 = vst [vmem:[#allocation31_spill] sm:$0xff] %v4296_v15  ;;  %4954 = vst [vmem:[#allocation32_spill] sm:$0xff] %v4298_v16  ;;  %219 = vadd.xlane.f32.xlu1 %v218_v51  ;;  %216 = vadd.xlane.f32.xlu0 %v215_v57  ;;  %v194_v25 = vmul.f32 %v4292_v7, %v4292_v7  ;;  %v191_v30 = vmul.f32 %v4296_v15, %v4296_v15  ;;  %v4316_v34 = vunpack.c.h.bf16 %v136_v63  ;;  %v3417_v47 = vld [vmem:[#allocation9 + $0x84] ss:$16 sps:$4 sm:$0xff]   ;;  %v3419_v56 = vld [vmem:[#allocation9 + $0x80] ss:$16 sps:$4 sm:$0xff]  }
  0x6a   :  { %4955 = vst [vmem:[#allocation33_spill] sm:$0xff] %v4310_v28  ;;  %781 = vmatpush1.bf16.msra.mxu1 %v3404_v12  ;;  %v192_v33 = vmul.f32 %v4298_v16, %v4298_v16  ;;  %1391 = vmatpush1.bf16.msra.mxu0 %v3407_v17  ;;  %v230_v37 = vadd.f32 %v190_v19, %v189_v14  ;;  %v4318_v41 = vunpack.c.l.bf16 %v135_v22  ;;  %v4320_v42 = vunpack.c.h.bf16 %v135_v22  ;;  %v3420_v57 = vld [vmem:[#allocation8 + $0xa4] ss:$16 sps:$4 sm:$0xff]   ;;  %v3422_v12 = vld [vmem:[#allocation8 + $0xa0] ss:$16 sps:$4 sm:$0xff]  }
  0x6b   :  { %4956 = vst [vmem:[#allocation34_spill] sm:$0xff] %v4316_v34  ;;  %782 = vmatprep.subr.bf16.mxu1 %v3408_v18  ;;  %v227_v40 = vadd.f32 %v188_v21, %v187_v20  ;;  %1392 = vmatprep.subr.bf16.mxu0 %v3411_v23  ;;  %v236_v48 = vadd.f32 %v194_v25, %v193_v24  ;;  %v4326_v53 = vunpack.c.l.bf16 %v138_v43  ;;  %v4328_v55 = vunpack.c.h.bf16 %v138_v43  ;;  %v3425_v18 = vld [vmem:[#allocation9 + $0xa0] ss:$16 sps:$4 sm:$0xff]   ;;  %v3426_v19 = vld [vmem:[#allocation8 + $0xc4] ss:$16 sps:$4 sm:$0xff]  }
  0x6c   :  { %4957 = vst [vmem:[#allocation35_spill] sm:$0xff] %v4318_v41  ;;  %4958 = vst [vmem:[#allocation36_spill] sm:$0xff] %v4320_v42  ;;  %v197_v49 = vmul.f32 %v4310_v28, %v4310_v28  ;;  %v233_v51 = vadd.f32 %v192_v33, %v191_v30  ;;  %v198_v52 = vmul.f32 %v4316_v34, %v4316_v34  ;;  %v4334_v63 = vunpack.c.l.bf16 %v137_v46  ;;  %v3429_v23 = vld [vmem:[#allocation9 + $0xc4] ss:$16 sps:$4 sm:$0xff]   ;;  %v3428_v24 = vld [vmem:[#allocation8 + $0xc0] ss:$16 sps:$4 sm:$0xff]  }
  0x6d   :  { %225 = vadd.xlane.f32.xlu1 %v224_v1  ;;  %222 = vadd.xlane.f32.xlu0 %v221_v13  ;;  %4959 = vst [vmem:[#allocation37_spill] sm:$0xff] %v4326_v53  ;;  %4960 = vst [vmem:[#allocation38_spill] sm:$0xff] %v4328_v55  ;;  %v195_v61 = vmul.f32 %v4318_v41, %v4318_v41  ;;  %v196_v62 = vmul.f32 %v4320_v42, %v4320_v42  ;;  %v4336_v0 = vunpack.c.h.bf16 %v137_v46  ;;  %v3423_v1 = vld [vmem:[#allocation9 + $0xa4] ss:$16 sps:$4 sm:$0xff]   ;;  %v3431_v25 = vld [vmem:[#allocation9 + $0xc0] ss:$16 sps:$4 sm:$0xff]  }
  0x6e   :  { %783 = vmatpush1.bf16.msra.mxu1 %v3410_v29  ;;  %1393 = vmatpush1.bf16.msra.mxu0 %v3413_v35  ;;  %4961 = vst [vmem:[#allocation39_spill] sm:$0xff] %v4334_v63  ;;  %v242_v13 = vadd.f32 %v198_v52, %v197_v49  ;;  %v201_v14 = vmul.f32 %v4326_v53, %v4326_v53  ;;  %v3432_v29 = vld [vmem:[#allocation8 + $0xe4] ss:$16 sps:$4 sm:$0xff]   ;;  %v3440_v46 = vld [vmem:[#allocation8 + $0x100] ss:$16 sps:$4 sm:$0xff]  }
  0x6f   :  { %784 = vmatprep.subr.bf16.mxu1 %v3414_v36  ;;  %4962 = vst [vmem:[#allocation40_spill] sm:$0xff] %v4336_v0  ;;  %1394 = vmatprep.subr.bf16.mxu0 %v3417_v47  ;;  %v202_v17 = vmul.f32 %v4328_v55, %v4328_v55  ;;  %v239_v20 = vadd.f32 %v196_v62, %v195_v61  ;;  %v3435_v35 = vld [vmem:[#allocation9 + $0xe4] ss:$16 sps:$4 sm:$0xff]   ;;  %v3434_v36 = vld [vmem:[#allocation8 + $0xe0] ss:$16 sps:$4 sm:$0xff]  }
  0x70   :  { %v199_v21 = vmul.f32 %v4334_v63, %v4334_v63  ;;  %v200_v22 = vmul.f32 %v4336_v0, %v4336_v0  ;;  %v3441_v43 = vld [vmem:[#allocation9 + $0x104] ss:$16 sps:$4 sm:$0xff]   ;;  %v3443_v47 = vld [vmem:[#allocation9 + $0x100] ss:$16 sps:$4 sm:$0xff]  }
  0x71   :  { %231 = vadd.xlane.f32.xlu1 %v230_v37  ;;  %228 = vadd.xlane.f32.xlu0 %v227_v40  ;;  %v248_v30 = vadd.f32 %v202_v17, %v201_v14  ;;  %v3437_v37 = vld [vmem:[#allocation9 + $0xe0] ss:$16 sps:$4 sm:$0xff]   ;;  %v3438_v40 = vld [vmem:[#allocation8 + $0x104] ss:$16 sps:$4 sm:$0xff]  }
  0x72   :  { %785 = vmatpush1.bf16.msra.mxu1 %v3416_v50  ;;  %1395 = vmatpush1.bf16.msra.mxu0 %v3419_v56  ;;  %v245_v33 = vadd.f32 %v200_v22, %v199_v21  ;;  %v3447_v49 = vld [vmem:[#allocation9 + $0x124] ss:$16 sps:$4 sm:$0xff]   ;;  %v3446_v50 = vld [vmem:[#allocation8 + $0x120] ss:$16 sps:$4 sm:$0xff]  }
  0x73   :  { %786 = vmatprep.subr.bf16.mxu1 %v3420_v57  ;;  %1396 = vmatprep.subr.bf16.mxu0 %v3423_v1  ;;  %v3450_v52 = vld [vmem:[#allocation8 + $0x144] ss:$16 sps:$4 sm:$0xff]   ;;  %v3452_v57 = vld [vmem:[#allocation8 + $0x140] ss:$16 sps:$4 sm:$0xff]  }
  0x74   :  { %v3453_v56 = vld [vmem:[#allocation9 + $0x144] ss:$16 sps:$4 sm:$0xff]   ;;  %v3455_v61 = vld [vmem:[#allocation9 + $0x140] ss:$16 sps:$4 sm:$0xff]  }
  0x75   :  { %237 = vadd.xlane.f32.xlu1 %v236_v48  ;;  %234 = vadd.xlane.f32.xlu0 %v233_v51  ;;  %v3444_v48 = vld [vmem:[#allocation8 + $0x124] ss:$16 sps:$4 sm:$0xff]   ;;  %v3449_v51 = vld [vmem:[#allocation9 + $0x120] ss:$16 sps:$4 sm:$0xff]  }
  0x76   :  { %787 = vmatpush1.bf16.msra.mxu1 %v3422_v12  ;;  %1397 = vmatpush1.bf16.msra.mxu0 %v3425_v18  ;;  %v3456_v62 = vld [vmem:[#allocation8 + $0x164] ss:$16 sps:$4 sm:$0xff]   ;;  %v3458_v12 = vld [vmem:[#allocation8 + $0x160] ss:$16 sps:$4 sm:$0xff]  }
  0x77   :  { %788 = vmatprep.subr.bf16.mxu1 %v3426_v19  ;;  %1398 = vmatprep.subr.bf16.mxu0 %v3429_v23  ;;  %v3459_v1 = vld [vmem:[#allocation9 + $0x164] ss:$16 sps:$4 sm:$0xff]   ;;  %v3464_v18 = vld [vmem:[#allocation8 + $0x180] ss:$16 sps:$4 sm:$0xff]  }
  0x78   :  { %v3462_v14 = vld [vmem:[#allocation8 + $0x184] ss:$16 sps:$4 sm:$0xff]   ;;  %v3467_v19 = vld [vmem:[#allocation9 + $0x180] ss:$16 sps:$4 sm:$0xff]  }
  0x79   :  { %243 = vadd.xlane.f32.xlu1 %v242_v13  ;;  %240 = vadd.xlane.f32.xlu0 %v239_v20  ;;  %v3461_v13 = vld [vmem:[#allocation9 + $0x160] ss:$16 sps:$4 sm:$0xff]   ;;  %v3465_v17 = vld [vmem:[#allocation9 + $0x184] ss:$16 sps:$4 sm:$0xff]  }
  0x7a   :  { %789 = vmatpush1.bf16.msra.mxu1 %v3428_v24  ;;  %1399 = vmatpush1.bf16.msra.mxu0 %v3431_v25  ;;  %v3468_v20 = vld [vmem:[#allocation8 + $0x1a4] ss:$16 sps:$4 sm:$0xff]   ;;  %v3470_v22 = vld [vmem:[#allocation8 + $0x1a0] ss:$16 sps:$4 sm:$0xff]  }
  0x7b   :  { %790 = vmatprep.subr.bf16.mxu1 %v3432_v29  ;;  %1400 = vmatprep.subr.bf16.mxu0 %v3435_v35  ;;  %v3471_v21 = vld [vmem:[#allocation9 + $0x1a4] ss:$16 sps:$4 sm:$0xff]   ;;  %v3473_v23 = vld [vmem:[#allocation9 + $0x1a0] ss:$16 sps:$4 sm:$0xff]  }
  0x7c   :  { %v3474_v24 = vld [vmem:[#allocation8 + $0x1c4] ss:$16 sps:$4 sm:$0xff]   ;;  %v3476_v29 = vld [vmem:[#allocation8 + $0x1c0] ss:$16 sps:$4 sm:$0xff]  }
  0x7d   :  { %249 = vadd.xlane.f32.xlu1 %v248_v30  ;;  %246 = vadd.xlane.f32.xlu0 %v245_v33  ;;  %v3477_v25 = vld [vmem:[#allocation9 + $0x1c4] ss:$16 sps:$4 sm:$0xff]   ;;  %v3479_v30 = vld [vmem:[#allocation9 + $0x1c0] ss:$16 sps:$4 sm:$0xff]  }
  0x7e   :  { %791 = vmatpush1.bf16.msra.mxu1 %v3434_v36  ;;  %1401 = vmatpush1.bf16.msra.mxu0 %v3437_v37  ;;  %v3480_v33 = vld [vmem:[#allocation8 + $0x1e4] ss:$16 sps:$4 sm:$0xff]   ;;  %v3482_v36 = vld [vmem:[#allocation8 + $0x1e0] ss:$16 sps:$4 sm:$0xff]  }
  0x7f   :  { %792 = vmatprep.subr.bf16.mxu1 %v3438_v40  ;;  %1402 = vmatprep.subr.bf16.mxu0 %v3441_v43  ;;  %v3483_v35 = vld [vmem:[#allocation9 + $0x1e4] ss:$16 sps:$4 sm:$0xff]   ;;  %v3485_v37 = vld [vmem:[#allocation9 + $0x1e0] ss:$16 sps:$4 sm:$0xff]   ;;  %v3488_v40 = vld [vmem:[#allocation8 + $0xc] ss:$16 sps:$4 sm:$0xff]  }
  0x82   :  { %793 = vmatpush1.bf16.msra.mxu1 %v3440_v46  ;;  %1403 = vmatpush1.bf16.msra.mxu0 %v3443_v47 }
  0x83   :  { %794 = vmatprep.subr.bf16.mxu1 %v3444_v48  ;;  %1404 = vmatprep.subr.bf16.mxu0 %v3447_v49 }
  0x86   :  { %795 = vmatpush1.bf16.msra.mxu1 %v3446_v50  ;;  %1405 = vmatpush1.bf16.msra.mxu0 %v3449_v51 }
  0x87   :  { %796 = vmatprep.subr.bf16.mxu1 %v3450_v52  ;;  %1406 = vmatprep.subr.bf16.mxu0 %v3453_v56 }
  0x8a   :  { %797 = vmatpush1.bf16.msra.mxu1 %v3452_v57  ;;  %1407 = vmatpush1.bf16.msra.mxu0 %v3455_v61  ;;  %v334_v61 = vlaneseq }
  0x8b   :  { %798 = vmatprep.subr.bf16.mxu1 %v3456_v62  ;;  %1408 = vmatprep.subr.bf16.mxu0 %v3459_v1 }
  0x8e   :  { %799 = vmatpush1.bf16.msra.mxu1 %v3458_v12  ;;  %1409 = vmatpush1.bf16.msra.mxu0 %v3461_v13 }
  0x8f   :  { %800 = vmatprep.subr.bf16.mxu1 %v3462_v14  ;;  %1410 = vmatprep.subr.bf16.mxu0 %v3465_v17 }
  0x92   :  { %801 = vmatpush1.bf16.msra.mxu1 %v3464_v18  ;;  %1411 = vmatpush1.bf16.msra.mxu0 %v3467_v19  ;;  %v335_v18 = vshrl.u32 %v334_v61, 7 }
  0x93   :  { %802 = vmatprep.subr.bf16.mxu1 %v3468_v20  ;;  %1412 = vmatprep.subr.bf16.mxu0 %v3471_v21 }
  0x96   :  { %803 = vmatpush1.bf16.msra.mxu1 %v3470_v22  ;;  %1413 = vmatpush1.bf16.msra.mxu0 %v3473_v23  ;;  %v340_v23 = vsub.s32 1, %v335_v18 }
  0x97   :  { %804 = vmatprep.subr.bf16.mxu1 %v3474_v24  ;;  %1414 = vmatprep.subr.bf16.mxu0 %v3477_v25 }
  0x9a   :  { %805 = vmatpush1.bf16.msra.mxu1 %v3476_v29  ;;  %1415 = vmatpush1.bf16.msra.mxu0 %v3479_v30  ;;  %v332_v29 = vld [vmem:[#allocation6] sm:$0x3]  ;;  %v336_v30 = vsub.s32 0, %v335_v18 }
  0x9b   :  { %806 = vmatprep.subr.bf16.mxu1 %v3480_v33  ;;  %1416 = vmatprep.subr.bf16.mxu0 %v3483_v35 }
  0x9e   :  { %807 = vmatpush1.bf16.msra.mxu1 %v3482_v36  ;;  %1417 = vmatpush1.bf16.msra.mxu0 %v3485_v37 }
  0x9f   :  { %889 = vmatprep.subr.bf16.mxu1 %v3488_v40 }
  0xee   :  { %v205_v43 = vpop.xlane.xlu0 %204  ;;  %v211_v46 = vpop.xlane.xlu1 %210 }
  0xef   :  { %v252_v47 = vmul.f32 0.00390625, %v205_v43  ;;  %v254_v48 = vmul.f32 0.00390625, %v211_v46 }
  0xf1   :  { %v268_v49 = vadd.f32 1e-05, %v252_v47  ;;  %v270_v50 = vadd.f32 1e-05, %v254_v48  ;;  %v4347_v47 = vrot.slane %v332_v29, %v340_v23 }
  0xf2   :  { %v208_v51 = vpop.xlane.xlu0 %207  ;;  %v214_v52 = vpop.xlane.xlu1 %213 }
  0xf3   :  { %3678 = vrsqrt.f32 %v268_v49  ;;  %v253_v56 = vmul.f32 0.00390625, %v208_v51  ;;  %v255_v57 = vmul.f32 0.00390625, %v214_v52 }
  0xf4   :  { %3680 = vrsqrt.f32 %v270_v50  ;;  %v4351_v50 = vrot.slane %v332_v29, %v336_v30  ;;  %v3486_v29 = vld [vmem:[#allocation8 + $0x8] ss:$16 sps:$4 sm:$0xff]  }
  0xf5   :  { %v269_v62 = vadd.f32 1e-05, %v253_v56  ;;  %v271_v1 = vadd.f32 1e-05, %v255_v57 }
  0xf6   :  { %v220_v12 = vpop.xlane.xlu1 %219  ;;  %v217_v13 = vpop.xlane.xlu0 %216 }
  0xf7   :  { %3682 = vrsqrt.f32 %v269_v62  ;;  %v257_v14 = vmul.f32 0.00390625, %v220_v12  ;;  %v256_v17 = vmul.f32 0.00390625, %v217_v13 }
  0xf8   :  { %3684 = vrsqrt.f32 %v271_v1 }
  0xf9   :  { %v273_v19 = vadd.f32 1e-05, %v257_v14  ;;  %v272_v20 = vadd.f32 1e-05, %v256_v17 }
  0xfa   :  { %v226_v21 = vpop.xlane.xlu1 %225  ;;  %v223_v22 = vpop.xlane.xlu0 %222 }
  0xfb   :  { %3686 = vrsqrt.f32 %v273_v19  ;;  %v259_v24 = vmul.f32 0.00390625, %v226_v21  ;;  %v258_v25 = vmul.f32 0.00390625, %v223_v22 }
  0xfc   :  { %3688 = vrsqrt.f32 %v272_v20 }
  0xfd   :  { %v3679_v33 = vpop.eup %3678  ;;  %v275_v35 = vadd.f32 1e-05, %v259_v24  ;;  %v274_v36 = vadd.f32 1e-05, %v258_v25 }
  0xfe   :  { %v3681_v37 = vpop.eup %3680  ;;  %v232_v40 = vpop.xlane.xlu1 %231  ;;  %v301_v46 = vmul.f32 %v3679_v33, %v4220_v4  ;;  %v300_v49 = vmul.f32 %v3679_v33, %v4218_v3 }
  0xff   :  { %v229_v43 = vpop.xlane.xlu0 %228  ;;  %v305_v48 = vmul.f32 %v3681_v37, %v4224_v6  ;;  %3690 = vrsqrt.f32 %v275_v35  ;;  %v261_v51 = vmul.f32 0.00390625, %v232_v40  ;;  %v3491_v40 = vld [vmem:[#allocation8 + $0x2c] ss:$16 sps:$4 sm:$0xff]  }
 0x100   :  { %3692 = vrsqrt.f32 %v274_v36  ;;  %v260_v56 = vmul.f32 0.00390625, %v229_v43  ;;  %v345_v1 = vmul.f32 %v4347_v47, %v301_v46  ;;  %v344_v17 = vmul.f32 %v4351_v50, %v300_v49 }
 0x101   :  { %v3683_v52 = vpop.eup %3682  ;;  %v349_v13 = vmul.f32 %v4347_v47, %v305_v48  ;;  %v277_v19 = vadd.f32 1e-05, %v261_v51  ;;  %v304_v43 = vmul.f32 %v3681_v37, %v4222_v5  ;;  %v3489_v37 = vld [vmem:[#allocation8 + $0x28] ss:$16 sps:$4 sm:$0xff]  }
 0x102   :  { %v3685_v57 = vpop.eup %3684  ;;  %v303_v61 = vmul.f32 %v3683_v52, %v4228_v9  ;;  %v302_v62 = vmul.f32 %v3683_v52, %v4226_v8  ;;  %v276_v22 = vadd.f32 1e-05, %v260_v56  ;;  %v238_v23 = vpop.xlane.xlu1 %237 }
 0x103   :  { %v307_v12 = vmul.f32 %v3685_v57, %v4232_v11  ;;  %v235_v35 = vpop.xlane.xlu0 %234  ;;  %v306_v46 = vmul.f32 %v3685_v57, %v4230_v10  ;;  %3694 = vrsqrt.f32 %v277_v19  ;;  %v263_v49 = vmul.f32 0.00390625, %v238_v23 }
 0x104   :  { %v347_v14 = vmul.f32 %v4347_v47, %v303_v61  ;;  %v346_v18 = vmul.f32 %v4351_v50, %v302_v62  ;;  %3696 = vrsqrt.f32 %v276_v22  ;;  %v262_v51 = vmul.f32 0.00390625, %v235_v35  ;;  %v3494_v62 = vld [vmem:[#allocation8 + $0x4c] ss:$16 sps:$4 sm:$0xff]  }
 0x105   :  { %v3687_v20 = vpop.eup %3686  ;;  %v351_v21 = vmul.f32 %v4347_v47, %v307_v12  ;;  %v350_v12 = vmul.f32 %v4351_v50, %v306_v46 }
 0x106   :  { %v3689_v24 = vpop.eup %3688  ;;  %v4362_v25 = vpack.c.bf16 %v347_v14, %v345_v1  ;;  %v4364_v30 = vpack.c.bf16 %v346_v18, %v344_v17  ;;  %v311_v33 = vmul.f32 %v3687_v20, %v4252_v27  ;;  %v348_v1 = vmul.f32 %v4351_v50, %v304_v43  ;;  %v244_v19 = vpop.xlane.xlu1 %243 }
 0x107   :  { %v4367_v36 = vpack.c.bf16 %v351_v21, %v349_v13  ;;  %v309_v48 = vmul.f32 %v3689_v24, %v4256_v32  ;;  %v279_v13 = vadd.f32 1e-05, %v263_v49  ;;  %v308_v14 = vmul.f32 %v3689_v24, %v4254_v31  ;;  %v3492_v21 = vld [vmem:[#allocation8 + $0x48] ss:$16 sps:$4 sm:$0xff]  }
 0x108   :  { %808 = vmatprep.mubr.bf16.mxu1 %v4362_v25  ;;  %1418 = vmatprep.mubr.bf16.mxu0 %v4362_v25  ;;  %v355_v57 = vmul.f32 %v4347_v47, %v311_v33  ;;  %v310_v17 = vmul.f32 %v3687_v20, %v4250_v26  ;;  %v278_v18 = vadd.f32 1e-05, %v262_v51  ;;  %v241_v33 = vpop.xlane.xlu0 %240  ;;  %v4388_v35 = vpack.c.bf16 %v350_v12, %v348_v1  ;;  %v3495_v49 = vld [vmem:[#allocation8 + $0x68] ss:$16 sps:$4 sm:$0xff]  }
 0x109   :  { %809 = vmatmul.mubr.bf16.vlgmr.msra.gmra.mrb[0].mxu1 %v4364_v30  ;;  %1419 = vmatmul.mubr.bf16.vlgmr.msra.gmra.mrb[0].mxu0 %v4364_v30  ;;  %v3691_v52 = vpop.eup %3690  ;;  %v353_v56 = vmul.f32 %v4347_v47, %v309_v48  ;;  %3698 = vrsqrt.f32 %v279_v13  ;;  %v265_v43 = vmul.f32 0.00390625, %v244_v19  ;;  %v352_v20 = vmul.f32 %v4351_v50, %v308_v14 }
 0x10a   :  { %890 = vmatpush1.bf16.msra.mxu1 %v3486_v29  ;;  %818 = vmatprep.mubr.bf16.mxu1 %v4367_v36  ;;  %v3693_v61 = vpop.eup %3692  ;;  %v315_v29 = vmul.f32 %v3691_v52, %v4264_v39  ;;  %v354_v24 = vmul.f32 %v4351_v50, %v310_v17  ;;  %3700 = vrsqrt.f32 %v278_v18  ;;  %v264_v46 = vmul.f32 0.00390625, %v241_v33  ;;  %v250_v17 = vpop.xlane.xlu1 %249  ;;  %v3498_v18 = vld [vmem:[#allocation8 + $0x88] ss:$16 sps:$4 sm:$0xff]   ;;  %v3503_v33 = vld [vmem:[#allocation8 + $0xac] ss:$16 sps:$4 sm:$0xff]  }
 0x10b   :  { %891 = vmatprep.subr.bf16.mxu1 %v3491_v40  ;;  %1428 = vmatprep.mubr.bf16.mxu0 %v4367_v36  ;;  %v4384_v22 = vpack.c.bf16 %v355_v57, %v353_v56  ;;  %v313_v23 = vmul.f32 %v3693_v61, %v4272_v45  ;;  %v3497_v40 = vld [vmem:[#allocation8 + $0x6c] ss:$16 sps:$4 sm:$0xff]   ;;  %v312_v12 = vmul.f32 %v3693_v61, %v4270_v44  ;;  %v3633_v45 = vld [vmem:[#allocation11 + $0x110] ss:$8 sps:$4 sm:$0xff]  }
 0x10c   :  { %v3500_v57 = vld [vmem:[#allocation8 + $0x8c] ss:$16 sps:$4 sm:$0xff]   ;;  %v4398_v1 = vpack.c.bf16 %v354_v24, %v352_v20  ;;  %v314_v13 = vmul.f32 %v3691_v52, %v4262_v38  ;;  %v280_v14 = vadd.f32 1e-05, %v264_v46  ;;  %v3501_v24 = vld [vmem:[#allocation8 + $0xa8] ss:$16 sps:$4 sm:$0xff]  }
 0x10d   :  { %v3695_v48 = vpop.eup %3694  ;;  %v357_v51 = vmul.f32 %v4347_v47, %v313_v23  ;;  %v356_v52 = vmul.f32 %v4351_v50, %v312_v12 }
 0x10e   :  { %892 = vmatpush1.bf16.msra.mxu1 %v3489_v37  ;;  %v359_v37 = vmul.f32 %v4347_v47, %v315_v29  ;;  %v3697_v56 = vpop.eup %3696  ;;  %v319_v23 = vmul.f32 %v3695_v48, %v4284_v58  ;;  %v247_v29 = vpop.xlane.xlu0 %246  ;;  %v358_v61 = vmul.f32 %v4351_v50, %v314_v13  ;;  %v318_v13 = vmul.f32 %v3695_v48, %v4282_v54 }
 0x10f   :  { %893 = vmatprep.subr.bf16.mxu1 %v3494_v62  ;;  %v281_v62 = vadd.f32 1e-05, %v265_v43  ;;  %v266_v43 = vmul.f32 0.00390625, %v247_v29  ;;  %v316_v12 = vmul.f32 %v3697_v56, %v4286_v59  ;;  %v3509_v29 = vld [vmem:[#allocation8 + $0xec] ss:$16 sps:$4 sm:$0xff]  }
 0x110   :  { %v4402_v19 = vpack.c.bf16 %v359_v37, %v357_v51  ;;  %v3506_v37 = vld [vmem:[#allocation8 + $0xcc] ss:$16 sps:$4 sm:$0xff]   ;;  %v362_v48 = vmul.f32 %v4351_v50, %v318_v13 }
 0x111   :  { %819 = vmatmul.mubr.bf16.gmra.mrb[4].mxu1 %v4388_v35  ;;  %1429 = vmatmul.mubr.bf16.gmra.mrb[4].mxu0 %v4388_v35  ;;  %3702 = vrsqrt.f32 %v281_v62  ;;  %v4414_v62 = vpack.c.bf16 %v358_v61, %v356_v52 }
 0x112   :  { %894 = vmatpush1.bf16.msra.mxu1 %v3492_v21  ;;  %828 = vmatprep.mubr.bf16.mxu1 %v4384_v22  ;;  %v317_v21 = vmul.f32 %v3697_v56, %v4288_v60  ;;  %3704 = vrsqrt.f32 %v280_v14  ;;  %v282_v14 = vadd.f32 1e-05, %v266_v43  ;;  %v360_v56 = vmul.f32 %v4351_v50, %v316_v12 }
 0x113   :  { %895 = vmatprep.subr.bf16.mxu1 %v3497_v40  ;;  %1438 = vmatprep.mubr.bf16.mxu0 %v4384_v22  ;;  %v267_v40 = vmul.f32 0.00390625, %v250_v17  ;;  %v3699_v20 = vpop.eup %3698  ;;  %v3504_v17 = vld [vmem:[#allocation8 + $0xc8] ss:$16 sps:$4 sm:$0xff]  }
 0x114   :  { %v361_v46 = vmul.f32 %v4347_v47, %v317_v21  ;;  %v3701_v51 = vpop.eup %3700 }
 0x115   :  { %v321_v21 = vmul.f32 %v3701_v51, %v4298_v16 }
 0x116   :  { %896 = vmatpush1.bf16.msra.mxu1 %v3495_v49  ;;  %v363_v49 = vmul.f32 %v4347_v47, %v319_v23  ;;  %v323_v23 = vmul.f32 %v3699_v20, %v4292_v7 }
 0x117   :  { %897 = vmatprep.subr.bf16.mxu1 %v3500_v57  ;;  %v283_v57 = vadd.f32 1e-05, %v267_v40  ;;  %v3507_v40 = vld [vmem:[#allocation8 + $0xe8] ss:$16 sps:$4 sm:$0xff]   ;;  %v365_v52 = vmul.f32 %v4347_v47, %v321_v21 }
 0x118   :  { %v367_v61 = vmul.f32 %v4347_v47, %v323_v23 }
 0x119   :  { %829 = vmatmul.mubr.bf16.gmra.mrb[8].mxu1 %v4398_v1  ;;  %1439 = vmatmul.mubr.bf16.gmra.mrb[8].mxu0 %v4398_v1  ;;  %3706 = vrsqrt.f32 %v283_v57  ;;  %v3510_v57 = vld [vmem:[#allocation8 + $0x108] ss:$16 sps:$4 sm:$0xff]  }
 0x11a   :  { %898 = vmatpush1.bf16.msra.mxu1 %v3498_v18  ;;  %838 = vmatprep.mubr.bf16.mxu1 %v4402_v19  ;;  %v4418_v18 = vpack.c.bf16 %v363_v49, %v361_v46  ;;  %3708 = vrsqrt.f32 %v282_v14  ;;  %v4430_v46 = vpack.c.bf16 %v362_v48, %v360_v56  ;;  %v320_v49 = vmul.f32 %v3701_v51, %v4296_v15 }
 0x11b   :  { %899 = vmatprep.subr.bf16.mxu1 %v3503_v33  ;;  %1448 = vmatprep.mubr.bf16.mxu0 %v4402_v19  ;;  %v3703_v33 = vpop.eup %3702  ;;  %v4434_v12 = vpack.c.bf16 %v367_v61, %v365_v52 }
 0x11c   :  { %v3705_v43 = vpop.eup %3704  ;;  %v327_v14 = vmul.f32 %v3703_v33, %v4316_v34  ;;  %v364_v21 = vmul.f32 %v4351_v50, %v320_v49  ;;  %v3516_v49 = vld [vmem:[#allocation8 + $0x148] ss:$16 sps:$4 sm:$0xff]  }
 0x11d   :  { %v325_v13 = vmul.f32 %v3705_v43, %v4320_v42  ;;  %v324_v61 = vmul.f32 %v3705_v43, %v4318_v41 }
 0x11e   :  { %900 = vmatpush1.bf16.msra.mxu1 %v3501_v24  ;;  %v3512_v24 = vld [vmem:[#allocation8 + $0x10c] ss:$16 sps:$4 sm:$0xff]   ;;  %v371_v56 = vmul.f32 %v4347_v47, %v327_v14 }
 0x11f   :  { %901 = vmatprep.subr.bf16.mxu1 %v3506_v37  ;;  %v322_v37 = vmul.f32 %v3699_v20, %v4290_v2  ;;  %v3513_v20 = vld [vmem:[#allocation8 + $0x128] ss:$16 sps:$4 sm:$0xff]   ;;  %v3521_v14 = vld [vmem:[#allocation8 + $0x16c] ss:$16 sps:$4 sm:$0xff]  }
 0x121   :  { %839 = vmatmul.mubr.bf16.gmra.mrb[12].mxu1 %v4414_v62  ;;  %1449 = vmatmul.mubr.bf16.gmra.mrb[12].mxu0 %v4414_v62  ;;  %v366_v51 = vmul.f32 %v4351_v50, %v322_v37 }
 0x122   :  { %902 = vmatpush1.bf16.msra.mxu1 %v3504_v17  ;;  %848 = vmatprep.mubr.bf16.mxu1 %v4418_v18  ;;  %v3515_v17 = vld [vmem:[#allocation8 + $0x12c] ss:$16 sps:$4 sm:$0xff]  }
 0x123   :  { %903 = vmatprep.subr.bf16.mxu1 %v3509_v29  ;;  %1458 = vmatprep.mubr.bf16.mxu0 %v4418_v18  ;;  %v3707_v23 = vpop.eup %3706  ;;  %v369_v29 = vmul.f32 %v4347_v47, %v325_v13  ;;  %v4446_v52 = vpack.c.bf16 %v366_v51, %v364_v21 }
 0x124   :  { %v3709_v48 = vpop.eup %3708  ;;  %v331_v13 = vmul.f32 %v3707_v23, %v4328_v55 }
 0x125   :  { %v4450_v37 = vpack.c.bf16 %v371_v56, %v369_v29  ;;  %v328_v56 = vmul.f32 %v3709_v48, %v4334_v63 }
 0x126   :  { %904 = vmatpush1.bf16.msra.mxu1 %v3507_v40  ;;  %v3518_v40 = vld [vmem:[#allocation8 + $0x14c] ss:$16 sps:$4 sm:$0xff]   ;;  %v375_v51 = vmul.f32 %v4347_v47, %v331_v13  ;;  %v3525_v13 = vld [vmem:[#allocation8 + $0x1a8] ss:$16 sps:$4 sm:$0xff]  }
 0x127   :  { %905 = vmatprep.subr.bf16.mxu1 %v3512_v24  ;;  %v326_v24 = vmul.f32 %v3703_v33, %v4310_v28  ;;  %v3519_v33 = vld [vmem:[#allocation8 + $0x168] ss:$16 sps:$4 sm:$0xff]  }
 0x129   :  { %849 = vmatmul.mubr.bf16.gmra.mrb[16].mxu1 %v4430_v46  ;;  %1459 = vmatmul.mubr.bf16.gmra.mrb[16].mxu0 %v4430_v46  ;;  %v370_v43 = vmul.f32 %v4351_v50, %v326_v24 }
 0x12a   :  { %906 = vmatpush1.bf16.msra.mxu1 %v3510_v57  ;;  %858 = vmatprep.mubr.bf16.mxu1 %v4434_v12  ;;  %v329_v57 = vmul.f32 %v3709_v48, %v4336_v0 }
 0x12b   :  { %907 = vmatprep.subr.bf16.mxu1 %v3515_v17  ;;  %1468 = vmatprep.mubr.bf16.mxu0 %v4434_v12  ;;  %v368_v17 = vmul.f32 %v4351_v50, %v324_v61  ;;  %v3522_v61 = vld [vmem:[#allocation8 + $0x188] ss:$16 sps:$4 sm:$0xff]  }
 0x12c   :  { %v373_v21 = vmul.f32 %v4347_v47, %v329_v57  ;;  %v372_v47 = vmul.f32 %v4351_v50, %v328_v56  ;;  %v3590_v56 = vld [vmem:[#allocation11 + $0x24] ss:$8 sps:$4 sm:$0xff]  }
 0x12d   :  { %v4462_v29 = vpack.c.bf16 %v370_v43, %v368_v17  ;;  %v3533_v17 = vld [vmem:[#allocation8 + $0x1ec] ss:$16 sps:$4 sm:$0xff]  }
 0x12e   :  { %908 = vmatpush1.bf16.msra.mxu1 %v3513_v20  ;;  %v3524_v20 = vld [vmem:[#allocation8 + $0x18c] ss:$16 sps:$4 sm:$0xff]   ;;  %v4466_v24 = vpack.c.bf16 %v375_v51, %v373_v21  ;;  %v3531_v21 = vld [vmem:[#allocation8 + $0x1e8] ss:$16 sps:$4 sm:$0xff]  }
 0x12f   :  { %909 = vmatprep.subr.bf16.mxu1 %v3518_v40  ;;  %v330_v40 = vmul.f32 %v3707_v23, %v4326_v53  ;;  %v3530_v23 = vld [vmem:[#allocation8 + $0x1cc] ss:$16 sps:$4 sm:$0xff]  }
 0x130   :  { %v3584_v43 = vld [vmem:[#allocation11 + $0x4] ss:$8 sps:$4 sm:$0xff]  }
 0x131   :  { %859 = vmatmul.mubr.bf16.gmra.mrb[20].mxu1 %v4446_v52  ;;  %1469 = vmatmul.mubr.bf16.gmra.mrb[20].mxu0 %v4446_v52  ;;  %v374_v57 = vmul.f32 %v4351_v50, %v330_v40  ;;  %v3587_v50 = vld [vmem:[#allocation11 + $0x14] ss:$8 sps:$4 sm:$0xff]   ;;  %v3534_v40 = vld [vmem:[#allocation9 + $0x8] ss:$16 sps:$4 sm:$0xff]  }
 0x132   :  { %910 = vmatpush1.bf16.msra.mxu1 %v3516_v49  ;;  %868 = vmatprep.mubr.bf16.mxu1 %v4450_v37  ;;  %v3527_v49 = vld [vmem:[#allocation8 + $0x1ac] ss:$16 sps:$4 sm:$0xff]  }
 0x133   :  { %911 = vmatprep.subr.bf16.mxu1 %v3521_v14  ;;  %1478 = vmatprep.mubr.bf16.mxu0 %v4450_v37  ;;  %v4474_v48 = vpack.c.bf16 %v374_v57, %v372_v47  ;;  %v3528_v14 = vld [vmem:[#allocation8 + $0x1c8] ss:$16 sps:$4 sm:$0xff]   ;;  %v3536_v51 = vld [vmem:[#allocation9 + $0xc] ss:$16 sps:$4 sm:$0xff]  }
 0x134   :  { %2572 = vmatprep.subr.bf16.mxu0 %v3584_v43  ;;  %v3593_v47 = vld [vmem:[#allocation11 + $0x34] ss:$8 sps:$4 sm:$0xff]   ;;  %v3537_v57 = vld [vmem:[#allocation9 + $0x28] ss:$16 sps:$4 sm:$0xff]  }
 0x135   :  { %v3545_v43 = vld [vmem:[#allocation9 + $0x6c] ss:$16 sps:$4 sm:$0xff]  }
 0x136   :  { %912 = vmatpush1.bf16.msra.mxu1 %v3519_v33  ;;  %v3582_v33 = vld [vmem:[#allocation11] ss:$8 sps:$4 sm:$0xff]  }
 0x137   :  { %913 = vmatprep.subr.bf16.mxu1 %v3524_v20  ;;  %2573 = vmatpush1.bf16.msra.mxu0 %v3582_v33  ;;  %v3585_v20 = vld [vmem:[#allocation11 + $0x10] ss:$8 sps:$4 sm:$0xff]   ;;  %v3594_v33 = vld [vmem:[#allocation11 + $0x40] ss:$8 sps:$4 sm:$0xff]  }
 0x138   :  { %2574 = vmatprep.subr.bf16.mxu0 %v3587_v50  ;;  %v3599_v50 = vld [vmem:[#allocation11 + $0x54] ss:$8 sps:$4 sm:$0xff]  }
 0x139   :  { %869 = vmatmul.mubr.bf16.gmra.mrb[24].mxu1 %v4462_v29  ;;  %1479 = vmatmul.mubr.bf16.gmra.mrb[24].mxu0 %v4462_v29 }
 0x13a   :  { %914 = vmatpush1.bf16.msra.mxu1 %v3522_v61  ;;  %878 = vmatprep.mubr.bf16.mxu1 %v4466_v24  ;;  %v3539_v61 = vld [vmem:[#allocation9 + $0x2c] ss:$16 sps:$4 sm:$0xff]  }
 0x13b   :  { %915 = vmatprep.subr.bf16.mxu1 %v3527_v49  ;;  %1488 = vmatprep.mubr.bf16.mxu0 %v4466_v24  ;;  %v3588_v49 = vld [vmem:[#allocation11 + $0x20] ss:$8 sps:$4 sm:$0xff]  }
 0x13c   :  { %2575 = vmatpush1.bf16.msra.mxu0 %v3585_v20  ;;  %v3597_v20 = vld [vmem:[#allocation11 + $0x50] ss:$8 sps:$4 sm:$0xff]  }
 0x13d   :  { %2576 = vmatprep.subr.bf16.mxu0 %v3590_v56  ;;  %v3602_v56 = vld [vmem:[#allocation11 + $0x64] ss:$8 sps:$4 sm:$0xff]  }
 0x13e   :  { %916 = vmatpush1.bf16.msra.mxu1 %v3525_v13  ;;  %v3542_v13 = vld [vmem:[#allocation9 + $0x4c] ss:$16 sps:$4 sm:$0xff]  }
 0x13f   :  { %917 = vmatprep.subr.bf16.mxu1 %v3530_v23  ;;  %v3591_v23 = vld [vmem:[#allocation11 + $0x30] ss:$8 sps:$4 sm:$0xff]  }
 0x140   :  { %2577 = vmatpush1.bf16.msra.mxu0 %v3588_v49  ;;  %v3600_v49 = vld [vmem:[#allocation11 + $0x60] ss:$8 sps:$4 sm:$0xff]  }
 0x141   :  { %879 = vmatmul.mubr.bf16.gmra.mrb[28].mxu1 %v4474_v48  ;;  %1489 = vmatmul.mubr.bf16.gmra.mrb[28].mxu0 %v4474_v48 }
 0x142   :  { %918 = vmatpush1.bf16.msra.mxu1 %v3528_v14  ;;  %921 = vmatprep.mubr.bf16.mxu1 %v4362_v25  ;;  %v3596_v14 = vld [vmem:[#allocation11 + $0x44] ss:$8 sps:$4 sm:$0xff]  }
 0x143   :  { %919 = vmatprep.subr.bf16.mxu1 %v3533_v17  ;;  %2578 = vmatprep.subr.bf16.mxu0 %v3593_v47  ;;  %v3540_v17 = vld [vmem:[#allocation9 + $0x48] ss:$16 sps:$4 sm:$0xff]  }
 0x144   :  { %2579 = vmatpush1.bf16.msra.mxu0 %v3591_v23  ;;  %v3549_v47 = vld [vmem:[#allocation9 + $0xa8] ss:$16 sps:$4 sm:$0xff]  }
 0x145   :  { %2580 = vmatprep.subr.bf16.mxu0 %v3596_v14  ;;  %v3603_v23 = vld [vmem:[#allocation11 + $0x70] ss:$8 sps:$4 sm:$0xff]  }
 0x146   :  { %920 = vmatpush1.bf16.msra.mxu1 %v3531_v21  ;;  %v3543_v21 = vld [vmem:[#allocation9 + $0x68] ss:$16 sps:$4 sm:$0xff]  }
 0x147   :  { %1499 = vmatprep.subr.bf16.mxu1 %v3536_v51  ;;  %v3548_v51 = vld [vmem:[#allocation9 + $0x8c] ss:$16 sps:$4 sm:$0xff]   ;;  %v3552_v14 = vld [vmem:[#allocation9 + $0xc8] ss:$16 sps:$4 sm:$0xff]  }
 0x148   :  { %2581 = vmatpush1.bf16.msra.mxu0 %v3594_v33  ;;  %v3606_v33 = vld [vmem:[#allocation11 + $0x80] ss:$8 sps:$4 sm:$0xff]  }
 0x149   :  { %922 = vmatmul.mubr.bf16.vlgmr.msra.gmra.mrb[32].mxu1 %v4364_v30  ;;  %2582 = vmatprep.subr.bf16.mxu0 %v3599_v50  ;;  %v3555_v50 = vld [vmem:[#allocation9 + $0xe8] ss:$16 sps:$4 sm:$0xff]  }
 0x14a   :  { %1500 = vmatpush1.bf16.msra.mxu1 %v3534_v40  ;;  %931 = vmatprep.mubr.bf16.mxu1 %v4367_v36  ;;  %v3546_v40 = vld [vmem:[#allocation9 + $0x88] ss:$16 sps:$4 sm:$0xff]  }
 0x14b   :  { %1501 = vmatprep.subr.bf16.mxu1 %v3539_v61  ;;  %v3551_v61 = vld [vmem:[#allocation9 + $0xac] ss:$16 sps:$4 sm:$0xff]  }
 0x14c   :  { %2583 = vmatpush1.bf16.msra.mxu0 %v3597_v20  ;;  %v3609_v20 = vld [vmem:[#allocation11 + $0x90] ss:$8 sps:$4 sm:$0xff]  }
 0x14d   :  { %2584 = vmatprep.subr.bf16.mxu0 %v3602_v56  ;;  %v3558_v56 = vld [vmem:[#allocation9 + $0x108] ss:$16 sps:$4 sm:$0xff]  }
 0x14e   :  { %1502 = vmatpush1.bf16.msra.mxu1 %v3537_v57  ;;  %v3554_v57 = vld [vmem:[#allocation9 + $0xcc] ss:$16 sps:$4 sm:$0xff]  }
 0x14f   :  { %1503 = vmatprep.subr.bf16.mxu1 %v3542_v13  ;;  %v3605_v13 = vld [vmem:[#allocation11 + $0x74] ss:$8 sps:$4 sm:$0xff]  }
 0x150   :  { %2585 = vmatpush1.bf16.msra.mxu0 %v3600_v49  ;;  %v3612_v49 = vld [vmem:[#allocation11 + $0xa0] ss:$8 sps:$4 sm:$0xff]  }
 0x151   :  { %932 = vmatmul.mubr.bf16.gmra.mrb[36].mxu1 %v4388_v35  ;;  %2586 = vmatprep.subr.bf16.mxu0 %v3605_v13  ;;  %v3617_v13 = vld [vmem:[#allocation11 + $0xb4] ss:$8 sps:$4 sm:$0xff]  }
 0x152   :  { %1504 = vmatpush1.bf16.msra.mxu1 %v3540_v17  ;;  %941 = vmatprep.mubr.bf16.mxu1 %v4384_v22  ;;  %v3557_v17 = vld [vmem:[#allocation9 + $0xec] ss:$16 sps:$4 sm:$0xff]  }
 0x153   :  { %1505 = vmatprep.subr.bf16.mxu1 %v3545_v43  ;;  %v3608_v43 = vld [vmem:[#allocation11 + $0x84] ss:$8 sps:$4 sm:$0xff]  }
 0x154   :  { %2587 = vmatpush1.bf16.msra.mxu0 %v3603_v23  ;;  %v3615_v23 = vld [vmem:[#allocation11 + $0xb0] ss:$8 sps:$4 sm:$0xff]  }
 0x155   :  { %2588 = vmatprep.subr.bf16.mxu0 %v3608_v43  ;;  %v3620_v43 = vld [vmem:[#allocation11 + $0xc4] ss:$8 sps:$4 sm:$0xff]  }
 0x156   :  { %1506 = vmatpush1.bf16.msra.mxu1 %v3543_v21  ;;  %v3560_v21 = vld [vmem:[#allocation9 + $0x10c] ss:$16 sps:$4 sm:$0xff]  }
 0x157   :  { %1507 = vmatprep.subr.bf16.mxu1 %v3548_v51  ;;  %v3611_v51 = vld [vmem:[#allocation11 + $0x94] ss:$8 sps:$4 sm:$0xff]  }
 0x158   :  { %2589 = vmatpush1.bf16.msra.mxu0 %v3606_v33  ;;  %v3618_v33 = vld [vmem:[#allocation11 + $0xc0] ss:$8 sps:$4 sm:$0xff]  }
 0x159   :  { %942 = vmatmul.mubr.bf16.gmra.mrb[40].mxu1 %v4398_v1  ;;  %2590 = vmatprep.subr.bf16.mxu0 %v3611_v51  ;;  %v3623_v51 = vld [vmem:[#allocation11 + $0xd4] ss:$8 sps:$4 sm:$0xff]  }
 0x15a   :  { %1508 = vmatpush1.bf16.msra.mxu1 %v3546_v40  ;;  %951 = vmatprep.mubr.bf16.mxu1 %v4402_v19  ;;  %v3563_v40 = vld [vmem:[#allocation9 + $0x12c] ss:$16 sps:$4 sm:$0xff]  }
 0x15b   :  { %1509 = vmatprep.subr.bf16.mxu1 %v3551_v61  ;;  %v3614_v61 = vld [vmem:[#allocation11 + $0xa4] ss:$8 sps:$4 sm:$0xff]  }
 0x15c   :  { %2591 = vmatpush1.bf16.msra.mxu0 %v3609_v20  ;;  %v3621_v20 = vld [vmem:[#allocation11 + $0xd0] ss:$8 sps:$4 sm:$0xff]  }
 0x15d   :  { %2592 = vmatprep.subr.bf16.mxu0 %v3614_v61  ;;  %v3626_v61 = vld [vmem:[#allocation11 + $0xe4] ss:$8 sps:$4 sm:$0xff]  }
 0x15e   :  { %1510 = vmatpush1.bf16.msra.mxu1 %v3549_v47  ;;  %v3561_v47 = vld [vmem:[#allocation9 + $0x128] ss:$16 sps:$4 sm:$0xff]  }
 0x15f   :  { %1511 = vmatprep.subr.bf16.mxu1 %v3554_v57  ;;  %v3566_v57 = vld [vmem:[#allocation9 + $0x14c] ss:$16 sps:$4 sm:$0xff]  }
 0x160   :  { %2593 = vmatpush1.bf16.msra.mxu0 %v3612_v49  ;;  %v3624_v49 = vld [vmem:[#allocation11 + $0xe0] ss:$8 sps:$4 sm:$0xff]  }
 0x161   :  { %952 = vmatmul.mubr.bf16.gmra.mrb[44].mxu1 %v4414_v62  ;;  %2594 = vmatprep.subr.bf16.mxu0 %v3617_v13  ;;  %v3629_v13 = vld [vmem:[#allocation11 + $0xf4] ss:$8 sps:$4 sm:$0xff]  }
 0x162   :  { %1512 = vmatpush1.bf16.msra.mxu1 %v3552_v14  ;;  %961 = vmatprep.mubr.bf16.mxu1 %v4418_v18  ;;  %v3564_v14 = vld [vmem:[#allocation9 + $0x148] ss:$16 sps:$4 sm:$0xff]  }
 0x163   :  { %1513 = vmatprep.subr.bf16.mxu1 %v3557_v17  ;;  %v3569_v17 = vld [vmem:[#allocation9 + $0x16c] ss:$16 sps:$4 sm:$0xff]  }
 0x164   :  { %2595 = vmatpush1.bf16.msra.mxu0 %v3615_v23  ;;  %v3576_v23 = vld [vmem:[#allocation9 + $0x1c8] ss:$16 sps:$4 sm:$0xff]  }
 0x165   :  { %2596 = vmatprep.subr.bf16.mxu0 %v3620_v43  ;;  %v3579_v43 = vld [vmem:[#allocation9 + $0x1e8] ss:$16 sps:$4 sm:$0xff]  }
 0x166   :  { %1514 = vmatpush1.bf16.msra.mxu1 %v3555_v50  ;;  %v3567_v50 = vld [vmem:[#allocation9 + $0x168] ss:$16 sps:$4 sm:$0xff]  }
 0x167   :  { %1515 = vmatprep.subr.bf16.mxu1 %v3560_v21  ;;  %v3572_v21 = vld [vmem:[#allocation9 + $0x18c] ss:$16 sps:$4 sm:$0xff]  }
 0x168   :  { %2597 = vmatpush1.bf16.msra.mxu0 %v3618_v33 }
 0x169   :  { %962 = vmatmul.mubr.bf16.gmra.mrb[48].mxu1 %v4430_v46  ;;  %2598 = vmatprep.subr.bf16.mxu0 %v3623_v51 }
 0x16a   :  { %1516 = vmatpush1.bf16.msra.mxu1 %v3558_v56  ;;  %971 = vmatprep.mubr.bf16.mxu1 %v4434_v12  ;;  %v3570_v56 = vld [vmem:[#allocation9 + $0x188] ss:$16 sps:$4 sm:$0xff]  }
 0x16b   :  { %1517 = vmatprep.subr.bf16.mxu1 %v3563_v40  ;;  %v3575_v40 = vld [vmem:[#allocation9 + $0x1ac] ss:$16 sps:$4 sm:$0xff]  }
 0x16c   :  { %2599 = vmatpush1.bf16.msra.mxu0 %v3621_v20 }
 0x16d   :  { %2600 = vmatprep.subr.bf16.mxu0 %v3626_v61 }
 0x16e   :  { %1518 = vmatpush1.bf16.msra.mxu1 %v3561_v47  ;;  %v3573_v47 = vld [vmem:[#allocation9 + $0x1a8] ss:$16 sps:$4 sm:$0xff]  }
 0x16f   :  { %1519 = vmatprep.subr.bf16.mxu1 %v3566_v57  ;;  %v3578_v57 = vld [vmem:[#allocation9 + $0x1cc] ss:$16 sps:$4 sm:$0xff]  }
 0x170   :  { %2601 = vmatpush1.bf16.msra.mxu0 %v3624_v49 }
 0x171   :  { %972 = vmatmul.mubr.bf16.gmra.mrb[52].mxu1 %v4446_v52  ;;  %2602 = vmatprep.subr.bf16.mxu0 %v3629_v13 }
 0x172   :  { %1520 = vmatpush1.bf16.msra.mxu1 %v3564_v14  ;;  %981 = vmatprep.mubr.bf16.mxu1 %v4450_v37  ;;  %v3627_v14 = vld [vmem:[#allocation11 + $0xf0] ss:$8 sps:$4 sm:$0xff]  }
 0x173   :  { %1521 = vmatprep.subr.bf16.mxu1 %v3569_v17  ;;  %v3581_v17 = vld [vmem:[#allocation9 + $0x1ec] ss:$16 sps:$4 sm:$0xff]  }
 0x174   :  { %2603 = vmatpush1.bf16.msra.mxu0 %v3627_v14 }
 0x176   :  { %1522 = vmatpush1.bf16.msra.mxu1 %v3567_v50 }
 0x177   :  { %1523 = vmatprep.subr.bf16.mxu1 %v3572_v21 }
 0x179   :  { %982 = vmatmul.mubr.bf16.gmra.mrb[56].mxu1 %v4462_v29 }
 0x17a   :  { %1524 = vmatpush1.bf16.msra.mxu1 %v3570_v56  ;;  %991 = vmatprep.mubr.bf16.mxu1 %v4466_v24 }
 0x17b   :  { %1525 = vmatprep.subr.bf16.mxu1 %v3575_v40 }
 0x17e   :  { %1526 = vmatpush1.bf16.msra.mxu1 %v3573_v47 }
 0x17f   :  { %1527 = vmatprep.subr.bf16.mxu1 %v3578_v57 }
 0x181   :  { %992 = vmatmul.mubr.bf16.gmra.mrb[60].mxu1 %v4474_v48 }
 0x182   :  { %1528 = vmatpush1.bf16.msra.mxu1 %v3576_v23  ;;  %1531 = vmatprep.mubr.bf16.mxu1 %v4362_v25  ;;  %v3632_v25 = vld [vmem:[#allocation11 + $0x104] ss:$8 sps:$4 sm:$0xff]  }
 0x183   :  { %1529 = vmatprep.subr.bf16.mxu1 %v3581_v17  ;;  %2685 = vmatprep.subr.bf16.mxu0 %v3632_v25 }
 0x186   :  { %1530 = vmatpush1.bf16.msra.mxu1 %v3579_v43 }
 0x189   :  { %1532 = vmatmul.mubr.bf16.vlgmr.msra.gmra.mrb[64].mxu1 %v4364_v30 }
 0x18a   :  { %1541 = vmatprep.mubr.bf16.mxu1 %v4367_v36 }
 0x191   :  { %1542 = vmatmul.mubr.bf16.gmra.mrb[68].mxu1 %v4388_v35 }
 0x192   :  { %1551 = vmatprep.mubr.bf16.mxu1 %v4384_v22 }
 0x199   :  { %1552 = vmatmul.mubr.bf16.gmra.mrb[72].mxu1 %v4398_v1 }
 0x19a   :  { %1561 = vmatprep.mubr.bf16.mxu1 %v4402_v19 }
 0x1a1   :  { %1562 = vmatmul.mubr.bf16.gmra.mrb[76].mxu1 %v4414_v62 }
 0x1a2   :  { %1571 = vmatprep.mubr.bf16.mxu1 %v4418_v18 }
 0x1a9   :  { %1572 = vmatmul.mubr.bf16.gmra.mrb[80].mxu1 %v4430_v46 }
 0x1aa   :  { %1581 = vmatprep.mubr.bf16.mxu1 %v4434_v12 }
 0x1b1   :  { %1582 = vmatmul.mubr.bf16.gmra.mrb[84].mxu1 %v4446_v52 }
 0x1b2   :  { %1591 = vmatprep.mubr.bf16.mxu1 %v4450_v37 }
 0x1b9   :  { %1592 = vmatmul.mubr.bf16.gmra.mrb[88].mxu1 %v4462_v29 }
 0x1ba   :  { %1601 = vmatprep.mubr.bf16.mxu1 %v4466_v24 }
 0x1c1   :  { %1602 = vmatmul.mubr.bf16.gmra.mrb[92].mxu1 %v4474_v48 }
 0x1dc   :  { %v4510_v30 = vpop.f32.mrb[0].mxu1  ;;  %v4512_v36 = vpop.f32.mrb[0].mxu0 }
 0x1dd   :  { %v3188_v22 = vmul.f32 -1.442695, %v4510_v30  ;;  %v4515_v35 = vpop.f32.mrb[1].mxu1  ;;  %v4517_v1 = vpop.f32.mrb[1].mxu0 }
 0x1de   :  { %v3189_v19 = vmul.f32 -1.442695, %v4515_v35  ;;  %v4520_v62 = vpop.f32.mrb[2].mxu1  ;;  %v4522_v18 = vpop.f32.mrb[2].mxu0 }
 0x1df   :  { %3710 = vpow2.f32 %v3188_v22  ;;  %v3192_v46 = vmul.f32 -1.442695, %v4520_v62  ;;  %v4525_v12 = vpop.f32.mrb[3].mxu1  ;;  %v4527_v52 = vpop.f32.mrb[3].mxu0 }
 0x1e0   :  { %3712 = vpow2.f32 %v3189_v19  ;;  %v3193_v37 = vmul.f32 -1.442695, %v4525_v12 }
 0x1e1   :  { %3714 = vpow2.f32 %v3192_v46 }
 0x1e2   :  { %3716 = vpow2.f32 %v3193_v37 }
 0x1e4   :  { %v4530_v29 = vpop.f32.mrb[4].mxu1  ;;  %v4532_v24 = vpop.f32.mrb[4].mxu0 }
 0x1e5   :  { %v3196_v48 = vmul.f32 -1.442695, %v4530_v29  ;;  %v4535_v33 = vpop.f32.mrb[5].mxu1  ;;  %v4537_v50 = vpop.f32.mrb[5].mxu0 }
 0x1e6   :  { %v3197_v21 = vmul.f32 -1.442695, %v4535_v33  ;;  %v4540_v51 = vpop.f32.mrb[6].mxu1  ;;  %v4542_v20 = vpop.f32.mrb[6].mxu0 }
 0x1e7   :  { %3718 = vpow2.f32 %v3196_v48  ;;  %v3200_v56 = vmul.f32 -1.442695, %v4540_v51  ;;  %v4545_v40 = vpop.f32.mrb[7].mxu1  ;;  %v4547_v61 = vpop.f32.mrb[7].mxu0 }
 0x1e8   :  { %3720 = vpow2.f32 %v3197_v21  ;;  %v3201_v49 = vmul.f32 -1.442695, %v4545_v40 }
 0x1e9   :  { %v3711_v47 = vpop.eup %3710  ;;  %3722 = vpow2.f32 %v3200_v56 }
 0x1ea   :  { %v3713_v57 = vpop.eup %3712  ;;  %v1804_v13 = vadd.f32 1.0, %v3711_v47  ;;  %3724 = vpow2.f32 %v3201_v49 }
 0x1eb   :  { %v3715_v23 = vpop.eup %3714  ;;  %v1805_v14 = vadd.f32 1.0, %v3713_v57 }
 0x1ec   :  { %v3717_v17 = vpop.eup %3716  ;;  %3726 = vrcp.f32 %v1804_v13  ;;  %v1808_v43 = vadd.f32 1.0, %v3715_v23  ;;  %v4550_v25 = vpop.f32.mrb[8].mxu1 }
 0x1ed   :  { %v4552_v22 = vpop.f32.mrb[8].mxu0  ;;  %3728 = vrcp.f32 %v1805_v14  ;;  %v1809_v19 = vadd.f32 1.0, %v3717_v17  ;;  %v3204_v46 = vmul.f32 -1.442695, %v4550_v25  ;;  %v4555_v37 = vpop.f32.mrb[9].mxu1 }
 0x1ee   :  { %v4557_v48 = vpop.f32.mrb[9].mxu0  ;;  %3730 = vrcp.f32 %v1808_v43  ;;  %v3205_v21 = vmul.f32 -1.442695, %v4555_v37  ;;  %v4560_v56 = vpop.f32.mrb[10].mxu1 }
 0x1ef   :  { %v4562_v49 = vpop.f32.mrb[10].mxu0  ;;  %3732 = vrcp.f32 %v1809_v19  ;;  %v3208_v47 = vmul.f32 -1.442695, %v4560_v56  ;;  %v4565_v57 = vpop.f32.mrb[11].mxu1 }
 0x1f0   :  { %v4567_v13 = vpop.f32.mrb[11].mxu0  ;;  %3734 = vpow2.f32 %v3204_v46  ;;  %v3209_v23 = vmul.f32 -1.442695, %v4565_v57 }
 0x1f1   :  { %v3719_v14 = vpop.eup %3718  ;;  %3736 = vpow2.f32 %v3205_v21 }
 0x1f2   :  { %v3721_v17 = vpop.eup %3720  ;;  %v1812_v43 = vadd.f32 1.0, %v3719_v14  ;;  %3738 = vpow2.f32 %v3208_v47 }
 0x1f3   :  { %v3723_v55 = vpop.eup %3722  ;;  %v1813_v53 = vadd.f32 1.0, %v3721_v17  ;;  %3740 = vpow2.f32 %v3209_v23 }
 0x1f4   :  { %v3725_v0 = vpop.eup %3724  ;;  %3742 = vrcp.f32 %v1812_v43  ;;  %v1816_v19 = vadd.f32 1.0, %v3723_v55  ;;  %v4570_v63 = vpop.f32.mrb[12].mxu1 }
 0x1f5   :  { %v4572_v34 = vpop.f32.mrb[12].mxu0  ;;  %3744 = vrcp.f32 %v1813_v53  ;;  %v1817_v28 = vadd.f32 1.0, %v3725_v0  ;;  %v3212_v46 = vmul.f32 -1.442695, %v4570_v63  ;;  %v4575_v42 = vpop.f32.mrb[13].mxu1 }
 0x1f6   :  { %v4577_v21 = vpop.f32.mrb[13].mxu0  ;;  %v3727_v14 = vpop.eup %3726  ;;  %3746 = vrcp.f32 %v1816_v19  ;;  %v3213_v47 = vmul.f32 -1.442695, %v4575_v42 }
 0x1f7   :  { %v4580_v23 = vpop.f32.mrb[14].mxu1  ;;  %v4582_v17 = vpop.f32.mrb[14].mxu0  ;;  %v1996_v43 = vmul.f32 %v3727_v14, %v4510_v30  ;;  %3748 = vrcp.f32 %v1817_v28 }
 0x1f8   :  { %v3729_v55 = vpop.eup %3728  ;;  %v3216_v53 = vmul.f32 -1.442695, %v4580_v23  ;;  %v4586_v0 = vpop.f32.mrb[15].mxu1  ;;  %3750 = vpow2.f32 %v3212_v46 }
 0x1f9   :  { %v4588_v41 = vpop.f32.mrb[15].mxu0  ;;  %v3731_v7 = vpop.eup %3730  ;;  %v1997_v2 = vmul.f32 %v3729_v55, %v4515_v35  ;;  %v3217_v19 = vmul.f32 -1.442695, %v4586_v0  ;;  %v2060_v15 = vmul.f32 %v1996_v43, %v4512_v36  ;;  %3752 = vpow2.f32 %v3213_v47 }
 0x1fa   :  { %v3733_v16 = vpop.eup %3732  ;;  %v2000_v58 = vmul.f32 %v3731_v7, %v4520_v62  ;;  %3754 = vpow2.f32 %v3216_v53  ;;  %v3630_v7 = vld [vmem:[#allocation11 + $0x100] ss:$8 sps:$4 sm:$0xff]  }
 0x1fb   :  { %v3735_v30 = vpop.eup %3734  ;;  %v2061_v28 = vmul.f32 %v1997_v2, %v4517_v1  ;;  %v2001_v14 = vmul.f32 %v3733_v16, %v4525_v12  ;;  %3756 = vpow2.f32 %v3217_v19 }
 0x1fc   :  { %v3737_v54 = vpop.eup %3736  ;;  %v2064_v60 = vmul.f32 %v2000_v58, %v4522_v18  ;;  %v1820_v59 = vadd.f32 1.0, %v3735_v30  ;;  %v4598_v39 = vpop.f32.mrb[16].mxu1 }
 0x1fd   :  { %v3739_v35 = vpop.eup %3738  ;;  %v2065_v46 = vmul.f32 %v2001_v14, %v4527_v52  ;;  %v1821_v55 = vadd.f32 1.0, %v3737_v54  ;;  %v4600_v36 = vpop.f32.mrb[16].mxu0  ;;  %v3220_v16 = vmul.f32 -1.442695, %v4598_v39  ;;  %v3635_v14 = vld [vmem:[#allocation11 + $0x114] ss:$8 sps:$4 sm:$0xff]  }
 0x1fe   :  { %v3741_v62 = vpop.eup %3740  ;;  %v2124_v47 = vpack.c.bf16 %v2064_v60, %v2060_v15  ;;  %3758 = vrcp.f32 %v1820_v59  ;;  %v1824_v2 = vadd.f32 1.0, %v3739_v35  ;;  %v4603_v1 = vpop.f32.mrb[17].mxu1 }
 0x1ff   :  { %v4605_v58 = vpop.f32.mrb[17].mxu0  ;;  %v3743_v18 = vpop.eup %3742  ;;  %v2125_v12 = vpack.c.bf16 %v2065_v46, %v2061_v28  ;;  %3760 = vrcp.f32 %v1821_v55  ;;  %v1825_v52 = vadd.f32 1.0, %v3741_v62  ;;  %v3221_v54 = vmul.f32 -1.442695, %v4603_v1 }
 0x200   :  { %v4608_v43 = vpop.f32.mrb[18].mxu1  ;;  %v4610_v53 = vpop.f32.mrb[18].mxu0  ;;  %v2004_v59 = vmul.f32 %v3743_v18, %v4530_v29  ;;  %3762 = vrcp.f32 %v1824_v2 }
 0x201   :  { %v3745_v19 = vpop.eup %3744  ;;  %v3224_v60 = vmul.f32 -1.442695, %v4608_v43  ;;  %v4614_v15 = vpop.f32.mrb[19].mxu1  ;;  %3764 = vrcp.f32 %v1825_v52  ;;  %2604 = vmatprep.mubr.bf16.mxu0 %v2125_v12  ;;  %v3638_v12 = vld [vmem:[#allocation11 + $0x124] ss:$8 sps:$4 sm:$0xff]  }
 0x202   :  { %v4616_v30 = vpop.f32.mrb[19].mxu0  ;;  %v3747_v28 = vpop.eup %3746  ;;  %v2005_v35 = vmul.f32 %v3745_v19, %v4535_v33  ;;  %v3225_v46 = vmul.f32 -1.442695, %v4614_v15  ;;  %v2068_v62 = vmul.f32 %v2004_v59, %v4532_v24  ;;  %3766 = vpow2.f32 %v3220_v16  ;;  %2605 = vmatmul.mubr.bf16.vlgmr.msra.gmra.mrb[32].mxu0 %v2124_v47 }
 0x203   :  { %v3749_v55 = vpop.eup %3748  ;;  %v2008_v29 = vmul.f32 %v3747_v28, %v4540_v51  ;;  %3768 = vpow2.f32 %v3221_v54  ;;  %2686 = vmatpush1.bf16.msra.mxu0 %v3630_v7 }
 0x204   :  { %v3751_v2 = vpop.eup %3750  ;;  %v2069_v18 = vmul.f32 %v2005_v35, %v4537_v50  ;;  %v2009_v38 = vmul.f32 %v3749_v55, %v4545_v40  ;;  %3770 = vpow2.f32 %v3224_v60  ;;  %2687 = vmatprep.subr.bf16.mxu0 %v3635_v14  ;;  %v4626_v47 = vpop.f32.mrb[20].mxu1  ;;  %v3636_v40 = vld [vmem:[#allocation11 + $0x120] ss:$8 sps:$4 sm:$0xff]  }
 0x205   :  { %v3753_v33 = vpop.eup %3752  ;;  %v2072_v52 = vmul.f32 %v2008_v29, %v4542_v20  ;;  %v1828_v19 = vadd.f32 1.0, %v3751_v2  ;;  %3772 = vpow2.f32 %v3225_v46  ;;  %v4628_v50 = vpop.f32.mrb[20].mxu0  ;;  %v3228_v20 = vmul.f32 -1.442695, %v4626_v47 }
 0x206   :  { %v3755_v24 = vpop.eup %3754  ;;  %v2073_v51 = vmul.f32 %v2009_v38, %v4547_v61  ;;  %v1829_v16 = vadd.f32 1.0, %v3753_v33  ;;  %v4631_v28 = vpop.f32.mrb[21].mxu1  ;;  %v3641_v33 = vld [vmem:[#allocation11 + $0x134] ss:$8 sps:$4 sm:$0xff]  }
 0x207   :  { %v3757_v54 = vpop.eup %3756  ;;  %v2128_v7 = vpack.c.bf16 %v2072_v52, %v2068_v62  ;;  %3774 = vrcp.f32 %v1828_v19  ;;  %v1832_v59 = vadd.f32 1.0, %v3755_v24  ;;  %v4633_v60 = vpop.f32.mrb[21].mxu0  ;;  %v3229_v61 = vmul.f32 -1.442695, %v4631_v28  ;;  %2688 = vmatpush1.bf16.msra.mxu0 %v3633_v45 }
 0x208   :  { %v2129_v14 = vpack.c.bf16 %v2073_v51, %v2069_v18  ;;  %3776 = vrcp.f32 %v1829_v16  ;;  %v1833_v38 = vadd.f32 1.0, %v3757_v54  ;;  %v4636_v35 = vpop.f32.mrb[22].mxu1  ;;  %v4638_v46 = vpop.f32.mrb[22].mxu0  ;;  %2689 = vmatprep.subr.bf16.mxu0 %v3638_v12  ;;  %v3639_v12 = vld [vmem:[#allocation11 + $0x130] ss:$8 sps:$4 sm:$0xff]  }
 0x209   :  { %v3759_v55 = vpop.eup %3758  ;;  %3778 = vrcp.f32 %v1832_v59  ;;  %v3232_v62 = vmul.f32 -1.442695, %v4636_v35  ;;  %v4641_v29 = vpop.f32.mrb[23].mxu1 }
 0x20a   :  { %v4643_v2 = vpop.f32.mrb[23].mxu0  ;;  %v3761_v18 = vpop.eup %3760  ;;  %v2012_v52 = vmul.f32 %v3759_v55, %v4550_v25  ;;  %3780 = vrcp.f32 %v1833_v38  ;;  %v3233_v19 = vmul.f32 -1.442695, %v4641_v29  ;;  %2614 = vmatprep.mubr.bf16.mxu0 %v2129_v14  ;;  %v3644_v14 = vld [vmem:[#allocation11 + $0x144] ss:$8 sps:$4 sm:$0xff]  }
 0x20b   :  { %v3763_v24 = vpop.eup %3762  ;;  %v2013_v45 = vmul.f32 %v3761_v18, %v4555_v37  ;;  %3782 = vpow2.f32 %v3228_v20  ;;  %2615 = vmatmul.mubr.bf16.gmra.mrb[36].mxu0 %v2128_v7 }
 0x20c   :  { %v3765_v51 = vpop.eup %3764  ;;  %v2076_v16 = vmul.f32 %v2012_v52, %v4552_v22  ;;  %v2016_v54 = vmul.f32 %v3763_v24, %v4560_v56  ;;  %3784 = vpow2.f32 %v3229_v61  ;;  %2690 = vmatpush1.bf16.msra.mxu0 %v3636_v40  ;;  %v4653_v20 = vpop.f32.mrb[24].mxu1 }
 0x20d   :  { %v3767_v59 = vpop.eup %3766  ;;  %v2077_v25 = vmul.f32 %v2013_v45, %v4557_v48  ;;  %v2017_v38 = vmul.f32 %v3765_v51, %v4565_v57  ;;  %3786 = vpow2.f32 %v3232_v62  ;;  %2691 = vmatprep.subr.bf16.mxu0 %v3641_v33  ;;  %v4655_v22 = vpop.f32.mrb[24].mxu0  ;;  %v3642_v57 = vld [vmem:[#allocation11 + $0x140] ss:$8 sps:$4 sm:$0xff]  }
 0x20e   :  { %v3769_v55 = vpop.eup %3768  ;;  %v2080_v37 = vmul.f32 %v2016_v54, %v4562_v49  ;;  %v1836_v7 = vadd.f32 1.0, %v3767_v59  ;;  %3788 = vpow2.f32 %v3233_v19  ;;  %v4658_v18 = vpop.f32.mrb[25].mxu1  ;;  %v3236_v49 = vmul.f32 -1.442695, %v4653_v20 }
 0x20f   :  { %v3771_v56 = vpop.eup %3770  ;;  %v2081_v40 = vmul.f32 %v2017_v38, %v4567_v13  ;;  %v1837_v61 = vadd.f32 1.0, %v3769_v55  ;;  %v4660_v48 = vpop.f32.mrb[25].mxu0  ;;  %v3237_v54 = vmul.f32 -1.442695, %v4658_v18 }
 0x210   :  { %v3773_v62 = vpop.eup %3772  ;;  %v2132_v33 = vpack.c.bf16 %v2080_v37, %v2076_v16  ;;  %3790 = vrcp.f32 %v1836_v7  ;;  %v1840_v52 = vadd.f32 1.0, %v3771_v56  ;;  %v4663_v19 = vpop.f32.mrb[26].mxu1  ;;  %2692 = vmatpush1.bf16.msra.mxu0 %v3639_v12  ;;  %v3647_v7 = vld [vmem:[#allocation11 + $0x154] ss:$8 sps:$4 sm:$0xff]  }
 0x211   :  { %v4665_v24 = vpop.f32.mrb[26].mxu0  ;;  %v3775_v45 = vpop.eup %3774  ;;  %v2133_v51 = vpack.c.bf16 %v2081_v40, %v2077_v25  ;;  %3792 = vrcp.f32 %v1837_v61  ;;  %v1841_v13 = vadd.f32 1.0, %v3773_v62  ;;  %2693 = vmatprep.subr.bf16.mxu0 %v3644_v14  ;;  %v3240_v37 = vmul.f32 -1.442695, %v4663_v19 }
 0x212   :  { %v4668_v59 = vpop.f32.mrb[27].mxu1  ;;  %v4670_v38 = vpop.f32.mrb[27].mxu0  ;;  %v2020_v55 = vmul.f32 %v3775_v45, %v4570_v63  ;;  %3794 = vrcp.f32 %v1840_v52  ;;  %v3645_v45 = vld [vmem:[#allocation11 + $0x150] ss:$8 sps:$4 sm:$0xff]  }
 0x213   :  { %v3777_v16 = vpop.eup %3776  ;;  %3796 = vrcp.f32 %v1841_v13  ;;  %v3241_v25 = vmul.f32 -1.442695, %v4668_v59  ;;  %2624 = vmatprep.mubr.bf16.mxu0 %v2133_v51 }
 0x214   :  { %v3779_v56 = vpop.eup %3778  ;;  %v2021_v12 = vmul.f32 %v3777_v16, %v4575_v42  ;;  %v2084_v61 = vmul.f32 %v2020_v55, %v4572_v34  ;;  %3798 = vpow2.f32 %v3236_v49  ;;  %2625 = vmatmul.mubr.bf16.gmra.mrb[40].mxu0 %v2132_v33  ;;  %v4681_v51 = vpop.f32.mrb[28].mxu1 }
 0x215   :  { %v3781_v40 = vpop.eup %3780  ;;  %v2024_v62 = vmul.f32 %v3779_v56, %v4580_v23  ;;  %3800 = vpow2.f32 %v3237_v54  ;;  %2694 = vmatpush1.bf16.msra.mxu0 %v3642_v57  ;;  %v4683_v34 = vpop.f32.mrb[28].mxu0  ;;  %v3650_v23 = vld [vmem:[#allocation11 + $0x164] ss:$8 sps:$4 sm:$0xff]   ;;  %v3648_v54 = vld [vmem:[#allocation11 + $0x160] ss:$8 sps:$4 sm:$0xff]  }
 0x216   :  { %v3783_v14 = vpop.eup %3782  ;;  %v2085_v63 = vmul.f32 %v2021_v12, %v4577_v21  ;;  %v2025_v52 = vmul.f32 %v3781_v40, %v4586_v0  ;;  %3802 = vpow2.f32 %v3240_v37  ;;  %2695 = vmatprep.subr.bf16.mxu0 %v3647_v7  ;;  %v4686_v0 = vpop.f32.mrb[29].mxu1  ;;  %v3244_v56 = vmul.f32 -1.442695, %v4681_v51 }
 0x217   :  { %v3785_v42 = vpop.eup %3784  ;;  %v2088_v13 = vmul.f32 %v2024_v62, %v4582_v17  ;;  %v1844_v16 = vadd.f32 1.0, %v3783_v14  ;;  %3804 = vpow2.f32 %v3241_v25  ;;  %v4688_v57 = vpop.f32.mrb[29].mxu0  ;;  %v3245_v25 = vmul.f32 -1.442695, %v4686_v0 }
 0x218   :  { %v3787_v33 = vpop.eup %3786  ;;  %v2089_v49 = vmul.f32 %v2025_v52, %v4588_v41  ;;  %v1845_v21 = vadd.f32 1.0, %v3785_v42  ;;  %v4691_v12 = vpop.f32.mrb[30].mxu1  ;;  %v3653_v42 = vld [vmem:[#allocation11 + $0x174] ss:$8 sps:$4 sm:$0xff]  }
 0x219   :  { %v3789_v55 = vpop.eup %3788  ;;  %v2136_v17 = vpack.c.bf16 %v2088_v13, %v2084_v61  ;;  %3806 = vrcp.f32 %v1844_v16  ;;  %v1848_v37 = vadd.f32 1.0, %v3787_v33  ;;  %v4693_v7 = vpop.f32.mrb[30].mxu0  ;;  %2696 = vmatpush1.bf16.msra.mxu0 %v3645_v45  ;;  %v3248_v61 = vmul.f32 -1.442695, %v4691_v12 }
 0x21a   :  { %v2137_v40 = vpack.c.bf16 %v2089_v49, %v2085_v63  ;;  %3808 = vrcp.f32 %v1845_v21  ;;  %v1849_v41 = vadd.f32 1.0, %v3789_v55  ;;  %v4696_v62 = vpop.f32.mrb[31].mxu1  ;;  %v4698_v14 = vpop.f32.mrb[31].mxu0  ;;  %2697 = vmatprep.subr.bf16.mxu0 %v3650_v23  ;;  %v3651_v23 = vld [vmem:[#allocation11 + $0x170] ss:$8 sps:$4 sm:$0xff]  }
 0x21b   :  { %v3791_v52 = vpop.eup %3790  ;;  %3810 = vrcp.f32 %v1848_v37  ;;  %v3249_v63 = vmul.f32 -1.442695, %v4696_v62 }
 0x21c   :  { %v3793_v13 = vpop.eup %3792  ;;  %v2028_v16 = vmul.f32 %v3791_v52, %v4598_v39  ;;  %3812 = vrcp.f32 %v1849_v41  ;;  %2634 = vmatprep.mubr.bf16.mxu0 %v2137_v40  ;;  %v4708_v40 = vpop.f32.mrb[32].mxu1 }
 0x21d   :  { %v3795_v33 = vpop.eup %3794  ;;  %v2029_v49 = vmul.f32 %v3793_v13, %v4603_v1  ;;  %3814 = vpow2.f32 %v3244_v56  ;;  %2635 = vmatmul.mubr.bf16.gmra.mrb[44].mxu0 %v2136_v17  ;;  %v3656_v1 = vld [vmem:[#allocation11 + $0x184] ss:$8 sps:$4 sm:$0xff]  }
 0x21e   :  { %v3797_v21 = vpop.eup %3796  ;;  %v2092_v45 = vmul.f32 %v2028_v16, %v4600_v36  ;;  %v2032_v55 = vmul.f32 %v3795_v33, %v4608_v43  ;;  %3816 = vpow2.f32 %v3245_v25  ;;  %2698 = vmatpush1.bf16.msra.mxu0 %v3648_v54  ;;  %v4711_v36 = vpop.f32.mrb[33].mxu1 }
 0x21f   :  { %v3799_v37 = vpop.eup %3798  ;;  %v2093_v39 = vmul.f32 %v2029_v49, %v4605_v58  ;;  %v2033_v41 = vmul.f32 %v3797_v21, %v4614_v15  ;;  %3818 = vpow2.f32 %v3248_v61  ;;  %2699 = vmatprep.subr.bf16.mxu0 %v3653_v42  ;;  %v4714_v13 = vpop.f32.mrb[34].mxu1 }
 0x220   :  { %v3801_v56 = vpop.eup %3800  ;;  %v2096_v17 = vmul.f32 %v2032_v55, %v4610_v53  ;;  %v1852_v52 = vadd.f32 1.0, %v3799_v37  ;;  %3820 = vpow2.f32 %v3249_v63  ;;  %v4716_v16 = vpop.f32.mrb[35].mxu1  ;;  %v3654_v63 = vld [vmem:[#allocation11 + $0x180] ss:$8 sps:$4 sm:$0xff]  }
 0x221   :  { %v3803_v43 = vpop.eup %3802  ;;  %v2097_v54 = vmul.f32 %v2033_v41, %v4616_v30  ;;  %v1853_v25 = vadd.f32 1.0, %v3801_v56  ;;  %v3659_v30 = vld [vmem:[#allocation11 + $0x194] ss:$8 sps:$4 sm:$0xff]  }
 0x222   :  { %v3805_v58 = vpop.eup %3804  ;;  %v2140_v15 = vpack.c.bf16 %v2096_v17, %v2092_v45  ;;  %3822 = vrcp.f32 %v1852_v52  ;;  %v1856_v61 = vadd.f32 1.0, %v3803_v43  ;;  %2700 = vmatpush1.bf16.msra.mxu0 %v3651_v23 }
 0x223   :  { %v3807_v42 = vpop.eup %3806  ;;  %v2141_v33 = vpack.c.bf16 %v2097_v54, %v2093_v39  ;;  %3824 = vrcp.f32 %v1853_v25  ;;  %v1857_v53 = vadd.f32 1.0, %v3805_v58  ;;  %2701 = vmatprep.subr.bf16.mxu0 %v3656_v1 }
 0x224   :  { %v3809_v49 = vpop.eup %3808  ;;  %v2036_v21 = vmul.f32 %v3807_v42, %v4626_v47  ;;  %3826 = vrcp.f32 %v1856_v61  ;;  %v4724_v17 = vpop.f32.mrb[36].mxu1  ;;  %v3657_v47 = vld [vmem:[#allocation11 + $0x190] ss:$8 sps:$4 sm:$0xff]  }
 0x225   :  { %v3811_v55 = vpop.eup %3810  ;;  %v2037_v37 = vmul.f32 %v3809_v49, %v4631_v28  ;;  %3828 = vrcp.f32 %v1857_v53  ;;  %2644 = vmatprep.mubr.bf16.mxu0 %v2141_v33  ;;  %v4727_v54 = vpop.f32.mrb[37].mxu1  ;;  %v3660_v53 = vld [vmem:[#allocation11 + $0x1a0] ss:$8 sps:$4 sm:$0xff]   ;;  %v3665_v49 = vld [vmem:[#allocation11 + $0x1b4] ss:$8 sps:$4 sm:$0xff]  }
 0x226   :  { %v3813_v45 = vpop.eup %3812  ;;  %v2100_v41 = vmul.f32 %v2036_v21, %v4628_v50  ;;  %v2040_v23 = vmul.f32 %v3811_v55, %v4636_v35  ;;  %2645 = vmatmul.mubr.bf16.gmra.mrb[48].mxu0 %v2140_v15  ;;  %v3662_v50 = vld [vmem:[#allocation11 + $0x1a4] ss:$8 sps:$4 sm:$0xff]   ;;  %v4730_v15 = vpop.f32.mrb[38].mxu1 }
 0x227   :  { %v3815_v39 = vpop.eup %3814  ;;  %v2101_v56 = vmul.f32 %v2037_v37, %v4633_v60  ;;  %v2041_v1 = vmul.f32 %v3813_v45, %v4641_v29  ;;  %2702 = vmatpush1.bf16.msra.mxu0 %v3654_v63  ;;  %v4732_v42 = vpop.f32.mrb[39].mxu1 }
 0x228   :  { %v3817_v52 = vpop.eup %3816  ;;  %v2104_v28 = vmul.f32 %v2040_v23, %v4638_v46  ;;  %v1860_v43 = vadd.f32 1.0, %v3815_v39  ;;  %2703 = vmatprep.subr.bf16.mxu0 %v3659_v30  ;;  %v3663_v39 = vld [vmem:[#allocation11 + $0x1b0] ss:$8 sps:$4 sm:$0xff]  }
 0x229   :  { %v3819_v25 = vpop.eup %3818  ;;  %v2105_v35 = vmul.f32 %v2041_v1, %v4643_v2  ;;  %v1861_v58 = vadd.f32 1.0, %v3817_v52 }
 0x22a   :  { %v3821_v60 = vpop.eup %3820  ;;  %v2144_v29 = vpack.c.bf16 %v2104_v28, %v2100_v41  ;;  %3830 = vrcp.f32 %v1860_v43  ;;  %v1864_v61 = vadd.f32 1.0, %v3819_v25  ;;  %v3666_v25 = vld [vmem:[#allocation11 + $0x1c0] ss:$8 sps:$4 sm:$0xff]  }
 0x22b   :  { %v2145_v33 = vpack.c.bf16 %v2105_v35, %v2101_v56  ;;  %3832 = vrcp.f32 %v1861_v58  ;;  %v1865_v46 = vadd.f32 1.0, %v3821_v60  ;;  %2704 = vmatpush1.bf16.msra.mxu0 %v3657_v47  ;;  %v3668_v47 = vld [vmem:[#allocation11 + $0x1c4] ss:$8 sps:$4 sm:$0xff]   ;;  %v3671_v35 = vld [vmem:[#allocation11 + $0x1d4] ss:$8 sps:$4 sm:$0xff]  }
 0x22c   :  { %v3823_v63 = vpop.eup %3822  ;;  %3834 = vrcp.f32 %v1864_v61  ;;  %2705 = vmatprep.subr.bf16.mxu0 %v3662_v50  ;;  %v4738_v23 = vpop.f32.mrb[40].mxu1 }
 0x22d   :  { %v3825_v21 = vpop.eup %3824  ;;  %v2044_v2 = vmul.f32 %v3823_v63, %v4653_v20  ;;  %3836 = vrcp.f32 %v1865_v46  ;;  %2654 = vmatprep.mubr.bf16.mxu0 %v2145_v33  ;;  %v4742_v20 = vpop.f32.mrb[41].mxu1 }
 0x22e   :  { %v3827_v30 = vpop.eup %3826  ;;  %v2045_v55 = vmul.f32 %v3825_v21, %v4658_v18  ;;  %2655 = vmatmul.mubr.bf16.gmra.mrb[52].mxu0 %v2144_v29  ;;  %v4745_v52 = vpop.f32.mrb[42].mxu1  ;;  %v3191_v21 = vmul.f32 -1.442695, %v4711_v36 }
 0x22f   :  { %v3829_v37 = vpop.eup %3828  ;;  %v2108_v45 = vmul.f32 %v2044_v2, %v4655_v22  ;;  %v2048_v41 = vmul.f32 %v3827_v30, %v4663_v19  ;;  %2706 = vmatpush1.bf16.msra.mxu0 %v3660_v53  ;;  %v4748_v28 = vpop.f32.mrb[43].mxu1  ;;  %v3672_v30 = vld [vmem:[#allocation11 + $0x1e0] ss:$8 sps:$4 sm:$0xff]  }
 0x230   :  { %v2109_v56 = vmul.f32 %v2045_v55, %v4660_v48  ;;  %v2049_v1 = vmul.f32 %v3829_v37, %v4668_v59  ;;  %2707 = vmatprep.subr.bf16.mxu0 %v3665_v49  ;;  %v3194_v55 = vmul.f32 -1.442695, %v4714_v13  ;;  %v3195_v37 = vmul.f32 -1.442695, %v4716_v16 }
 0x231   :  { %v2112_v18 = vmul.f32 %v2048_v41, %v4665_v24 }
 0x232   :  { %v2113_v22 = vmul.f32 %v2049_v1, %v4670_v38 }
 0x233   :  { %v2148_v19 = vpack.c.bf16 %v2112_v18, %v2108_v45  ;;  %2708 = vmatpush1.bf16.msra.mxu0 %v3663_v39  ;;  %v3675_v39 = vld [vmem:[#allocation11 + $0x1f0] ss:$8 sps:$4 sm:$0xff]  }
 0x234   :  { %v3831_v43 = vpop.eup %3830  ;;  %v2149_v50 = vpack.c.bf16 %v2113_v22, %v2109_v56  ;;  %2709 = vmatprep.subr.bf16.mxu0 %v3668_v47  ;;  %v4754_v61 = vpop.f32.mrb[44].mxu1  ;;  %v3199_v56 = vmul.f32 -1.442695, %v4727_v54  ;;  %v3202_v47 = vmul.f32 -1.442695, %v4730_v15 }
 0x235   :  { %v3833_v48 = vpop.eup %3832  ;;  %v2052_v59 = vmul.f32 %v3831_v43, %v4681_v51  ;;  %v4758_v53 = vpop.f32.mrb[45].mxu1  ;;  %v3669_v51 = vld [vmem:[#allocation11 + $0x1d0] ss:$8 sps:$4 sm:$0xff]   ;;  %v3203_v22 = vmul.f32 -1.442695, %v4732_v42 }
 0x236   :  { %v3835_v58 = vpop.eup %3834  ;;  %v2053_v60 = vmul.f32 %v3833_v48, %v4686_v0  ;;  %2664 = vmatprep.mubr.bf16.mxu0 %v2149_v50  ;;  %v3190_v0 = vmul.f32 -1.442695, %v4708_v40  ;;  %v4762_v49 = vpop.f32.mrb[46].mxu1 }
 0x237   :  { %v3837_v24 = vpop.eup %3836  ;;  %v2116_v29 = vmul.f32 %v2052_v59, %v4683_v34  ;;  %v2056_v38 = vmul.f32 %v3835_v58, %v4691_v12  ;;  %2665 = vmatmul.mubr.bf16.gmra.mrb[56].mxu0 %v2148_v19  ;;  %v3674_v34 = vld [vmem:[#allocation11 + $0x1e4] ss:$8 sps:$4 sm:$0xff]   ;;  %v4766_v2 = vpop.f32.mrb[47].mxu1  ;;  %v3207_v59 = vmul.f32 -1.442695, %v4742_v20 }
 0x238   :  { %v2117_v33 = vmul.f32 %v2053_v60, %v4688_v57  ;;  %v2057_v46 = vmul.f32 %v3837_v24, %v4696_v62  ;;  %2710 = vmatpush1.bf16.msra.mxu0 %v3666_v25  ;;  %3838 = vpow2.f32 %v3190_v0  ;;  %v3206_v25 = vmul.f32 -1.442695, %v4738_v23 }
 0x239   :  { %v2120_v63 = vmul.f32 %v2056_v38, %v4693_v7  ;;  %2711 = vmatprep.subr.bf16.mxu0 %v3671_v35  ;;  %v3677_v7 = vld [vmem:[#allocation11 + $0x1f4] ss:$8 sps:$4 sm:$0xff]   ;;  %3840 = vpow2.f32 %v3191_v21 }
 0x23a   :  { %v2121_v12 = vmul.f32 %v2057_v46, %v4698_v14  ;;  %v3198_v14 = vmul.f32 -1.442695, %v4724_v17  ;;  %3842 = vpow2.f32 %v3194_v55  ;;  %v3211_v46 = vmul.f32 -1.442695, %v4748_v28 }
 0x23b   :  { %v2152_v57 = vpack.c.bf16 %v2120_v63, %v2116_v29  ;;  %3844 = vpow2.f32 %v3195_v37 }
 0x23c   :  { %v2153_v62 = vpack.c.bf16 %v2121_v12, %v2117_v33  ;;  %2712 = vmatpush1.bf16.msra.mxu0 %v3669_v51  ;;  %v4770_v45 = vpop.f32.mrb[48].mxu1  ;;  %3846 = vpow2.f32 %v3198_v14  ;;  %v3210_v33 = vmul.f32 -1.442695, %v4745_v52 }
 0x23d   :  { %2713 = vmatprep.subr.bf16.mxu0 %v3674_v34  ;;  %v4773_v41 = vpop.f32.mrb[49].mxu1  ;;  %3848 = vpow2.f32 %v3199_v56  ;;  %v3215_v56 = vmul.f32 -1.442695, %v4758_v53 }
 0x23e   :  { %2674 = vmatprep.mubr.bf16.mxu0 %v2153_v62  ;;  %v4776_v1 = vpop.f32.mrb[50].mxu1  ;;  %3850 = vpow2.f32 %v3202_v47  ;;  %v3218_v47 = vmul.f32 -1.442695, %v4762_v49 }
 0x23f   :  { %2675 = vmatmul.mubr.bf16.gmra.mrb[60].mxu0 %v2152_v57  ;;  %v4779_v18 = vpop.f32.mrb[51].mxu1  ;;  %3852 = vpow2.f32 %v3203_v22  ;;  %v3214_v57 = vmul.f32 -1.442695, %v4754_v61 }
 0x240   :  { %2714 = vmatpush1.bf16.msra.mxu0 %v3672_v30  ;;  %3854 = vpow2.f32 %v3206_v25  ;;  %v3219_v25 = vmul.f32 -1.442695, %v4766_v2 }
 0x241   :  { %2715 = vmatprep.subr.bf16.mxu0 %v3677_v7  ;;  %3856 = vpow2.f32 %v3207_v59 }
 0x242   :  { %v3839_v19 = vpop.eup %3838 }
 0x243   :  { %v3841_v50 = vpop.eup %3840  ;;  %v1806_v58 = vadd.f32 1.0, %v3839_v19 }
 0x244   :  { %2716 = vmatpush1.bf16.msra.mxu0 %v3675_v39  ;;  %v4782_v43 = vpop.f32.mrb[52].mxu1  ;;  %v3843_v24 = vpop.eup %3842  ;;  %v1807_v29 = vadd.f32 1.0, %v3841_v50 }
 0x245   :  { %v4785_v48 = vpop.f32.mrb[53].mxu1  ;;  %v3845_v38 = vpop.eup %3844  ;;  %3858 = vrcp.f32 %v1806_v58  ;;  %v1810_v63 = vadd.f32 1.0, %v3843_v24  ;;  %v3222_v24 = vmul.f32 -1.442695, %v4770_v45  ;;  %v3230_v27 = vmul.f32 -1.442695, %v4782_v43 }
 0x246   :  { %v4788_v35 = vpop.f32.mrb[54].mxu1  ;;  %v3847_v51 = vpop.eup %3846  ;;  %3860 = vrcp.f32 %v1807_v29  ;;  %v1811_v34 = vadd.f32 1.0, %v3845_v38 }
 0x247   :  { %v4790_v60 = vpop.f32.mrb[55].mxu1  ;;  %v3849_v0 = vpop.eup %3848  ;;  %3862 = vpow2.f32 %v3210_v33  ;;  %v1814_v30 = vadd.f32 1.0, %v3847_v51 }
 0x248   :  { %v3851_v21 = vpop.eup %3850  ;;  %3864 = vpow2.f32 %v3211_v46  ;;  %v1815_v7 = vadd.f32 1.0, %v3849_v0 }
 0x249   :  { %3866 = vrcp.f32 %v1810_v63  ;;  %v3853_v14 = vpop.eup %3852  ;;  %v1818_v39 = vadd.f32 1.0, %v3851_v21  ;;  %v3223_v21 = vmul.f32 -1.442695, %v4773_v41 }
 0x24a   :  { %3868 = vrcp.f32 %v1811_v34  ;;  %v3855_v22 = vpop.eup %3854  ;;  %v1819_v19 = vadd.f32 1.0, %v3853_v14 }
 0x24b   :  { %3870 = vpow2.f32 %v3214_v57  ;;  %v3857_v50 = vpop.eup %3856  ;;  %v1822_v33 = vadd.f32 1.0, %v3855_v22 }
 0x24c   :  { %v4794_v12 = vpop.f32.mrb[56].mxu1  ;;  %3872 = vrcp.f32 %v1814_v30  ;;  %v1823_v63 = vadd.f32 1.0, %v3857_v50  ;;  %v3226_v30 = vmul.f32 -1.442695, %v4776_v1  ;;  %v3227_v50 = vmul.f32 -1.442695, %v4779_v18 }
 0x24d   :  { %v4797_v62 = vpop.f32.mrb[57].mxu1  ;;  %3874 = vrcp.f32 %v1815_v7 }
 0x24e   :  { %v4799_v55 = vpop.f32.mrb[58].mxu1  ;;  %3876 = vrcp.f32 %v1818_v39 }
 0x24f   :  { %v4801_v37 = vpop.f32.mrb[59].mxu1  ;;  %v3859_v58 = vpop.eup %3858  ;;  %3878 = vpow2.f32 %v3215_v56 }
 0x250   :  { %v3861_v38 = vpop.eup %3860  ;;  %3880 = vpow2.f32 %v3218_v47  ;;  %v1998_v56 = vmul.f32 %v3859_v58, %v4708_v40  ;;  %v3231_v58 = vmul.f32 -1.442695, %v4785_v48 }
 0x251   :  { %v3863_v51 = vpop.eup %3862  ;;  %3882 = vrcp.f32 %v1819_v19  ;;  %v1999_v19 = vmul.f32 %v3861_v38, %v4711_v36 }
 0x252   :  { %v3865_v34 = vpop.eup %3864  ;;  %3884 = vpow2.f32 %v3219_v25  ;;  %v1826_v14 = vadd.f32 1.0, %v3863_v51 }
 0x253   :  { %v3867_v57 = vpop.eup %3866  ;;  %3886 = vpow2.f32 %v3222_v24  ;;  %v1827_v47 = vadd.f32 1.0, %v3865_v34 }
 0x254   :  { %v4806_v59 = vpop.f32.mrb[60].mxu1  ;;  %v3869_v7 = vpop.eup %3868  ;;  %3888 = vrcp.f32 %v1822_v33  ;;  %v2002_v24 = vmul.f32 %v3867_v57, %v4714_v13 }
 0x255   :  { %v4809_v29 = vpop.f32.mrb[61].mxu1  ;;  %v3871_v39 = vpop.eup %3870  ;;  %3890 = vrcp.f32 %v1823_v63  ;;  %v2003_v40 = vmul.f32 %v3869_v7, %v4716_v16 }
 0x256   :  { %v4811_v46 = vpop.f32.mrb[62].mxu1  ;;  %v3873_v22 = vpop.eup %3872  ;;  %3892 = vpow2.f32 %v3223_v21  ;;  %v1830_v31 = vadd.f32 1.0, %v3871_v39  ;;  %v3235_v39 = vmul.f32 -1.442695, %v4790_v60 }
 0x257   :  { %v4813_v0 = vpop.f32.mrb[63].mxu1  ;;  %v3875_v44 = vpop.eup %3874  ;;  %3894 = vpow2.f32 %v3226_v30  ;;  %v3234_v30 = vmul.f32 -1.442695, %v4788_v35 }
 0x258   :  { %v3877_v26 = vpop.eup %3876  ;;  %3896 = vrcp.f32 %v1826_v14 }
 0x259   :  { %v3879_v38 = vpop.eup %3878  ;;  %3898 = vrcp.f32 %v1827_v47 }
 0x25a   :  { %v3881_v32 = vpop.eup %3880  ;;  %3900 = vpow2.f32 %v3227_v50  ;;  %v1831_v16 = vadd.f32 1.0, %v3879_v38 }
 0x25b   :  { %v3883_v57 = vpop.eup %3882  ;;  %3902 = vpow2.f32 %v3230_v27 }
 0x25c   :  { %v1533_v25 = vpop.f32.mrb[64].mxu1  ;;  %3904 = vpow2.f32 %v3231_v58 }
 0x25d   :  { %v2062_v33 = vmul.f32 %v1998_v56, %v1533_v25  ;;  %v1535_v51 = vpop.f32.mrb[65].mxu1  ;;  %v3885_v25 = vpop.eup %3884  ;;  %3906 = vrcp.f32 %v1830_v31 }
 0x25e   :  { %v2063_v63 = vmul.f32 %v1999_v19, %v1535_v51  ;;  %v1537_v36 = vpop.f32.mrb[66].mxu1  ;;  %v3887_v14 = vpop.eup %3886  ;;  %v2006_v19 = vmul.f32 %v3873_v22, %v4724_v17  ;;  %v1834_v51 = vadd.f32 1.0, %v3881_v32  ;;  %3908 = vpow2.f32 %v3234_v30 }
 0x25f   :  { %v2066_v34 = vmul.f32 %v2002_v24, %v1537_v36  ;;  %v1539_v21 = vpop.f32.mrb[67].mxu1  ;;  %v3889_v47 = vpop.eup %3888  ;;  %v2007_v24 = vmul.f32 %v3875_v44, %v4727_v54  ;;  %v2011_v17 = vmul.f32 %v3883_v57, %v4732_v42  ;;  %3910 = vrcp.f32 %v1831_v16 }
 0x260   :  { %v2067_v13 = vmul.f32 %v2003_v40, %v1539_v21  ;;  %v3891_v27 = vpop.eup %3890  ;;  %v2010_v40 = vmul.f32 %v3877_v26, %v4730_v15  ;;  %v1838_v32 = vadd.f32 1.0, %v3887_v14  ;;  %3912 = vrcp.f32 %v1834_v51 }
 0x261   :  { %v2126_v56 = vpack.c.bf16 %v2066_v34, %v2062_v33  ;;  %v1835_v33 = vadd.f32 1.0, %v3885_v25  ;;  %v3238_v54 = vmul.f32 -1.442695, %v4794_v12  ;;  %3914 = vpow2.f32 %v3235_v39 }
 0x262   :  { %v2127_v7 = vpack.c.bf16 %v2067_v13, %v2063_v63  ;;  %v3893_v63 = vpop.eup %3892  ;;  %v3239_v26 = vmul.f32 -1.442695, %v4797_v62  ;;  %v3242_v14 = vmul.f32 -1.442695, %v4799_v55  ;;  %v2015_v51 = vmul.f32 %v3891_v27, %v4742_v20 }
 0x263   :  { %v3895_v31 = vpop.eup %3894  ;;  %3916 = vrcp.f32 %v1835_v33  ;;  %v1839_v30 = vadd.f32 1.0, %v3893_v63 }
 0x264   :  { %v1543_v50 = vpop.f32.mrb[68].mxu1  ;;  %2717 = vmatprep.mubr.bf16.mxu0 %v2127_v7  ;;  %v3897_v21 = vpop.eup %3896  ;;  %3918 = vrcp.f32 %v1838_v32  ;;  %v1842_v57 = vadd.f32 1.0, %v3895_v31  ;;  %v2014_v7 = vmul.f32 %v3889_v47, %v4738_v23 }
 0x265   :  { %v2070_v36 = vmul.f32 %v2006_v19, %v1543_v50  ;;  %v1545_v58 = vpop.f32.mrb[69].mxu1  ;;  %2718 = vmatmul.mubr.bf16.vlgmr.msra.gmra.mrb[32].mxu0 %v2126_v56  ;;  %v3899_v13 = vpop.eup %3898  ;;  %3920 = vpow2.f32 %v3238_v54  ;;  %v2018_v50 = vmul.f32 %v3897_v21, %v4745_v52  ;;  %v3246_v52 = vmul.f32 -1.442695, %v4806_v59 }
 0x266   :  { %v2071_v22 = vmul.f32 %v2007_v24, %v1545_v58  ;;  %v1547_v44 = vpop.f32.mrb[70].mxu1  ;;  %v3901_v42 = vpop.eup %3900  ;;  %3922 = vpow2.f32 %v3239_v26  ;;  %v3243_v24 = vmul.f32 -1.442695, %v4801_v37  ;;  %v2019_v23 = vmul.f32 %v3899_v13, %v4748_v28 }
 0x267   :  { %v2074_v38 = vmul.f32 %v2010_v40, %v1547_v44  ;;  %v1549_v34 = vpop.f32.mrb[71].mxu1  ;;  %v3903_v16 = vpop.eup %3902  ;;  %3924 = vrcp.f32 %v1839_v30  ;;  %v1843_v40 = vadd.f32 1.0, %v3901_v42  ;;  %v3250_v30 = vmul.f32 -1.442695, %v4811_v46 }
 0x268   :  { %v2075_v15 = vmul.f32 %v2011_v17, %v1549_v34  ;;  %v3905_v19 = vpop.eup %3904  ;;  %3926 = vrcp.f32 %v1842_v57  ;;  %v1846_v47 = vadd.f32 1.0, %v3903_v16  ;;  %v3251_v57 = vmul.f32 -1.442695, %v4813_v0 }
 0x269   :  { %v2130_v56 = vpack.c.bf16 %v2074_v38, %v2070_v36  ;;  %v3907_v58 = vpop.eup %3906  ;;  %v1847_v27 = vadd.f32 1.0, %v3905_v19  ;;  %3928 = vpow2.f32 %v3242_v14  ;;  %v3247_v38 = vmul.f32 -1.442695, %v4809_v29 }
 0x26a   :  { %v2131_v25 = vpack.c.bf16 %v2075_v15, %v2071_v22  ;;  %v3909_v20 = vpop.eup %3908  ;;  %3930 = vpow2.f32 %v3243_v24  ;;  %v2022_v13 = vmul.f32 %v3907_v58, %v4754_v61 }
 0x26b   :  { %v3911_v44 = vpop.eup %3910  ;;  %3932 = vrcp.f32 %v1843_v40  ;;  %v1850_v21 = vadd.f32 1.0, %v3909_v20 }
 0x26c   :  { %v1553_v39 = vpop.f32.mrb[72].mxu1  ;;  %2727 = vmatprep.mubr.bf16.mxu0 %v2131_v25  ;;  %v3913_v54 = vpop.eup %3912  ;;  %3934 = vrcp.f32 %v1846_v47  ;;  %v2023_v42 = vmul.f32 %v3911_v44, %v4758_v53 }
 0x26d   :  { %v2078_v33 = vmul.f32 %v2014_v7, %v1553_v39  ;;  %v1555_v36 = vpop.f32.mrb[73].mxu1  ;;  %2728 = vmatmul.mubr.bf16.gmra.mrb[36].mxu0 %v2130_v56  ;;  %v3915_v28 = vpop.eup %3914  ;;  %3936 = vrcp.f32 %v1847_v27  ;;  %v2026_v7 = vmul.f32 %v3913_v54, %v4762_v49 }
 0x26e   :  { %v2079_v63 = vmul.f32 %v2015_v51, %v1555_v36  ;;  %v1557_v17 = vpop.f32.mrb[74].mxu1  ;;  %v3917_v15 = vpop.eup %3916  ;;  %3938 = vpow2.f32 %v3246_v52  ;;  %v1851_v14 = vadd.f32 1.0, %v3915_v28 }
 0x26f   :  { %v2082_v32 = vmul.f32 %v2018_v50, %v1557_v17  ;;  %v1559_v22 = vpop.f32.mrb[75].mxu1  ;;  %v3919_v56 = vpop.eup %3918  ;;  %3940 = vpow2.f32 %v3247_v38  ;;  %v2027_v24 = vmul.f32 %v3917_v15, %v4766_v2 }
 0x270   :  { %v2083_v31 = vmul.f32 %v2019_v23, %v1559_v22  ;;  %v3921_v16 = vpop.eup %3920  ;;  %3942 = vrcp.f32 %v1850_v21  ;;  %v2030_v27 = vmul.f32 %v3919_v56, %v4770_v45 }
 0x271   :  { %v2134_v34 = vpack.c.bf16 %v2082_v32, %v2078_v33  ;;  %v3923_v61 = vpop.eup %3922  ;;  %3944 = vpow2.f32 %v3250_v30 }
 0x272   :  { %v2135_v26 = vpack.c.bf16 %v2083_v31, %v2079_v63  ;;  %v3925_v53 = vpop.eup %3924  ;;  %3946 = vpow2.f32 %v3251_v57  ;;  %v1854_v63 = vadd.f32 1.0, %v3921_v16  ;;  %v1855_v2 = vadd.f32 1.0, %v3923_v61 }
 0x273   :  { %v3927_v36 = vpop.eup %3926  ;;  %3948 = vrcp.f32 %v1851_v14  ;;  %v2031_v22 = vmul.f32 %v3925_v53, %v4773_v41 }
 0x274   :  { %v1563_v25 = vpop.f32.mrb[76].mxu1  ;;  %2737 = vmatprep.mubr.bf16.mxu0 %v2135_v26  ;;  %v3929_v23 = vpop.eup %3928  ;;  %v2034_v54 = vmul.f32 %v3927_v36, %v4776_v1  ;;  %3950 = vrcp.f32 %v1854_v63 }
 0x275   :  { %v2086_v19 = vmul.f32 %v2022_v13, %v1563_v25  ;;  %v1565_v51 = vpop.f32.mrb[77].mxu1  ;;  %2738 = vmatmul.mubr.bf16.gmra.mrb[40].mxu0 %v2134_v34  ;;  %v3931_v47 = vpop.eup %3930  ;;  %v1858_v44 = vadd.f32 1.0, %v3929_v23  ;;  %3952 = vrcp.f32 %v1855_v2 }
 0x276   :  { %v2087_v39 = vmul.f32 %v2023_v42, %v1565_v51  ;;  %v1567_v50 = vpop.f32.mrb[78].mxu1  ;;  %v3933_v20 = vpop.eup %3932  ;;  %v1859_v38 = vadd.f32 1.0, %v3931_v47 }
 0x277   :  { %v2090_v40 = vmul.f32 %v2026_v7, %v1567_v50  ;;  %v1569_v33 = vpop.f32.mrb[79].mxu1  ;;  %v3935_v32 = vpop.eup %3934  ;;  %v2035_v26 = vmul.f32 %v3933_v20, %v4779_v18  ;;  %3954 = vrcp.f32 %v1858_v44 }
 0x278   :  { %v2091_v58 = vmul.f32 %v2027_v24, %v1569_v33  ;;  %v3937_v31 = vpop.eup %3936  ;;  %3956 = vrcp.f32 %v1859_v38 }
 0x279   :  { %v2138_v49 = vpack.c.bf16 %v2090_v40, %v2086_v19  ;;  %v3939_v21 = vpop.eup %3938  ;;  %v2038_v19 = vmul.f32 %v3935_v32, %v4782_v43  ;;  %v2039_v51 = vmul.f32 %v3937_v31, %v4785_v48 }
 0x27a   :  { %v2139_v17 = vpack.c.bf16 %v2091_v58, %v2087_v39  ;;  %v3941_v13 = vpop.eup %3940  ;;  %v1862_v16 = vadd.f32 1.0, %v3939_v21 }
 0x27b   :  { %v3943_v56 = vpop.eup %3942  ;;  %v1863_v18 = vadd.f32 1.0, %v3941_v13 }
 0x27c   :  { %v1573_v52 = vpop.f32.mrb[80].mxu1  ;;  %2747 = vmatprep.mubr.bf16.mxu0 %v2139_v17  ;;  %v3945_v57 = vpop.eup %3944  ;;  %v2042_v39 = vmul.f32 %v3943_v56, %v4788_v35  ;;  %3958 = vrcp.f32 %v1862_v16 }
 0x27d   :  { %v2094_v34 = vmul.f32 %v2030_v27, %v1573_v52  ;;  %v1575_v28 = vpop.f32.mrb[81].mxu1  ;;  %2748 = vmatmul.mubr.bf16.gmra.mrb[44].mxu0 %v2138_v49  ;;  %v3947_v25 = vpop.eup %3946  ;;  %v1866_v61 = vadd.f32 1.0, %v3945_v57  ;;  %3960 = vrcp.f32 %v1863_v18 }
 0x27e   :  { %v2095_v15 = vmul.f32 %v2031_v22, %v1575_v28  ;;  %v1577_v45 = vpop.f32.mrb[82].mxu1  ;;  %v3949_v14 = vpop.eup %3948  ;;  %v1867_v50 = vadd.f32 1.0, %v3947_v25 }
 0x27f   :  { %v2098_v30 = vmul.f32 %v2034_v54, %v1577_v45  ;;  %v1579_v41 = vpop.f32.mrb[83].mxu1  ;;  %v2043_v33 = vmul.f32 %v3949_v14, %v4790_v60  ;;  %v3951_v49 = vpop.eup %3950  ;;  %3962 = vrcp.f32 %v1866_v61 }
 0x280   :  { %v2099_v42 = vmul.f32 %v2035_v26, %v1579_v41  ;;  %v3953_v47 = vpop.eup %3952  ;;  %3964 = vrcp.f32 %v1867_v50  ;;  %v2046_v27 = vmul.f32 %v3951_v49, %v4794_v12  ;;  %v4963_v49 = vld [vmem:[#allocation19_spill] sm:$0xff] }
 0x281   :  { %v2142_v1 = vpack.c.bf16 %v2098_v30, %v2094_v34  ;;  %v3955_v17 = vpop.eup %3954  ;;  %v2047_v2 = vmul.f32 %v3953_v47, %v4797_v62 }
 0x282   :  { %v2143_v7 = vpack.c.bf16 %v2099_v42, %v2095_v15  ;;  %v3957_v20 = vpop.eup %3956  ;;  %v2050_v32 = vmul.f32 %v3955_v17, %v4799_v55 }
 0x283   :  { %v2051_v52 = vmul.f32 %v3957_v20, %v4801_v37 }
 0x284   :  { %v1583_v24 = vpop.f32.mrb[84].mxu1  ;;  %2757 = vmatprep.mubr.bf16.mxu0 %v2143_v7 }
 0x285   :  { %v2102_v53 = vmul.f32 %v2038_v19, %v1583_v24  ;;  %v1585_v40 = vpop.f32.mrb[85].mxu1  ;;  %2758 = vmatmul.mubr.bf16.gmra.mrb[48].mxu0 %v2142_v1 }
 0x286   :  { %v2103_v36 = vmul.f32 %v2039_v51, %v1585_v40  ;;  %v1587_v58 = vpop.f32.mrb[86].mxu1  ;;  %v3959_v28 = vpop.eup %3958 }
 0x287   :  { %v2106_v23 = vmul.f32 %v2042_v39, %v1587_v58  ;;  %v1589_v43 = vpop.f32.mrb[87].mxu1  ;;  %v3961_v26 = vpop.eup %3960  ;;  %v2054_v13 = vmul.f32 %v3959_v28, %v4806_v59 }
 0x288   :  { %v2107_v48 = vmul.f32 %v2043_v33, %v1589_v43  ;;  %v2055_v55 = vmul.f32 %v3961_v26, %v4809_v29  ;;  %v4970_v26 = vld [vmem:[#allocation22_spill] sm:$0xff] }
 0x289   :  { %v2146_v63 = vpack.c.bf16 %v2106_v23, %v2102_v53  ;;  %v3963_v12 = vpop.eup %3962 }
 0x28a   :  { %v2147_v35 = vpack.c.bf16 %v2107_v48, %v2103_v36  ;;  %v3965_v62 = vpop.eup %3964  ;;  %v2058_v41 = vmul.f32 %v3963_v12, %v4811_v46 }
 0x28b   :  { %v2059_v42 = vmul.f32 %v3965_v62, %v4813_v0  ;;  %v4971_v62 = vld [vmem:[#allocation27_spill] sm:$0xff] }
 0x28c   :  { %v1593_v60 = vpop.f32.mrb[88].mxu1  ;;  %2767 = vmatprep.mubr.bf16.mxu0 %v2147_v35  ;;  %v4965_v35 = vld [vmem:[#allocation17_spill] sm:$0xff] }
 0x28d   :  { %v2110_v22 = vmul.f32 %v2046_v27, %v1593_v60  ;;  %v1595_v44 = vpop.f32.mrb[89].mxu1  ;;  %2768 = vmatmul.mubr.bf16.gmra.mrb[52].mxu0 %v2146_v63  ;;  %v4964_v63 = vld [vmem:[#allocation20_spill] sm:$0xff] }
 0x28e   :  { %v2111_v31 = vmul.f32 %v2047_v2, %v1595_v44  ;;  %v1597_v54 = vpop.f32.mrb[90].mxu1  ;;  %v4966_v2 = vld [vmem:[#allocation18_spill] sm:$0xff] }
 0x28f   :  { %v2114_v38 = vmul.f32 %v2050_v32, %v1597_v54  ;;  %v1599_v34 = vpop.f32.mrb[91].mxu1  ;;  %v4967_v32 = vld [vmem:[#allocation23_spill] sm:$0xff] }
 0x290   :  { %v2115_v21 = vmul.f32 %v2051_v52, %v1599_v34  ;;  %v4968_v52 = vld [vmem:[#allocation24_spill] sm:$0xff] }
 0x291   :  { %v2150_v15 = vpack.c.bf16 %v2114_v38, %v2110_v22  ;;  %v4969_v38 = vld [vmem:[#allocation21_spill] sm:$0xff] }
 0x292   :  { %v2151_v45 = vpack.c.bf16 %v2115_v21, %v2111_v31 }
 0x294   :  { %v1603_v30 = vpop.f32.mrb[92].mxu1  ;;  %2777 = vmatprep.mubr.bf16.mxu0 %v2151_v45 }
 0x295   :  { %v2118_v37 = vmul.f32 %v2054_v13, %v1603_v30  ;;  %v1605_v56 = vpop.f32.mrb[93].mxu1  ;;  %2778 = vmatmul.mubr.bf16.gmra.mrb[56].mxu0 %v2150_v15  ;;  %v4972_v30 = vld [vmem:[#allocation28_spill] sm:$0xff] }
 0x296   :  { %v2119_v57 = vmul.f32 %v2055_v55, %v1605_v56  ;;  %v1607_v1 = vpop.f32.mrb[94].mxu1  ;;  %v4973_v56 = vld [vmem:[#allocation25_spill] sm:$0xff] }
 0x297   :  { %v2122_v25 = vmul.f32 %v2058_v41, %v1607_v1  ;;  %v1609_v16 = vpop.f32.mrb[95].mxu1 }
 0x298   :  { %v2123_v7 = vmul.f32 %v2059_v42, %v1609_v16 }
 0x299   :  { %v2154_v14 = vpack.c.bf16 %v2122_v25, %v2118_v37  ;;  %v4974_v25 = vld [vmem:[#allocation26_spill] sm:$0xff] }
 0x29a   :  { %v2155_v19 = vpack.c.bf16 %v2123_v7, %v2119_v57 }
 0x29c   :  { %2787 = vmatprep.mubr.bf16.mxu0 %v2155_v19  ;;  %v4975_v19 = vld [vmem:[#allocation31_spill] sm:$0xff] }
 0x29d   :  { %2788 = vmatmul.mubr.bf16.gmra.mrb[60].mxu0 %v2154_v14 }
 0x338   :  { %v2719_v59 = vpop.f32.mrb[32].mxu0 }
 0x339   :  { %v2897_v29 = vadd.f32 %v2719_v59, %v4218_v3  ;;  %v2721_v18 = vpop.f32.mrb[33].mxu0 }
 0x33a   :  { %v2898_v46 = vadd.f32 %v2721_v18, %v4220_v4  ;;  %v2723_v51 = vpop.f32.mrb[34].mxu0  ;;  %v4976_v18 = vld [vmem:[#allocation32_spill] sm:$0xff] }
 0x33b   :  { %v2899_v61 = vadd.f32 %v2723_v51, %v4226_v8  ;;  %v2725_v24 = vpop.f32.mrb[35].mxu0 }
 0x33c   :  { %v3332_v0 = vpack.c.bf16 %v2898_v46, %v2897_v29  ;;  %v2900_v39 = vadd.f32 %v2725_v24, %v4228_v9 }
 0x33e   :  { %3025 = vst [vmem:[#allocation12] sm:$0xff] %v3332_v0  ;;  %v3333_v50 = vpack.c.bf16 %v2900_v39, %v2899_v61  ;;  %v4977_v61 = vld [vmem:[#allocation29_spill] sm:$0xff] }
 0x340   :  { %3026 = vst [vmem:[#allocation12 + $0x8] sm:$0xff] %v3333_v50  ;;  %v2729_v53 = vpop.f32.mrb[36].mxu0  ;;  %v4978_v50 = vld [vmem:[#allocation30_spill] sm:$0xff] }
 0x341   :  { %v2901_v40 = vadd.f32 %v2729_v53, %v4222_v5  ;;  %v2731_v33 = vpop.f32.mrb[37].mxu0 }
 0x342   :  { %v2902_v36 = vadd.f32 %v2731_v33, %v4224_v6  ;;  %v2733_v3 = vpop.f32.mrb[38].mxu0 }
 0x343   :  { %v2903_v58 = vadd.f32 %v2733_v3, %v4230_v10  ;;  %v2735_v4 = vpop.f32.mrb[39].mxu0 }
 0x344   :  { %v3334_v23 = vpack.c.bf16 %v2902_v36, %v2901_v40  ;;  %v2904_v8 = vadd.f32 %v2735_v4, %v4232_v11  ;;  %v4979_v36 = vld [vmem:[#allocation35_spill] sm:$0xff]  ;;  %v4980_v4 = vld [vmem:[#allocation36_spill] sm:$0xff] }
 0x346   :  { %3027 = vst [vmem:[#allocation12 + $0x10] sm:$0xff] %v3334_v23  ;;  %v3335_v43 = vpack.c.bf16 %v2904_v8, %v2903_v58 }
 0x348   :  { %3028 = vst [vmem:[#allocation12 + $0x18] sm:$0xff] %v3335_v43  ;;  %v2739_v9 = vpop.f32.mrb[40].mxu0  ;;  %v4981_v43 = vld [vmem:[#allocation33_spill] sm:$0xff] }
 0x349   :  { %v2905_v48 = vadd.f32 %v2739_v9, %v4963_v49  ;;  %v2741_v47 = vpop.f32.mrb[41].mxu0 }
 0x34a   :  { %v2906_v17 = vadd.f32 %v2741_v47, %v4964_v63  ;;  %v2743_v5 = vpop.f32.mrb[42].mxu0  ;;  %v4982_v47 = vld [vmem:[#allocation34_spill] sm:$0xff] }
 0x34b   :  { %v2907_v20 = vadd.f32 %v2743_v5, %v4965_v35  ;;  %v2745_v6 = vpop.f32.mrb[43].mxu0  ;;  %v4983_v35 = vld [vmem:[#allocation39_spill] sm:$0xff] }
 0x34c   :  { %v3336_v27 = vpack.c.bf16 %v2906_v17, %v2905_v48  ;;  %v2908_v10 = vadd.f32 %v2745_v6, %v4966_v2 }
 0x34e   :  { %3029 = vst [vmem:[#allocation12 + $0x20] sm:$0xff] %v3336_v27  ;;  %v3337_v60 = vpack.c.bf16 %v2908_v10, %v2907_v20  ;;  %v4984_v27 = vld [vmem:[#allocation40_spill] sm:$0xff] }
 0x350   :  { %3030 = vst [vmem:[#allocation12 + $0x28] sm:$0xff] %v3337_v60  ;;  %v2749_v11 = vpop.f32.mrb[44].mxu0  ;;  %v4985_v60 = vld [vmem:[#allocation37_spill] sm:$0xff] }
 0x351   :  { %v2909_v22 = vadd.f32 %v2749_v11, %v4967_v32  ;;  %v2751_v44 = vpop.f32.mrb[45].mxu0 }
 0x352   :  { %v2910_v31 = vadd.f32 %v2751_v44, %v4968_v52  ;;  %v2753_v54 = vpop.f32.mrb[46].mxu0  ;;  %v4986_v44 = vld [vmem:[#allocation38_spill] sm:$0xff] }
 0x353   :  { %v2911_v34 = vadd.f32 %v2753_v54, %v4969_v38  ;;  %v2755_v28 = vpop.f32.mrb[47].mxu0 }
 0x354   :  { %v3338_v21 = vpack.c.bf16 %v2910_v31, %v2909_v22  ;;  %v2912_v15 = vadd.f32 %v2755_v28, %v4970_v26 }
 0x356   :  { %3031 = vst [vmem:[#allocation12 + $0x30] sm:$0xff] %v3338_v21  ;;  %v3339_v12 = vpack.c.bf16 %v2912_v15, %v2911_v34 }
 0x358   :  { %3032 = vst [vmem:[#allocation12 + $0x38] sm:$0xff] %v3339_v12  ;;  %v2759_v45 = vpop.f32.mrb[48].mxu0 }
 0x359   :  { %v2913_v13 = vadd.f32 %v2759_v45, %v4971_v62  ;;  %v2761_v55 = vpop.f32.mrb[49].mxu0 }
 0x35a   :  { %v2914_v41 = vadd.f32 %v2761_v55, %v4972_v30  ;;  %v2763_v37 = vpop.f32.mrb[50].mxu0 }
 0x35b   :  { %v2915_v42 = vadd.f32 %v2763_v37, %v4973_v56  ;;  %v2765_v57 = vpop.f32.mrb[51].mxu0 }
 0x35c   :  { %v3340_v1 = vpack.c.bf16 %v2914_v41, %v2913_v13  ;;  %v2916_v16 = vadd.f32 %v2765_v57, %v4974_v25 }
 0x35e   :  { %3033 = vst [vmem:[#allocation12 + $0x40] sm:$0xff] %v3340_v1  ;;  %v3341_v7 = vpack.c.bf16 %v2916_v16, %v2915_v42 }
 0x360   :  { %3034 = vst [vmem:[#allocation12 + $0x48] sm:$0xff] %v3341_v7  ;;  %v2769_v14 = vpop.f32.mrb[52].mxu0 }
 0x361   :  { %v2917_v59 = vadd.f32 %v2769_v14, %v4975_v19  ;;  %v2771_v29 = vpop.f32.mrb[53].mxu0 }
 0x362   :  { %v2918_v46 = vadd.f32 %v2771_v29, %v4976_v18  ;;  %v2773_v51 = vpop.f32.mrb[54].mxu0 }
 0x363   :  { %v2919_v24 = vadd.f32 %v2773_v51, %v4977_v61  ;;  %v2775_v0 = vpop.f32.mrb[55].mxu0 }
 0x364   :  { %v3342_v39 = vpack.c.bf16 %v2918_v46, %v2917_v59  ;;  %v2920_v53 = vadd.f32 %v2775_v0, %v4978_v50 }
 0x366   :  { %3035 = vst [vmem:[#allocation12 + $0x50] sm:$0xff] %v3342_v39  ;;  %v3343_v40 = vpack.c.bf16 %v2920_v53, %v2919_v24 }
 0x368   :  { %3036 = vst [vmem:[#allocation12 + $0x58] sm:$0xff] %v3343_v40  ;;  %v2779_v33 = vpop.f32.mrb[56].mxu0 }
 0x369   :  { %v2921_v3 = vadd.f32 %v2779_v33, %v4979_v36  ;;  %v2781_v58 = vpop.f32.mrb[57].mxu0 }
 0x36a   :  { %v2922_v23 = vadd.f32 %v2781_v58, %v4980_v4  ;;  %v2783_v8 = vpop.f32.mrb[58].mxu0 }
 0x36b   :  { %v2923_v9 = vadd.f32 %v2783_v8, %v4981_v43  ;;  %v2785_v49 = vpop.f32.mrb[59].mxu0 }
 0x36c   :  { %v3344_v48 = vpack.c.bf16 %v2922_v23, %v2921_v3  ;;  %v2924_v63 = vadd.f32 %v2785_v49, %v4982_v47 }
 0x36e   :  { %3037 = vst [vmem:[#allocation12 + $0x60] sm:$0xff] %v3344_v48  ;;  %v3345_v17 = vpack.c.bf16 %v2924_v63, %v2923_v9 }
 0x370   :  { %3038 = vst [vmem:[#allocation12 + $0x68] sm:$0xff] %v3345_v17  ;;  %v2789_v5 = vpop.f32.mrb[60].mxu0 }
 0x371   :  { %v2925_v20 = vadd.f32 %v2789_v5, %v4983_v35  ;;  %v2791_v6 = vpop.f32.mrb[61].mxu0 }
 0x372   :  { %v2926_v2 = vadd.f32 %v2791_v6, %v4984_v27  ;;  %v2793_v10 = vpop.f32.mrb[62].mxu0 }
 0x373   :  { %v2927_v11 = vadd.f32 %v2793_v10, %v4985_v60  ;;  %v2795_v32 = vpop.f32.mrb[63].mxu0 }
 0x374   :  { %v3346_v22 = vpack.c.bf16 %v2926_v2, %v2925_v20  ;;  %v2928_v52 = vadd.f32 %v2795_v32, %v4986_v44 }
 0x376   :  { %3039 = vst [vmem:[#allocation12 + $0x70] sm:$0xff] %v3346_v22  ;;  %v3347_v31 = vpack.c.bf16 %v2928_v52, %v2927_v11 }
 0x378   :  { %3040 = vst [vmem:[#allocation12 + $0x78] sm:$0xff] %v3347_v31 }
 0x379   :  { %4087 = shalt.err (!%p4084_p2)
}
 0x37a   :  { %s4088_s7 = scalar_lea.hbm %s4914_s5, 2048 }
 0x37b   :  { %p4089_p3 = scmp.ne.s32.totalorder %s4914_s5, %s4088_s7  ;;  %p4092_p4 = scmp.lt.u32.totalorder %s4088_s7, %s4914_s5 }
 0x37d   :  { %p4094_p5 = pnand %p4092_p4, %p4089_p3 }
 0x37f   :  { %4097 = shalt.err (!%p4094_p5)
}
 0x380   :  { %3052 = dma.vmem_to_hbm [thread:$0]  %s3047_s17, 2048, %s4914_s5, [#allocation5], %s4111_s3, %s4111_s3, %s4112_s28  }
 0x381   :  { %4104 = dma.done.wait [#allocation5], 2048  }
 0x382   :  { %4105 = vsyncadd [#allocation5], 4294965248 }
 0x383   :  { %3056 = vsyncpa [#allocation4], 1 }
 0x384   :  { %3057 = vsyncpa [#allocation7], 1 }
 0x385   :  { %3058 = vsyncpa [#allocation10], 1 }
 0x386   :  { %3059 = vsyncpa [#allocation5], 1 }

</bundles_post_ra>
